<compile_context>
chip_gen: v6e
topology: v6e:2x2x1
jax: 0.10.0
libtpu: 0.0.40
codegen_flags: <defaults>
</compile_context>

<pallas_src>
import math
import jax
import jax.numpy as jnp
from jax import lax
from jax.experimental import pallas as pl
from jax.experimental.pallas import tpu as pltpu


# ---------------------------------------------------------------------------
# In-kernel helpers (traced inside the Pallas kernel body)
# ---------------------------------------------------------------------------
def _layernorm(x, gamma, beta):
    # mean / biased variance over the last dim, eps = 1e-10 (matches PyTorch ref)
    mean = jnp.mean(x, axis=-1, keepdims=True)
    var = jnp.mean((x - mean) ** 2, axis=-1, keepdims=True)
    out = (x - mean) * lax.rsqrt(var + 1e-10)          # rsqrt -> EUP slot
    return gamma * out + beta


def _attend(xq, kh, vh, wq, bq, wc, bc, bias, n_head):
    # xq:  (Tq, D)     f32 query rows
    # kh:  (H, Sk, dh) bf16 cached keys   (head-major, built once per batch)
    # vh:  (H, Sk, dh) bf16 cached values
    # bias:(Tq, Sk)    f32 additive mask bias (0 keep / -1e9 masked)
    # wq / bq already carry the 1/sqrt(dh) softmax scale (folded on the host).
    Tq, D = xq.shape
    dh = D // n_head
    bf16, f32 = jnp.bfloat16, jnp.float32

    q = jnp.dot(xq.astype(bf16), wq, preferred_element_type=f32) + bq     # (Tq, D)
    qh = q.astype(bf16).reshape(Tq, n_head, dh).transpose(1, 0, 2)        # (H, Tq, dh)

    # TODO(synk): for very long sequences a flash-style K-block loop with an
    # online softmax would bound the (H, Tq, Sk) score tensor (v7x VMEM).
    s = jnp.einsum('hqd,hkd->hqk', qh, kh,
                   preferred_element_type=f32)                            # (H, Tq, Sk)
    s = s + bias[None, :, :]

    # softmax (f32 elementwise, reciprocal on the EUP)
    s = s - jnp.max(s, axis=-1, keepdims=True)
    e = jnp.exp(s)
    p = e * pl.reciprocal(jnp.sum(e, axis=-1, keepdims=True), approx=True)

    o = jnp.einsum('hqk,hkd->hqd', p.astype(bf16), vh,
                   preferred_element_type=f32)                            # (H, Tq, dh)
    o = o.transpose(1, 0, 2).reshape(Tq, D)                               # (Tq, D)
    return jnp.dot(o.astype(bf16), wc, preferred_element_type=f32) + bc


# ---------------------------------------------------------------------------
# Pallas kernel: one (batch, query-tile) block per grid step.
# The q axis is the inner "arbitrary" axis; K/V caches are built at q == 0.
# ---------------------------------------------------------------------------
def _decoder_layer_kernel(n_head,
                          x_dec_q_ref, x_dec_full_ref, x_enc_ref,
                          trg_bias_ref, src_bias_ref,
                          # self-attention params
                          wq1, bq1, wk1, bk1, wv1, bv1, wc1, bc1, g1, be1,
                          # cross-attention params
                          wq2, bq2, wk2, bk2, wv2, bv2, wc2, bc2, g2, be2,
                          # feed-forward + final norm params
                          w1, b1, w2, b2, g3, be3,
                          o_ref,
                          kv_self_ref, kv_cross_ref):
    bf16, f32 = jnp.bfloat16, jnp.float32
    H = n_head

    # ---- K/V caches: computed once per batch index, reused by all q tiles ----
    @pl.when(pl.program_id(1) == 0)
    def _():
        def project(ctx, wk, bk, wv, bv, cache_ref):
            Sk, D = ctx.shape
            dh = D // H
            k = jnp.dot(ctx, wk[...], preferred_element_type=f32) + bk[...]
            v = jnp.dot(ctx, wv[...], preferred_element_type=f32) + bv[...]
            cache_ref[0] = k.astype(bf16).reshape(Sk, H, dh).transpose(1, 0, 2)
            cache_ref[1] = v.astype(bf16).reshape(Sk, H, dh).transpose(1, 0, 2)

        project(x_dec_full_ref[0].astype(bf16), wk1, bk1, wv1, bv1, kv_self_ref)
        project(x_enc_ref[0].astype(bf16), wk2, bk2, wv2, bv2, kv_cross_ref)

    xq = x_dec_q_ref[0]                                   # (TQ, D) query rows
    trg_bias = trg_bias_ref[0].astype(f32)                # (TQ, S)
    src_bias = src_bias_ref[0].astype(f32)                # (TQ, Se)

    # ---- masked self-attention + add & norm (dropout = identity, eval) ----
    residual = xq
    attn = _attend(xq, kv_self_ref[0], kv_self_ref[1],
                   wq1[...], bq1[...], wc1[...], bc1[...], trg_bias, H)
    x = _layernorm(attn + residual, g1[...], be1[...])

    # ---- encoder-decoder attention + add & norm ----
    residual = x
    attn = _attend(x, kv_cross_ref[0], kv_cross_ref[1],
                   wq2[...], bq2[...], wc2[...], bc2[...], src_bias, H)
    x = _layernorm(attn + residual, g2[...], be2[...])

    # ---- position-wise feed-forward + add & norm ----
    residual = x
    h = jnp.dot(x.astype(bf16), w1[...], preferred_element_type=f32) + b1[...]
    h = jnp.maximum(h, 0.0)
    h = jnp.dot(h.astype(bf16), w2[...], preferred_element_type=f32) + b2[...]
    x = _layernorm(h + residual, g3[...], be3[...])

    o_ref[0] = x.astype(o_ref.dtype)


# ---------------------------------------------------------------------------
# Wrapper
# ---------------------------------------------------------------------------
def _pick_tq(S):
    # Fixed MXU-native query tile; the tail block (if any) is padded/masked by
    # Pallas (grid uses pl.cdiv). 256 is also reasonable on v6e/v7x.
    return S if S <= 128 else 128


def decoder_layer(x_encoder, x_decoder, src_mask, trg_mask, params, n_head):
    B, S, D = x_decoder.shape
    Se = x_encoder.shape[1]
    dh = D // n_head
    TQ = _pick_tq(S)
    n_q = pl.cdiv(S, TQ)
    scale = 1.0 / math.sqrt(dh)

    bf16, f32 = jnp.bfloat16, jnp.float32

    # --- host-side weight prep: bf16 matmul weights, f32 biases / LN params.
    #     The softmax scale is folded into the Q projection weights/bias. ---
    weights = [
        (params["wq1"] * scale).astype(bf16), (params["bq1"] * scale).astype(f32),
        params["wk1"].astype(bf16), params["bk1"].astype(f32),
        params["wv1"].astype(bf16), params["bv1"].astype(f32),
        params["wc1"].astype(bf16), params["bc1"].astype(f32),
        params["g1"].astype(f32), params["be1"].astype(f32),
        (params["wq2"] * scale).astype(bf16), (params["bq2"] * scale).astype(f32),
        params["wk2"].astype(bf16), params["bk2"].astype(f32),
        params["wv2"].astype(bf16), params["bv2"].astype(f32),
        params["wc2"].astype(bf16), params["bc2"].astype(f32),
        params["g2"].astype(f32), params["be2"].astype(f32),
        params["w1"].astype(bf16), params["b1"].astype(f32),
        params["w2"].astype(bf16), params["b2"].astype(f32),
        params["g3"].astype(f32), params["be3"].astype(f32),
    ]

    # --- host-side mask -> additive bias (bf16): hoists compare/select out of
    #     the kernel and halves mask DMA traffic vs f32 masks ---
    # TODO(synk): for a known-causal trg_mask this could be generated in-kernel
    # with broadcasted_iota and skip the O(B*S^2) DMA stream entirely.
    trg_bias = jnp.where(trg_mask == 0, -1e9, 0.0).astype(bf16)   # (B, S, S)
    src_bias = jnp.where(src_mask == 0, -1e9, 0.0).astype(bf16)   # (B, S, Se)

    kernel = lambda *refs: _decoder_layer_kernel(n_head, *refs)

    def build(single_buffer_weights):
        def wspec(shape):
            kwargs = {}
            if single_buffer_weights:
                # Grid-invariant blocks: never re-fetched -> one VMEM buffer
                # (halves the replicated-weight footprint; matters on v7x).
                kwargs["pipeline_mode"] = pl.Buffered(1)
            return pl.BlockSpec(shape, lambda b, q: tuple(0 for _ in shape),
                                **kwargs)

        in_specs = [
            pl.BlockSpec((1, TQ, D), lambda b, q: (b, q, 0)),    # query rows tile
            pl.BlockSpec((1, S, D), lambda b, q: (b, 0, 0)),     # self-attn K/V src
            pl.BlockSpec((1, Se, D), lambda b, q: (b, 0, 0)),    # cross-attn K/V src
            pl.BlockSpec((1, TQ, S), lambda b, q: (b, q, 0)),    # trg additive bias
            pl.BlockSpec((1, TQ, Se), lambda b, q: (b, q, 0)),   # src additive bias
        ] + [wspec(w.shape) for w in weights]

        return pl.pallas_call(
            kernel,
            out_shape=jax.ShapeDtypeStruct((B, S, D), jnp.float32),
            grid_spec=pltpu.PrefetchScalarGridSpec(
                num_scalar_prefetch=0,
                grid=(B, n_q),
                in_specs=in_specs,
                out_specs=pl.BlockSpec((1, TQ, D), lambda b, q: (b, q, 0)),
                scratch_shapes=[
                    pltpu.VMEM((2, n_head, S, dh), bf16),    # self-attn K/V cache
                    pltpu.VMEM((2, n_head, Se, dh), bf16),   # cross-attn K/V cache
                ]),
            compiler_params=pltpu.CompilerParams(
                # batch stays "parallel" (megacore); q must be "arbitrary" so the
                # per-batch K/V cache built at q == 0 is reused sequentially.
                dimension_semantics=("parallel", "arbitrary"),
                vmem_limit_bytes=64 * 1024 * 1024),
        )

    args = (x_decoder, x_decoder, x_encoder, trg_bias, src_bias, *weights)
    try:
        return build(True)(*args)
    except Exception:
        # Fallback for jax versions whose main pipeline rejects Buffered(1).
        return build(False)(*args)


# ---------------------------------------------------------------------------
# Pure-JAX reference (mirrors the PyTorch forward exactly, f32)
# ---------------------------------------------------------------------------
def _ref_decoder_layer(x_enc, x_dec, src_mask, trg_mask, p, n_head):
    def ln(x, g, b):
        m = jnp.mean(x, -1, keepdims=True)
        v = jnp.mean((x - m) ** 2, -1, keepdims=True)
        return g * (x - m) / jnp.sqrt(v + 1e-10) + b

    def mha(xq, xk, xv, wq, bq, wk, bk, wv, bv, wc, bc, mask):
        B, Sq, D = xq.shape
        Sk = xk.shape[1]
        dh = D // n_head
        q = (xq @ wq + bq).reshape(B, Sq, n_head, dh).transpose(0, 2, 1, 3)
        k = (xk @ wk + bk).reshape(B, Sk, n_head, dh).transpose(0, 2, 1, 3)
        v = (xv @ wv + bv).reshape(B, Sk, n_head, dh).transpose(0, 2, 1, 3)
        s = q @ k.transpose(0, 1, 3, 2) / math.sqrt(dh)
        s = jnp.where(mask[:, None, :, :] == 0, -1e9, s)
        s = jax.nn.softmax(s, axis=-1)
        o = (s @ v).transpose(0, 2, 1, 3).reshape(B, Sq, D)
        return o @ wc + bc

    x = x_dec
    x = ln(mha(x, x, x, p["wq1"], p["bq1"], p["wk1"], p["bk1"],
               p["wv1"], p["bv1"], p["wc1"], p["bc1"], trg_mask) + x,
           p["g1"], p["be1"])
    x = ln(mha(x, x_enc, x_enc, p["wq2"], p["bq2"], p["wk2"], p["bk2"],
               p["wv2"], p["bv2"], p["wc2"], p["bc2"], src_mask) + x,
           p["g2"], p["be2"])
    h = jnp.maximum(x @ p["w1"] + p["b1"], 0.0) @ p["w2"] + p["b2"]
    return ln(h + x, p["g3"], p["be3"])


# ---------------------------------------------------------------------------
# Main
# ---------------------------------------------------------------------------
if __name__ == "__main__":
    B, S, Se, D, H, FFN = 2, 8, 8, 32, 4, 64

    key = jax.random.PRNGKey(0)
    keys = jax.random.split(key, 20)

    def rnd(k, shape, scale=0.1):
        return (scale * jax.random.normal(k, shape)).astype(jnp.float32)

    # Deterministic synthetic parameters. nn.Linear(in,out) stored as (in,out)
    # so forward is x @ W + b; biases / LN params kept as (1, dim) for lanes.
    params = {
        # self-attention
        "wq1": rnd(keys[0], (D, D)), "bq1": rnd(keys[1], (1, D)),
        "wk1": rnd(keys[2], (D, D)), "bk1": rnd(keys[3], (1, D)),
        "wv1": rnd(keys[4], (D, D)), "bv1": rnd(keys[5], (1, D)),
        "wc1": rnd(keys[6], (D, D)), "bc1": rnd(keys[7], (1, D)),
        "g1": jnp.ones((1, D), jnp.float32), "be1": jnp.zeros((1, D), jnp.float32),
        # cross-attention
        "wq2": rnd(keys[8], (D, D)), "bq2": rnd(keys[9], (1, D)),
        "wk2": rnd(keys[10], (D, D)), "bk2": rnd(keys[11], (1, D)),
        "wv2": rnd(keys[12], (D, D)), "bv2": rnd(keys[13], (1, D)),
        "wc2": rnd(keys[14], (D, D)), "bc2": rnd(keys[15], (1, D)),
        "g2": jnp.ones((1, D), jnp.float32), "be2": jnp.zeros((1, D), jnp.float32),
        # feed-forward + final norm
        "w1": rnd(keys[16], (D, FFN)), "b1": rnd(keys[17], (1, FFN)),
        "w2": rnd(keys[18], (FFN, D)), "b2": rnd(keys[19], (1, D)),
        "g3": jnp.ones((1, D), jnp.float32), "be3": jnp.zeros((1, D), jnp.float32),
    }

    xk1, xk2 = jax.random.split(jax.random.PRNGKey(1))
    x_encoder = jax.random.normal(xk1, (B, Se, D), jnp.float32)
    x_decoder = jax.random.normal(xk2, (B, S, D), jnp.float32)

    # causal target mask, all-ones source mask (1 = keep, 0 = mask)
    trg_mask = jnp.broadcast_to(
        jnp.tril(jnp.ones((S, S), jnp.float32)), (B, S, S))
    src_mask = jnp.ones((B, S, Se), jnp.float32)

    out = decoder_layer(x_encoder, x_decoder, src_mask, trg_mask, params, H)
    out = jax.block_until_ready(out)

    ref = _ref_decoder_layer(x_encoder, x_decoder, src_mask, trg_mask, params, H)
    assert out.shape == (B, S, D)
    # bf16 MXU operands + approx reciprocal -> slightly looser tolerance than f32
    assert jnp.allclose(out, ref, atol=5e-2, rtol=5e-2), "mismatch vs reference"

    # TODO(synk): dropout layers are identity here (inference mode); training-mode
    # dropout would need pltpu.prng_seed/prng_random_bits inside the kernel.
    # TODO(synk): a bf16 output (out_shape dtype bfloat16) would halve writeback
    # on v5e if the surrounding model accepts it; kept f32 to match the reference.
    print("KERNEL_OK")
</pallas_src>

<mosaic_0001>
module attributes {stable_mosaic.version = 11 : i64} {
  func.func @_lambda_(%arg0: i32, %arg1: i32, %arg2: memref<1x8x32xf32, #tpu.memory_space<vmem>>, %arg3: memref<1x8x32xf32, #tpu.memory_space<vmem>>, %arg4: memref<1x8x32xf32, #tpu.memory_space<vmem>>, %arg5: memref<1x8x8xbf16, #tpu.memory_space<vmem>>, %arg6: memref<1x8x8xbf16, #tpu.memory_space<vmem>>, %arg7: memref<32x32xbf16, #tpu.memory_space<vmem>>, %arg8: memref<1x32xf32, #tpu.memory_space<vmem>>, %arg9: memref<32x32xbf16, #tpu.memory_space<vmem>>, %arg10: memref<1x32xf32, #tpu.memory_space<vmem>>, %arg11: memref<32x32xbf16, #tpu.memory_space<vmem>>, %arg12: memref<1x32xf32, #tpu.memory_space<vmem>>, %arg13: memref<32x32xbf16, #tpu.memory_space<vmem>>, %arg14: memref<1x32xf32, #tpu.memory_space<vmem>>, %arg15: memref<1x32xf32, #tpu.memory_space<vmem>>, %arg16: memref<1x32xf32, #tpu.memory_space<vmem>>, %arg17: memref<32x32xbf16, #tpu.memory_space<vmem>>, %arg18: memref<1x32xf32, #tpu.memory_space<vmem>>, %arg19: memref<32x32xbf16, #tpu.memory_space<vmem>>, %arg20: memref<1x32xf32, #tpu.memory_space<vmem>>, %arg21: memref<32x32xbf16, #tpu.memory_space<vmem>>, %arg22: memref<1x32xf32, #tpu.memory_space<vmem>>, %arg23: memref<32x32xbf16, #tpu.memory_space<vmem>>, %arg24: memref<1x32xf32, #tpu.memory_space<vmem>>, %arg25: memref<1x32xf32, #tpu.memory_space<vmem>>, %arg26: memref<1x32xf32, #tpu.memory_space<vmem>>, %arg27: memref<32x64xbf16, #tpu.memory_space<vmem>>, %arg28: memref<1x64xf32, #tpu.memory_space<vmem>>, %arg29: memref<64x32xbf16, #tpu.memory_space<vmem>>, %arg30: memref<1x32xf32, #tpu.memory_space<vmem>>, %arg31: memref<1x32xf32, #tpu.memory_space<vmem>>, %arg32: memref<1x32xf32, #tpu.memory_space<vmem>>, %arg33: memref<1x8x32xf32, #tpu.memory_space<vmem>>, %arg34: memref<2x4x8x8xbf16, #tpu.memory_space<vmem>>, %arg35: memref<2x4x8x8xbf16, #tpu.memory_space<vmem>>) attributes {dimension_semantics = [#tpu.dimension_semantics<parallel>, #tpu.dimension_semantics<arbitrary>], iteration_bounds = array<i64: 2, 1>, scalar_prefetch = 0 : i64, scratch_operands = 2 : i64, tpu.core_type = #tpu.core_type<tc>, window_params = [{transform_indices = @transform_0, window_bounds = array<i64: 1, 8, 32>}, {transform_indices = @transform_1, window_bounds = array<i64: 1, 8, 32>}, {transform_indices = @transform_2, window_bounds = array<i64: 1, 8, 32>}, {transform_indices = @transform_3, window_bounds = array<i64: 1, 8, 8>}, {transform_indices = @transform_4, window_bounds = array<i64: 1, 8, 8>}, {pipeline_mode = #tpu.pipeline_mode<synchronous>, transform_indices = @transform_5, window_bounds = array<i64: 32, 32>}, {pipeline_mode = #tpu.pipeline_mode<synchronous>, transform_indices = @transform_6, window_bounds = array<i64: 1, 32>}, {pipeline_mode = #tpu.pipeline_mode<synchronous>, transform_indices = @transform_7, window_bounds = array<i64: 32, 32>}, {pipeline_mode = #tpu.pipeline_mode<synchronous>, transform_indices = @transform_8, window_bounds = array<i64: 1, 32>}, {pipeline_mode = #tpu.pipeline_mode<synchronous>, transform_indices = @transform_9, window_bounds = array<i64: 32, 32>}, {pipeline_mode = #tpu.pipeline_mode<synchronous>, transform_indices = @transform_10, window_bounds = array<i64: 1, 32>}, {pipeline_mode = #tpu.pipeline_mode<synchronous>, transform_indices = @transform_11, window_bounds = array<i64: 32, 32>}, {pipeline_mode = #tpu.pipeline_mode<synchronous>, transform_indices = @transform_12, window_bounds = array<i64: 1, 32>}, {pipeline_mode = #tpu.pipeline_mode<synchronous>, transform_indices = @transform_13, window_bounds = array<i64: 1, 32>}, {pipeline_mode = #tpu.pipeline_mode<synchronous>, transform_indices = @transform_14, window_bounds = array<i64: 1, 32>}, {pipeline_mode = #tpu.pipeline_mode<synchronous>, transform_indices = @transform_15, window_bounds = array<i64: 32, 32>}, {pipeline_mode = #tpu.pipeline_mode<synchronous>, transform_indices = @transform_16, window_bounds = array<i64: 1, 32>}, {pipeline_mode = #tpu.pipeline_mode<synchronous>, transform_indices = @transform_17, window_bounds = array<i64: 32, 32>}, {pipeline_mode = #tpu.pipeline_mode<synchronous>, transform_indices = @transform_18, window_bounds = array<i64: 1, 32>}, {pipeline_mode = #tpu.pipeline_mode<synchronous>, transform_indices = @transform_19, window_bounds = array<i64: 32, 32>}, {pipeline_mode = #tpu.pipeline_mode<synchronous>, transform_indices = @transform_20, window_bounds = array<i64: 1, 32>}, {pipeline_mode = #tpu.pipeline_mode<synchronous>, transform_indices = @transform_21, window_bounds = array<i64: 32, 32>}, {pipeline_mode = #tpu.pipeline_mode<synchronous>, transform_indices = @transform_22, window_bounds = array<i64: 1, 32>}, {pipeline_mode = #tpu.pipeline_mode<synchronous>, transform_indices = @transform_23, window_bounds = array<i64: 1, 32>}, {pipeline_mode = #tpu.pipeline_mode<synchronous>, transform_indices = @transform_24, window_bounds = array<i64: 1, 32>}, {pipeline_mode = #tpu.pipeline_mode<synchronous>, transform_indices = @transform_25, window_bounds = array<i64: 32, 64>}, {pipeline_mode = #tpu.pipeline_mode<synchronous>, transform_indices = @transform_26, window_bounds = array<i64: 1, 64>}, {pipeline_mode = #tpu.pipeline_mode<synchronous>, transform_indices = @transform_27, window_bounds = array<i64: 64, 32>}, {pipeline_mode = #tpu.pipeline_mode<synchronous>, transform_indices = @transform_28, window_bounds = array<i64: 1, 32>}, {pipeline_mode = #tpu.pipeline_mode<synchronous>, transform_indices = @transform_29, window_bounds = array<i64: 1, 32>}, {pipeline_mode = #tpu.pipeline_mode<synchronous>, transform_indices = @transform_30, window_bounds = array<i64: 1, 32>}, {transform_indices = @transform_31, window_bounds = array<i64: 1, 8, 32>}]} {
    %c0_i32 = arith.constant 0 : i32
    %0 = arith.cmpi eq, %arg1, %c0_i32 : i32
    %1 = arith.extui %0 : i1 to i32
    %c0_i32_0 = arith.constant 0 : i32
    %2 = arith.cmpi ne, %1, %c0_i32_0 : i32
    scf.if %2 {
      %c0_92 = arith.constant 0 : index
      %c0_93 = arith.constant 0 : index
      %c0_94 = arith.constant 0 : index
      %177 = vector.load %arg3[%c0_92, %c0_93, %c0_94] : memref<1x8x32xf32, #tpu.memory_space<vmem>>, vector<1x8x32xf32>
      %178 = vector.shape_cast %177 : vector<1x8x32xf32> to vector<8x32xf32>
      %179 = arith.truncf %178 : vector<8x32xf32> to vector<8x32xbf16>
      %c0_95 = arith.constant 0 : index
      %c0_96 = arith.constant 0 : index
      %180 = vector.load %arg9[%c0_95, %c0_96] : memref<32x32xbf16, #tpu.memory_space<vmem>>, vector<32x32xbf16>
      %cst_97 = arith.constant dense<0.000000e+00> : vector<8x32xf32>
      %181 = tpu.matmul %179, %180, %cst_97 {dimension_numbers = #tpu.dot_dimension_numbers<[1], [0], [0], [1], [0, 0, 1, 1], [], []>} : vector<8x32xbf16>, vector<32x32xbf16>, vector<8x32xf32> -> vector<8x32xf32>
      %c0_98 = arith.constant 0 : index
      %c0_99 = arith.constant 0 : index
      %182 = vector.load %arg10[%c0_98, %c0_99] : memref<1x32xf32, #tpu.memory_space<vmem>>, vector<1x32xf32>
      %183 = vector.broadcast %182 : vector<1x32xf32> to vector<8x32xf32>
      %184 = arith.addf %181, %183 : vector<8x32xf32>
      %c0_100 = arith.constant 0 : index
      %c0_101 = arith.constant 0 : index
      %185 = vector.load %arg11[%c0_100, %c0_101] : memref<32x32xbf16, #tpu.memory_space<vmem>>, vector<32x32xbf16>
      %cst_102 = arith.constant dense<0.000000e+00> : vector<8x32xf32>
      %186 = tpu.matmul %179, %185, %cst_102 {dimension_numbers = #tpu.dot_dimension_numbers<[1], [0], [0], [1], [0, 0, 1, 1], [], []>} : vector<8x32xbf16>, vector<32x32xbf16>, vector<8x32xf32> -> vector<8x32xf32>
      %c0_103 = arith.constant 0 : index
      %c0_104 = arith.constant 0 : index
      %187 = vector.load %arg12[%c0_103, %c0_104] : memref<1x32xf32, #tpu.memory_space<vmem>>, vector<1x32xf32>
      %188 = vector.broadcast %187 : vector<1x32xf32> to vector<8x32xf32>
      %189 = arith.addf %186, %188 : vector<8x32xf32>
      %190 = arith.truncf %184 : vector<8x32xf32> to vector<8x32xbf16>
      %191 = vector.shape_cast %190 : vector<8x32xbf16> to vector<8x4x8xbf16>
      %192 = tpu.transpose %191, [1, 0, 2] : vector<8x4x8xbf16> -> vector<4x8x8xbf16>
      %c0_105 = arith.constant 0 : index
      %c0_106 = arith.constant 0 : index
      %c0_107 = arith.constant 0 : index
      %c0_108 = arith.constant 0 : index
      %193 = vector.load %arg34[%c0_105, %c0_106, %c0_107, %c0_108] : memref<2x4x8x8xbf16, #tpu.memory_space<vmem>>, vector<1x4x8x8xbf16>
      %194 = vector.shape_cast %193 : vector<1x4x8x8xbf16> to vector<4x8x8xbf16>
      %195 = vector.shape_cast %192 : vector<4x8x8xbf16> to vector<1x4x8x8xbf16>
      tpu.vector_store %arg34[%c0_105, %c0_106, %c0_107, %c0_108], %195 {strides = array<i32>} : memref<2x4x8x8xbf16, #tpu.memory_space<vmem>>, vector<1x4x8x8xbf16>,
      %196 = arith.truncf %189 : vector<8x32xf32> to vector<8x32xbf16>
      %197 = vector.shape_cast %196 : vector<8x32xbf16> to vector<8x4x8xbf16>
      %198 = tpu.transpose %197, [1, 0, 2] : vector<8x4x8xbf16> -> vector<4x8x8xbf16>
      %c1_109 = arith.constant 1 : index
      %c0_110 = arith.constant 0 : index
      %c0_111 = arith.constant 0 : index
      %c0_112 = arith.constant 0 : index
      %199 = vector.load %arg34[%c1_109, %c0_110, %c0_111, %c0_112] : memref<2x4x8x8xbf16, #tpu.memory_space<vmem>>, vector<1x4x8x8xbf16>
      %200 = vector.shape_cast %199 : vector<1x4x8x8xbf16> to vector<4x8x8xbf16>
      %201 = vector.shape_cast %198 : vector<4x8x8xbf16> to vector<1x4x8x8xbf16>
      tpu.vector_store %arg34[%c1_109, %c0_110, %c0_111, %c0_112], %201 {strides = array<i32>} : memref<2x4x8x8xbf16, #tpu.memory_space<vmem>>, vector<1x4x8x8xbf16>,
      %c0_113 = arith.constant 0 : index
      %c0_114 = arith.constant 0 : index
      %c0_115 = arith.constant 0 : index
      %202 = vector.load %arg4[%c0_113, %c0_114, %c0_115] : memref<1x8x32xf32, #tpu.memory_space<vmem>>, vector<1x8x32xf32>
      %203 = vector.shape_cast %202 : vector<1x8x32xf32> to vector<8x32xf32>
      %204 = arith.truncf %203 : vector<8x32xf32> to vector<8x32xbf16>
      %c0_116 = arith.constant 0 : index
      %c0_117 = arith.constant 0 : index
      %205 = vector.load %arg19[%c0_116, %c0_117] : memref<32x32xbf16, #tpu.memory_space<vmem>>, vector<32x32xbf16>
      %cst_118 = arith.constant dense<0.000000e+00> : vector<8x32xf32>
      %206 = tpu.matmul %204, %205, %cst_118 {dimension_numbers = #tpu.dot_dimension_numbers<[1], [0], [0], [1], [0, 0, 1, 1], [], []>} : vector<8x32xbf16>, vector<32x32xbf16>, vector<8x32xf32> -> vector<8x32xf32>
      %c0_119 = arith.constant 0 : index
      %c0_120 = arith.constant 0 : index
      %207 = vector.load %arg20[%c0_119, %c0_120] : memref<1x32xf32, #tpu.memory_space<vmem>>, vector<1x32xf32>
      %208 = vector.broadcast %207 : vector<1x32xf32> to vector<8x32xf32>
      %209 = arith.addf %206, %208 : vector<8x32xf32>
      %c0_121 = arith.constant 0 : index
      %c0_122 = arith.constant 0 : index
      %210 = vector.load %arg21[%c0_121, %c0_122] : memref<32x32xbf16, #tpu.memory_space<vmem>>, vector<32x32xbf16>
      %cst_123 = arith.constant dense<0.000000e+00> : vector<8x32xf32>
      %211 = tpu.matmul %204, %210, %cst_123 {dimension_numbers = #tpu.dot_dimension_numbers<[1], [0], [0], [1], [0, 0, 1, 1], [], []>} : vector<8x32xbf16>, vector<32x32xbf16>, vector<8x32xf32> -> vector<8x32xf32>
      %c0_124 = arith.constant 0 : index
      %c0_125 = arith.constant 0 : index
      %212 = vector.load %arg22[%c0_124, %c0_125] : memref<1x32xf32, #tpu.memory_space<vmem>>, vector<1x32xf32>
      %213 = vector.broadcast %212 : vector<1x32xf32> to vector<8x32xf32>
      %214 = arith.addf %211, %213 : vector<8x32xf32>
      %215 = arith.truncf %209 : vector<8x32xf32> to vector<8x32xbf16>
      %216 = vector.shape_cast %215 : vector<8x32xbf16> to vector<8x4x8xbf16>
      %217 = tpu.transpose %216, [1, 0, 2] : vector<8x4x8xbf16> -> vector<4x8x8xbf16>
      %c0_126 = arith.constant 0 : index
      %c0_127 = arith.constant 0 : index
      %c0_128 = arith.constant 0 : index
      %c0_129 = arith.constant 0 : index
      %218 = vector.load %arg35[%c0_126, %c0_127, %c0_128, %c0_129] : memref<2x4x8x8xbf16, #tpu.memory_space<vmem>>, vector<1x4x8x8xbf16>
      %219 = vector.shape_cast %218 : vector<1x4x8x8xbf16> to vector<4x8x8xbf16>
      %220 = vector.shape_cast %217 : vector<4x8x8xbf16> to vector<1x4x8x8xbf16>
      tpu.vector_store %arg35[%c0_126, %c0_127, %c0_128, %c0_129], %220 {strides = array<i32>} : memref<2x4x8x8xbf16, #tpu.memory_space<vmem>>, vector<1x4x8x8xbf16>,
      %221 = arith.truncf %214 : vector<8x32xf32> to vector<8x32xbf16>
      %222 = vector.shape_cast %221 : vector<8x32xbf16> to vector<8x4x8xbf16>
      %223 = tpu.transpose %222, [1, 0, 2] : vector<8x4x8xbf16> -> vector<4x8x8xbf16>
      %c1_130 = arith.constant 1 : index
      %c0_131 = arith.constant 0 : index
      %c0_132 = arith.constant 0 : index
      %c0_133 = arith.constant 0 : index
      %224 = vector.load %arg35[%c1_130, %c0_131, %c0_132, %c0_133] : memref<2x4x8x8xbf16, #tpu.memory_space<vmem>>, vector<1x4x8x8xbf16>
      %225 = vector.shape_cast %224 : vector<1x4x8x8xbf16> to vector<4x8x8xbf16>
      %226 = vector.shape_cast %223 : vector<4x8x8xbf16> to vector<1x4x8x8xbf16>
      tpu.vector_store %arg35[%c1_130, %c0_131, %c0_132, %c0_133], %226 {strides = array<i32>} : memref<2x4x8x8xbf16, #tpu.memory_space<vmem>>, vector<1x4x8x8xbf16>,
    } else {
    }
    %c0 = arith.constant 0 : index
    %c0_1 = arith.constant 0 : index
    %c0_2 = arith.constant 0 : index
    %3 = vector.load %arg2[%c0, %c0_1, %c0_2] : memref<1x8x32xf32, #tpu.memory_space<vmem>>, vector<1x8x32xf32>
    %4 = vector.shape_cast %3 : vector<1x8x32xf32> to vector<8x32xf32>
    %c0_3 = arith.constant 0 : index
    %c0_4 = arith.constant 0 : index
    %c0_5 = arith.constant 0 : index
    %5 = vector.load %arg5[%c0_3, %c0_4, %c0_5] : memref<1x8x8xbf16, #tpu.memory_space<vmem>>, vector<1x8x8xbf16>
    %6 = vector.shape_cast %5 : vector<1x8x8xbf16> to vector<8x8xbf16>
    %7 = arith.extf %6 : vector<8x8xbf16> to vector<8x8xf32>
    %c0_6 = arith.constant 0 : index
    %c0_7 = arith.constant 0 : index
    %c0_8 = arith.constant 0 : index
    %8 = vector.load %arg6[%c0_6, %c0_7, %c0_8] : memref<1x8x8xbf16, #tpu.memory_space<vmem>>, vector<1x8x8xbf16>
    %9 = vector.shape_cast %8 : vector<1x8x8xbf16> to vector<8x8xbf16>
    %10 = arith.extf %9 : vector<8x8xbf16> to vector<8x8xf32>
    %c0_9 = arith.constant 0 : index
    %c0_10 = arith.constant 0 : index
    %c0_11 = arith.constant 0 : index
    %c0_12 = arith.constant 0 : index
    %11 = vector.load %arg34[%c0_9, %c0_10, %c0_11, %c0_12] : memref<2x4x8x8xbf16, #tpu.memory_space<vmem>>, vector<1x4x8x8xbf16>
    %12 = vector.shape_cast %11 : vector<1x4x8x8xbf16> to vector<4x8x8xbf16>
    %c1 = arith.constant 1 : index
    %c0_13 = arith.constant 0 : index
    %c0_14 = arith.constant 0 : index
    %c0_15 = arith.constant 0 : index
    %13 = vector.load %arg34[%c1, %c0_13, %c0_14, %c0_15] : memref<2x4x8x8xbf16, #tpu.memory_space<vmem>>, vector<1x4x8x8xbf16>
    %14 = vector.shape_cast %13 : vector<1x4x8x8xbf16> to vector<4x8x8xbf16>
    %c0_16 = arith.constant 0 : index
    %c0_17 = arith.constant 0 : index
    %15 = vector.load %arg7[%c0_16, %c0_17] : memref<32x32xbf16, #tpu.memory_space<vmem>>, vector<32x32xbf16>
    %c0_18 = arith.constant 0 : index
    %c0_19 = arith.constant 0 : index
    %16 = vector.load %arg8[%c0_18, %c0_19] : memref<1x32xf32, #tpu.memory_space<vmem>>, vector<1x32xf32>
    %c0_20 = arith.constant 0 : index
    %c0_21 = arith.constant 0 : index
    %17 = vector.load %arg13[%c0_20, %c0_21] : memref<32x32xbf16, #tpu.memory_space<vmem>>, vector<32x32xbf16>
    %c0_22 = arith.constant 0 : index
    %c0_23 = arith.constant 0 : index
    %18 = vector.load %arg14[%c0_22, %c0_23] : memref<1x32xf32, #tpu.memory_space<vmem>>, vector<1x32xf32>
    %19 = arith.truncf %4 : vector<8x32xf32> to vector<8x32xbf16>
    %cst = arith.constant dense<0.000000e+00> : vector<8x32xf32>
    %20 = tpu.matmul %19, %15, %cst {dimension_numbers = #tpu.dot_dimension_numbers<[1], [0], [0], [1], [0, 0, 1, 1], [], []>} : vector<8x32xbf16>, vector<32x32xbf16>, vector<8x32xf32> -> vector<8x32xf32>
    %21 = vector.broadcast %16 : vector<1x32xf32> to vector<8x32xf32>
    %22 = arith.addf %20, %21 : vector<8x32xf32>
    %23 = arith.truncf %22 : vector<8x32xf32> to vector<8x32xbf16>
    %24 = vector.shape_cast %23 : vector<8x32xbf16> to vector<8x4x8xbf16>
    %25 = tpu.transpose %24, [1, 0, 2] : vector<8x4x8xbf16> -> vector<4x8x8xbf16>
    "tpu.trace_start"() <{level = 10 : i32, message = "hqd,hkd->hqk"}> : () -> ()
    %cst_24 = arith.constant dense<0.000000e+00> : vector<4x8x8xf32>
    %26 = tpu.matmul %25, %12, %cst_24 {dimension_numbers = #tpu.dot_dimension_numbers<[2], [2], [1], [1], [0, 0, 0, 1, 1, 1], [0], [0]>} : vector<4x8x8xbf16>, vector<4x8x8xbf16>, vector<4x8x8xf32> -> vector<4x8x8xf32>
    "tpu.trace_stop"() : () -> ()
    %27 = vector.shape_cast %7 : vector<8x8xf32> to vector<1x8x8xf32>
    %28 = vector.broadcast %27 : vector<1x8x8xf32> to vector<4x8x8xf32>
    %29 = arith.addf %26, %28 : vector<4x8x8xf32>
    %cst_25 = arith.constant dense<0xFF800000> : vector<4x8xf32>
    %30 = vector.multi_reduction <maximumf>, %29, %cst_25 [2] : vector<4x8x8xf32> to vector<4x8xf32>
    %31 = vector.shape_cast %30 : vector<4x8xf32> to vector<4x8x1xf32>
    %32 = vector.broadcast %31 : vector<4x8x1xf32> to vector<4x8x8xf32>
    %33 = arith.subf %29, %32 : vector<4x8x8xf32>
    %34 = math.exp %33 : vector<4x8x8xf32>
    %cst_26 = arith.constant dense<0.000000e+00> : vector<4x8xf32>
    %35 = vector.multi_reduction <add>, %34, %cst_26 [2] : vector<4x8x8xf32> to vector<4x8xf32>
    %36 = vector.shape_cast %35 : vector<4x8xf32> to vector<4x8x1xf32>
    %37 = tpu.reciprocal %36 {approx = true} : vector<4x8x1xf32> -> vector<4x8x1xf32>
    %38 = vector.broadcast %37 : vector<4x8x1xf32> to vector<4x8x8xf32>
    %39 = arith.mulf %34, %38 : vector<4x8x8xf32>
    %40 = arith.truncf %39 : vector<4x8x8xf32> to vector<4x8x8xbf16>
    "tpu.trace_start"() <{level = 10 : i32, message = "hqk,hkd->hqd"}> : () -> ()
    %cst_27 = arith.constant dense<0.000000e+00> : vector<4x8x8xf32>
    %41 = tpu.matmul %40, %14, %cst_27 {dimension_numbers = #tpu.dot_dimension_numbers<[2], [1], [1], [2], [0, 0, 0, 1, 1, 2], [0], [0]>} : vector<4x8x8xbf16>, vector<4x8x8xbf16>, vector<4x8x8xf32> -> vector<4x8x8xf32>
    "tpu.trace_stop"() : () -> ()
    %42 = tpu.transpose %41, [1, 0, 2] : vector<4x8x8xf32> -> vector<8x4x8xf32>
    %43 = vector.shape_cast %42 : vector<8x4x8xf32> to vector<8x32xf32>
    %44 = arith.truncf %43 : vector<8x32xf32> to vector<8x32xbf16>
    %cst_28 = arith.constant dense<0.000000e+00> : vector<8x32xf32>
    %45 = tpu.matmul %44, %17, %cst_28 {dimension_numbers = #tpu.dot_dimension_numbers<[1], [0], [0], [1], [0, 0, 1, 1], [], []>} : vector<8x32xbf16>, vector<32x32xbf16>, vector<8x32xf32> -> vector<8x32xf32>
    %46 = vector.broadcast %18 : vector<1x32xf32> to vector<8x32xf32>
    %47 = arith.addf %45, %46 : vector<8x32xf32>
    %48 = arith.addf %47, %4 : vector<8x32xf32>
    %c0_29 = arith.constant 0 : index
    %c0_30 = arith.constant 0 : index
    %49 = vector.load %arg15[%c0_29, %c0_30] : memref<1x32xf32, #tpu.memory_space<vmem>>, vector<1x32xf32>
    %c0_31 = arith.constant 0 : index
    %c0_32 = arith.constant 0 : index
    %50 = vector.load %arg16[%c0_31, %c0_32] : memref<1x32xf32, #tpu.memory_space<vmem>>, vector<1x32xf32>
    %cst_33 = arith.constant dense<0.000000e+00> : vector<8xf32>
    %51 = vector.multi_reduction <add>, %48, %cst_33 [1] : vector<8x32xf32> to vector<8xf32>
    %52 = vector.shape_cast %51 : vector<8xf32> to vector<8x1xf32>
    %cst_34 = arith.constant 3.200000e+01 : f32
    %53 = vector.broadcast %cst_34 : f32 to vector<8x1xf32>
    %54 = arith.divf %52, %53 : vector<8x1xf32>
    %55 = vector.broadcast %54 : vector<8x1xf32> to vector<8x32xf32>
    %56 = arith.subf %48, %55 : vector<8x32xf32>
    %57 = arith.mulf %56, %56 : vector<8x32xf32>
    %cst_35 = arith.constant dense<0.000000e+00> : vector<8xf32>
    %58 = vector.multi_reduction <add>, %57, %cst_35 [1] : vector<8x32xf32> to vector<8xf32>
    %59 = vector.shape_cast %58 : vector<8xf32> to vector<8x1xf32>
    %cst_36 = arith.constant 3.200000e+01 : f32
    %60 = vector.broadcast %cst_36 : f32 to vector<8x1xf32>
    %61 = arith.divf %59, %60 : vector<8x1xf32>
    %62 = vector.broadcast %54 : vector<8x1xf32> to vector<8x32xf32>
    %63 = arith.subf %48, %62 : vector<8x32xf32>
    %cst_37 = arith.constant 1.000000e-10 : f32
    %64 = vector.broadcast %cst_37 : f32 to vector<8x1xf32>
    %65 = arith.addf %61, %64 : vector<8x1xf32>
    %66 = math.rsqrt %65 : vector<8x1xf32>
    %67 = vector.broadcast %66 : vector<8x1xf32> to vector<8x32xf32>
    %68 = arith.mulf %63, %67 : vector<8x32xf32>
    %69 = vector.broadcast %49 : vector<1x32xf32> to vector<8x32xf32>
    %70 = arith.mulf %69, %68 : vector<8x32xf32>
    %71 = vector.broadcast %50 : vector<1x32xf32> to vector<8x32xf32>
    %72 = arith.addf %70, %71 : vector<8x32xf32>
    %c0_38 = arith.constant 0 : index
    %c0_39 = arith.constant 0 : index
    %c0_40 = arith.constant 0 : index
    %c0_41 = arith.constant 0 : index
    %73 = vector.load %arg35[%c0_38, %c0_39, %c0_40, %c0_41] : memref<2x4x8x8xbf16, #tpu.memory_space<vmem>>, vector<1x4x8x8xbf16>
    %74 = vector.shape_cast %73 : vector<1x4x8x8xbf16> to vector<4x8x8xbf16>
    %c1_42 = arith.constant 1 : index
    %c0_43 = arith.constant 0 : index
    %c0_44 = arith.constant 0 : index
    %c0_45 = arith.constant 0 : index
    %75 = vector.load %arg35[%c1_42, %c0_43, %c0_44, %c0_45] : memref<2x4x8x8xbf16, #tpu.memory_space<vmem>>, vector<1x4x8x8xbf16>
    %76 = vector.shape_cast %75 : vector<1x4x8x8xbf16> to vector<4x8x8xbf16>
    %c0_46 = arith.constant 0 : index
    %c0_47 = arith.constant 0 : index
    %77 = vector.load %arg17[%c0_46, %c0_47] : memref<32x32xbf16, #tpu.memory_space<vmem>>, vector<32x32xbf16>
    %c0_48 = arith.constant 0 : index
    %c0_49 = arith.constant 0 : index
    %78 = vector.load %arg18[%c0_48, %c0_49] : memref<1x32xf32, #tpu.memory_space<vmem>>, vector<1x32xf32>
    %c0_50 = arith.constant 0 : index
    %c0_51 = arith.constant 0 : index
    %79 = vector.load %arg23[%c0_50, %c0_51] : memref<32x32xbf16, #tpu.memory_space<vmem>>, vector<32x32xbf16>
    %c0_52 = arith.constant 0 : index
    %c0_53 = arith.constant 0 : index
    %80 = vector.load %arg24[%c0_52, %c0_53] : memref<1x32xf32, #tpu.memory_space<vmem>>, vector<1x32xf32>
    %81 = arith.truncf %72 : vector<8x32xf32> to vector<8x32xbf16>
    %cst_54 = arith.constant dense<0.000000e+00> : vector<8x32xf32>
    %82 = tpu.matmul %81, %77, %cst_54 {dimension_numbers = #tpu.dot_dimension_numbers<[1], [0], [0], [1], [0, 0, 1, 1], [], []>} : vector<8x32xbf16>, vector<32x32xbf16>, vector<8x32xf32> -> vector<8x32xf32>
    %83 = vector.broadcast %78 : vector<1x32xf32> to vector<8x32xf32>
    %84 = arith.addf %82, %83 : vector<8x32xf32>
    %85 = arith.truncf %84 : vector<8x32xf32> to vector<8x32xbf16>
    %86 = vector.shape_cast %85 : vector<8x32xbf16> to vector<8x4x8xbf16>
    %87 = tpu.transpose %86, [1, 0, 2] : vector<8x4x8xbf16> -> vector<4x8x8xbf16>
    "tpu.trace_start"() <{level = 10 : i32, message = "hqd,hkd->hqk"}> : () -> ()
    %cst_55 = arith.constant dense<0.000000e+00> : vector<4x8x8xf32>
    %88 = tpu.matmul %87, %74, %cst_55 {dimension_numbers = #tpu.dot_dimension_numbers<[2], [2], [1], [1], [0, 0, 0, 1, 1, 1], [0], [0]>} : vector<4x8x8xbf16>, vector<4x8x8xbf16>, vector<4x8x8xf32> -> vector<4x8x8xf32>
    "tpu.trace_stop"() : () -> ()
    %89 = vector.shape_cast %10 : vector<8x8xf32> to vector<1x8x8xf32>
    %90 = vector.broadcast %89 : vector<1x8x8xf32> to vector<4x8x8xf32>
    %91 = arith.addf %88, %90 : vector<4x8x8xf32>
    %cst_56 = arith.constant dense<0xFF800000> : vector<4x8xf32>
    %92 = vector.multi_reduction <maximumf>, %91, %cst_56 [2] : vector<4x8x8xf32> to vector<4x8xf32>
    %93 = vector.shape_cast %92 : vector<4x8xf32> to vector<4x8x1xf32>
    %94 = vector.broadcast %93 : vector<4x8x1xf32> to vector<4x8x8xf32>
    %95 = arith.subf %91, %94 : vector<4x8x8xf32>
    %96 = math.exp %95 : vector<4x8x8xf32>
    %cst_57 = arith.constant dense<0.000000e+00> : vector<4x8xf32>
    %97 = vector.multi_reduction <add>, %96, %cst_57 [2] : vector<4x8x8xf32> to vector<4x8xf32>
    %98 = vector.shape_cast %97 : vector<4x8xf32> to vector<4x8x1xf32>
    %99 = tpu.reciprocal %98 {approx = true} : vector<4x8x1xf32> -> vector<4x8x1xf32>
    %100 = vector.broadcast %99 : vector<4x8x1xf32> to vector<4x8x8xf32>
    %101 = arith.mulf %96, %100 : vector<4x8x8xf32>
    %102 = arith.truncf %101 : vector<4x8x8xf32> to vector<4x8x8xbf16>
    "tpu.trace_start"() <{level = 10 : i32, message = "hqk,hkd->hqd"}> : () -> ()
    %cst_58 = arith.constant dense<0.000000e+00> : vector<4x8x8xf32>
    %103 = tpu.matmul %102, %76, %cst_58 {dimension_numbers = #tpu.dot_dimension_numbers<[2], [1], [1], [2], [0, 0, 0, 1, 1, 2], [0], [0]>} : vector<4x8x8xbf16>, vector<4x8x8xbf16>, vector<4x8x8xf32> -> vector<4x8x8xf32>
    "tpu.trace_stop"() : () -> ()
    %104 = tpu.transpose %103, [1, 0, 2] : vector<4x8x8xf32> -> vector<8x4x8xf32>
    %105 = vector.shape_cast %104 : vector<8x4x8xf32> to vector<8x32xf32>
    %106 = arith.truncf %105 : vector<8x32xf32> to vector<8x32xbf16>
    %cst_59 = arith.constant dense<0.000000e+00> : vector<8x32xf32>
    %107 = tpu.matmul %106, %79, %cst_59 {dimension_numbers = #tpu.dot_dimension_numbers<[1], [0], [0], [1], [0, 0, 1, 1], [], []>} : vector<8x32xbf16>, vector<32x32xbf16>, vector<8x32xf32> -> vector<8x32xf32>
    %108 = vector.broadcast %80 : vector<1x32xf32> to vector<8x32xf32>
    %109 = arith.addf %107, %108 : vector<8x32xf32>
    %110 = arith.addf %109, %72 : vector<8x32xf32>
    %c0_60 = arith.constant 0 : index
    %c0_61 = arith.constant 0 : index
    %111 = vector.load %arg25[%c0_60, %c0_61] : memref<1x32xf32, #tpu.memory_space<vmem>>, vector<1x32xf32>
    %c0_62 = arith.constant 0 : index
    %c0_63 = arith.constant 0 : index
    %112 = vector.load %arg26[%c0_62, %c0_63] : memref<1x32xf32, #tpu.memory_space<vmem>>, vector<1x32xf32>
    %cst_64 = arith.constant dense<0.000000e+00> : vector<8xf32>
    %113 = vector.multi_reduction <add>, %110, %cst_64 [1] : vector<8x32xf32> to vector<8xf32>
    %114 = vector.shape_cast %113 : vector<8xf32> to vector<8x1xf32>
    %cst_65 = arith.constant 3.200000e+01 : f32
    %115 = vector.broadcast %cst_65 : f32 to vector<8x1xf32>
    %116 = arith.divf %114, %115 : vector<8x1xf32>
    %117 = vector.broadcast %116 : vector<8x1xf32> to vector<8x32xf32>
    %118 = arith.subf %110, %117 : vector<8x32xf32>
    %119 = arith.mulf %118, %118 : vector<8x32xf32>
    %cst_66 = arith.constant dense<0.000000e+00> : vector<8xf32>
    %120 = vector.multi_reduction <add>, %119, %cst_66 [1] : vector<8x32xf32> to vector<8xf32>
    %121 = vector.shape_cast %120 : vector<8xf32> to vector<8x1xf32>
    %cst_67 = arith.constant 3.200000e+01 : f32
    %122 = vector.broadcast %cst_67 : f32 to vector<8x1xf32>
    %123 = arith.divf %121, %122 : vector<8x1xf32>
    %124 = vector.broadcast %116 : vector<8x1xf32> to vector<8x32xf32>
    %125 = arith.subf %110, %124 : vector<8x32xf32>
    %cst_68 = arith.constant 1.000000e-10 : f32
    %126 = vector.broadcast %cst_68 : f32 to vector<8x1xf32>
    %127 = arith.addf %123, %126 : vector<8x1xf32>
    %128 = math.rsqrt %127 : vector<8x1xf32>
    %129 = vector.broadcast %128 : vector<8x1xf32> to vector<8x32xf32>
    %130 = arith.mulf %125, %129 : vector<8x32xf32>
    %131 = vector.broadcast %111 : vector<1x32xf32> to vector<8x32xf32>
    %132 = arith.mulf %131, %130 : vector<8x32xf32>
    %133 = vector.broadcast %112 : vector<1x32xf32> to vector<8x32xf32>
    %134 = arith.addf %132, %133 : vector<8x32xf32>
    %135 = arith.truncf %134 : vector<8x32xf32> to vector<8x32xbf16>
    %c0_69 = arith.constant 0 : index
    %c0_70 = arith.constant 0 : index
    %136 = vector.load %arg27[%c0_69, %c0_70] : memref<32x64xbf16, #tpu.memory_space<vmem>>, vector<32x64xbf16>
    %cst_71 = arith.constant dense<0.000000e+00> : vector<8x64xf32>
    %137 = tpu.matmul %135, %136, %cst_71 {dimension_numbers = #tpu.dot_dimension_numbers<[1], [0], [0], [1], [0, 0, 1, 1], [], []>} : vector<8x32xbf16>, vector<32x64xbf16>, vector<8x64xf32> -> vector<8x64xf32>
    %c0_72 = arith.constant 0 : index
    %c0_73 = arith.constant 0 : index
    %138 = vector.load %arg28[%c0_72, %c0_73] : memref<1x64xf32, #tpu.memory_space<vmem>>, vector<1x64xf32>
    %139 = vector.broadcast %138 : vector<1x64xf32> to vector<8x64xf32>
    %140 = arith.addf %137, %139 : vector<8x64xf32>
    %cst_74 = arith.constant 0.000000e+00 : f32
    %141 = vector.broadcast %cst_74 : f32 to vector<8x64xf32>
    %142 = arith.maximumf %140, %141 : vector<8x64xf32>
    %143 = arith.truncf %142 : vector<8x64xf32> to vector<8x64xbf16>
    %c0_75 = arith.constant 0 : index
    %c0_76 = arith.constant 0 : index
    %144 = vector.load %arg29[%c0_75, %c0_76] : memref<64x32xbf16, #tpu.memory_space<vmem>>, vector<64x32xbf16>
    %cst_77 = arith.constant dense<0.000000e+00> : vector<8x32xf32>
    %145 = tpu.matmul %143, %144, %cst_77 {dimension_numbers = #tpu.dot_dimension_numbers<[1], [0], [0], [1], [0, 0, 1, 1], [], []>} : vector<8x64xbf16>, vector<64x32xbf16>, vector<8x32xf32> -> vector<8x32xf32>
    %c0_78 = arith.constant 0 : index
    %c0_79 = arith.constant 0 : index
    %146 = vector.load %arg30[%c0_78, %c0_79] : memref<1x32xf32, #tpu.memory_space<vmem>>, vector<1x32xf32>
    %147 = vector.broadcast %146 : vector<1x32xf32> to vector<8x32xf32>
    %148 = arith.addf %145, %147 : vector<8x32xf32>
    %149 = arith.addf %148, %134 : vector<8x32xf32>
    %c0_80 = arith.constant 0 : index
    %c0_81 = arith.constant 0 : index
    %150 = vector.load %arg31[%c0_80, %c0_81] : memref<1x32xf32, #tpu.memory_space<vmem>>, vector<1x32xf32>
    %c0_82 = arith.constant 0 : index
    %c0_83 = arith.constant 0 : index
    %151 = vector.load %arg32[%c0_82, %c0_83] : memref<1x32xf32, #tpu.memory_space<vmem>>, vector<1x32xf32>
    %cst_84 = arith.constant dense<0.000000e+00> : vector<8xf32>
    %152 = vector.multi_reduction <add>, %149, %cst_84 [1] : vector<8x32xf32> to vector<8xf32>
    %153 = vector.shape_cast %152 : vector<8xf32> to vector<8x1xf32>
    %cst_85 = arith.constant 3.200000e+01 : f32
    %154 = vector.broadcast %cst_85 : f32 to vector<8x1xf32>
    %155 = arith.divf %153, %154 : vector<8x1xf32>
    %156 = vector.broadcast %155 : vector<8x1xf32> to vector<8x32xf32>
    %157 = arith.subf %149, %156 : vector<8x32xf32>
    %158 = arith.mulf %157, %157 : vector<8x32xf32>
    %cst_86 = arith.constant dense<0.000000e+00> : vector<8xf32>
    %159 = vector.multi_reduction <add>, %158, %cst_86 [1] : vector<8x32xf32> to vector<8xf32>
    %160 = vector.shape_cast %159 : vector<8xf32> to vector<8x1xf32>
    %cst_87 = arith.constant 3.200000e+01 : f32
    %161 = vector.broadcast %cst_87 : f32 to vector<8x1xf32>
    %162 = arith.divf %160, %161 : vector<8x1xf32>
    %163 = vector.broadcast %155 : vector<8x1xf32> to vector<8x32xf32>
    %164 = arith.subf %149, %163 : vector<8x32xf32>
    %cst_88 = arith.constant 1.000000e-10 : f32
    %165 = vector.broadcast %cst_88 : f32 to vector<8x1xf32>
    %166 = arith.addf %162, %165 : vector<8x1xf32>
    %167 = math.rsqrt %166 : vector<8x1xf32>
    %168 = vector.broadcast %167 : vector<8x1xf32> to vector<8x32xf32>
    %169 = arith.mulf %164, %168 : vector<8x32xf32>
    %170 = vector.broadcast %150 : vector<1x32xf32> to vector<8x32xf32>
    %171 = arith.mulf %170, %169 : vector<8x32xf32>
    %172 = vector.broadcast %151 : vector<1x32xf32> to vector<8x32xf32>
    %173 = arith.addf %171, %172 : vector<8x32xf32>
    %c0_89 = arith.constant 0 : index
    %c0_90 = arith.constant 0 : index
    %c0_91 = arith.constant 0 : index
    %174 = vector.load %arg33[%c0_89, %c0_90, %c0_91] : memref<1x8x32xf32, #tpu.memory_space<vmem>>, vector<1x8x32xf32>
    %175 = vector.shape_cast %174 : vector<1x8x32xf32> to vector<8x32xf32>
    %176 = vector.shape_cast %173 : vector<8x32xf32> to vector<1x8x32xf32>
    tpu.vector_store %arg33[%c0_89, %c0_90, %c0_91], %176 {strides = array<i32>} : memref<1x8x32xf32, #tpu.memory_space<vmem>>, vector<1x8x32xf32>,
    return
  }
  func.func @transform_0(%arg0: i32, %arg1: i32) -> (i32, i32, i32) {
    %c0_i32 = arith.constant 0 : i32
    %c0_i32_0 = arith.constant 0 : i32
    return %arg0, %arg1, %c0_i32 : i32, i32, i32
  }
  func.func @transform_1(%arg0: i32, %arg1: i32) -> (i32, i32, i32) {
    %c0_i32 = arith.constant 0 : i32
    %c0_i32_0 = arith.constant 0 : i32
    %c0_i32_1 = arith.constant 0 : i32
    return %arg0, %c0_i32, %c0_i32_0 : i32, i32, i32
  }
  func.func @transform_2(%arg0: i32, %arg1: i32) -> (i32, i32, i32) {
    %c0_i32 = arith.constant 0 : i32
    %c0_i32_0 = arith.constant 0 : i32
    %c0_i32_1 = arith.constant 0 : i32
    return %arg0, %c0_i32, %c0_i32_0 : i32, i32, i32
  }
  func.func @transform_3(%arg0: i32, %arg1: i32) -> (i32, i32, i32) {
    %c0_i32 = arith.constant 0 : i32
    %c0_i32_0 = arith.constant 0 : i32
    return %arg0, %arg1, %c0_i32 : i32, i32, i32
  }
  func.func @transform_4(%arg0: i32, %arg1: i32) -> (i32, i32, i32) {
    %c0_i32 = arith.constant 0 : i32
    %c0_i32_0 = arith.constant 0 : i32
    return %arg0, %arg1, %c0_i32 : i32, i32, i32
  }
  func.func @transform_5(%arg0: i32, %arg1: i32) -> (i32, i32) {
    %c0_i32 = arith.constant 0 : i32
    %c0_i32_0 = arith.constant 0 : i32
    %c0_i32_1 = arith.constant 0 : i32
    return %c0_i32, %c0_i32_0 : i32, i32
  }
  func.func @transform_6(%arg0: i32, %arg1: i32) -> (i32, i32) {
    %c0_i32 = arith.constant 0 : i32
    %c0_i32_0 = arith.constant 0 : i32
    %c0_i32_1 = arith.constant 0 : i32
    return %c0_i32, %c0_i32_0 : i32, i32
  }
  func.func @transform_7(%arg0: i32, %arg1: i32) -> (i32, i32) {
    %c0_i32 = arith.constant 0 : i32
    %c0_i32_0 = arith.constant 0 : i32
    %c0_i32_1 = arith.constant 0 : i32
    return %c0_i32, %c0_i32_0 : i32, i32
  }
  func.func @transform_8(%arg0: i32, %arg1: i32) -> (i32, i32) {
    %c0_i32 = arith.constant 0 : i32
    %c0_i32_0 = arith.constant 0 : i32
    %c0_i32_1 = arith.constant 0 : i32
    return %c0_i32, %c0_i32_0 : i32, i32
  }
  func.func @transform_9(%arg0: i32, %arg1: i32) -> (i32, i32) {
    %c0_i32 = arith.constant 0 : i32
    %c0_i32_0 = arith.constant 0 : i32
    %c0_i32_1 = arith.constant 0 : i32
    return %c0_i32, %c0_i32_0 : i32, i32
  }
  func.func @transform_10(%arg0: i32, %arg1: i32) -> (i32, i32) {
    %c0_i32 = arith.constant 0 : i32
    %c0_i32_0 = arith.constant 0 : i32
    %c0_i32_1 = arith.constant 0 : i32
    return %c0_i32, %c0_i32_0 : i32, i32
  }
  func.func @transform_11(%arg0: i32, %arg1: i32) -> (i32, i32) {
    %c0_i32 = arith.constant 0 : i32
    %c0_i32_0 = arith.constant 0 : i32
    %c0_i32_1 = arith.constant 0 : i32
    return %c0_i32, %c0_i32_0 : i32, i32
  }
  func.func @transform_12(%arg0: i32, %arg1: i32) -> (i32, i32) {
    %c0_i32 = arith.constant 0 : i32
    %c0_i32_0 = arith.constant 0 : i32
    %c0_i32_1 = arith.constant 0 : i32
    return %c0_i32, %c0_i32_0 : i32, i32
  }
  func.func @transform_13(%arg0: i32, %arg1: i32) -> (i32, i32) {
    %c0_i32 = arith.constant 0 : i32
    %c0_i32_0 = arith.constant 0 : i32
    %c0_i32_1 = arith.constant 0 : i32
    return %c0_i32, %c0_i32_0 : i32, i32
  }
  func.func @transform_14(%arg0: i32, %arg1: i32) -> (i32, i32) {
    %c0_i32 = arith.constant 0 : i32
    %c0_i32_0 = arith.constant 0 : i32
    %c0_i32_1 = arith.constant 0 : i32
    return %c0_i32, %c0_i32_0 : i32, i32
  }
  func.func @transform_15(%arg0: i32, %arg1: i32) -> (i32, i32) {
    %c0_i32 = arith.constant 0 : i32
    %c0_i32_0 = arith.constant 0 : i32
    %c0_i32_1 = arith.constant 0 : i32
    return %c0_i32, %c0_i32_0 : i32, i32
  }
  func.func @transform_16(%arg0: i32, %arg1: i32) -> (i32, i32) {
    %c0_i32 = arith.constant 0 : i32
    %c0_i32_0 = arith.constant 0 : i32
    %c0_i32_1 = arith.constant 0 : i32
    return %c0_i32, %c0_i32_0 : i32, i32
  }
  func.func @transform_17(%arg0: i32, %arg1: i32) -> (i32, i32) {
    %c0_i32 = arith.constant 0 : i32
    %c0_i32_0 = arith.constant 0 : i32
    %c0_i32_1 = arith.constant 0 : i32
    return %c0_i32, %c0_i32_0 : i32, i32
  }
  func.func @transform_18(%arg0: i32, %arg1: i32) -> (i32, i32) {
    %c0_i32 = arith.constant 0 : i32
    %c0_i32_0 = arith.constant 0 : i32
    %c0_i32_1 = arith.constant 0 : i32
    return %c0_i32, %c0_i32_0 : i32, i32
  }
  func.func @transform_19(%arg0: i32, %arg1: i32) -> (i32, i32) {
    %c0_i32 = arith.constant 0 : i32
    %c0_i32_0 = arith.constant 0 : i32
    %c0_i32_1 = arith.constant 0 : i32
    return %c0_i32, %c0_i32_0 : i32, i32
  }
  func.func @transform_20(%arg0: i32, %arg1: i32) -> (i32, i32) {
    %c0_i32 = arith.constant 0 : i32
    %c0_i32_0 = arith.constant 0 : i32
    %c0_i32_1 = arith.constant 0 : i32
    return %c0_i32, %c0_i32_0 : i32, i32
  }
  func.func @transform_21(%arg0: i32, %arg1: i32) -> (i32, i32) {
    %c0_i32 = arith.constant 0 : i32
    %c0_i32_0 = arith.constant 0 : i32
    %c0_i32_1 = arith.constant 0 : i32
    return %c0_i32, %c0_i32_0 : i32, i32
  }
  func.func @transform_22(%arg0: i32, %arg1: i32) -> (i32, i32) {
    %c0_i32 = arith.constant 0 : i32
    %c0_i32_0 = arith.constant 0 : i32
    %c0_i32_1 = arith.constant 0 : i32
    return %c0_i32, %c0_i32_0 : i32, i32
  }
  func.func @transform_23(%arg0: i32, %arg1: i32) -> (i32, i32) {
    %c0_i32 = arith.constant 0 : i32
    %c0_i32_0 = arith.constant 0 : i32
    %c0_i32_1 = arith.constant 0 : i32
    return %c0_i32, %c0_i32_0 : i32, i32
  }
  func.func @transform_24(%arg0: i32, %arg1: i32) -> (i32, i32) {
    %c0_i32 = arith.constant 0 : i32
    %c0_i32_0 = arith.constant 0 : i32
    %c0_i32_1 = arith.constant 0 : i32
    return %c0_i32, %c0_i32_0 : i32, i32
  }
  func.func @transform_25(%arg0: i32, %arg1: i32) -> (i32, i32) {
    %c0_i32 = arith.constant 0 : i32
    %c0_i32_0 = arith.constant 0 : i32
    %c0_i32_1 = arith.constant 0 : i32
    return %c0_i32, %c0_i32_0 : i32, i32
  }
  func.func @transform_26(%arg0: i32, %arg1: i32) -> (i32, i32) {
    %c0_i32 = arith.constant 0 : i32
    %c0_i32_0 = arith.constant 0 : i32
    %c0_i32_1 = arith.constant 0 : i32
    return %c0_i32, %c0_i32_0 : i32, i32
  }
  func.func @transform_27(%arg0: i32, %arg1: i32) -> (i32, i32) {
    %c0_i32 = arith.constant 0 : i32
    %c0_i32_0 = arith.constant 0 : i32
    %c0_i32_1 = arith.constant 0 : i32
    return %c0_i32, %c0_i32_0 : i32, i32
  }
  func.func @transform_28(%arg0: i32, %arg1: i32) -> (i32, i32) {
    %c0_i32 = arith.constant 0 : i32
    %c0_i32_0 = arith.constant 0 : i32
    %c0_i32_1 = arith.constant 0 : i32
    return %c0_i32, %c0_i32_0 : i32, i32
  }
  func.func @transform_29(%arg0: i32, %arg1: i32) -> (i32, i32) {
    %c0_i32 = arith.constant 0 : i32
    %c0_i32_0 = arith.constant 0 : i32
    %c0_i32_1 = arith.constant 0 : i32
    return %c0_i32, %c0_i32_0 : i32, i32
  }
  func.func @transform_30(%arg0: i32, %arg1: i32) -> (i32, i32) {
    %c0_i32 = arith.constant 0 : i32
    %c0_i32_0 = arith.constant 0 : i32
    %c0_i32_1 = arith.constant 0 : i32
    return %c0_i32, %c0_i32_0 : i32, i32
  }
  func.func @transform_31(%arg0: i32, %arg1: i32) -> (i32, i32, i32) {
    %c0_i32 = arith.constant 0 : i32
    %c0_i32_0 = arith.constant 0 : i32
    return %arg0, %arg1, %c0_i32 : i32, i32, i32
  }
}

module attributes {stable_mosaic.version = 11 : i64} {
  func.func @_lambda_(%arg0: i32, %arg1: i32, %arg2: memref<1x8x32xf32, #tpu.memory_space<vmem>>, %arg3: memref<1x8x32xf32, #tpu.memory_space<vmem>>, %arg4: memref<1x8x32xf32, #tpu.memory_space<vmem>>, %arg5: memref<1x8x8xbf16, #tpu.memory_space<vmem>>, %arg6: memref<1x8x8xbf16, #tpu.memory_space<vmem>>, %arg7: memref<32x32xbf16, #tpu.memory_space<vmem>>, %arg8: memref<1x32xf32, #tpu.memory_space<vmem>>, %arg9: memref<32x32xbf16, #tpu.memory_space<vmem>>, %arg10: memref<1x32xf32, #tpu.memory_space<vmem>>, %arg11: memref<32x32xbf16, #tpu.memory_space<vmem>>, %arg12: memref<1x32xf32, #tpu.memory_space<vmem>>, %arg13: memref<32x32xbf16, #tpu.memory_space<vmem>>, %arg14: memref<1x32xf32, #tpu.memory_space<vmem>>, %arg15: memref<1x32xf32, #tpu.memory_space<vmem>>, %arg16: memref<1x32xf32, #tpu.memory_space<vmem>>, %arg17: memref<32x32xbf16, #tpu.memory_space<vmem>>, %arg18: memref<1x32xf32, #tpu.memory_space<vmem>>, %arg19: memref<32x32xbf16, #tpu.memory_space<vmem>>, %arg20: memref<1x32xf32, #tpu.memory_space<vmem>>, %arg21: memref<32x32xbf16, #tpu.memory_space<vmem>>, %arg22: memref<1x32xf32, #tpu.memory_space<vmem>>, %arg23: memref<32x32xbf16, #tpu.memory_space<vmem>>, %arg24: memref<1x32xf32, #tpu.memory_space<vmem>>, %arg25: memref<1x32xf32, #tpu.memory_space<vmem>>, %arg26: memref<1x32xf32, #tpu.memory_space<vmem>>, %arg27: memref<32x64xbf16, #tpu.memory_space<vmem>>, %arg28: memref<1x64xf32, #tpu.memory_space<vmem>>, %arg29: memref<64x32xbf16, #tpu.memory_space<vmem>>, %arg30: memref<1x32xf32, #tpu.memory_space<vmem>>, %arg31: memref<1x32xf32, #tpu.memory_space<vmem>>, %arg32: memref<1x32xf32, #tpu.memory_space<vmem>>, %arg33: memref<1x8x32xf32, #tpu.memory_space<vmem>>, %arg34: memref<2x4x8x8xbf16, #tpu.memory_space<vmem>>, %arg35: memref<2x4x8x8xbf16, #tpu.memory_space<vmem>>) attributes {dimension_semantics = [#tpu.dimension_semantics<parallel>, #tpu.dimension_semantics<arbitrary>], iteration_bounds = array<i64: 2, 1>, scalar_prefetch = 0 : i64, scratch_operands = 2 : i64, tpu.core_type = #tpu.core_type<tc>, window_params = [{transform_indices = @transform_0, window_bounds = array<i64: 1, 8, 32>}, {transform_indices = @transform_1, window_bounds = array<i64: 1, 8, 32>}, {transform_indices = @transform_2, window_bounds = array<i64: 1, 8, 32>}, {transform_indices = @transform_3, window_bounds = array<i64: 1, 8, 8>}, {transform_indices = @transform_4, window_bounds = array<i64: 1, 8, 8>}, {pipeline_mode = #tpu.pipeline_mode<synchronous>, transform_indices = @transform_5, window_bounds = array<i64: 32, 32>}, {pipeline_mode = #tpu.pipeline_mode<synchronous>, transform_indices = @transform_6, window_bounds = array<i64: 1, 32>}, {pipeline_mode = #tpu.pipeline_mode<synchronous>, transform_indices = @transform_7, window_bounds = array<i64: 32, 32>}, {pipeline_mode = #tpu.pipeline_mode<synchronous>, transform_indices = @transform_8, window_bounds = array<i64: 1, 32>}, {pipeline_mode = #tpu.pipeline_mode<synchronous>, transform_indices = @transform_9, window_bounds = array<i64: 32, 32>}, {pipeline_mode = #tpu.pipeline_mode<synchronous>, transform_indices = @transform_10, window_bounds = array<i64: 1, 32>}, {pipeline_mode = #tpu.pipeline_mode<synchronous>, transform_indices = @transform_11, window_bounds = array<i64: 32, 32>}, {pipeline_mode = #tpu.pipeline_mode<synchronous>, transform_indices = @transform_12, window_bounds = array<i64: 1, 32>}, {pipeline_mode = #tpu.pipeline_mode<synchronous>, transform_indices = @transform_13, window_bounds = array<i64: 1, 32>}, {pipeline_mode = #tpu.pipeline_mode<synchronous>, transform_indices = @transform_14, window_bounds = array<i64: 1, 32>}, {pipeline_mode = #tpu.pipeline_mode<synchronous>, transform_indices = @transform_15, window_bounds = array<i64: 32, 32>}, {pipeline_mode = #tpu.pipeline_mode<synchronous>, transform_indices = @transform_16, window_bounds = array<i64: 1, 32>}, {pipeline_mode = #tpu.pipeline_mode<synchronous>, transform_indices = @transform_17, window_bounds = array<i64: 32, 32>}, {pipeline_mode = #tpu.pipeline_mode<synchronous>, transform_indices = @transform_18, window_bounds = array<i64: 1, 32>}, {pipeline_mode = #tpu.pipeline_mode<synchronous>, transform_indices = @transform_19, window_bounds = array<i64: 32, 32>}, {pipeline_mode = #tpu.pipeline_mode<synchronous>, transform_indices = @transform_20, window_bounds = array<i64: 1, 32>}, {pipeline_mode = #tpu.pipeline_mode<synchronous>, transform_indices = @transform_21, window_bounds = array<i64: 32, 32>}, {pipeline_mode = #tpu.pipeline_mode<synchronous>, transform_indices = @transform_22, window_bounds = array<i64: 1, 32>}, {pipeline_mode = #tpu.pipeline_mode<synchronous>, transform_indices = @transform_23, window_bounds = array<i64: 1, 32>}, {pipeline_mode = #tpu.pipeline_mode<synchronous>, transform_indices = @transform_24, window_bounds = array<i64: 1, 32>}, {pipeline_mode = #tpu.pipeline_mode<synchronous>, transform_indices = @transform_25, window_bounds = array<i64: 32, 64>}, {pipeline_mode = #tpu.pipeline_mode<synchronous>, transform_indices = @transform_26, window_bounds = array<i64: 1, 64>}, {pipeline_mode = #tpu.pipeline_mode<synchronous>, transform_indices = @transform_27, window_bounds = array<i64: 64, 32>}, {pipeline_mode = #tpu.pipeline_mode<synchronous>, transform_indices = @transform_28, window_bounds = array<i64: 1, 32>}, {pipeline_mode = #tpu.pipeline_mode<synchronous>, transform_indices = @transform_29, window_bounds = array<i64: 1, 32>}, {pipeline_mode = #tpu.pipeline_mode<synchronous>, transform_indices = @transform_30, window_bounds = array<i64: 1, 32>}, {transform_indices = @transform_31, window_bounds = array<i64: 1, 8, 32>}]} {
    %c0_i32 = arith.constant 0 : i32
    %0 = arith.cmpi eq, %arg1, %c0_i32 : i32
    %1 = arith.extui %0 : i1 to i32
    %c0_i32_0 = arith.constant 0 : i32
    %2 = arith.cmpi ne, %1, %c0_i32_0 : i32
    scf.if %2 {
      %c0_92 = arith.constant 0 : index
      %c0_93 = arith.constant 0 : index
      %c0_94 = arith.constant 0 : index
      %177 = vector.load %arg3[%c0_92, %c0_93, %c0_94] : memref<1x8x32xf32, #tpu.memory_space<vmem>>, vector<1x8x32xf32>
      %178 = vector.shape_cast %177 : vector<1x8x32xf32> to vector<8x32xf32>
      %179 = arith.truncf %178 : vector<8x32xf32> to vector<8x32xbf16>
      %c0_95 = arith.constant 0 : index
      %c0_96 = arith.constant 0 : index
      %180 = vector.load %arg9[%c0_95, %c0_96] : memref<32x32xbf16, #tpu.memory_space<vmem>>, vector<32x32xbf16>
      %cst_97 = arith.constant dense<0.000000e+00> : vector<8x32xf32>
      %181 = tpu.matmul %179, %180, %cst_97 {dimension_numbers = #tpu.dot_dimension_numbers<[1], [0], [0], [1], [0, 0, 1, 1], [], []>} : vector<8x32xbf16>, vector<32x32xbf16>, vector<8x32xf32> -> vector<8x32xf32>
      %c0_98 = arith.constant 0 : index
      %c0_99 = arith.constant 0 : index
      %182 = vector.load %arg10[%c0_98, %c0_99] : memref<1x32xf32, #tpu.memory_space<vmem>>, vector<1x32xf32>
      %183 = vector.broadcast %182 : vector<1x32xf32> to vector<8x32xf32>
      %184 = arith.addf %181, %183 : vector<8x32xf32>
      %c0_100 = arith.constant 0 : index
      %c0_101 = arith.constant 0 : index
      %185 = vector.load %arg11[%c0_100, %c0_101] : memref<32x32xbf16, #tpu.memory_space<vmem>>, vector<32x32xbf16>
      %cst_102 = arith.constant dense<0.000000e+00> : vector<8x32xf32>
      %186 = tpu.matmul %179, %185, %cst_102 {dimension_numbers = #tpu.dot_dimension_numbers<[1], [0], [0], [1], [0, 0, 1, 1], [], []>} : vector<8x32xbf16>, vector<32x32xbf16>, vector<8x32xf32> -> vector<8x32xf32>
      %c0_103 = arith.constant 0 : index
      %c0_104 = arith.constant 0 : index
      %187 = vector.load %arg12[%c0_103, %c0_104] : memref<1x32xf32, #tpu.memory_space<vmem>>, vector<1x32xf32>
      %188 = vector.broadcast %187 : vector<1x32xf32> to vector<8x32xf32>
      %189 = arith.addf %186, %188 : vector<8x32xf32>
      %190 = arith.truncf %184 : vector<8x32xf32> to vector<8x32xbf16>
      %191 = vector.shape_cast %190 : vector<8x32xbf16> to vector<8x4x8xbf16>
      %192 = tpu.transpose %191, [1, 0, 2] : vector<8x4x8xbf16> -> vector<4x8x8xbf16>
      %c0_105 = arith.constant 0 : index
      %c0_106 = arith.constant 0 : index
      %c0_107 = arith.constant 0 : index
      %c0_108 = arith.constant 0 : index
      %193 = vector.load %arg34[%c0_105, %c0_106, %c0_107, %c0_108] : memref<2x4x8x8xbf16, #tpu.memory_space<vmem>>, vector<1x4x8x8xbf16>
      %194 = vector.shape_cast %193 : vector<1x4x8x8xbf16> to vector<4x8x8xbf16>
      %195 = vector.shape_cast %192 : vector<4x8x8xbf16> to vector<1x4x8x8xbf16>
      tpu.vector_store %arg34[%c0_105, %c0_106, %c0_107, %c0_108], %195 {strides = array<i32>} : memref<2x4x8x8xbf16, #tpu.memory_space<vmem>>, vector<1x4x8x8xbf16>,
      %196 = arith.truncf %189 : vector<8x32xf32> to vector<8x32xbf16>
      %197 = vector.shape_cast %196 : vector<8x32xbf16> to vector<8x4x8xbf16>
      %198 = tpu.transpose %197, [1, 0, 2] : vector<8x4x8xbf16> -> vector<4x8x8xbf16>
      %c1_109 = arith.constant 1 : index
      %c0_110 = arith.constant 0 : index
      %c0_111 = arith.constant 0 : index
      %c0_112 = arith.constant 0 : index
      %199 = vector.load %arg34[%c1_109, %c0_110, %c0_111, %c0_112] : memref<2x4x8x8xbf16, #tpu.memory_space<vmem>>, vector<1x4x8x8xbf16>
      %200 = vector.shape_cast %199 : vector<1x4x8x8xbf16> to vector<4x8x8xbf16>
      %201 = vector.shape_cast %198 : vector<4x8x8xbf16> to vector<1x4x8x8xbf16>
      tpu.vector_store %arg34[%c1_109, %c0_110, %c0_111, %c0_112], %201 {strides = array<i32>} : memref<2x4x8x8xbf16, #tpu.memory_space<vmem>>, vector<1x4x8x8xbf16>,
      %c0_113 = arith.constant 0 : index
      %c0_114 = arith.constant 0 : index
      %c0_115 = arith.constant 0 : index
      %202 = vector.load %arg4[%c0_113, %c0_114, %c0_115] : memref<1x8x32xf32, #tpu.memory_space<vmem>>, vector<1x8x32xf32>
      %203 = vector.shape_cast %202 : vector<1x8x32xf32> to vector<8x32xf32>
      %204 = arith.truncf %203 : vector<8x32xf32> to vector<8x32xbf16>
      %c0_116 = arith.constant 0 : index
      %c0_117 = arith.constant 0 : index
      %205 = vector.load %arg19[%c0_116, %c0_117] : memref<32x32xbf16, #tpu.memory_space<vmem>>, vector<32x32xbf16>
      %cst_118 = arith.constant dense<0.000000e+00> : vector<8x32xf32>
      %206 = tpu.matmul %204, %205, %cst_118 {dimension_numbers = #tpu.dot_dimension_numbers<[1], [0], [0], [1], [0, 0, 1, 1], [], []>} : vector<8x32xbf16>, vector<32x32xbf16>, vector<8x32xf32> -> vector<8x32xf32>
      %c0_119 = arith.constant 0 : index
      %c0_120 = arith.constant 0 : index
      %207 = vector.load %arg20[%c0_119, %c0_120] : memref<1x32xf32, #tpu.memory_space<vmem>>, vector<1x32xf32>
      %208 = vector.broadcast %207 : vector<1x32xf32> to vector<8x32xf32>
      %209 = arith.addf %206, %208 : vector<8x32xf32>
      %c0_121 = arith.constant 0 : index
      %c0_122 = arith.constant 0 : index
      %210 = vector.load %arg21[%c0_121, %c0_122] : memref<32x32xbf16, #tpu.memory_space<vmem>>, vector<32x32xbf16>
      %cst_123 = arith.constant dense<0.000000e+00> : vector<8x32xf32>
      %211 = tpu.matmul %204, %210, %cst_123 {dimension_numbers = #tpu.dot_dimension_numbers<[1], [0], [0], [1], [0, 0, 1, 1], [], []>} : vector<8x32xbf16>, vector<32x32xbf16>, vector<8x32xf32> -> vector<8x32xf32>
      %c0_124 = arith.constant 0 : index
      %c0_125 = arith.constant 0 : index
      %212 = vector.load %arg22[%c0_124, %c0_125] : memref<1x32xf32, #tpu.memory_space<vmem>>, vector<1x32xf32>
      %213 = vector.broadcast %212 : vector<1x32xf32> to vector<8x32xf32>
      %214 = arith.addf %211, %213 : vector<8x32xf32>
      %215 = arith.truncf %209 : vector<8x32xf32> to vector<8x32xbf16>
      %216 = vector.shape_cast %215 : vector<8x32xbf16> to vector<8x4x8xbf16>
      %217 = tpu.transpose %216, [1, 0, 2] : vector<8x4x8xbf16> -> vector<4x8x8xbf16>
      %c0_126 = arith.constant 0 : index
      %c0_127 = arith.constant 0 : index
      %c0_128 = arith.constant 0 : index
      %c0_129 = arith.constant 0 : index
      %218 = vector.load %arg35[%c0_126, %c0_127, %c0_128, %c0_129] : memref<2x4x8x8xbf16, #tpu.memory_space<vmem>>, vector<1x4x8x8xbf16>
      %219 = vector.shape_cast %218 : vector<1x4x8x8xbf16> to vector<4x8x8xbf16>
      %220 = vector.shape_cast %217 : vector<4x8x8xbf16> to vector<1x4x8x8xbf16>
      tpu.vector_store %arg35[%c0_126, %c0_127, %c0_128, %c0_129], %220 {strides = array<i32>} : memref<2x4x8x8xbf16, #tpu.memory_space<vmem>>, vector<1x4x8x8xbf16>,
      %221 = arith.truncf %214 : vector<8x32xf32> to vector<8x32xbf16>
      %222 = vector.shape_cast %221 : vector<8x32xbf16> to vector<8x4x8xbf16>
      %223 = tpu.transpose %222, [1, 0, 2] : vector<8x4x8xbf16> -> vector<4x8x8xbf16>
      %c1_130 = arith.constant 1 : index
      %c0_131 = arith.constant 0 : index
      %c0_132 = arith.constant 0 : index
      %c0_133 = arith.constant 0 : index
      %224 = vector.load %arg35[%c1_130, %c0_131, %c0_132, %c0_133] : memref<2x4x8x8xbf16, #tpu.memory_space<vmem>>, vector<1x4x8x8xbf16>
      %225 = vector.shape_cast %224 : vector<1x4x8x8xbf16> to vector<4x8x8xbf16>
      %226 = vector.shape_cast %223 : vector<4x8x8xbf16> to vector<1x4x8x8xbf16>
      tpu.vector_store %arg35[%c1_130, %c0_131, %c0_132, %c0_133], %226 {strides = array<i32>} : memref<2x4x8x8xbf16, #tpu.memory_space<vmem>>, vector<1x4x8x8xbf16>,
    } else {
    }
    %c0 = arith.constant 0 : index
    %c0_1 = arith.constant 0 : index
    %c0_2 = arith.constant 0 : index
    %3 = vector.load %arg2[%c0, %c0_1, %c0_2] : memref<1x8x32xf32, #tpu.memory_space<vmem>>, vector<1x8x32xf32>
    %4 = vector.shape_cast %3 : vector<1x8x32xf32> to vector<8x32xf32>
    %c0_3 = arith.constant 0 : index
    %c0_4 = arith.constant 0 : index
    %c0_5 = arith.constant 0 : index
    %5 = vector.load %arg5[%c0_3, %c0_4, %c0_5] : memref<1x8x8xbf16, #tpu.memory_space<vmem>>, vector<1x8x8xbf16>
    %6 = vector.shape_cast %5 : vector<1x8x8xbf16> to vector<8x8xbf16>
    %7 = arith.extf %6 : vector<8x8xbf16> to vector<8x8xf32>
    %c0_6 = arith.constant 0 : index
    %c0_7 = arith.constant 0 : index
    %c0_8 = arith.constant 0 : index
    %8 = vector.load %arg6[%c0_6, %c0_7, %c0_8] : memref<1x8x8xbf16, #tpu.memory_space<vmem>>, vector<1x8x8xbf16>
    %9 = vector.shape_cast %8 : vector<1x8x8xbf16> to vector<8x8xbf16>
    %10 = arith.extf %9 : vector<8x8xbf16> to vector<8x8xf32>
    %c0_9 = arith.constant 0 : index
    %c0_10 = arith.constant 0 : index
    %c0_11 = arith.constant 0 : index
    %c0_12 = arith.constant 0 : index
    %11 = vector.load %arg34[%c0_9, %c0_10, %c0_11, %c0_12] : memref<2x4x8x8xbf16, #tpu.memory_space<vmem>>, vector<1x4x8x8xbf16>
    %12 = vector.shape_cast %11 : vector<1x4x8x8xbf16> to vector<4x8x8xbf16>
    %c1 = arith.constant 1 : index
    %c0_13 = arith.constant 0 : index
    %c0_14 = arith.constant 0 : index
    %c0_15 = arith.constant 0 : index
    %13 = vector.load %arg34[%c1, %c0_13, %c0_14, %c0_15] : memref<2x4x8x8xbf16, #tpu.memory_space<vmem>>, vector<1x4x8x8xbf16>
    %14 = vector.shape_cast %13 : vector<1x4x8x8xbf16> to vector<4x8x8xbf16>
    %c0_16 = arith.constant 0 : index
    %c0_17 = arith.constant 0 : index
    %15 = vector.load %arg7[%c0_16, %c0_17] : memref<32x32xbf16, #tpu.memory_space<vmem>>, vector<32x32xbf16>
    %c0_18 = arith.constant 0 : index
    %c0_19 = arith.constant 0 : index
    %16 = vector.load %arg8[%c0_18, %c0_19] : memref<1x32xf32, #tpu.memory_space<vmem>>, vector<1x32xf32>
    %c0_20 = arith.constant 0 : index
    %c0_21 = arith.constant 0 : index
    %17 = vector.load %arg13[%c0_20, %c0_21] : memref<32x32xbf16, #tpu.memory_space<vmem>>, vector<32x32xbf16>
    %c0_22 = arith.constant 0 : index
    %c0_23 = arith.constant 0 : index
    %18 = vector.load %arg14[%c0_22, %c0_23] : memref<1x32xf32, #tpu.memory_space<vmem>>, vector<1x32xf32>
    %19 = arith.truncf %4 : vector<8x32xf32> to vector<8x32xbf16>
    %cst = arith.constant dense<0.000000e+00> : vector<8x32xf32>
    %20 = tpu.matmul %19, %15, %cst {dimension_numbers = #tpu.dot_dimension_numbers<[1], [0], [0], [1], [0, 0, 1, 1], [], []>} : vector<8x32xbf16>, vector<32x32xbf16>, vector<8x32xf32> -> vector<8x32xf32>
    %21 = vector.broadcast %16 : vector<1x32xf32> to vector<8x32xf32>
    %22 = arith.addf %20, %21 : vector<8x32xf32>
    %23 = arith.truncf %22 : vector<8x32xf32> to vector<8x32xbf16>
    %24 = vector.shape_cast %23 : vector<8x32xbf16> to vector<8x4x8xbf16>
    %25 = tpu.transpose %24, [1, 0, 2] : vector<8x4x8xbf16> -> vector<4x8x8xbf16>
    "tpu.trace_start"() <{level = 10 : i32, message = "hqd,hkd->hqk"}> : () -> ()
    %cst_24 = arith.constant dense<0.000000e+00> : vector<4x8x8xf32>
    %26 = tpu.matmul %25, %12, %cst_24 {dimension_numbers = #tpu.dot_dimension_numbers<[2], [2], [1], [1], [0, 0, 0, 1, 1, 1], [0], [0]>} : vector<4x8x8xbf16>, vector<4x8x8xbf16>, vector<4x8x8xf32> -> vector<4x8x8xf32>
    "tpu.trace_stop"() : () -> ()
    %27 = vector.shape_cast %7 : vector<8x8xf32> to vector<1x8x8xf32>
    %28 = vector.broadcast %27 : vector<1x8x8xf32> to vector<4x8x8xf32>
    %29 = arith.addf %26, %28 : vector<4x8x8xf32>
    %cst_25 = arith.constant dense<0xFF800000> : vector<4x8xf32>
    %30 = vector.multi_reduction <maximumf>, %29, %cst_25 [2] : vector<4x8x8xf32> to vector<4x8xf32>
    %31 = vector.shape_cast %30 : vector<4x8xf32> to vector<4x8x1xf32>
    %32 = vector.broadcast %31 : vector<4x8x1xf32> to vector<4x8x8xf32>
    %33 = arith.subf %29, %32 : vector<4x8x8xf32>
    %34 = math.exp %33 : vector<4x8x8xf32>
    %cst_26 = arith.constant dense<0.000000e+00> : vector<4x8xf32>
    %35 = vector.multi_reduction <add>, %34, %cst_26 [2] : vector<4x8x8xf32> to vector<4x8xf32>
    %36 = vector.shape_cast %35 : vector<4x8xf32> to vector<4x8x1xf32>
    %37 = tpu.reciprocal %36 {approx = true} : vector<4x8x1xf32> -> vector<4x8x1xf32>
    %38 = vector.broadcast %37 : vector<4x8x1xf32> to vector<4x8x8xf32>
    %39 = arith.mulf %34, %38 : vector<4x8x8xf32>
    %40 = arith.truncf %39 : vector<4x8x8xf32> to vector<4x8x8xbf16>
    "tpu.trace_start"() <{level = 10 : i32, message = "hqk,hkd->hqd"}> : () -> ()
    %cst_27 = arith.constant dense<0.000000e+00> : vector<4x8x8xf32>
    %41 = tpu.matmul %40, %14, %cst_27 {dimension_numbers = #tpu.dot_dimension_numbers<[2], [1], [1], [2], [0, 0, 0, 1, 1, 2], [0], [0]>} : vector<4x8x8xbf16>, vector<4x8x8xbf16>, vector<4x8x8xf32> -> vector<4x8x8xf32>
    "tpu.trace_stop"() : () -> ()
    %42 = tpu.transpose %41, [1, 0, 2] : vector<4x8x8xf32> -> vector<8x4x8xf32>
    %43 = vector.shape_cast %42 : vector<8x4x8xf32> to vector<8x32xf32>
    %44 = arith.truncf %43 : vector<8x32xf32> to vector<8x32xbf16>
    %cst_28 = arith.constant dense<0.000000e+00> : vector<8x32xf32>
    %45 = tpu.matmul %44, %17, %cst_28 {dimension_numbers = #tpu.dot_dimension_numbers<[1], [0], [0], [1], [0, 0, 1, 1], [], []>} : vector<8x32xbf16>, vector<32x32xbf16>, vector<8x32xf32> -> vector<8x32xf32>
    %46 = vector.broadcast %18 : vector<1x32xf32> to vector<8x32xf32>
    %47 = arith.addf %45, %46 : vector<8x32xf32>
    %48 = arith.addf %47, %4 : vector<8x32xf32>
    %c0_29 = arith.constant 0 : index
    %c0_30 = arith.constant 0 : index
    %49 = vector.load %arg15[%c0_29, %c0_30] : memref<1x32xf32, #tpu.memory_space<vmem>>, vector<1x32xf32>
    %c0_31 = arith.constant 0 : index
    %c0_32 = arith.constant 0 : index
    %50 = vector.load %arg16[%c0_31, %c0_32] : memref<1x32xf32, #tpu.memory_space<vmem>>, vector<1x32xf32>
    %cst_33 = arith.constant dense<0.000000e+00> : vector<8xf32>
    %51 = vector.multi_reduction <add>, %48, %cst_33 [1] : vector<8x32xf32> to vector<8xf32>
    %52 = vector.shape_cast %51 : vector<8xf32> to vector<8x1xf32>
    %cst_34 = arith.constant 3.200000e+01 : f32
    %53 = vector.broadcast %cst_34 : f32 to vector<8x1xf32>
    %54 = arith.divf %52, %53 : vector<8x1xf32>
    %55 = vector.broadcast %54 : vector<8x1xf32> to vector<8x32xf32>
    %56 = arith.subf %48, %55 : vector<8x32xf32>
    %57 = arith.mulf %56, %56 : vector<8x32xf32>
    %cst_35 = arith.constant dense<0.000000e+00> : vector<8xf32>
    %58 = vector.multi_reduction <add>, %57, %cst_35 [1] : vector<8x32xf32> to vector<8xf32>
    %59 = vector.shape_cast %58 : vector<8xf32> to vector<8x1xf32>
    %cst_36 = arith.constant 3.200000e+01 : f32
    %60 = vector.broadcast %cst_36 : f32 to vector<8x1xf32>
    %61 = arith.divf %59, %60 : vector<8x1xf32>
    %62 = vector.broadcast %54 : vector<8x1xf32> to vector<8x32xf32>
    %63 = arith.subf %48, %62 : vector<8x32xf32>
    %cst_37 = arith.constant 1.000000e-10 : f32
    %64 = vector.broadcast %cst_37 : f32 to vector<8x1xf32>
    %65 = arith.addf %61, %64 : vector<8x1xf32>
    %66 = math.rsqrt %65 : vector<8x1xf32>
    %67 = vector.broadcast %66 : vector<8x1xf32> to vector<8x32xf32>
    %68 = arith.mulf %63, %67 : vector<8x32xf32>
    %69 = vector.broadcast %49 : vector<1x32xf32> to vector<8x32xf32>
    %70 = arith.mulf %69, %68 : vector<8x32xf32>
    %71 = vector.broadcast %50 : vector<1x32xf32> to vector<8x32xf32>
    %72 = arith.addf %70, %71 : vector<8x32xf32>
    %c0_38 = arith.constant 0 : index
    %c0_39 = arith.constant 0 : index
    %c0_40 = arith.constant 0 : index
    %c0_41 = arith.constant 0 : index
    %73 = vector.load %arg35[%c0_38, %c0_39, %c0_40, %c0_41] : memref<2x4x8x8xbf16, #tpu.memory_space<vmem>>, vector<1x4x8x8xbf16>
    %74 = vector.shape_cast %73 : vector<1x4x8x8xbf16> to vector<4x8x8xbf16>
    %c1_42 = arith.constant 1 : index
    %c0_43 = arith.constant 0 : index
    %c0_44 = arith.constant 0 : index
    %c0_45 = arith.constant 0 : index
    %75 = vector.load %arg35[%c1_42, %c0_43, %c0_44, %c0_45] : memref<2x4x8x8xbf16, #tpu.memory_space<vmem>>, vector<1x4x8x8xbf16>
    %76 = vector.shape_cast %75 : vector<1x4x8x8xbf16> to vector<4x8x8xbf16>
    %c0_46 = arith.constant 0 : index
    %c0_47 = arith.constant 0 : index
    %77 = vector.load %arg17[%c0_46, %c0_47] : memref<32x32xbf16, #tpu.memory_space<vmem>>, vector<32x32xbf16>
    %c0_48 = arith.constant 0 : index
    %c0_49 = arith.constant 0 : index
    %78 = vector.load %arg18[%c0_48, %c0_49] : memref<1x32xf32, #tpu.memory_space<vmem>>, vector<1x32xf32>
    %c0_50 = arith.constant 0 : index
    %c0_51 = arith.constant 0 : index
    %79 = vector.load %arg23[%c0_50, %c0_51] : memref<32x32xbf16, #tpu.memory_space<vmem>>, vector<32x32xbf16>
    %c0_52 = arith.constant 0 : index
    %c0_53 = arith.constant 0 : index
    %80 = vector.load %arg24[%c0_52, %c0_53] : memref<1x32xf32, #tpu.memory_space<vmem>>, vector<1x32xf32>
    %81 = arith.truncf %72 : vector<8x32xf32> to vector<8x32xbf16>
    %cst_54 = arith.constant dense<0.000000e+00> : vector<8x32xf32>
    %82 = tpu.matmul %81, %77, %cst_54 {dimension_numbers = #tpu.dot_dimension_numbers<[1], [0], [0], [1], [0, 0, 1, 1], [], []>} : vector<8x32xbf16>, vector<32x32xbf16>, vector<8x32xf32> -> vector<8x32xf32>
    %83 = vector.broadcast %78 : vector<1x32xf32> to vector<8x32xf32>
    %84 = arith.addf %82, %83 : vector<8x32xf32>
    %85 = arith.truncf %84 : vector<8x32xf32> to vector<8x32xbf16>
    %86 = vector.shape_cast %85 : vector<8x32xbf16> to vector<8x4x8xbf16>
    %87 = tpu.transpose %86, [1, 0, 2] : vector<8x4x8xbf16> -> vector<4x8x8xbf16>
    "tpu.trace_start"() <{level = 10 : i32, message = "hqd,hkd->hqk"}> : () -> ()
    %cst_55 = arith.constant dense<0.000000e+00> : vector<4x8x8xf32>
    %88 = tpu.matmul %87, %74, %cst_55 {dimension_numbers = #tpu.dot_dimension_numbers<[2], [2], [1], [1], [0, 0, 0, 1, 1, 1], [0], [0]>} : vector<4x8x8xbf16>, vector<4x8x8xbf16>, vector<4x8x8xf32> -> vector<4x8x8xf32>
    "tpu.trace_stop"() : () -> ()
    %89 = vector.shape_cast %10 : vector<8x8xf32> to vector<1x8x8xf32>
    %90 = vector.broadcast %89 : vector<1x8x8xf32> to vector<4x8x8xf32>
    %91 = arith.addf %88, %90 : vector<4x8x8xf32>
    %cst_56 = arith.constant dense<0xFF800000> : vector<4x8xf32>
    %92 = vector.multi_reduction <maximumf>, %91, %cst_56 [2] : vector<4x8x8xf32> to vector<4x8xf32>
    %93 = vector.shape_cast %92 : vector<4x8xf32> to vector<4x8x1xf32>
    %94 = vector.broadcast %93 : vector<4x8x1xf32> to vector<4x8x8xf32>
    %95 = arith.subf %91, %94 : vector<4x8x8xf32>
    %96 = math.exp %95 : vector<4x8x8xf32>
    %cst_57 = arith.constant dense<0.000000e+00> : vector<4x8xf32>
    %97 = vector.multi_reduction <add>, %96, %cst_57 [2] : vector<4x8x8xf32> to vector<4x8xf32>
    %98 = vector.shape_cast %97 : vector<4x8xf32> to vector<4x8x1xf32>
    %99 = tpu.reciprocal %98 {approx = true} : vector<4x8x1xf32> -> vector<4x8x1xf32>
    %100 = vector.broadcast %99 : vector<4x8x1xf32> to vector<4x8x8xf32>
    %101 = arith.mulf %96, %100 : vector<4x8x8xf32>
    %102 = arith.truncf %101 : vector<4x8x8xf32> to vector<4x8x8xbf16>
    "tpu.trace_start"() <{level = 10 : i32, message = "hqk,hkd->hqd"}> : () -> ()
    %cst_58 = arith.constant dense<0.000000e+00> : vector<4x8x8xf32>
    %103 = tpu.matmul %102, %76, %cst_58 {dimension_numbers = #tpu.dot_dimension_numbers<[2], [1], [1], [2], [0, 0, 0, 1, 1, 2], [0], [0]>} : vector<4x8x8xbf16>, vector<4x8x8xbf16>, vector<4x8x8xf32> -> vector<4x8x8xf32>
    "tpu.trace_stop"() : () -> ()
    %104 = tpu.transpose %103, [1, 0, 2] : vector<4x8x8xf32> -> vector<8x4x8xf32>
    %105 = vector.shape_cast %104 : vector<8x4x8xf32> to vector<8x32xf32>
    %106 = arith.truncf %105 : vector<8x32xf32> to vector<8x32xbf16>
    %cst_59 = arith.constant dense<0.000000e+00> : vector<8x32xf32>
    %107 = tpu.matmul %106, %79, %cst_59 {dimension_numbers = #tpu.dot_dimension_numbers<[1], [0], [0], [1], [0, 0, 1, 1], [], []>} : vector<8x32xbf16>, vector<32x32xbf16>, vector<8x32xf32> -> vector<8x32xf32>
    %108 = vector.broadcast %80 : vector<1x32xf32> to vector<8x32xf32>
    %109 = arith.addf %107, %108 : vector<8x32xf32>
    %110 = arith.addf %109, %72 : vector<8x32xf32>
    %c0_60 = arith.constant 0 : index
    %c0_61 = arith.constant 0 : index
    %111 = vector.load %arg25[%c0_60, %c0_61] : memref<1x32xf32, #tpu.memory_space<vmem>>, vector<1x32xf32>
    %c0_62 = arith.constant 0 : index
    %c0_63 = arith.constant 0 : index
    %112 = vector.load %arg26[%c0_62, %c0_63] : memref<1x32xf32, #tpu.memory_space<vmem>>, vector<1x32xf32>
    %cst_64 = arith.constant dense<0.000000e+00> : vector<8xf32>
    %113 = vector.multi_reduction <add>, %110, %cst_64 [1] : vector<8x32xf32> to vector<8xf32>
    %114 = vector.shape_cast %113 : vector<8xf32> to vector<8x1xf32>
    %cst_65 = arith.constant 3.200000e+01 : f32
    %115 = vector.broadcast %cst_65 : f32 to vector<8x1xf32>
    %116 = arith.divf %114, %115 : vector<8x1xf32>
    %117 = vector.broadcast %116 : vector<8x1xf32> to vector<8x32xf32>
    %118 = arith.subf %110, %117 : vector<8x32xf32>
    %119 = arith.mulf %118, %118 : vector<8x32xf32>
    %cst_66 = arith.constant dense<0.000000e+00> : vector<8xf32>
    %120 = vector.multi_reduction <add>, %119, %cst_66 [1] : vector<8x32xf32> to vector<8xf32>
    %121 = vector.shape_cast %120 : vector<8xf32> to vector<8x1xf32>
    %cst_67 = arith.constant 3.200000e+01 : f32
    %122 = vector.broadcast %cst_67 : f32 to vector<8x1xf32>
    %123 = arith.divf %121, %122 : vector<8x1xf32>
    %124 = vector.broadcast %116 : vector<8x1xf32> to vector<8x32xf32>
    %125 = arith.subf %110, %124 : vector<8x32xf32>
    %cst_68 = arith.constant 1.000000e-10 : f32
    %126 = vector.broadcast %cst_68 : f32 to vector<8x1xf32>
    %127 = arith.addf %123, %126 : vector<8x1xf32>
    %128 = math.rsqrt %127 : vector<8x1xf32>
    %129 = vector.broadcast %128 : vector<8x1xf32> to vector<8x32xf32>
    %130 = arith.mulf %125, %129 : vector<8x32xf32>
    %131 = vector.broadcast %111 : vector<1x32xf32> to vector<8x32xf32>
    %132 = arith.mulf %131, %130 : vector<8x32xf32>
    %133 = vector.broadcast %112 : vector<1x32xf32> to vector<8x32xf32>
    %134 = arith.addf %132, %133 : vector<8x32xf32>
    %135 = arith.truncf %134 : vector<8x32xf32> to vector<8x32xbf16>
    %c0_69 = arith.constant 0 : index
    %c0_70 = arith.constant 0 : index
    %136 = vector.load %arg27[%c0_69, %c0_70] : memref<32x64xbf16, #tpu.memory_space<vmem>>, vector<32x64xbf16>
    %cst_71 = arith.constant dense<0.000000e+00> : vector<8x64xf32>
    %137 = tpu.matmul %135, %136, %cst_71 {dimension_numbers = #tpu.dot_dimension_numbers<[1], [0], [0], [1], [0, 0, 1, 1], [], []>} : vector<8x32xbf16>, vector<32x64xbf16>, vector<8x64xf32> -> vector<8x64xf32>
    %c0_72 = arith.constant 0 : index
    %c0_73 = arith.constant 0 : index
    %138 = vector.load %arg28[%c0_72, %c0_73] : memref<1x64xf32, #tpu.memory_space<vmem>>, vector<1x64xf32>
    %139 = vector.broadcast %138 : vector<1x64xf32> to vector<8x64xf32>
    %140 = arith.addf %137, %139 : vector<8x64xf32>
    %cst_74 = arith.constant 0.000000e+00 : f32
    %141 = vector.broadcast %cst_74 : f32 to vector<8x64xf32>
    %142 = arith.maximumf %140, %141 : vector<8x64xf32>
    %143 = arith.truncf %142 : vector<8x64xf32> to vector<8x64xbf16>
    %c0_75 = arith.constant 0 : index
    %c0_76 = arith.constant 0 : index
    %144 = vector.load %arg29[%c0_75, %c0_76] : memref<64x32xbf16, #tpu.memory_space<vmem>>, vector<64x32xbf16>
    %cst_77 = arith.constant dense<0.000000e+00> : vector<8x32xf32>
    %145 = tpu.matmul %143, %144, %cst_77 {dimension_numbers = #tpu.dot_dimension_numbers<[1], [0], [0], [1], [0, 0, 1, 1], [], []>} : vector<8x64xbf16>, vector<64x32xbf16>, vector<8x32xf32> -> vector<8x32xf32>
    %c0_78 = arith.constant 0 : index
    %c0_79 = arith.constant 0 : index
    %146 = vector.load %arg30[%c0_78, %c0_79] : memref<1x32xf32, #tpu.memory_space<vmem>>, vector<1x32xf32>
    %147 = vector.broadcast %146 : vector<1x32xf32> to vector<8x32xf32>
    %148 = arith.addf %145, %147 : vector<8x32xf32>
    %149 = arith.addf %148, %134 : vector<8x32xf32>
    %c0_80 = arith.constant 0 : index
    %c0_81 = arith.constant 0 : index
    %150 = vector.load %arg31[%c0_80, %c0_81] : memref<1x32xf32, #tpu.memory_space<vmem>>, vector<1x32xf32>
    %c0_82 = arith.constant 0 : index
    %c0_83 = arith.constant 0 : index
    %151 = vector.load %arg32[%c0_82, %c0_83] : memref<1x32xf32, #tpu.memory_space<vmem>>, vector<1x32xf32>
    %cst_84 = arith.constant dense<0.000000e+00> : vector<8xf32>
    %152 = vector.multi_reduction <add>, %149, %cst_84 [1] : vector<8x32xf32> to vector<8xf32>
    %153 = vector.shape_cast %152 : vector<8xf32> to vector<8x1xf32>
    %cst_85 = arith.constant 3.200000e+01 : f32
    %154 = vector.broadcast %cst_85 : f32 to vector<8x1xf32>
    %155 = arith.divf %153, %154 : vector<8x1xf32>
    %156 = vector.broadcast %155 : vector<8x1xf32> to vector<8x32xf32>
    %157 = arith.subf %149, %156 : vector<8x32xf32>
    %158 = arith.mulf %157, %157 : vector<8x32xf32>
    %cst_86 = arith.constant dense<0.000000e+00> : vector<8xf32>
    %159 = vector.multi_reduction <add>, %158, %cst_86 [1] : vector<8x32xf32> to vector<8xf32>
    %160 = vector.shape_cast %159 : vector<8xf32> to vector<8x1xf32>
    %cst_87 = arith.constant 3.200000e+01 : f32
    %161 = vector.broadcast %cst_87 : f32 to vector<8x1xf32>
    %162 = arith.divf %160, %161 : vector<8x1xf32>
    %163 = vector.broadcast %155 : vector<8x1xf32> to vector<8x32xf32>
    %164 = arith.subf %149, %163 : vector<8x32xf32>
    %cst_88 = arith.constant 1.000000e-10 : f32
    %165 = vector.broadcast %cst_88 : f32 to vector<8x1xf32>
    %166 = arith.addf %162, %165 : vector<8x1xf32>
    %167 = math.rsqrt %166 : vector<8x1xf32>
    %168 = vector.broadcast %167 : vector<8x1xf32> to vector<8x32xf32>
    %169 = arith.mulf %164, %168 : vector<8x32xf32>
    %170 = vector.broadcast %150 : vector<1x32xf32> to vector<8x32xf32>
    %171 = arith.mulf %170, %169 : vector<8x32xf32>
    %172 = vector.broadcast %151 : vector<1x32xf32> to vector<8x32xf32>
    %173 = arith.addf %171, %172 : vector<8x32xf32>
    %c0_89 = arith.constant 0 : index
    %c0_90 = arith.constant 0 : index
    %c0_91 = arith.constant 0 : index
    %174 = vector.load %arg33[%c0_89, %c0_90, %c0_91] : memref<1x8x32xf32, #tpu.memory_space<vmem>>, vector<1x8x32xf32>
    %175 = vector.shape_cast %174 : vector<1x8x32xf32> to vector<8x32xf32>
    %176 = vector.shape_cast %173 : vector<8x32xf32> to vector<1x8x32xf32>
    tpu.vector_store %arg33[%c0_89, %c0_90, %c0_91], %176 {strides = array<i32>} : memref<1x8x32xf32, #tpu.memory_space<vmem>>, vector<1x8x32xf32>,
    return
  }
  func.func @transform_0(%arg0: i32, %arg1: i32) -> (i32, i32, i32) {
    %c0_i32 = arith.constant 0 : i32
    %c0_i32_0 = arith.constant 0 : i32
    return %arg0, %arg1, %c0_i32 : i32, i32, i32
  }
  func.func @transform_1(%arg0: i32, %arg1: i32) -> (i32, i32, i32) {
    %c0_i32 = arith.constant 0 : i32
    %c0_i32_0 = arith.constant 0 : i32
    %c0_i32_1 = arith.constant 0 : i32
    return %arg0, %c0_i32, %c0_i32_0 : i32, i32, i32
  }
  func.func @transform_2(%arg0: i32, %arg1: i32) -> (i32, i32, i32) {
    %c0_i32 = arith.constant 0 : i32
    %c0_i32_0 = arith.constant 0 : i32
    %c0_i32_1 = arith.constant 0 : i32
    return %arg0, %c0_i32, %c0_i32_0 : i32, i32, i32
  }
  func.func @transform_3(%arg0: i32, %arg1: i32) -> (i32, i32, i32) {
    %c0_i32 = arith.constant 0 : i32
    %c0_i32_0 = arith.constant 0 : i32
    return %arg0, %arg1, %c0_i32 : i32, i32, i32
  }
  func.func @transform_4(%arg0: i32, %arg1: i32) -> (i32, i32, i32) {
    %c0_i32 = arith.constant 0 : i32
    %c0_i32_0 = arith.constant 0 : i32
    return %arg0, %arg1, %c0_i32 : i32, i32, i32
  }
  func.func @transform_5(%arg0: i32, %arg1: i32) -> (i32, i32) {
    %c0_i32 = arith.constant 0 : i32
    %c0_i32_0 = arith.constant 0 : i32
    %c0_i32_1 = arith.constant 0 : i32
    return %c0_i32, %c0_i32_0 : i32, i32
  }
  func.func @transform_6(%arg0: i32, %arg1: i32) -> (i32, i32) {
    %c0_i32 = arith.constant 0 : i32
    %c0_i32_0 = arith.constant 0 : i32
    %c0_i32_1 = arith.constant 0 : i32
    return %c0_i32, %c0_i32_0 : i32, i32
  }
  func.func @transform_7(%arg0: i32, %arg1: i32) -> (i32, i32) {
    %c0_i32 = arith.constant 0 : i32
    %c0_i32_0 = arith.constant 0 : i32
    %c0_i32_1 = arith.constant 0 : i32
    return %c0_i32, %c0_i32_0 : i32, i32
  }
  func.func @transform_8(%arg0: i32, %arg1: i32) -> (i32, i32) {
    %c0_i32 = arith.constant 0 : i32
    %c0_i32_0 = arith.constant 0 : i32
    %c0_i32_1 = arith.constant 0 : i32
    return %c0_i32, %c0_i32_0 : i32, i32
  }
  func.func @transform_9(%arg0: i32, %arg1: i32) -> (i32, i32) {
    %c0_i32 = arith.constant 0 : i32
    %c0_i32_0 = arith.constant 0 : i32
    %c0_i32_1 = arith.constant 0 : i32
    return %c0_i32, %c0_i32_0 : i32, i32
  }
  func.func @transform_10(%arg0: i32, %arg1: i32) -> (i32, i32) {
    %c0_i32 = arith.constant 0 : i32
    %c0_i32_0 = arith.constant 0 : i32
    %c0_i32_1 = arith.constant 0 : i32
    return %c0_i32, %c0_i32_0 : i32, i32
  }
  func.func @transform_11(%arg0: i32, %arg1: i32) -> (i32, i32) {
    %c0_i32 = arith.constant 0 : i32
    %c0_i32_0 = arith.constant 0 : i32
    %c0_i32_1 = arith.constant 0 : i32
    return %c0_i32, %c0_i32_0 : i32, i32
  }
  func.func @transform_12(%arg0: i32, %arg1: i32) -> (i32, i32) {
    %c0_i32 = arith.constant 0 : i32
    %c0_i32_0 = arith.constant 0 : i32
    %c0_i32_1 = arith.constant 0 : i32
    return %c0_i32, %c0_i32_0 : i32, i32
  }
  func.func @transform_13(%arg0: i32, %arg1: i32) -> (i32, i32) {
    %c0_i32 = arith.constant 0 : i32
    %c0_i32_0 = arith.constant 0 : i32
    %c0_i32_1 = arith.constant 0 : i32
    return %c0_i32, %c0_i32_0 : i32, i32
  }
  func.func @transform_14(%arg0: i32, %arg1: i32) -> (i32, i32) {
    %c0_i32 = arith.constant 0 : i32
    %c0_i32_0 = arith.constant 0 : i32
    %c0_i32_1 = arith.constant 0 : i32
    return %c0_i32, %c0_i32_0 : i32, i32
  }
  func.func @transform_15(%arg0: i32, %arg1: i32) -> (i32, i32) {
    %c0_i32 = arith.constant 0 : i32
    %c0_i32_0 = arith.constant 0 : i32
    %c0_i32_1 = arith.constant 0 : i32
    return %c0_i32, %c0_i32_0 : i32, i32
  }
  func.func @transform_16(%arg0: i32, %arg1: i32) -> (i32, i32) {
    %c0_i32 = arith.constant 0 : i32
    %c0_i32_0 = arith.constant 0 : i32
    %c0_i32_1 = arith.constant 0 : i32
    return %c0_i32, %c0_i32_0 : i32, i32
  }
  func.func @transform_17(%arg0: i32, %arg1: i32) -> (i32, i32) {
    %c0_i32 = arith.constant 0 : i32
    %c0_i32_0 = arith.constant 0 : i32
    %c0_i32_1 = arith.constant 0 : i32
    return %c0_i32, %c0_i32_0 : i32, i32
  }
  func.func @transform_18(%arg0: i32, %arg1: i32) -> (i32, i32) {
    %c0_i32 = arith.constant 0 : i32
    %c0_i32_0 = arith.constant 0 : i32
    %c0_i32_1 = arith.constant 0 : i32
    return %c0_i32, %c0_i32_0 : i32, i32
  }
  func.func @transform_19(%arg0: i32, %arg1: i32) -> (i32, i32) {
    %c0_i32 = arith.constant 0 : i32
    %c0_i32_0 = arith.constant 0 : i32
    %c0_i32_1 = arith.constant 0 : i32
    return %c0_i32, %c0_i32_0 : i32, i32
  }
  func.func @transform_20(%arg0: i32, %arg1: i32) -> (i32, i32) {
    %c0_i32 = arith.constant 0 : i32
    %c0_i32_0 = arith.constant 0 : i32
    %c0_i32_1 = arith.constant 0 : i32
    return %c0_i32, %c0_i32_0 : i32, i32
  }
  func.func @transform_21(%arg0: i32, %arg1: i32) -> (i32, i32) {
    %c0_i32 = arith.constant 0 : i32
    %c0_i32_0 = arith.constant 0 : i32
    %c0_i32_1 = arith.constant 0 : i32
    return %c0_i32, %c0_i32_0 : i32, i32
  }
  func.func @transform_22(%arg0: i32, %arg1: i32) -> (i32, i32) {
    %c0_i32 = arith.constant 0 : i32
    %c0_i32_0 = arith.constant 0 : i32
    %c0_i32_1 = arith.constant 0 : i32
    return %c0_i32, %c0_i32_0 : i32, i32
  }
  func.func @transform_23(%arg0: i32, %arg1: i32) -> (i32, i32) {
    %c0_i32 = arith.constant 0 : i32
    %c0_i32_0 = arith.constant 0 : i32
    %c0_i32_1 = arith.constant 0 : i32
    return %c0_i32, %c0_i32_0 : i32, i32
  }
  func.func @transform_24(%arg0: i32, %arg1: i32) -> (i32, i32) {
    %c0_i32 = arith.constant 0 : i32
    %c0_i32_0 = arith.constant 0 : i32
    %c0_i32_1 = arith.constant 0 : i32
    return %c0_i32, %c0_i32_0 : i32, i32
  }
  func.func @transform_25(%arg0: i32, %arg1: i32) -> (i32, i32) {
    %c0_i32 = arith.constant 0 : i32
    %c0_i32_0 = arith.constant 0 : i32
    %c0_i32_1 = arith.constant 0 : i32
    return %c0_i32, %c0_i32_0 : i32, i32
  }
  func.func @transform_26(%arg0: i32, %arg1: i32) -> (i32, i32) {
    %c0_i32 = arith.constant 0 : i32
    %c0_i32_0 = arith.constant 0 : i32
    %c0_i32_1 = arith.constant 0 : i32
    return %c0_i32, %c0_i32_0 : i32, i32
  }
  func.func @transform_27(%arg0: i32, %arg1: i32) -> (i32, i32) {
    %c0_i32 = arith.constant 0 : i32
    %c0_i32_0 = arith.constant 0 : i32
    %c0_i32_1 = arith.constant 0 : i32
    return %c0_i32, %c0_i32_0 : i32, i32
  }
  func.func @transform_28(%arg0: i32, %arg1: i32) -> (i32, i32) {
    %c0_i32 = arith.constant 0 : i32
    %c0_i32_0 = arith.constant 0 : i32
    %c0_i32_1 = arith.constant 0 : i32
    return %c0_i32, %c0_i32_0 : i32, i32
  }
  func.func @transform_29(%arg0: i32, %arg1: i32) -> (i32, i32) {
    %c0_i32 = arith.constant 0 : i32
    %c0_i32_0 = arith.constant 0 : i32
    %c0_i32_1 = arith.constant 0 : i32
    return %c0_i32, %c0_i32_0 : i32, i32
  }
  func.func @transform_30(%arg0: i32, %arg1: i32) -> (i32, i32) {
    %c0_i32 = arith.constant 0 : i32
    %c0_i32_0 = arith.constant 0 : i32
    %c0_i32_1 = arith.constant 0 : i32
    return %c0_i32, %c0_i32_0 : i32, i32
  }
  func.func @transform_31(%arg0: i32, %arg1: i32) -> (i32, i32, i32) {
    %c0_i32 = arith.constant 0 : i32
    %c0_i32_0 = arith.constant 0 : i32
    return %arg0, %arg1, %c0_i32 : i32, i32, i32
  }
}

</mosaic_0001>

<bundles_post_ra>
// kernel: tpu_custom_call.1
= control target key start
LH: loop header
LB: loop body
LE: loop exit
PB: predicated region body
PF: predicated region fallthrough
CT: control target
= control target key end

     0   :  { %s5930_s6 = smov 1   ;;  %s5931_s10 = smov 2   ;;  %s6917_s0 = inlined_call_operand.smem [shape: u32[32], index: -1, kind: input, shape index: {}] }
   0x1   :  { %s6001_s5 = sld [smem:[%s6917_s0]]   ;;  %s5932_s14 = smov 3  }
   0x2   :  { %s6006_s9 = sld [smem:[%s6917_s0 + %s5930_s6]]   ;;  %s5933_s18 = smov 4  }
   0x3   :  { %s6011_s13 = sld [smem:[%s6917_s0 + %s5931_s10]]   ;;  %s5934_s22 = smov 5  }
   0x4   :  { %s6016_s17 = sld [smem:[%s6917_s0 + %s5932_s14]]   ;;  %s5935_s26 = smov 6  }
   0x5   :  { %s6021_s21 = sld [smem:[%s6917_s0 + %s5933_s18]]   ;;  %s5936_s30 = smov 7  }
   0x6   :  { %s6026_s25 = sld [smem:[%s6917_s0 + %s5934_s22]]   ;;  %s5937_s4 = smov 8  }
   0x7   :  { %6933 = sst [smem:[#allocation46_spill]] %s6001_s5  ;;  %s5938_s10 = smov 9  }
   0x8   :  { %6934 = sst [smem:[#allocation47_spill]] %s6006_s9  ;;  %s5939_s15 = smov 10  }
   0x9   :  { %6935 = sst [smem:[#allocation48_spill]] %s6011_s13  ;;  %s5940_s20 = smov 11  }
   0xa   :  { %6936 = sst [smem:[#allocation49_spill]] %s6016_s17  ;;  %s5942_s1 = smov 13  }
   0xb   :  { %6937 = sst [smem:[#allocation50_spill]] %s6021_s21  ;;  %s5943_s7 = smov 14  }
   0xc   :  { %s6031_s29 = sld [smem:[%s6917_s0 + %s5935_s26]]   ;;  %s5941_s26 = smov 12  }
   0xd   :  { %s6036_s3 = sld [smem:[%s6917_s0 + %s5936_s30]]   ;;  %s5945_s22 = smov 16  }
   0xe   :  { %s6041_s8 = sld [smem:[%s6917_s0 + %s5937_s4]]   ;;  %s5946_s28 = smov 17  }
   0xf   :  { %s6046_s14 = sld [smem:[%s6917_s0 + %s5938_s10]]  }
  0x10   :  { %s6051_s19 = sld [smem:[%s6917_s0 + %s5939_s15]]   ;;  %s5944_s15 = smov 15  }
  0x11   :  { %s6056_s24 = sld [smem:[%s6917_s0 + %s5940_s20]]  }
  0x12   :  { %s6061_s30 = sld [smem:[%s6917_s0 + %s5941_s26]]  }
  0x13   :  { %6938 = sst [smem:[#allocation51_spill]] %s6036_s3 }
  0x14   :  { %6939 = sst [smem:[#allocation52_spill]] %s6041_s8 }
  0x15   :  { %6940 = sst [smem:[#allocation53_spill]] %s6046_s14 }
  0x16   :  { %6941 = sst [smem:[#allocation54_spill]] %s6051_s19 }
  0x17   :  { %6942 = sst [smem:[#allocation55_spill]] %s6056_s24 }
  0x18   :  { %s6066_s6 = sld [smem:[%s6917_s0 + %s5942_s1]]  }
  0x19   :  { %s6071_s12 = sld [smem:[%s6917_s0 + %s5943_s7]]   ;;  %s5947_s7 = smov 18  }
  0x1a   :  { %s6076_s20 = sld [smem:[%s6917_s0 + %s5944_s15]]   ;;  %s5948_s15 = smov 19  }
  0x1b   :  { %s6081_s27 = sld [smem:[%s6917_s0 + %s5945_s22]]   ;;  %s5949_s22 = smov 20  }
  0x1c   :  { %s6086_s4 = sld [smem:[%s6917_s0 + %s5946_s28]]   ;;  %s5950_s28 = smov 21  }
  0x1d   :  { %s6091_s14 = sld [smem:[%s6917_s0 + %s5947_s7]]   ;;  %s5951_s7 = smov 22  }
  0x1e   :  { %6943 = sst [smem:[#allocation56_spill]] %s6066_s6 }
  0x1f   :  { %6944 = sst [smem:[#allocation57_spill]] %s6071_s12 }
  0x20   :  { %s6096_s5 = sld [smem:[%s6917_s0 + %s5948_s15]]   ;;  %s5952_s15 = smov 23  }
  0x21   :  { %s6101_s13 = sld [smem:[%s6917_s0 + %s5949_s22]]   ;;  %s5953_s22 = smov 24  }
  0x22   :  { %6945 = sst [smem:[#allocation58_spill]] %s6086_s4 }
  0x23   :  { %6946 = sst [smem:[#allocation59_spill]] %s6091_s14 }
  0x24   :  { %s6106_s9 = sld [smem:[%s6917_s0 + %s5950_s28]]   ;;  %s5954_s28 = smov 25  }
  0x25   :  { %s6111_s21 = sld [smem:[%s6917_s0 + %s5951_s7]]   ;;  %s5955_s7 = smov 26  }
  0x26   :  { %6947 = sst [smem:[#allocation60_spill]] %s6096_s5 }
  0x27   :  { %6948 = sst [smem:[#allocation61_spill]] %s6101_s13 }
  0x28   :  { %s6116_s17 = sld [smem:[%s6917_s0 + %s5952_s15]]   ;;  %s5956_s15 = smov 27  }
  0x29   :  { %s6121_s13 = sld [smem:[%s6917_s0 + %s5953_s22]]   ;;  %s5957_s22 = smov 28  }
  0x2a   :  { %6949 = sst [smem:[#allocation62_spill]] %s6106_s9 }
  0x2b   :  { %6950 = sst [smem:[#allocation63_spill]] %s6111_s21 }
  0x2c   :  { %s6126_s9 = sld [smem:[%s6917_s0 + %s5954_s28]]   ;;  %s5958_s28 = smov 29  }
  0x2d   :  { %s6131_s21 = sld [smem:[%s6917_s0 + %s5955_s7]]   ;;  %s5959_s7 = smov 30  }
  0x2e   :  { %6951 = sst [smem:[#allocation64_spill]] %s6116_s17 }
  0x2f   :  { %6952 = sst [smem:[#allocation65_spill]] %s6121_s13 }
  0x30   :  { %s6136_s17 = sld [smem:[%s6917_s0 + %s5956_s15]]   ;;  %s5960_s15 = smov 31  }
  0x31   :  { %s6141_s13 = sld [smem:[%s6917_s0 + %s5957_s22]]  }
  0x32   :  { %6953 = sst [smem:[#allocation66_spill]] %s6126_s9 }
  0x33   :  { %6954 = sst [smem:[#allocation67_spill]] %s6131_s21 }
  0x34   :  { %s6146_s9 = sld [smem:[%s6917_s0 + %s5958_s28]]  }
  0x35   :  { %s6151_s21 = sld [smem:[%s6917_s0 + %s5959_s7]]  }
  0x36   :  { %6955 = sst [smem:[#allocation68_spill]] %s6136_s17 }
  0x37   :  { %6956 = sst [smem:[#allocation69_spill]] %s6141_s13 }
  0x38   :  { %s6156_s17 = sld [smem:[%s6917_s0 + %s5960_s15]]  }
  0x3a   :  { %6957 = sst [smem:[#allocation70_spill]] %s6146_s9 }
  0x3b   :  { %6958 = sst [smem:[#allocation71_spill]] %s6151_s21 }
  0x3e   :  { %6959 = sst [smem:[#allocation72_spill]] %s6156_s17 }
  0x3f   :  { %68 = vsyncpa [#allocation5], 0 }
  0x40   :  { %70 = vsyncpa [#allocation5 + $0x1], 0 }
  0x41   :  { %71 = vsyncpa [#allocation8], 0 }
  0x42   :  { %73 = vsyncpa [#allocation8 + $0x1], 0 }
  0x43   :  { %74 = vsyncpa [#allocation11], 0 }
  0x44   :  { %75 = vsyncpa [#allocation14], 0 }
  0x45   :  { %76 = vsyncpa [#allocation17], 0 }
  0x46   :  { %77 = vsyncpa [#allocation20], 0 }
  0x47   :  { %78 = vsyncpa [#allocation23], 0 }
  0x48   :  { %79 = vsyncpa [#allocation26], 0 }
  0x49   :  { %80 = vsyncpa [#allocation29], 0 }
  0x4a   :  { %81 = vsyncpa [#allocation32], 0 }
  0x4b   :  { %82 = vsyncpa [#allocation6], 0 }
  0x4c   :  { %84 = vsyncpa [#allocation6 + $0x1], 0  ;;  %s6158_s22 = smov 0   ;;  %s6160_s23 = smov 0  }
  0x4d   :  { %s6162_s0 = smov 0   ;;  %s6164_s26 = smov 0  }
  0x4e   :  { %s6166_s28 = smov 0   ;;  %s6168_s1 = smov 0  }
  0x4f LB: > { %6960 = sst [smem:[#allocation73_spill]] %s5920_s26  ;;  %s6189_s2 = sadd.s32 4294967295, %s5928_s1   ;;  %s5928_s1 = sphi %s6168_s1, %s90_s1   ;;  %s5924_s28 = sphi %s6166_s28, %s7026_s28   ;;  %s5920_s26 = sphi %s6164_s26, %s7025_s26   ;;  %s5916_s0 = sphi %s6162_s0, %s7024_s0   ;;  %s5912_s23 = sphi %s6160_s23, %s7023_s23   ;;  %s5908_s22 = sphi %s6158_s22, %s7022_s22  }
  0x50   : > { %p4643_p0 = scmp.ge.s32.totalorder %s5928_s1, 1  ;;  %p6924_p1 = scmp.eq.s32.totalorder %s6189_s2, 0 }
  0x51   : > { %p817_p2 = scmp.lt.s32.totalorder %s5928_s1, 3  ;;  %s5961_s10 = smov [#allocation9]  }
  0x52   : > { %s829_s11 = sshll.u32 %s5961_s10, 4  ;;  %s5962_s16 = smov [#allocation10]   ;;  %s830_s11 = int_to_ptr.vmem [resolvable:$true] %s829_s11 }
  0x53   : > { %p6194_p3 = pnand %p4643_p0, %p817_p2  ;;  %s843_s18 = sshll.u32 %s5962_s16, 4  ;;  %s844_s18 = int_to_ptr.vmem [resolvable:$true] %s843_s18 }
  0x54   : > { %s5963_s17 = smov [#allocation13]   ;;  %s5347_s10 = scalar_lea.vmem %s830_s11, 256 }
  0x55   : > { %s6961_s7 = scalar_select %p6194_p3, 1, 0 }
  0x56   : > { %p5074_p4 = pneg %p6194_p3  ;;  %s867_s21 = sshll.u32 %s5963_s17, 4  ;;  %s868_s21 = int_to_ptr.vmem [resolvable:$true] %s867_s21 }
  0x57   : > { %p5348_p8 = scmp.ne.s32.totalorder %s830_s11, %s5347_s10  ;;  %p5355_p11 = scmp.lt.s32.totalorder %s830_s11, %s830_s11 }
  0x58   : > { %p6203_p6 = pnand %p5074_p4, %p6924_p1  ;;  %p5356_p12 = scmp.lt.s32.totalorder %s5347_s10, %s5347_s10 }
  0x5a   : > { %p6209_p7 = pneg %p6203_p6  ;;  %p5357_p13 = por %p5356_p12, %p5355_p11 }
  0x5c   : > { %p5350_p9 = pnand %p5348_p8, %p6209_p7 }
  0x5e   : > { %p5351_p10 = pneg %p5350_p9 }
  0x60   : > { %p5358_p0 = pnand %p5357_p13, %p5351_p10 }
  0x62   : > { %5361 = shalt.err (!%p5358_p0)
}
  0x63   : > { %s6926_s16 = smov 64   ;;  %s6928_s17 = smov 4  }
  0x64   : > { %5077 = dma.hbm_to_vmem [thread:$0]  (!%p6203_p6), %s6026_s25, 256, %s830_s11, [#allocation8], %s6926_s16, %s6926_s16, %s6928_s17  }
  0x65   : > { %s5373_s13 = scalar_lea.vmem %s844_s18, 16  ;;  %s5380_s26 = scalar_lea.vmem %s844_s18, 32 }
  0x66   : > { %p5374_p2 = scmp.ne.s32.totalorder %s844_s18, %s5373_s13  ;;  %p5381_p9 = scmp.lt.s32.totalorder %s844_s18, %s844_s18 }
  0x67   : > { %p5382_p11 = scmp.lt.s32.totalorder %s5380_s26, %s5373_s13 }
  0x68   : > { %p5376_p4 = pnand %p5374_p2, %p6209_p7 }
  0x69   : > { %p5383_p10 = por %p5382_p11, %p5381_p9 }
  0x6a   : > { %p5377_p8 = pneg %p5376_p4 }
  0x6c   : > { %p5384_p12 = pnand %p5383_p10, %p5377_p8 }
  0x6e   : > { %5387 = shalt.err (!%p5384_p12)
}
  0x6f   : > { %5080 = dma.hbm_to_vmem [thread:$0]  (!%p6203_p6), %s6031_s29, 16, %s844_s18, [#allocation11]  }
  0x70   : > { %s5399_s10 = scalar_lea.vmem %s868_s21, 16  ;;  %s5406_s11 = scalar_lea.vmem %s868_s21, 32 }
  0x71   : > { %p5400_p13 = scmp.ne.s32.totalorder %s868_s21, %s5399_s10  ;;  %p5407_p2 = scmp.lt.s32.totalorder %s868_s21, %s868_s21 }
  0x72   : > { %p5408_p4 = scmp.lt.s32.totalorder %s5406_s11, %s5399_s10 }
  0x73   : > { %p5402_p0 = pnand %p5400_p13, %p6209_p7 }
  0x74   : > { %p5409_p1 = por %p5408_p4, %p5407_p2 }
  0x75   : > { %p5403_p5 = pneg %p5402_p0 }
  0x77   : > { %p5410_p3 = pnand %p5409_p1, %p5403_p5 }
  0x79   : > { %5413 = shalt.err (!%p5410_p3)
}
  0x7a   : > { %s6964_s8 = sld [smem:[#allocation52_spill]]  ;;  %s5966_s13 = smov [#allocation16]  }
  0x7b   : > { %s891_s26 = sshll.u32 %s5966_s13, 4  ;;  %s5967_s18 = smov [#allocation19]   ;;  %s892_s26 = int_to_ptr.vmem [resolvable:$true] %s891_s26 }
  0x7c   : > { %s916_s16 = sshll.u32 %s5967_s18, 4  ;;  %s5425_s17 = scalar_lea.vmem %s892_s26, 256  ;;  %s917_s16 = int_to_ptr.vmem [resolvable:$true] %s916_s16 }
  0x7d   : > { %p5426_p8 = scmp.ne.s32.totalorder %s892_s26, %s5425_s17  ;;  %p5433_p10 = scmp.lt.s32.totalorder %s892_s26, %s892_s26 }
  0x7e   : > { %p5434_p12 = scmp.lt.s32.totalorder %s5425_s17, %s5425_s17 }
  0x7f   : > { %p5428_p9 = pnand %p5426_p8, %p6209_p7 }
  0x80   : > { %5086 = dma.hbm_to_vmem [thread:$0]  (!%p6203_p6), %s6964_s8, 16, %s868_s21, [#allocation14]  }
  0x81   : > { %p5429_p11 = pneg %p5428_p9  ;;  %p5435_p13 = por %p5434_p12, %p5433_p10 }
  0x83   : > { %p5436_p1 = pnand %p5435_p13, %p5429_p11 }
  0x85   : > { %5439 = shalt.err (!%p5436_p1)
}
  0x86   : > { %s6965_s10 = smov 4   ;;  %s6966_s11 = smov 64  }
  0x87   : > { %s6967_s24 = sld [smem:[#allocation55_spill]]  ;;  %s5451_s21 = scalar_lea.vmem %s917_s16, 16 }
  0x88   : > { %p5452_p3 = scmp.ne.s32.totalorder %s917_s16, %s5451_s21  ;;  %s5458_s13 = scalar_lea.vmem %s917_s16, 32 }
  0x89   : > { %p5459_p2 = scmp.lt.s32.totalorder %s917_s16, %s917_s16  ;;  %p5460_p4 = scmp.lt.s32.totalorder %s5458_s13, %s5451_s21 }
  0x8a   : > { %p5454_p5 = pnand %p5452_p3, %p6209_p7 }
  0x8b   : > { %p5461_p8 = por %p5460_p4, %p5459_p2 }
  0x8c   : > { %p5455_p0 = pneg %p5454_p5 }
  0x8d   : > { %5092 = dma.hbm_to_vmem [thread:$0]  (!%p6203_p6), %s6967_s24, 256, %s892_s26, [#allocation17], %s6966_s11, %s6966_s11, %s6965_s10  }
  0x8e   : > { %p5462_p9 = pnand %p5461_p8, %p5455_p0 }
  0x90   : > { %5465 = shalt.err (!%p5462_p9)
}
  0x91   : > { %s6968_s6 = sld [smem:[#allocation56_spill]]  ;;  %s5968_s17 = smov [#allocation22]  }
  0x92   : > { %s937_s18 = sshll.u32 %s5968_s17, 4  ;;  %s5969_s26 = smov [#allocation25]   ;;  %s938_s18 = int_to_ptr.vmem [resolvable:$true] %s937_s18 }
  0x93   : > { %s961_s8 = sshll.u32 %s5969_s26, 4  ;;  %s5477_s24 = scalar_lea.vmem %s938_s18, 256  ;;  %s962_s8 = int_to_ptr.vmem [resolvable:$true] %s961_s8 }
  0x94   : > { %p5478_p11 = scmp.ne.s32.totalorder %s938_s18, %s5477_s24  ;;  %p5485_p13 = scmp.lt.s32.totalorder %s938_s18, %s938_s18 }
  0x95   : > { %p5486_p1 = scmp.lt.s32.totalorder %s5477_s24, %s5477_s24 }
  0x96   : > { %p5480_p10 = pnand %p5478_p11, %p6209_p7 }
  0x97   : > { %5098 = dma.hbm_to_vmem [thread:$0]  (!%p6203_p6), %s6968_s6, 16, %s917_s16, [#allocation20]  }
  0x98   : > { %p5481_p12 = pneg %p5480_p10  ;;  %p5487_p3 = por %p5486_p1, %p5485_p13 }
  0x9a   : > { %p5488_p5 = pnand %p5487_p3, %p5481_p12 }
  0x9c   : > { %5491 = shalt.err (!%p5488_p5)
}
  0x9d   : > { %5104 = dma.hbm_to_vmem [thread:$0]  (!%p6203_p6), %s6076_s20, 256, %s938_s18, [#allocation23], %s6966_s11, %s6966_s11, %s6965_s10  }
  0x9e   : > { %s5503_s16 = scalar_lea.vmem %s962_s8, 256  ;;  %p5511_p8 = scmp.lt.s32.totalorder %s962_s8, %s962_s8 }
  0x9f   : > { %p5504_p0 = scmp.ne.s32.totalorder %s962_s8, %s5503_s16  ;;  %p5512_p9 = scmp.lt.s32.totalorder %s5503_s16, %s5503_s16 }
  0xa1   : > { %p5506_p2 = pnand %p5504_p0, %p6209_p7  ;;  %p5513_p11 = por %p5512_p9, %p5511_p8 }
  0xa3   : > { %p5507_p4 = pneg %p5506_p2 }
  0xa5   : > { %p5514_p10 = pnand %p5513_p11, %p5507_p4 }
  0xa7   : > { %5517 = shalt.err (!%p5514_p10)
}
  0xa8   : > { %s6969_s4 = sld [smem:[#allocation58_spill]]  ;;  %s5970_s24 = smov [#allocation28]  }
  0xa9   : > { %s985_s21 = sshll.u32 %s5970_s24, 4  ;;  %s5971_s13 = smov [#allocation12]   ;;  %s986_s21 = int_to_ptr.vmem [resolvable:$true] %s985_s21 }
  0xaa   : > { %s853_s17 = sshll.u32 %s5971_s13, 4  ;;  %s5529_s18 = scalar_lea.vmem %s986_s21, 256  ;;  %s854_s17 = int_to_ptr.vmem [resolvable:$true] %s853_s17 }
  0xab   : > { %p5530_p12 = scmp.ne.s32.totalorder %s986_s21, %s5529_s18  ;;  %p5537_p3 = scmp.lt.s32.totalorder %s986_s21, %s986_s21 }
  0xac   : > { %p5538_p5 = scmp.lt.s32.totalorder %s5529_s18, %s5529_s18 }
  0xad   : > { %p5532_p13 = pnand %p5530_p12, %p6209_p7 }
  0xae   : > { %5110 = dma.hbm_to_vmem [thread:$0]  (!%p6203_p6), %s6969_s4, 256, %s962_s8, [#allocation26], %s6966_s11, %s6966_s11, %s6965_s10  }
  0xaf   : > { %p5533_p1 = pneg %p5532_p13  ;;  %p5539_p0 = por %p5538_p5, %p5537_p3 }
  0xb1   : > { %p5540_p2 = pnand %p5539_p0, %p5533_p1 }
  0xb3   : > { %5543 = shalt.err (!%p5540_p2)
}
  0xb4   : > { %s6970_s5 = sld [smem:[#allocation60_spill]]  ;;  %s5555_s8 = scalar_lea.vmem %s854_s17, 256 }
  0xb5   : > { %p5556_p4 = scmp.ne.s32.totalorder %s854_s17, %s5555_s8  ;;  %p5563_p11 = scmp.lt.s32.totalorder %s854_s17, %s854_s17 }
  0xb6   : > { %p5564_p10 = scmp.lt.s32.totalorder %s5555_s8, %s5555_s8 }
  0xb7   : > { %p5558_p8 = pnand %p5556_p4, %p6209_p7 }
  0xb8   : > { %p5565_p12 = por %p5564_p10, %p5563_p11 }
  0xb9   : > { %p5559_p9 = pneg %p5558_p8 }
  0xba   : > { %5116 = dma.hbm_to_vmem [thread:$0]  (!%p6203_p6), %s6970_s5, 256, %s986_s21, [#allocation29], %s6966_s11, %s6966_s11, %s6965_s10  }
  0xbb   : > { %p5566_p13 = pnand %p5565_p12, %p5559_p9 }
  0xbd   : > { %5569 = shalt.err (!%p5566_p13)
}
  0xbe   : > { %s6971_s3 = sld [smem:[#allocation51_spill]]  ;;  %s5972_s26 = smov [#allocation15]  }
  0xbf   : > { %s881_s16 = sshll.u32 %s5972_s26, 4  ;;  %s5973_s24 = smov [#allocation18]   ;;  %s882_s16 = int_to_ptr.vmem [resolvable:$true] %s881_s16 }
  0xc0   : > { %s905_s21 = sshll.u32 %s5973_s24, 4  ;;  %s5581_s13 = scalar_lea.vmem %s882_s16, 16  ;;  %s906_s21 = int_to_ptr.vmem [resolvable:$true] %s905_s21 }
  0xc1   : > { %p5582_p1 = scmp.ne.s32.totalorder %s882_s16, %s5581_s13  ;;  %s5588_s18 = scalar_lea.vmem %s882_s16, 32 }
  0xc2   : > { %p5589_p0 = scmp.lt.s32.totalorder %s882_s16, %s882_s16  ;;  %p5590_p2 = scmp.lt.s32.totalorder %s5588_s18, %s5581_s13 }
  0xc3   : > { %p5584_p3 = pnand %p5582_p1, %p6209_p7 }
  0xc4   : > { %5083 = dma.hbm_to_vmem [thread:$0]  (!%p6203_p6), %s6971_s3, 256, %s854_s17, [#allocation11], %s6966_s11, %s6966_s11, %s6965_s10  }
  0xc5   : > { %p5585_p5 = pneg %p5584_p3  ;;  %p5591_p4 = por %p5590_p2, %p5589_p0 }
  0xc7   : > { %p5592_p8 = pnand %p5591_p4, %p5585_p5 }
  0xc9   : > { %5595 = shalt.err (!%p5592_p8)
}
  0xca   : > { %s6972_s19 = sld [smem:[#allocation54_spill]]  ;;  %s5607_s17 = scalar_lea.vmem %s906_s21, 16 }
  0xcb   : > { %p5608_p9 = scmp.ne.s32.totalorder %s906_s21, %s5607_s17  ;;  %s5614_s8 = scalar_lea.vmem %s906_s21, 32 }
  0xcc   : > { %p5615_p12 = scmp.lt.s32.totalorder %s906_s21, %s906_s21  ;;  %p5616_p13 = scmp.lt.s32.totalorder %s5614_s8, %s5607_s17 }
  0xcd   : > { %p5610_p11 = pnand %p5608_p9, %p6209_p7 }
  0xce   : > { %p5617_p1 = por %p5616_p13, %p5615_p12 }
  0xcf   : > { %p5611_p10 = pneg %p5610_p11 }
  0xd0   : > { %5089 = dma.hbm_to_vmem [thread:$0]  (!%p6203_p6), %s6972_s19, 16, %s882_s16, [#allocation14]  }
  0xd1   : > { %p5618_p3 = pnand %p5617_p1, %p5611_p10 }
  0xd3   : > { %5621 = shalt.err (!%p5618_p3)
}
  0xd4   : > { %5095 = dma.hbm_to_vmem [thread:$0]  (!%p6203_p6), %s6061_s30, 16, %s906_s21, [#allocation17]  }
  0xd5   : > { %s5974_s26 = smov [#allocation21]   ;;  %s5975_s16 = smov [#allocation24]  }
  0xd6   : > { %s927_s24 = sshll.u32 %s5974_s26, 4  ;;  %s951_s13 = sshll.u32 %s5975_s16, 4  ;;  %s928_s24 = int_to_ptr.vmem [resolvable:$true] %s927_s24  ;;  %s952_s13 = int_to_ptr.vmem [resolvable:$true] %s951_s13 }
  0xd7   : > { %s5633_s18 = scalar_lea.vmem %s928_s24, 16  ;;  %s5640_s3 = scalar_lea.vmem %s928_s24, 32 }
  0xd8   : > { %p5634_p5 = scmp.ne.s32.totalorder %s928_s24, %s5633_s18  ;;  %p5641_p4 = scmp.lt.s32.totalorder %s928_s24, %s928_s24 }
  0xd9   : > { %p5642_p8 = scmp.lt.s32.totalorder %s5640_s3, %s5633_s18 }
  0xda   : > { %p5636_p0 = pnand %p5634_p5, %p6209_p7 }
  0xdb   : > { %p5643_p9 = por %p5642_p8, %p5641_p4 }
  0xdc   : > { %p5637_p2 = pneg %p5636_p0 }
  0xde   : > { %p5644_p11 = pnand %p5643_p9, %p5637_p2 }
  0xe0   : > { %5647 = shalt.err (!%p5644_p11)
}
  0xe1   : > { %s6973_s12 = sld [smem:[#allocation57_spill]]  ;;  %s5659_s21 = scalar_lea.vmem %s952_s13, 16 }
  0xe2   : > { %p5660_p10 = scmp.ne.s32.totalorder %s952_s13, %s5659_s21  ;;  %s5666_s17 = scalar_lea.vmem %s952_s13, 32 }
  0xe3   : > { %p5667_p1 = scmp.lt.s32.totalorder %s952_s13, %s952_s13  ;;  %p5668_p3 = scmp.lt.s32.totalorder %s5666_s17, %s5659_s21 }
  0xe4   : > { %p5662_p12 = pnand %p5660_p10, %p6209_p7 }
  0xe5   : > { %p5669_p5 = por %p5668_p3, %p5667_p1 }
  0xe6   : > { %p5663_p13 = pneg %p5662_p12 }
  0xe7   : > { %5101 = dma.hbm_to_vmem [thread:$0]  (!%p6203_p6), %s6973_s12, 16, %s928_s24, [#allocation20]  }
  0xe8   : > { %p5670_p0 = pnand %p5669_p5, %p5663_p13 }
  0xea   : > { %5673 = shalt.err (!%p5670_p0)
}
  0xeb   : > { %5107 = dma.hbm_to_vmem [thread:$0]  (!%p6203_p6), %s6081_s27, 16, %s952_s13, [#allocation23]  }
  0xec   : > { %s5976_s3 = smov [#allocation27]   ;;  %s5977_s26 = smov [#allocation30]  }
  0xed   : > { %s975_s8 = sshll.u32 %s5976_s3, 4  ;;  %s1001_s24 = sshll.u32 %s5977_s26, 4  ;;  %s976_s8 = int_to_ptr.vmem [resolvable:$true] %s975_s8  ;;  %s1002_s24 = int_to_ptr.vmem [resolvable:$true] %s1001_s24 }
  0xee   : > { %s5685_s16 = scalar_lea.vmem %s976_s8, 16  ;;  %s5692_s18 = scalar_lea.vmem %s976_s8, 32 }
  0xef   : > { %p5686_p2 = scmp.ne.s32.totalorder %s976_s8, %s5685_s16  ;;  %p5693_p9 = scmp.lt.s32.totalorder %s976_s8, %s976_s8 }
  0xf0   : > { %p5694_p11 = scmp.lt.s32.totalorder %s5692_s18, %s5685_s16 }
  0xf1   : > { %p5688_p4 = pnand %p5686_p2, %p6209_p7 }
  0xf2   : > { %p5695_p10 = por %p5694_p11, %p5693_p9 }
  0xf3   : > { %p5689_p8 = pneg %p5688_p4 }
  0xf5   : > { %p5696_p12 = pnand %p5695_p10, %p5689_p8 }
  0xf7   : > { %5699 = shalt.err (!%p5696_p12)
}
  0xf8   : > { %s6974_s14 = sld [smem:[#allocation59_spill]]  ;;  %s5711_s13 = scalar_lea.vmem %s1002_s24, 256 }
  0xf9   : > { %p5712_p13 = scmp.ne.s32.totalorder %s1002_s24, %s5711_s13  ;;  %p5719_p5 = scmp.lt.s32.totalorder %s1002_s24, %s1002_s24 }
  0xfa   : > { %p5720_p0 = scmp.lt.s32.totalorder %s5711_s13, %s5711_s13 }
  0xfb   : > { %p5714_p1 = pnand %p5712_p13, %p6209_p7 }
  0xfc   : > { %p5721_p2 = por %p5720_p0, %p5719_p5 }
  0xfd   : > { %p5715_p3 = pneg %p5714_p1 }
  0xfe   : > { %5113 = dma.hbm_to_vmem [thread:$0]  (!%p6203_p6), %s6974_s14, 16, %s976_s8, [#allocation26]  }
  0xff   : > { %p5722_p4 = pnand %p5721_p2, %p5715_p3 }
 0x101   : > { %5725 = shalt.err (!%p5722_p4)
}
 0x102   : > { %s6975_s21 = sld [smem:[#allocation62_spill]]  ;;  %s5978_s17 = smov [#allocation31]  }
 0x103   : > { %s1023_s3 = sshll.u32 %s5978_s17, 4  ;;  %s1024_s3 = int_to_ptr.vmem [resolvable:$true] %s1023_s3 }
 0x104   : > { %s5737_s8 = scalar_lea.vmem %s1024_s3, 256  ;;  %p5745_p10 = scmp.lt.s32.totalorder %s1024_s3, %s1024_s3 }
 0x105   : > { %p5738_p8 = scmp.ne.s32.totalorder %s1024_s3, %s5737_s8  ;;  %p5746_p12 = scmp.lt.s32.totalorder %s5737_s8, %s5737_s8 }
 0x107   : > { %p5740_p9 = pnand %p5738_p8, %p6209_p7  ;;  %p5747_p13 = por %p5746_p12, %p5745_p10 }
 0x108   : > { %5119 = dma.hbm_to_vmem [thread:$0]  (!%p6203_p6), %s6975_s21, 256, %s1002_s24, [#allocation29], %s6966_s11, %s6966_s11, %s6965_s10  }
 0x109   : > { %p5741_p11 = pneg %p5740_p9 }
 0x10b   : > { %p5748_p1 = pnand %p5747_p13, %p5741_p11 }
 0x10d   : > { %5751 = shalt.err (!%p5748_p1)
}
 0x10e   : > { %s6976_s26 = sld [smem:[#allocation66_spill]]  ;;  %s4642_s9 = sadd.s32 4294967294, %s5928_s1  }
 0x10f   : > { %s102_s24 = sadd.s32 1, %s5924_s28  ;;  %s191_s15 = sadd.s32 1, %s5916_s0 }
 0x110   : > { %p104_p7 = scmp.ge.s32.totalorder %s102_s24, 2  ;;  %p198_p3 = scmp.ne.s32.totalorder %s5916_s0, %s5912_s23 }
 0x111   : > { %p199_p5 = scmp.eq.s32.totalorder %s5928_s1, 0  ;;  %s6977_s16 = sld [smem:[#allocation49_spill]] }
 0x112   : > { %s7028_s24 = smov (%p104_p7, %s102_s24), 0  ;;  %p204_p2 = scmp.ne.s32.totalorder %s5912_s23, %s5908_s22 }
 0x113   : > { %p6325_p0 = por %p199_p5, %p198_p3  ;;  %p6980_p8 = scmp.eq.s32.totalorder %s6189_s2, 0 }
 0x114   : > { %5122 = dma.hbm_to_vmem [thread:$0]  (!%p6203_p6), %s6976_s26, 256, %s1024_s3, [#allocation32], %s6966_s11, %s6966_s11, %s6965_s10  }
 0x115   : > { %s186_s10 = ssub.s32 %s5924_s28, %s7028_s24  ;;  %p804_p6 = scmp.eq.s32.totalorder %s6189_s2, 1 }
 0x116   : > { %s6979_s11 = sld [smem:[#allocation50_spill]]  ;;  %p189_p4 = scmp.eq.s32.totalorder %s186_s10, 0 }
 0x117   : > { %p6336_p9 = por %p6980_p8, %p204_p2  ;;  %p6340_p11 = por %p804_p6, %p198_p3 }
 0x118   : > { %p810_p10 = scmp.eq.s32.totalorder %s4642_s9, 1  ;;  %p5150_p13 = scmp.lt.s32.totalorder %s5928_s1, 2 }
 0x119   : > { %s6981_s13 = scalar_select %p6336_p9, 1, 0 }
 0x11a   : > { %s6982_s21 = scalar_select %p6340_p11, 1, 0 }
 0x11b   : > { %s6345_s17 = scalar_select %p189_p4, %s5916_s0, %s191_s15  }
 0x11c   : > { %p6347_p12 = por %p810_p10, %p204_p2  ;;  %s1076_s8 = sand.u32 1, %s5916_s0  }
 0x11d   : > { %s4662_s26 = sshll.u32 %s5924_s28, 6  ;;  %s6354_s10 = sshll.u32 %s1076_s8, 2 }
 0x11e   : > { %s6983_s3 = scalar_select %p6347_p12, 1, 0 }
 0x11f   : > { %s6357_s4 = scalar_lea.hbm %s6977_s16, %s4662_s26  ;;  %s1080_s9 = scalar_lea.vmem [#allocation4], %s6354_s10 }
 0x120   : > { %s1088_s15 = sshll.u32 %s1080_s9, 4  ;;  %p6362_p1 = pnand %p5150_p13, %p6325_p0  ;;  %s1089_s15 = int_to_ptr.vmem [resolvable:$true] %s1088_s15 }
 0x121   : > { %s6367_s6 = scalar_lea.hbm %s6979_s11, %s4662_s26  ;;  %s1077_s12 = scalar_lea.sflag [#allocation5], %s1076_s8 }
 0x122   : > { %s5752_s14 = scalar_lea.hbm %s6357_s4, 64  ;;  %p5754_p3 = pneg %p6362_p1 }
 0x123   : > { %p5753_p7 = scmp.ne.s32.totalorder %s6357_s4, %s5752_s14  ;;  %s5757_s9 = scalar_lea.hbm %s6977_s16, 128 }
 0x124   : > { %p5758_p6 = scmp.lt.s32.totalorder %s6357_s4, %s6977_s16  ;;  %p5759_p0 = scmp.lt.s32.totalorder %s5757_s9, %s5752_s14 }
 0x125   : > { %p5755_p5 = pnand %p5754_p3, %p5753_p7 }
 0x126   : > { %p5760_p4 = por %p5759_p0, %p5758_p6 }
 0x127   : > { %p5756_p2 = pneg %p5755_p5 }
 0x129   : > { %p5761_p8 = pnand %p5760_p4, %p5756_p2 }
 0x12b   : > { %5764 = shalt.err (!%p5761_p8)
}
 0x12c   : > { %s5765_s18 = scalar_lea.vmem %s1089_s15, 64  ;;  %s5979_s8 = smov [#allocation4]  }
 0x12d   : > { %p5766_p10 = scmp.ne.s32.totalorder %s1089_s15, %s5765_s18  ;;  %s5770_s26 = sshll.u32 %s5979_s8, 4  ;;  %s5771_s26 = int_to_ptr.vmem [resolvable:$false] %s5770_s26 }
 0x12e   : > { %s5772_s19 = scalar_lea.vmem %s5771_s26, 128  ;;  %p5773_p11 = scmp.lt.s32.totalorder %s1089_s15, %s5771_s26 }
 0x12f   : > { %p5768_p13 = pnand %p5766_p10, %p5754_p3  ;;  %p5774_p7 = scmp.lt.s32.totalorder %s5772_s19, %s5765_s18 }
 0x131   : > { %p5769_p12 = pneg %p5768_p13  ;;  %p5775_p5 = por %p5774_p7, %p5773_p11 }
 0x133   : > { %p5776_p9 = pnand %p5775_p5, %p5769_p12 }
 0x135   : > { %5779 = shalt.err (!%p5776_p9)
}
 0x136   : > { %5126 = dma.hbm_to_vmem [thread:$0]  (!%p6362_p1), %s6357_s4, 64, %s1089_s15, %s1077_s12  }
 0x137   : > { %s1095_s14 = sand.u32 1, %s5928_s1   ;;  %s1099_s9 = scalar_lea.vmem [#allocation7], %s6354_s10 }
 0x138   : > { %s1107_s8 = sshll.u32 %s1099_s9, 4  ;;  %s1096_s19 = scalar_lea.sflag [#allocation8], %s1095_s14  ;;  %s1108_s8 = int_to_ptr.vmem [resolvable:$true] %s1107_s8 }
 0x139   : > { %s5780_s18 = scalar_lea.hbm %s6367_s6, 64  ;;  %s5785_s26 = scalar_lea.hbm %s6979_s11, 128 }
 0x13a   : > { %p5781_p11 = scmp.ne.s32.totalorder %s6367_s6, %s5780_s18  ;;  %p5786_p2 = scmp.lt.s32.totalorder %s6367_s6, %s6979_s11 }
 0x13b   : > { %p5787_p6 = scmp.lt.s32.totalorder %s5785_s26, %s5780_s18 }
 0x13c   : > { %p5783_p9 = pnand %p5781_p11, %p5754_p3 }
 0x13d   : > { %p5788_p0 = por %p5787_p6, %p5786_p2 }
 0x13e   : > { %p5784_p12 = pneg %p5783_p9 }
 0x140   : > { %p5789_p4 = pnand %p5788_p0, %p5784_p12 }
 0x142   : > { %5792 = shalt.err (!%p5789_p4)
}
 0x143   : > { %s5793_s16 = scalar_lea.vmem %s1108_s8, 64  ;;  %s5980_s12 = smov [#allocation7]  }
 0x144   : > { %p5794_p8 = scmp.ne.s32.totalorder %s1108_s8, %s5793_s16  ;;  %s5798_s4 = sshll.u32 %s5980_s12, 4  ;;  %s5799_s4 = int_to_ptr.vmem [resolvable:$false] %s5798_s4 }
 0x145   : > { %s5800_s10 = scalar_lea.vmem %s5799_s4, 128  ;;  %p5801_p7 = scmp.lt.s32.totalorder %s1108_s8, %s5799_s4 }
 0x146   : > { %p5796_p10 = pnand %p5794_p8, %p5754_p3  ;;  %p5802_p5 = scmp.lt.s32.totalorder %s5800_s10, %s5793_s16 }
 0x148   : > { %p5797_p13 = pneg %p5796_p10  ;;  %p5803_p11 = por %p5802_p5, %p5801_p7 }
 0x14a   : > { %p5804_p9 = pnand %p5803_p11, %p5797_p13 }
 0x14c   : > { %5807 = shalt.err (!%p5804_p9)
}
 0x14d   : > { %5129 = dma.hbm_to_vmem [thread:$0]  (!%p6362_p1), %s6367_s6, 64, %s1108_s8, %s1096_s19  }
 0x14e   : > { %p6985_p12 = scmp.ne.s32.totalorder %s6961_s7, 0 }
 0x14f   : > { %s6404_s15 = sand.u32 (!%p6985_p12), 1, %s5912_s23   ;;  %p6986_p3 = scmp.ne.s32.totalorder (!%p6985_p12), %s6981_s13, 0 }
 0x150   : > { %1116 = sbr.rel (%p6985_p12) target bundleno = 4521 (0x11a9), region = 144  ;;  %s4666_s14 = sshll.u32 (!%p6985_p12), %s6404_s15, 2 }
 0x151   : > { %s1119_s9 = scalar_lea.sflag (!%p6985_p12), [#allocation5], %s6404_s15  ;;  %s6408_s18 = scalar_lea.vmem (!%p6985_p12), [#allocation4], %s4666_s14 }
 0x155   : > { %5859 = dma.done.wait (%p6986_p3), %s1119_s9, 64  }
 0x156   : > { %5861 = vsyncadd (%p6986_p3), %s1119_s9, 4294967232  ;;  %s1127_s5 = sand.u32 1, %s6189_s2   ;;  %s6415_s7 = scalar_lea.vmem [#allocation7], %s4666_s14 }
 0x157   : > { %s1128_s6 = scalar_lea.sflag [#allocation8], %s1127_s5 }
 0x158   : > { %5863 = dma.done.wait (%p6986_p3), %s1128_s6, 64  }
 0x159   : > { %5865 = vsyncadd (%p6986_p3), %s1128_s6, 4294967232  ;;  %p6987_p1 = scmp.eq.s32.totalorder %s6189_s2, 0 }
 0x15b   : > { %5867 = dma.done.wait (%p6987_p1), [#allocation8], 256   ;;  %p6988_p2 = pmov %p6987_p1 }
 0x15c   : > { %p6989_p6 = pmov %p6987_p1 }
 0x15d   : > { %5869 = vsyncadd (%p6988_p2), [#allocation8], 4294967040 }
 0x15e   : > { %5871 = dma.done.wait (%p6989_p6), [#allocation11], 272   ;;  %p6990_p0 = pmov %p6987_p1 }
 0x160   : > { %5873 = vsyncadd (%p6990_p0), [#allocation11], 4294967024  ;;  %p6991_p4 = pmov %p6990_p0 }
 0x161   : > { %p6992_p8 = pmov %p6990_p0 }
 0x162   : > { %5875 = dma.done.wait (%p6991_p4), [#allocation14], 32  }
 0x163   : > { %5877 = vsyncadd (%p6992_p8), [#allocation14], 4294967264  ;;  %p6993_p10 = pmov %p6990_p0 }
 0x164   : > { %p6994_p13 = pmov %p6990_p0 }
 0x165   : > { %5879 = dma.done.wait (%p6993_p10), [#allocation17], 272  }
 0x166   : > { %5881 = vsyncadd (%p6994_p13), [#allocation17], 4294967024  ;;  %p6995_p7 = pmov %p6990_p0 }
 0x167   : > { %p6996_p5 = pmov %p6990_p0 }
 0x168   : > { %5883 = dma.done.wait (%p6995_p7), [#allocation20], 32  }
 0x169   : > { %5885 = vsyncadd (%p6996_p5), [#allocation20], 4294967264  ;;  %p6997_p11 = pmov %p6990_p0 }
 0x16a   : > { %p6998_p9 = pmov %p6990_p0 }
 0x16b   : > { %5887 = dma.done.wait (%p6997_p11), [#allocation23], 272  }
 0x16c   : > { %5889 = vsyncadd (%p6998_p9), [#allocation23], 4294967024  ;;  %p6999_p12 = pmov %p6990_p0 }
 0x16d   : > { %p7000_p3 = pmov %p6990_p0 }
 0x16e   : > { %5891 = dma.done.wait (%p6999_p12), [#allocation26], 272  }
 0x16f   : > { %5893 = vsyncadd (%p7000_p3), [#allocation26], 4294967024  ;;  %p7001_p1 = pmov %p6990_p0 }
 0x170   : > { %p7002_p2 = pmov %p6990_p0 }
 0x171   : > { %5895 = dma.done.wait (%p7001_p1), [#allocation29], 512  }
 0x172   : > { %5897 = vsyncadd (%p7002_p2), [#allocation29], 4294966784  ;;  %p7003_p6 = pmov %p6990_p0 }
 0x174   : > { %5899 = dma.done.wait (%p7003_p6), [#allocation32], 256  }
 0x175   : > { %5901 = vsyncadd (%p6990_p0), [#allocation32], 4294967040  ;;  %s7004_s16 = sld [smem:[#allocation73_spill]]  ;;  %v5981_v0 = vmov 0.0   ;;  %vm5982_vm0 = vmmov 0   ;;  %v5276_v1 = vld [vmem:[#allocation12 + $0x8] sm:$0xff]   ;;  %v1457_v37 = vlaneseq }
 0x176   : > { %s7005_s13 = sld [smem:[#allocation47_spill]]  ;;  %4824 = vmatprep.subr.bf16.mxu0 %v5981_v0  ;;  %4828 = vmatprep.mubr.msk.bf16.mxu0 %vm5982_vm0, %v5981_v0  ;;  %v5277_v2 = vld [vmem:[#allocation12] sm:$0xff]   ;;  %vm1339_vm1 = vcmask 261120   ;;  %v5280_v8 = vld [vmem:[#allocation9 + $0x8] sm:$0xff]   ;;  %v5281_v10 = vld [vmem:[#allocation9] sm:$0xff]   ;;  %s5983_s9 = smov 104  }
 0x177   : > { %s7006_s8 = sld [smem:[#allocation48_spill]]  ;;  %4832 = vmatprep.subr.bf16.mxu1 %v5981_v0  ;;  %4836 = vmatprep.mubr.msk.bf16.mxu1 %vm5982_vm0, %v5981_v0  ;;  %v5278_v5 = vld [vmem:[#allocation25 + $0x8] sm:$0xff]   ;;  %v5279_v6 = vld [vmem:[#allocation25] sm:$0xff]   ;;  %v4688_v13 = vld [vmem:[#allocation13] ss:$0 sm:$0xff]  ;;  %s5984_s5 = smov 120  }
 0x178   : > { %4825 = vmatpush3.bf16.msra.mxu0 %v5276_v1  ;;  %s7007_s12 = sld [smem:[#allocation46_spill]]  ;;  %s5985_s6 = smov 112   ;;  %v4704_v26 = vld [vmem:[#allocation10] ss:$0 sm:$0xff]  ;;  %v5284_v27 = vld [vmem:[#allocation28 + $0x8] sm:$0xff]   ;;  %v5285_v32 = vld [vmem:[#allocation28] sm:$0xff]  }
 0x179   : > { %4826 = vmatprep.subr.bf16.mxu0 %v5981_v0  ;;  %s7008_s14 = sld [smem:[#allocation53_spill]]  ;;  %v5986_v35 = vmov 1983009808   ;;  %v5987_v38 = vmov 1934713408   ;;  %v1458_v41 = vshrl.u32 %v1457_v37, 7 }
 0x17a   : > { %v1455_v36 = vunpack.c.l.s4 %v5986_v35  ;;  %v1472_v39 = vunpack.c.l.s4 %v5987_v38  ;;  %v5988_v58 = vmov 0   ;;  %vm1619_vm2 = vcmask 60416   ;;  %p7019_p10 = scmp.ne.s32.totalorder %s6982_s21, 0 }
 0x17b   : > { %p1294_p4 = scmp.lt.s32.totalorder %s7004_s16, 1  ;;  %vm2544_vm3 = vcmask 64512   ;;  %vm2780_vm4 = vcmask 1043456   ;;  %vm3111_vm5 = vcmask 130048   ;;  %vm3113_vm6 = vcmask 195584  }
 0x17c   : > { %4827 = vmatpush3.bf16.msra.mxu0 %v5277_v2  ;;  %v1456_v40 = vunpack.c.0.s8 %v1455_v36  ;;  %v1473_v42 = vunpack.c.0.s8 %v1472_v39  ;;  %vm4225_vm7 = vcmask 523264  }
 0x17d   : > { %s1295_s19 = scalar_select %p1294_p4, %s7004_s16, 1  ;;  %4840 = vmatprep.subr.bf16.mxu0 %v5981_v0 }
 0x17e   : > { %v6507_v43 = vsub.s32 %v1456_v40, %v1458_v41  ;;  %v6510_v47 = vsub.s32 %v1473_v42, %v1458_v41 }
 0x17f   : > { %s4685_s2 = sshll.u32 %s1295_s19, 3  ;;  %v5282_v19 = vld [vmem:[%s7008_s14 + $0x8] sm:$0xff]   ;;  %v5283_v22 = vld [vmem:[%s7008_s14] sm:$0xff]   ;;  %s7009_s19 = sld [smem:[#allocation61_spill]] }
 0x180   : > { %s1304_s26 = scalar_lea.vmem %s7005_s13, %s4685_s2  ;;  %s1308_s4 = scalar_lea.vmem %s7006_s8, %s4685_s2  ;;  %4833 = vmatpush3.bf16.msra.mxu1 %v5282_v19 }
 0x181   : > { %v1314_v3 = vld [vmem:[%s1304_s26] sm:$0xff]  ;;  %s1300_s10 = scalar_lea.vmem %s7007_s12, %s4685_s2  ;;  %4834 = vmatprep.subr.bf16.mxu1 %v5981_v0  ;;  %s5990_s13 = smov 8  }
 0x182   : > { %v1315_v4 = vpack.c.bf16 %v1314_v3, %v1314_v3  ;;  %v1802_v7 = vld [vmem:[%s1308_s4] sm:$0xff]  ;;  %s5991_s8 = smov 24   ;;  %s7011_s2 = sld [smem:[#allocation68_spill]] }
 0x183   : > { %v1803_v9 = vpack.c.bf16 %v1802_v7, %v1802_v7  ;;  %v6478_v11 = vld [vmem:[%s1300_s10] sm:$0xff]  ;;  %s7012_s26 = sld [smem:[#allocation64_spill]] }
 0x184   : > { %4829 = vmatmul.mubr.msk.bf16.vlgmr.msra.gmra.mxu0 %vm1339_vm1, %v1315_v4  ;;  %v2312_v12 = vpack.c.bf16 %v6478_v11, %v6478_v11  ;;  %4835 = vmatpush3.bf16.msra.mxu1 %v5283_v22  ;;  %s7013_s12 = sld [smem:[#allocation65_spill]] }
 0x185   : > { %4841 = vmatpush3.bf16.msra.mxu0 %v5278_v5  ;;  %4844 = vmatprep.mubr.msk.bf16.mxu0 %vm5982_vm0, %v5981_v0  ;;  %s7014_s4 = sld [smem:[#allocation67_spill]] }
 0x186   : > { %4842 = vmatprep.subr.bf16.mxu0 %v5981_v0  ;;  %4848 = vmatprep.subr.bf16.mxu1 %v5981_v0  ;;  %s7015_s10 = sld [smem:[#allocation69_spill]] }
 0x187   : > { %4837 = vmatmul.mubr.msk.bf16.vlgmr.msra.gmra.mxu1 %vm1339_vm1, %v1315_v4 }
 0x188   : > { %4852 = vmatprep.mubr.msk.bf16.mxu1 %vm5982_vm0, %v5981_v0  ;;  %4849 = vmatpush3.bf16.msra.mxu1 %v5284_v27 }
 0x189   : > { %4843 = vmatpush3.bf16.msra.mxu0 %v5279_v6  ;;  %4850 = vmatprep.subr.bf16.mxu1 %v5981_v0 }
 0x18a   : > { %4856 = vmatprep.subr.bf16.mxu0 %v5981_v0 }
 0x18c   : > { %4845 = vmatmul.mubr.msk.bf16.vlgmr.msra.gmra.mxu0 %vm1339_vm1, %v1803_v9  ;;  %4851 = vmatpush3.bf16.msra.mxu1 %v5285_v32 }
 0x18d   : > { %4857 = vmatpush3.bf16.msra.mxu0 %v5280_v8  ;;  %4860 = vmatprep.mubr.msk.bf16.mxu0 %vm5982_vm0, %v5981_v0 }
 0x18e   : > { %4858 = vmatprep.subr.bf16.mxu0 %v5981_v0  ;;  %4864 = vmatprep.subr.bf16.mxu1 %v5981_v0 }
 0x18f   : > { %4853 = vmatmul.mubr.msk.bf16.vlgmr.msra.gmra.mxu1 %vm1339_vm1, %v1803_v9 }
 0x190   : > { %4866 = vmatprep.mubr.msk.bf16.mxu1 %vm5982_vm0, %v5981_v0 }
 0x191   : > { %4859 = vmatpush3.bf16.msra.mxu0 %v5281_v10 }
 0x192   : > { %4870 = vmatprep.subr.bf16.mxu0 %v5981_v0 }
 0x194   : > { %4861 = vmatmul.mubr.msk.bf16.vlgmr.msra.gmra.mxu0 %vm1339_vm1, %v2312_v12 }
 0x195   : > { %4872 = vmatprep.mubr.msk.bf16.mxu0 %vm5982_vm0, %v5981_v0 }
 0x244   : > { %v1377_v14 = vpop.f32.mrf.mxu0 }
 0x245   : > { %v1378_v15 = vadd.f32 %v4688_v13, %v1377_v14 }
 0x246   : > { %v4830_v16 = vpop.f32.mrf.mxu0 }
 0x247   : > { %v1446_v17 = vpack.c.bf16 %v1378_v15, %v1378_v15 }
 0x248   : > { %v1380_v18 = vpop.f32.mrf.mxu0 }
 0x249   : > { %1452 = vrot.lane.b32.xlu1 %v1446_v17, %s5983_s9  ;;  %1448 = vrot.lane.b32.xlu0 %v1446_v17, %s5984_s5  ;;  %v1460_v54 = vrot.slane %v1446_v17, %v6507_v43 }
 0x24a   : > { %v4831_v20 = vpop.f32.mrf.mxu0 }
 0x24c   : > { %v6490_v21 = vpop.f32.mrf.mxu0 }
 0x24d   : > { %1450 = vrot.lane.b32.xlu0 %v1446_v17, %s5985_s6 }
 0x24e   : > { %v4846_v23 = vpop.f32.mrf.mxu0 }
 0x250   : > { %v1867_v24 = vpop.f32.mrf.mxu0 }
 0x252   : > { %v4847_v25 = vpop.f32.mrf.mxu0 }
 0x254   : > { %v2369_v28 = vpop.f32.mrf.mxu0 }
 0x255   : > { %v2370_v29 = vadd.f32 %v4704_v26, %v2369_v28 }
 0x256   : > { %v4862_v30 = vpop.f32.mrf.mxu0 }
 0x257   : > { %v2375_v31 = vpack.c.bf16 %v2370_v29, %v2370_v29 }
 0x258   : > { %v2372_v33 = vpop.f32.mrf.mxu0 }
 0x259   : > { %2379 = vrot.lane.b32.xlu0 %v2375_v31, %s5985_s6  ;;  %2377 = vrot.lane.b32.xlu1 %v2375_v31, %s5984_s5  ;;  %v2389_v25 = vrot.slane %v2375_v31, %v6507_v43 }
 0x25a   : > { %v4863_v34 = vpop.f32.mrf.mxu0 }
 0x25d   : > { %2381 = vrot.lane.b32.xlu1 %v2375_v31, %s5983_s9 }
 0x2bb   : > { %v1453_v44 = vpop.permute.xlu1 %1452  ;;  %v1449_v45 = vpop.permute.xlu0 %1448 }
 0x2bc   : > { %v1502_v46 = vrot.slane %v1453_v44, %v6507_v43  ;;  %v1494_v48 = vrot.slane %v1449_v45, %v6507_v43 }
 0x2be   : > { %v1503_v49 = vcombine.low %v1494_v48, %v1502_v46  ;;  %v1504_v50 = vcombine.high %v1494_v48, %v1502_v46 }
 0x2bf   : > { %v1451_v51 = vpop.permute.xlu0 %1450 }
 0x2c0   : > { %v1511_v52 = vrot.slane %v1503_v49, %v6510_v47  ;;  %v1468_v53 = vrot.slane %v1451_v51, %v6507_v43  ;;  %v1518_v55 = vrot.slane %v1504_v50, %v6510_v47 }
 0x2c2   : > { %v1469_v56 = vcombine.low %v1460_v54, %v1468_v53  ;;  %v1470_v57 = vcombine.high %v1460_v54, %v1468_v53  ;;  %v1519_v59 = vcombine.high %v1511_v52, %v5988_v58  ;;  %v1520_v62 = vcombine.high %v1518_v55, %v5988_v58 }
 0x2c3   : > { %v1526_v63 = vshrl.u32 %v1511_v52, 16  ;;  %v1542_v6 = vshrl.u32 %v1518_v55, 16 }
 0x2c4   : > { %v1477_v60 = vrot.slane %v1469_v56, %v6510_v47  ;;  %v1484_v61 = vrot.slane %v1470_v57, %v6510_v47  ;;  %v1534_v5 = vshrl.u32 %v1519_v59, 16  ;;  %v1550_v14 = vshrl.u32 %v1520_v62, 16 }
 0x2c6   : > { %v1485_v1 = vcombine.high %v1477_v60, %v5988_v58  ;;  %v1486_v2 = vcombine.high %v1484_v61, %v5988_v58  ;;  %v1523_v3 = vpack.i.b16 %v1511_v52, %v1477_v60  ;;  %v1525_v4 = vshrl.u32 %v1477_v60, 16 }
 0x2c7   : > { %v1539_v7 = vpack.i.b16 %v1518_v55, %v1484_v61  ;;  %v1541_v8 = vshrl.u32 %v1484_v61, 16 }
 0x2c8   : > { %v1527_v9 = vpack.i.b16 %v1526_v63, %v1525_v4  ;;  %v1531_v10 = vpack.i.b16 %v1519_v59, %v1485_v1  ;;  %v1533_v12 = vshrl.u32 %v1485_v1, 16  ;;  %v1547_v13 = vpack.i.b16 %v1520_v62, %v1486_v2 }
 0x2c9   : > { %v1543_v15 = vpack.i.b16 %v1542_v6, %v1541_v8  ;;  %v1549_v16 = vshrl.u32 %v1486_v2, 16  ;;  %v1553_v17 = vcombine.low %v1523_v3, %v1539_v7 }
 0x2ca   : > { %v1535_v18 = vpack.i.b16 %v1534_v5, %v1533_v12  ;;  %v1561_v19 = vcombine.low %v1531_v10, %v1547_v13 }
 0x2cb   : > { %v2380_v20 = vpop.permute.xlu0 %2379  ;;  %v2378_v22 = vpop.permute.xlu1 %2377  ;;  %v1551_v23 = vpack.i.b16 %v1550_v14, %v1549_v16  ;;  %v1578_v24 = vcombine.low %v1527_v9, %v1543_v15  ;;  %v1560_v27 = vrot.slane %v1553_v17, %v6507_v43 }
 0x2cc   : > { %v2397_v26 = vrot.slane %v2380_v20, %v6507_v43  ;;  %v1568_v28 = vrot.slane %v1561_v19, %v6507_v43  ;;  %v2423_v40 = vrot.slane %v2378_v22, %v6507_v43 }
 0x2cd   : > { %v1586_v29 = vcombine.low %v1535_v18, %v1551_v23  ;;  %v1585_v34 = vrot.slane %v1578_v24, %v6507_v43 }
 0x2ce   : > { %v2398_v30 = vcombine.low %v2389_v25, %v2397_v26  ;;  %v2399_v32 = vcombine.high %v2389_v25, %v2397_v26  ;;  %v1569_v33 = vcombine.low %v1560_v27, %v1568_v28 }
 0x2cf   : > { %v2382_v35 = vpop.permute.xlu1 %2381  ;;  %v1593_v36 = vrot.slane %v1586_v29, %v6507_v43 }
 0x2d0   : > { %v2406_v37 = vrot.slane %v2398_v30, %v6510_v47  ;;  %v2413_v38 = vrot.slane %v2399_v32, %v6510_v47  ;;  %v2431_v31 = vrot.slane %v2382_v35, %v6507_v43  ;;  %v1576_v39 = vrot.slane %v1569_v33, %v6510_v47 }
 0x2d1   : > { %v1594_v41 = vcombine.low %v1585_v34, %v1593_v36 }
 0x2d2   : > { %v2414_v42 = vcombine.high %v2406_v37, %v5988_v58  ;;  %v2415_v44 = vcombine.high %v2413_v38, %v5988_v58  ;;  %v1577_v45 = vcombine.high %v1576_v39, %v5988_v58  ;;  %v2432_v46 = vcombine.low %v2423_v40, %v2431_v31 }
 0x2d3   : > { %v1601_v48 = vrot.slane %v1594_v41, %v6510_v47  ;;  %v1607_v49 = vshrl.u32 %v1576_v39, 16  ;;  %v2454_v50 = vshrl.u32 %v2406_v37, 16  ;;  %v2433_v51 = vcombine.high %v2423_v40, %v2431_v31 }
 0x2d4   : > { %v2462_v52 = vshrl.u32 %v2414_v42, 16  ;;  %v2470_v53 = vshrl.u32 %v2413_v38, 16  ;;  %v2478_v54 = vshrl.u32 %v2415_v44, 16  ;;  %v2440_v55 = vrot.slane %v2432_v46, %v6510_v47 }
 0x2d5   : > { %v1602_v56 = vcombine.high %v1601_v48, %v5988_v58  ;;  %v1605_v57 = vpack.i.b16 %v1601_v48, %v1576_v39  ;;  %v1608_v59 = vshrl.u32 %v1601_v48, 16  ;;  %v2447_v60 = vrot.slane %v2433_v51, %v6510_v47  ;;  %v1440_v51 = vpop.f32.mrf.mxu1 }
 0x2d6   : > { %v1615_v61 = vshrl.u32 %v1577_v45, 16  ;;  %v2448_v62 = vcombine.high %v2440_v55, %v5988_v58  ;;  %v2452_v63 = vpack.i.b16 %v2440_v55, %v2406_v37  ;;  %v2455_v1 = vshrl.u32 %v2440_v55, 16 }
 0x2d7   : > { %v1609_v2 = vpack.i.b16 %v1608_v59, %v1607_v49  ;;  %v1613_v3 = vpack.i.b16 %v1602_v56, %v1577_v45  ;;  %v1616_v4 = vshrl.u32 %v1602_v56, 16  ;;  %1620 = vst.msk [vmem:[#allocation2] sm:$0xf] %vm1619_vm2, %v1605_v57  ;;  %v2449_v5 = vcombine.high %v2447_v60, %v5988_v58 }
 0x2d8   : > { %v2456_v6 = vpack.i.b16 %v2455_v1, %v2454_v50  ;;  %v2460_v7 = vpack.i.b16 %v2448_v62, %v2414_v42  ;;  %v2463_v8 = vshrl.u32 %v2448_v62, 16  ;;  %v2468_v9 = vpack.i.b16 %v2447_v60, %v2413_v38 }
 0x2d9   : > { %v1617_v10 = vpack.i.b16 %v1616_v4, %v1615_v61  ;;  %1621 = vst.msk [vmem:[#allocation2 + $0x4] sm:$0xf] %vm1619_vm2, %v1609_v2  ;;  %1622 = vst.msk [vmem:[#allocation2 + $0x8] sm:$0xf] %vm1619_vm2, %v1613_v3  ;;  %v2471_v12 = vshrl.u32 %v2447_v60, 16  ;;  %v2476_v13 = vpack.i.b16 %v2449_v5, %v2415_v44  ;;  %v2479_v14 = vshrl.u32 %v2449_v5, 16 }
 0x2da   : > { %v2464_v15 = vpack.i.b16 %v2463_v8, %v2462_v52  ;;  %v2482_v16 = vcombine.low %v2452_v63, %v2468_v9  ;;  %v4838_v52 = vpop.f32.mrf.mxu1  ;;  %v2289_v60 = vld [vmem:[%s6408_s18] sm:$0xf]  ;;  %s5989_s18 = smov 16  }
 0x2db   : > { %1623 = vst.msk [vmem:[#allocation2 + $0xc] sm:$0xf] %vm1619_vm2, %v1617_v10  ;;  %v2472_v17 = vpack.i.b16 %v2471_v12, %v2470_v53  ;;  %v2480_v18 = vpack.i.b16 %v2479_v14, %v2478_v54  ;;  %v2490_v19 = vcombine.low %v2460_v7, %v2476_v13  ;;  %v2290_v61 = vunpack.c.l.bf16 %v2289_v60 }
 0x2dc   : > { %v2489_v20 = vrot.slane %v2482_v16, %v6507_v43  ;;  %v1443_v53 = vpop.f32.mrf.mxu1 }
 0x2dd   : > { %v2497_v22 = vrot.slane %v2490_v19, %v6507_v43  ;;  %v2507_v23 = vcombine.low %v2456_v6, %v2472_v17  ;;  %v2515_v24 = vcombine.low %v2464_v15, %v2480_v18 }
 0x2de   : > { %v2293_v25 = vld [vmem:[#allocation2] sm:$0xf]  ;;  %v4839_v54 = vpop.f32.mrf.mxu1 }
 0x2df   : > { %v2498_v26 = vcombine.low %v2489_v20, %v2497_v22  ;;  %v2514_v27 = vrot.slane %v2507_v23, %v6507_v43  ;;  %v2522_v28 = vrot.slane %v2515_v24, %v6507_v43  ;;  %v2549_v29 = vsel %vm2544_vm3, %v2293_v25, 0  ;;  %v4692_v20 = vld [vmem:[#allocation15] ss:$0 sm:$0xff] }
 0x2e0   : > { %4865 = vmatpush3.bf16.xpose.msra.mxu1 %v2549_v29  ;;  %v2294_v30 = vld [vmem:[#allocation2 + $0x4] sm:$0xf]  ;;  %v2295_v36 = vld [vmem:[#allocation2 + $0x8] sm:$0xf]  ;;  %v6575_v55 = vpop.f32.mrf.mxu1 }
 0x2e1   : > { %v2523_v32 = vcombine.low %v2514_v27, %v2522_v28  ;;  %v2595_v33 = vsel %vm2544_vm3, %v2294_v30, 0  ;;  %v2505_v34 = vrot.slane %v2498_v26, %v6510_v47  ;;  %4876 = vmatprep.subr.bf16.mxu1 %v5981_v0  ;;  %v2641_v40 = vsel %vm2544_vm3, %v2295_v36, 0 }
 0x2e2   : > { %4871 = vmatpush3.bf16.xpose.msra.mxu0 %v2595_v33  ;;  %v2296_v39 = vld [vmem:[#allocation2 + $0xc] sm:$0xf]  ;;  %v4854_v56 = vpop.f32.mrf.mxu1  ;;  %v1441_v26 = vadd.f32 %v4692_v20, %v1440_v51 }
 0x2e3   : > { %v2530_v35 = vrot.slane %v2523_v32, %v6510_v47  ;;  %4882 = vmatprep.subr.bf16.mxu0 %v5981_v0  ;;  %v2535_v38 = vshrl.u32 %v2505_v34, 16  ;;  %v2687_v44 = vsel %vm2544_vm3, %v2296_v39, 0  ;;  %v2506_v45 = vcombine.high %v2505_v34, %v5988_v58 }
 0x2e4   : > { %v1930_v57 = vpop.f32.mrf.mxu1  ;;  %v1624_v27 = vpack.c.bf16 %v1441_v26, %v1441_v26 }
 0x2e5   : > { %v2534_v37 = vpack.i.b16 %v2530_v35, %v2505_v34  ;;  %v2536_v31 = vshrl.u32 %v2530_v35, 16  ;;  %v2531_v42 = vcombine.high %v2530_v35, %v5988_v58  ;;  %v2541_v49 = vshrl.u32 %v2506_v45, 16 }
 0x2e6   : > { %v4855_v59 = vpop.f32.mrf.mxu1  ;;  %v1638_v52 = vrot.slane %v1624_v27, %v6507_v43 }
 0x2e7   : > { %4867 = vmatmul.mubr.msk.bf16.vlgmr.msra.gmra.mxu1 %vm2544_vm3, %v2534_v37  ;;  %v2537_v41 = vpack.i.b16 %v2536_v31, %v2535_v38  ;;  %v2542_v46 = vshrl.u32 %v2531_v42, 16  ;;  %v2540_v48 = vpack.i.b16 %v2531_v42, %v2506_v45 }
 0x2e8   : > { %4877 = vmatpush3.bf16.xpose.msra.mxu1 %v2641_v40  ;;  %4878 = vmatprep.mubr.msk.bf16.mxu1 %vm5982_vm0, %v5981_v0 }
 0x2e9   : > { %4873 = vmatmul.mubr.msk.bf16.vlgmr.msra.gmra.mxu0 %vm2544_vm3, %v2537_v41  ;;  %4888 = vmatprep.subr.bf16.mxu1 %v5981_v0  ;;  %v2543_v50 = vpack.i.b16 %v2542_v46, %v2541_v49 }
 0x2ea   : > { %4883 = vmatpush3.bf16.xpose.msra.mxu0 %v2687_v44  ;;  %4884 = vmatprep.mubr.msk.bf16.mxu0 %vm5982_vm0, %v5981_v0 }
 0x2eb   : > { %4894 = vmatprep.subr.bf16.mxu0 %v5981_v0 }
 0x2ef   : > { %4879 = vmatmul.mubr.msk.bf16.vlgmr.msra.gmra.mxu1 %vm2544_vm3, %v2540_v48 }
 0x2f0   : > { %4890 = vmatprep.mubr.msk.bf16.mxu1 %vm5982_vm0, %v5981_v0 }
 0x2f1   : > { %4885 = vmatmul.mubr.msk.bf16.vlgmr.msra.gmra.mxu0 %vm2544_vm3, %v2543_v50 }
 0x2f2   : > { %4896 = vmatprep.mubr.msk.bf16.mxu0 %vm5982_vm0, %v5981_v0 }
 0x3a7   : > { %v2585_v62 = vpop.f32.mrf.mxu1 }
 0x3a8   : > { %v2586_v63 = vadd.f32 %v2585_v62, %v2290_v61 }
 0x3a9   : > { %v4868_v1 = vpop.f32.mrf.mxu1  ;;  %v2631_v2 = vpop.f32.mrf.mxu0 }
 0x3aa   : > { %v2632_v3 = vadd.f32 %v2631_v2, %v2290_v61  ;;  %v2729_v4 = vsel %vm2544_vm3, %v2586_v63, -inf }
 0x3ab   : > { %2730 = vmax.xlane.f32.xlu0 %v2729_v4  ;;  %v2588_v5 = vpop.f32.mrf.mxu1  ;;  %v4874_v6 = vpop.f32.mrf.mxu0 }
 0x3ac   : > { %v2732_v7 = vsel %vm2544_vm3, %v2632_v3, -inf }
 0x3ad   : > { %v4869_v8 = vpop.f32.mrf.mxu1  ;;  %2733 = vmax.xlane.f32.xlu1 %v2732_v7  ;;  %v2634_v9 = vpop.f32.mrf.mxu0 }
 0x3af   : > { %v4875_v10 = vpop.f32.mrf.mxu0  ;;  %v2677_v12 = vpop.f32.mrf.mxu1 }
 0x3b0   : > { %v2678_v13 = vadd.f32 %v2677_v12, %v2290_v61 }
 0x3b1   : > { %v4880_v14 = vpop.f32.mrf.mxu1  ;;  %v2723_v15 = vpop.f32.mrf.mxu0 }
 0x3b2   : > { %v2724_v16 = vadd.f32 %v2723_v15, %v2290_v61  ;;  %v2735_v17 = vsel %vm2544_vm3, %v2678_v13, -inf }
 0x3b3   : > { %2736 = vmax.xlane.f32.xlu0 %v2735_v17  ;;  %v2680_v18 = vpop.f32.mrf.mxu1  ;;  %v4886_v19 = vpop.f32.mrf.mxu0 }
 0x3b4   : > { %v2738_v24 = vsel %vm2544_vm3, %v2724_v16, -inf }
 0x3b5   : > { %v4881_v22 = vpop.f32.mrf.mxu1  ;;  %v2726_v23 = vpop.f32.mrf.mxu0 }
 0x3b7   : > { %2739 = vmax.xlane.f32.xlu0 %v2738_v24  ;;  %v4887_v25 = vpop.f32.mrf.mxu0 }
 0x3be   : > { %1626 = vrot.lane.b32.xlu1 %v1624_v27, %s5984_s5 }
 0x3c2   : > { %1630 = vrot.lane.b32.xlu1 %v1624_v27, %s5983_s9 }
 0x3cd   : > { %1628 = vrot.lane.b32.xlu0 %v1624_v27, %s5985_s6 }
 0x434   : > { %v2731_v28 = vpop.xlane.xlu0 %2730 }
 0x435   : > { %v2741_v29 = vsub.f32 %v2586_v63, %v2731_v28 }
 0x436   : > { %v2734_v30 = vpop.xlane.xlu1 %2733 }
 0x437   : > { %v2745_v32 = vmul.f32 1.442695, %v2741_v29  ;;  %v2742_v33 = vsub.f32 %v2632_v3, %v2734_v30 }
 0x439   : > { %5298 = vpow2.f32 %v2745_v32  ;;  %v2747_v34 = vmul.f32 1.442695, %v2742_v33 }
 0x43a   : > { %v1627_v35 = vpop.permute.xlu1 %1626 }
 0x43b   : > { %5300 = vpow2.f32 %v2747_v34  ;;  %v1672_v31 = vrot.slane %v1627_v35, %v6507_v43 }
 0x43c   : > { %v2737_v36 = vpop.xlane.xlu0 %2736 }
 0x43d   : > { %v2743_v37 = vsub.f32 %v2678_v13, %v2737_v36 }
 0x43e   : > { %v1631_v38 = vpop.permute.xlu1 %1630 }
 0x43f   : > { %v2749_v39 = vmul.f32 1.442695, %v2743_v37  ;;  %v1680_v40 = vrot.slane %v1631_v38, %v6507_v43 }
 0x440   : > { %v2740_v41 = vpop.xlane.xlu0 %2739 }
 0x441   : > { %5302 = vpow2.f32 %v2749_v39  ;;  %v1681_v42 = vcombine.low %v1672_v31, %v1680_v40  ;;  %v1682_v44 = vcombine.high %v1672_v31, %v1680_v40  ;;  %v2744_v45 = vsub.f32 %v2724_v16, %v2740_v41 }
 0x443   : > { %v2751_v46 = vmul.f32 1.442695, %v2744_v45  ;;  %v1689_v49 = vrot.slane %v1681_v42, %v6510_v47  ;;  %v1696_v50 = vrot.slane %v1682_v44, %v6510_v47 }
 0x444   : > { %v1629_v48 = vpop.permute.xlu0 %1628 }
 0x445   : > { %5304 = vpow2.f32 %v2751_v46  ;;  %v1646_v53 = vrot.slane %v1629_v48, %v6507_v43  ;;  %v1697_v60 = vcombine.high %v1689_v49, %v5988_v58  ;;  %v1698_v61 = vcombine.high %v1696_v50, %v5988_v58 }
 0x446   : > { %v6589_v51 = vpop.eup %5298  ;;  %v1704_v2 = vshrl.u32 %v1689_v49, 16  ;;  %v1720_v3 = vshrl.u32 %v1696_v50, 16 }
 0x447   : > { %v2753_v54 = vsel %vm2544_vm3, %v6589_v51, 0.0  ;;  %v1647_v57 = vcombine.low %v1638_v52, %v1646_v53  ;;  %v1648_v59 = vcombine.high %v1638_v52, %v1646_v53  ;;  %v1712_v8 = vshrl.u32 %v1697_v60, 16 }
 0x448   : > { %v6595_v56 = vpop.eup %5300  ;;  %2754 = vadd.xlane.f32.xlu1 %v2753_v54  ;;  %v1728_v9 = vshrl.u32 %v1698_v61, 16 }
 0x449   : > { %v2756_v62 = vsel %vm2544_vm3, %v6595_v56, 0.0  ;;  %v1655_v63 = vrot.slane %v1647_v57, %v6510_v47  ;;  %v1662_v1 = vrot.slane %v1648_v59, %v6510_v47 }
 0x44a   : > { %2757 = vadd.xlane.f32.xlu0 %v2756_v62 }
 0x44b   : > { %v1663_v4 = vcombine.high %v1655_v63, %v5988_v58  ;;  %v1664_v5 = vcombine.high %v1662_v1, %v5988_v58  ;;  %v1701_v6 = vpack.i.b16 %v1689_v49, %v1655_v63  ;;  %v1703_v7 = vshrl.u32 %v1655_v63, 16 }
 0x44c   : > { %v1717_v10 = vpack.i.b16 %v1696_v50, %v1662_v1  ;;  %v1719_v12 = vshrl.u32 %v1662_v1, 16 }
 0x44d   : > { %v1705_v14 = vpack.i.b16 %v1704_v2, %v1703_v7  ;;  %v1709_v15 = vpack.i.b16 %v1697_v60, %v1663_v4  ;;  %v1711_v16 = vshrl.u32 %v1663_v4, 16  ;;  %v1725_v17 = vpack.i.b16 %v1698_v61, %v1664_v5 }
 0x44e   : > { %v6605_v13 = vpop.eup %5302  ;;  %v1721_v18 = vpack.i.b16 %v1720_v3, %v1719_v12  ;;  %v1727_v19 = vshrl.u32 %v1664_v5, 16  ;;  %v1731_v20 = vcombine.low %v1701_v6, %v1717_v10 }
 0x44f   : > { %v2759_v22 = vsel %vm2544_vm3, %v6605_v13, 0.0  ;;  %v1713_v23 = vpack.i.b16 %v1712_v8, %v1711_v16  ;;  %v1739_v24 = vcombine.low %v1709_v15, %v1725_v17 }
 0x450   : > { %2760 = vadd.xlane.f32.xlu0 %v2759_v22  ;;  %v1729_v25 = vpack.i.b16 %v1728_v9, %v1727_v19  ;;  %v1756_v26 = vcombine.low %v1705_v14, %v1721_v18  ;;  %v1738_v27 = vrot.slane %v1731_v20, %v6507_v43 }
 0x451   : > { %v1746_v28 = vrot.slane %v1739_v24, %v6507_v43 }
 0x452   : > { %v6611_v29 = vpop.eup %5304  ;;  %v1764_v30 = vcombine.low %v1713_v23, %v1729_v25  ;;  %v1763_v34 = vrot.slane %v1756_v26, %v6507_v43 }
 0x453   : > { %v1747_v32 = vcombine.low %v1738_v27, %v1746_v28  ;;  %v2762_v33 = vsel %vm2544_vm3, %v6611_v29, 0.0 }
 0x454   : > { %v1771_v35 = vrot.slane %v1764_v30, %v6507_v43  ;;  %2763 = vadd.xlane.f32.xlu1 %v2762_v33 }
 0x455   : > { %v1754_v36 = vrot.slane %v1747_v32, %v6510_v47 }
 0x456   : > { %v1772_v37 = vcombine.low %v1763_v34, %v1771_v35 }
 0x457   : > { %v1755_v38 = vcombine.high %v1754_v36, %v5988_v58  ;;  %v1785_v41 = vshrl.u32 %v1754_v36, 16 }
 0x458   : > { %v1779_v31 = vrot.slane %v1772_v37, %v6510_v47 }
 0x459   : > { %v1793_v46 = vshrl.u32 %v1755_v38, 16 }
 0x45a   : > { %v1780_v39 = vcombine.high %v1779_v31, %v5988_v58  ;;  %v1783_v40 = vpack.i.b16 %v1779_v31, %v1754_v36  ;;  %v1786_v42 = vshrl.u32 %v1779_v31, 16 }
 0x45c   : > { %v1787_v44 = vpack.i.b16 %v1786_v42, %v1785_v41  ;;  %v1791_v45 = vpack.i.b16 %v1780_v39, %v1755_v38  ;;  %v1794_v48 = vshrl.u32 %v1780_v39, 16  ;;  %1798 = vst.msk [vmem:[#allocation2 + $0x10] sm:$0xf] %vm1619_vm2, %v1783_v40  ;;  %v5286_v42 = vld [vmem:[#allocation16 + $0x8] sm:$0xff]  }
 0x45e   : > { %v1795_v49 = vpack.i.b16 %v1794_v48, %v1793_v46  ;;  %1799 = vst.msk [vmem:[#allocation2 + $0x14] sm:$0xf] %vm1619_vm2, %v1787_v44  ;;  %1800 = vst.msk [vmem:[#allocation2 + $0x18] sm:$0xf] %vm1619_vm2, %v1791_v45 }
 0x460   : > { %1801 = vst.msk [vmem:[#allocation2 + $0x1c] sm:$0xf] %vm1619_vm2, %v1795_v49 }
 0x463   : > { %v2298_v50 = vld [vmem:[#allocation2 + $0x10] sm:$0xf] }
 0x464   : > { %v2782_v52 = vsel %vm2780_vm4, %v2298_v50, 0 }
 0x465   : > { %4889 = vmatpush3.bf16.msra.mxu1 %v2782_v52  ;;  %v2299_v53 = vld [vmem:[#allocation2 + $0x14] sm:$0xf]  ;;  %v2300_v2 = vld [vmem:[#allocation2 + $0x18] sm:$0xf] }
 0x466   : > { %v2828_v54 = vsel %vm2780_vm4, %v2299_v53, 0  ;;  %4900 = vmatprep.subr.bf16.mxu1 %v5981_v0  ;;  %v2874_v6 = vsel %vm2780_vm4, %v2300_v2, 0 }
 0x467   : > { %4895 = vmatpush3.bf16.msra.mxu0 %v2828_v54  ;;  %v2301_v5 = vld [vmem:[#allocation2 + $0x1c] sm:$0xf] }
 0x468   : > { %4906 = vmatprep.subr.bf16.mxu0 %v5981_v0  ;;  %v2920_v8 = vsel %vm2780_vm4, %v2301_v5, 0 }
 0x4d1   : > { %v2755_v57 = vpop.xlane.xlu1 %2754 }
 0x4d2   : > { %5306 = vrcp.f32 %v2755_v57  ;;  %v5287_v57 = vld [vmem:[#allocation16] sm:$0xff]  }
 0x4d3   : > { %v2758_v59 = vpop.xlane.xlu0 %2757 }
 0x4d4   : > { %5308 = vrcp.f32 %v2758_v59 }
 0x4d9   : > { %v2761_v60 = vpop.xlane.xlu0 %2760 }
 0x4da   : > { %5310 = vrcp.f32 %v2761_v60 }
 0x4dd   : > { %v2764_v61 = vpop.xlane.xlu1 %2763 }
 0x4de   : > { %5312 = vrcp.f32 %v2764_v61 }
 0x4df   : > { %v5307_v62 = vpop.eup %5306 }
 0x4e0   : > { %v2769_v63 = vmul.f32 %v5307_v62, %v6589_v51 }
 0x4e1   : > { %v5309_v1 = vpop.eup %5308 }
 0x4e2   : > { %v2773_v3 = vpack.c.bf16 %v2769_v63, %v2769_v63  ;;  %v2770_v4 = vmul.f32 %v5309_v1, %v6595_v56 }
 0x4e4   : > { %4891 = vmatmul.mubr.msk.bf16.vlgmr.msra.gmra.mxu1 %vm2544_vm3, %v2773_v3  ;;  %v2774_v7 = vpack.c.bf16 %v2770_v4, %v2770_v4 }
 0x4e5   : > { %4901 = vmatpush3.bf16.msra.mxu1 %v2874_v6  ;;  %4902 = vmatprep.mubr.msk.bf16.mxu1 %vm5982_vm0, %v5981_v0 }
 0x4e6   : > { %4897 = vmatmul.mubr.msk.bf16.vlgmr.msra.gmra.mxu0 %vm2544_vm3, %v2774_v7  ;;  %4912 = vmatprep.subr.bf16.mxu1 %v5981_v0 }
 0x4e7   : > { %v5311_v51 = vpop.eup %5310  ;;  %4907 = vmatpush3.bf16.msra.mxu0 %v2920_v8  ;;  %4908 = vmatprep.mubr.msk.bf16.mxu0 %vm5982_vm0, %v5981_v0 }
 0x4e8   : > { %v2771_v56 = vmul.f32 %v5311_v51, %v6605_v13  ;;  %4920 = vmatprep.subr.bf16.mxu0 %v5981_v0 }
 0x4ea   : > { %v2775_v9 = vpack.c.bf16 %v2771_v56, %v2771_v56 }
 0x4eb   : > { %v5313_v10 = vpop.eup %5312 }
 0x4ec   : > { %4903 = vmatmul.mubr.msk.bf16.vlgmr.msra.gmra.mxu1 %vm2544_vm3, %v2775_v9  ;;  %v2772_v12 = vmul.f32 %v5313_v10, %v6611_v29 }
 0x4ed   : > { %4916 = vmatprep.mubr.msk.bf16.mxu1 %vm5982_vm0, %v5981_v0  ;;  %4913 = vmatpush3.bf16.msra.mxu1 %v5286_v42 }
 0x4ee   : > { %v2776_v14 = vpack.c.bf16 %v2772_v12, %v2772_v12  ;;  %4914 = vmatprep.subr.bf16.mxu1 %v5981_v0 }
 0x4f0   : > { %4909 = vmatmul.mubr.msk.bf16.vlgmr.msra.gmra.mxu0 %vm2544_vm3, %v2776_v14 }
 0x4f1   : > { %4924 = vmatprep.mubr.msk.bf16.mxu0 %vm5982_vm0, %v5981_v0  ;;  %4915 = vmatpush3.bf16.msra.mxu1 %v5287_v57 }
 0x4f2   : > { %4928 = vmatprep.subr.bf16.mxu1 %v5981_v0 }
 0x5a4   : > { %v2818_v15 = vpop.f32.mrf.mxu1 }
 0x5a6   : > { %v4892_v16 = vpop.f32.mrf.mxu1  ;;  %v2864_v13 = vpop.f32.mrf.mxu0 }
 0x5a8   : > { %v2821_v17 = vpop.f32.mrf.mxu1  ;;  %v4898_v18 = vpop.f32.mrf.mxu0 }
 0x5a9   : > { %v4718_v18 = vld [vmem:[#allocation18] ss:$0 sm:$0xff] }
 0x5aa   : > { %v4893_v19 = vpop.f32.mrf.mxu1  ;;  %v2867_v20 = vpop.f32.mrf.mxu0 }
 0x5ac   : > { %v4899_v22 = vpop.f32.mrf.mxu0  ;;  %v2910_v23 = vpop.f32.mrf.mxu1 }
 0x5ad   : > { %v2962_v25 = vcombine.low %v2818_v15, %v2910_v23  ;;  %v2963_v26 = vcombine.high %v2818_v15, %v2910_v23 }
 0x5ae   : > { %v4904_v24 = vpop.f32.mrf.mxu1 }
 0x5af   : > { %v2970_v34 = vrot.slane %v2962_v25, %v6507_v43  ;;  %v2977_v35 = vrot.slane %v2963_v26, %v6507_v43 }
 0x5b0   : > { %v2913_v27 = vpop.f32.mrf.mxu1  ;;  %v2956_v28 = vpop.f32.mrf.mxu0 }
 0x5b1   : > { %v2978_v29 = vcombine.low %v2864_v13, %v2956_v28  ;;  %v2979_v30 = vcombine.high %v2864_v13, %v2956_v28  ;;  %v4696_v27 = vld [vmem:[#allocation27] ss:$0 sm:$0xff] }
 0x5b2   : > { %v4905_v32 = vpop.f32.mrf.mxu1  ;;  %v4910_v33 = vpop.f32.mrf.mxu0  ;;  %v1865_v28 = vadd.f32 %v4696_v27, %v6490_v21 }
 0x5b3   : > { %v2986_v36 = vrot.slane %v2978_v29, %v6507_v43  ;;  %v2993_v37 = vrot.slane %v2979_v30, %v6507_v43 }
 0x5b4   : > { %v2959_v38 = vpop.f32.mrf.mxu0  ;;  %v1933_v29 = vpack.c.bf16 %v1865_v28, %v1865_v28  ;;  %v4723_v28 = vld [vmem:[#allocation21] ss:$0 sm:$0xff] }
 0x5b5   : > { %v2994_v31 = vcombine.low %v2970_v34, %v2986_v36  ;;  %v2995_v39 = vcombine.high %v2970_v34, %v2986_v36  ;;  %v3010_v40 = vcombine.low %v2977_v35, %v2993_v37  ;;  %v3011_v41 = vcombine.high %v2977_v35, %v2993_v37  ;;  %v5289_v36 = vld [vmem:[#allocation22] sm:$0xff]  }
 0x5b6   : > { %v4911_v44 = vpop.f32.mrf.mxu0 }
 0x5b7   : > { %v3002_v45 = vrot.slane %v2994_v31, %v6510_v47  ;;  %v3009_v46 = vrot.slane %v2995_v39, %v6510_v47  ;;  %v3018_v48 = vrot.slane %v3010_v40, %v6510_v47  ;;  %v3025_v49 = vrot.slane %v3011_v41, %v6510_v47 }
 0x5b9   : > { %v3030_v50 = vcombine.low %v3002_v45, %v3009_v46  ;;  %v4716_v52 = vcombine.high %v3002_v45, %v3009_v46  ;;  %v3046_v53 = vcombine.low %v3018_v48, %v3025_v49  ;;  %v4717_v54 = vcombine.high %v3018_v48, %v3025_v49 }
 0x5ba   : > { %v1947_v48 = vrot.slane %v1933_v29, %v6507_v43 }
 0x5bb   : > { %v3037_v59 = vrot.slane %v3030_v50, %v6507_v43  ;;  %v3045_v60 = vrot.slane %v4716_v52, %v6507_v43  ;;  %v3053_v61 = vrot.slane %v3046_v53, %v6507_v43  ;;  %v3061_v62 = vrot.slane %v4717_v54, %v6507_v43 }
 0x5bd   : > { %v3063_v63 = vcombine.high %v3037_v59, %v3045_v60  ;;  %v3079_v1 = vcombine.high %v3053_v61, %v3061_v62  ;;  %v3062_v2 = vcombine.low %v3037_v59, %v3045_v60  ;;  %v3078_v3 = vcombine.low %v3053_v61, %v3061_v62 }
 0x5bf   : > { %v3077_v4 = vrot.slane %v3063_v63, %v6510_v47  ;;  %v3093_v5 = vrot.slane %v3079_v1, %v6510_v47  ;;  %v3070_v6 = vrot.slane %v3062_v2, %v6510_v47  ;;  %v3086_v7 = vrot.slane %v3078_v3, %v6510_v47 }
 0x5c1   : > { %v3096_v8 = vcombine.low %v3077_v4, %v3093_v5  ;;  %v3095_v51 = vcombine.high %v3070_v6, %v3086_v7  ;;  %v3094_v56 = vcombine.low %v3070_v6, %v3086_v7  ;;  %v3097_v9 = vcombine.high %v3077_v4, %v3093_v5 }
 0x5c3   : > { %3103 = vrot.lane.b32.xlu1 %v3096_v8, %s5989_s18  ;;  %3099 = vrot.lane.b32.xlu0 %v3095_v51, %s5990_s13 }
 0x5c7   : > { %3107 = vrot.lane.b32.xlu1 %v3097_v9, %s5991_s8 }
 0x635   : > { %v3104_v10 = vpop.permute.xlu1 %3103  ;;  %v3100_v12 = vpop.permute.xlu0 %3099 }
 0x636   : > { %v3110_v14 = vsel %vm2544_vm3, %v3094_v56, %v3100_v12 }
 0x637   : > { %v3112_v16 = vsel %vm3111_vm5, %v3110_v14, %v3104_v10 }
 0x639   : > { %v3108_v15 = vpop.permute.xlu1 %3107 }
 0x63a   : > { %v3114_v13 = vsel %vm3113_vm6, %v3112_v16, %v3108_v15 }
 0x63b   : > { %v3115_v17 = vpack.c.bf16 %v3114_v13, %v3114_v13 }
 0x63d   : > { %4917 = vmatmul.mubr.msk.bf16.vlgmr.msra.gmra.mxu1 %vm1339_vm1, %v3115_v17 }
 0x63e   : > { %4930 = vmatprep.mubr.msk.bf16.mxu1 %vm5982_vm0, %v5981_v0 }
 0x6fd   : > { %v3171_v19 = vpop.f32.mrf.mxu1 }
 0x6fe   : > { %v3172_v20 = vadd.f32 %v4718_v18, %v3171_v19 }
 0x6ff   : > { %v4918_v22 = vpop.f32.mrf.mxu1 }
 0x700   : > { %v3177_v23 = vadd.f32 %v3172_v20, %v6478_v11  ;;  %v5288_v11 = vld [vmem:[#allocation22 + $0x8] sm:$0xff]  }
 0x701   : > { %v3174_v24 = vpop.f32.mrf.mxu1  ;;  %4921 = vmatpush3.bf16.msra.mxu0 %v5288_v11 }
 0x702   : > { %v3180_v25 = vsel %vm1339_vm1, %v3177_v23, 0.0  ;;  %4922 = vmatprep.subr.bf16.mxu0 %v5981_v0 }
 0x703   : > { %3181 = vadd.xlane.f32.xlu0 %v3180_v25  ;;  %v4919_v26 = vpop.f32.mrf.mxu1 }
 0x705   : > { %4923 = vmatpush3.bf16.msra.mxu0 %v5289_v36 }
 0x706   : > { %4934 = vmatprep.subr.bf16.mxu0 %v5981_v0 }
 0x719   : > { %1935 = vrot.lane.b32.xlu0 %v1933_v29, %s5984_s5 }
 0x71d   : > { %1939 = vrot.lane.b32.xlu0 %v1933_v29, %s5983_s9 }
 0x78c   : > { %v3182_v30 = vpop.xlane.xlu0 %3181 }
 0x78d   : > { %v3184_v32 = vmul.f32 0.03125, %v3182_v30 }
 0x78f   : > { %v3185_v33 = vsub.f32 %v3177_v23, %v3184_v32  ;;  %v4722_v23 = vld [vmem:[#allocation19] ss:$0 sm:$0xff] }
 0x790   : > { %v1936_v21 = vpop.permute.xlu0 %1935 }
 0x791   : > { %v3186_v34 = vmul.f32 %v3185_v33, %v3185_v33  ;;  %v1981_v31 = vrot.slane %v1936_v21, %v6507_v43 }
 0x793   : > { %v3187_v35 = vsel %vm1339_vm1, %v3186_v34, 0.0 }
 0x794   : > { %3188 = vadd.xlane.f32.xlu1 %v3187_v35  ;;  %v1940_v37 = vpop.permute.xlu0 %1939 }
 0x795   : > { %v1989_v38 = vrot.slane %v1940_v37, %v6507_v43 }
 0x797   : > { %v1990_v39 = vcombine.low %v1981_v31, %v1989_v38  ;;  %v1991_v42 = vcombine.high %v1981_v31, %v1989_v38 }
 0x799   : > { %v1998_v45 = vrot.slane %v1990_v39, %v6510_v47  ;;  %v2005_v50 = vrot.slane %v1991_v42, %v6510_v47 }
 0x79b   : > { %v2006_v54 = vcombine.high %v1998_v45, %v5988_v58  ;;  %v2007_v60 = vcombine.high %v2005_v50, %v5988_v58  ;;  %v2013_v61 = vshrl.u32 %v1998_v45, 16  ;;  %v2029_v4 = vshrl.u32 %v2005_v50, 16 }
 0x79d   : > { %v2021_v3 = vshrl.u32 %v2006_v54, 16  ;;  %v2037_v9 = vshrl.u32 %v2007_v60, 16 }
 0x7a5   : > { %1937 = vrot.lane.b32.xlu1 %v1933_v29, %s5985_s6 }
 0x81d   : > { %v3189_v40 = vpop.xlane.xlu1 %3188 }
 0x81e   : > { %v3190_v41 = vmul.f32 0.03125, %v3189_v40 }
 0x820   : > { %v3191_v44 = vadd.f32 1e-10, %v3190_v41 }
 0x821   : > { %v1938_v46 = vpop.permute.xlu1 %1937 }
 0x822   : > { %5314 = vrsqrt.f32 %v3191_v44  ;;  %v1955_v49 = vrot.slane %v1938_v46, %v6507_v43 }
 0x824   : > { %v1956_v52 = vcombine.low %v1947_v48, %v1955_v49  ;;  %v1957_v53 = vcombine.high %v1947_v48, %v1955_v49  ;;  %v4724_v49 = vld [vmem:[#allocation24] ss:$0 sm:$0xff] }
 0x826   : > { %v1964_v57 = vrot.slane %v1956_v52, %v6510_v47  ;;  %v1971_v59 = vrot.slane %v1957_v53, %v6510_v47 }
 0x828   : > { %v1972_v62 = vcombine.high %v1964_v57, %v5988_v58  ;;  %v1973_v63 = vcombine.high %v1971_v59, %v5988_v58  ;;  %v2010_v1 = vpack.i.b16 %v1998_v45, %v1964_v57  ;;  %v2012_v2 = vshrl.u32 %v1964_v57, 16 }
 0x829   : > { %v2026_v5 = vpack.i.b16 %v2005_v50, %v1971_v59  ;;  %v2028_v6 = vshrl.u32 %v1971_v59, 16 }
 0x82a   : > { %v2014_v7 = vpack.i.b16 %v2013_v61, %v2012_v2  ;;  %v2018_v8 = vpack.i.b16 %v2006_v54, %v1972_v62  ;;  %v2020_v51 = vshrl.u32 %v1972_v62, 16  ;;  %v2034_v56 = vpack.i.b16 %v2007_v60, %v1973_v63 }
 0x82b   : > { %v2030_v10 = vpack.i.b16 %v2029_v4, %v2028_v6  ;;  %v2036_v12 = vshrl.u32 %v1973_v63, 16  ;;  %v2040_v14 = vcombine.low %v2010_v1, %v2026_v5 }
 0x82c   : > { %v2022_v15 = vpack.i.b16 %v2021_v3, %v2020_v51  ;;  %v2048_v16 = vcombine.low %v2018_v8, %v2034_v56 }
 0x82d   : > { %v2038_v13 = vpack.i.b16 %v2037_v9, %v2036_v12  ;;  %v2065_v17 = vcombine.low %v2014_v7, %v2030_v10  ;;  %v2047_v18 = vrot.slane %v2040_v14, %v6507_v43 }
 0x82e   : > { %v2055_v19 = vrot.slane %v2048_v16, %v6507_v43 }
 0x82f   : > { %v5315_v20 = vpop.eup %5314  ;;  %v2073_v22 = vcombine.low %v2022_v15, %v2038_v13  ;;  %v2072_v26 = vrot.slane %v2065_v17, %v6507_v43 }
 0x830   : > { %v3193_v24 = vmul.f32 %v5315_v20, %v3185_v33  ;;  %v2056_v25 = vcombine.low %v2047_v18, %v2055_v19 }
 0x831   : > { %v2080_v27 = vrot.slane %v2073_v22, %v6507_v43 }
 0x832   : > { %v2063_v29 = vrot.slane %v2056_v25, %v6510_v47  ;;  %v3200_v30 = vmul.f32 %v4722_v23, %v3193_v24 }
 0x833   : > { %v2081_v32 = vcombine.low %v2072_v26, %v2080_v27 }
 0x834   : > { %v6702_v34 = vadd.f32 %v4723_v28, %v3200_v30  ;;  %v2064_v35 = vcombine.high %v2063_v29, %v5988_v58  ;;  %v2094_v37 = vshrl.u32 %v2063_v29, 16 }
 0x835   : > { %v2088_v11 = vrot.slane %v2081_v32, %v6510_v47 }
 0x836   : > { %v3227_v36 = vpack.c.bf16 %v6702_v34, %v6702_v34  ;;  %v2102_v40 = vshrl.u32 %v2064_v35, 16 }
 0x837   : > { %v2089_v33 = vcombine.high %v2088_v11, %v5988_v58  ;;  %v2092_v21 = vpack.i.b16 %v2088_v11, %v2063_v29  ;;  %v2095_v38 = vshrl.u32 %v2088_v11, 16 }
 0x838   : > { %4925 = vmatmul.mubr.msk.bf16.vlgmr.msra.gmra.mxu0 %vm1339_vm1, %v3227_v36 }
 0x839   : > { %v2096_v31 = vpack.i.b16 %v2095_v38, %v2094_v37  ;;  %v2100_v39 = vpack.i.b16 %v2089_v33, %v2064_v35  ;;  %v2103_v41 = vshrl.u32 %v2089_v33, 16  ;;  %2106 = vst.msk [vmem:[#allocation3] sm:$0xf] %vm1619_vm2, %v2092_v21  ;;  %4936 = vmatprep.mubr.msk.bf16.mxu0 %vm5982_vm0, %v5981_v0 }
 0x83b   : > { %v2104_v42 = vpack.i.b16 %v2103_v41, %v2102_v40  ;;  %2107 = vst.msk [vmem:[#allocation3 + $0x4] sm:$0xf] %vm1619_vm2, %v2096_v31  ;;  %2108 = vst.msk [vmem:[#allocation3 + $0x8] sm:$0xf] %vm1619_vm2, %v2100_v39 }
 0x83d   : > { %2109 = vst.msk [vmem:[#allocation3 + $0xc] sm:$0xf] %vm1619_vm2, %v2104_v42 }
 0x840   : > { %v3208_v44 = vld [vmem:[#allocation3] sm:$0xf] }
 0x841   : > { %v3462_v45 = vsel %vm2544_vm3, %v3208_v44, 0 }
 0x842   : > { %4929 = vmatpush3.bf16.xpose.msra.mxu1 %v3462_v45  ;;  %v3209_v46 = vld [vmem:[#allocation3 + $0x4] sm:$0xf]  ;;  %v3210_v44 = vld [vmem:[#allocation3 + $0x8] sm:$0xf] }
 0x843   : > { %v3508_v48 = vsel %vm2544_vm3, %v3209_v46, 0  ;;  %4940 = vmatprep.subr.bf16.mxu1 %v5981_v0 }
 0x844   : > { %4935 = vmatpush3.bf16.xpose.msra.mxu0 %v3508_v48 }
 0x845   : > { %4946 = vmatprep.subr.bf16.mxu0 %v5981_v0 }
 0x8f8   : > { %v3283_v50 = vpop.f32.mrf.mxu0 }
 0x8f9   : > { %v3284_v52 = vadd.f32 %v4724_v49, %v3283_v50  ;;  %v3211_v49 = vld [vmem:[#allocation3 + $0xc] sm:$0xf]  ;;  %v3554_v50 = vsel %vm2544_vm3, %v3210_v44, 0 }
 0x8fa   : > { %v4926_v53 = vpop.f32.mrf.mxu0 }
 0x8fb   : > { %v3289_v54 = vpack.c.bf16 %v3284_v52, %v3284_v52 }
 0x8fc   : > { %v3286_v57 = vpop.f32.mrf.mxu0 }
 0x8fd   : > { %3293 = vrot.lane.b32.xlu0 %v3289_v54, %s5985_s6  ;;  %3291 = vrot.lane.b32.xlu1 %v3289_v54, %s5984_s5  ;;  %v3303_v62 = vrot.slane %v3289_v54, %v6507_v43 }
 0x8fe   : > { %v4927_v59 = vpop.f32.mrf.mxu0 }
 0x901   : > { %3295 = vrot.lane.b32.xlu1 %v3289_v54, %s5983_s9  ;;  %v3600_v54 = vsel %vm2544_vm3, %v3211_v49, 0 }
 0x96f   : > { %v3294_v60 = vpop.permute.xlu0 %3293  ;;  %v3292_v61 = vpop.permute.xlu1 %3291 }
 0x970   : > { %v3311_v63 = vrot.slane %v3294_v60, %v6507_v43  ;;  %v3337_v6 = vrot.slane %v3292_v61, %v6507_v43 }
 0x972   : > { %v3312_v1 = vcombine.low %v3303_v62, %v3311_v63  ;;  %v3313_v2 = vcombine.high %v3303_v62, %v3311_v63  ;;  %v2291_v63 = vld [vmem:[%s6415_s7] sm:$0xf]  ;;  %s7010_s7 = sld [smem:[#allocation63_spill]] }
 0x973   : > { %v3296_v3 = vpop.permute.xlu1 %3295 }
 0x974   : > { %v3320_v4 = vrot.slane %v3312_v1, %v6510_v47  ;;  %v3345_v5 = vrot.slane %v3296_v3, %v6507_v43  ;;  %v3327_v7 = vrot.slane %v3313_v2, %v6510_v47  ;;  %v2292_v1 = vunpack.c.l.bf16 %v2291_v63 }
 0x976   : > { %v3346_v8 = vcombine.low %v3337_v6, %v3345_v5  ;;  %v3347_v51 = vcombine.high %v3337_v6, %v3345_v5  ;;  %v3328_v56 = vcombine.high %v3320_v4, %v5988_v58  ;;  %v3329_v12 = vcombine.high %v3327_v7, %v5988_v58 }
 0x977   : > { %v3368_v14 = vshrl.u32 %v3320_v4, 16  ;;  %v3384_v19 = vshrl.u32 %v3327_v7, 16 }
 0x978   : > { %v3354_v9 = vrot.slane %v3346_v8, %v6510_v47  ;;  %v3361_v10 = vrot.slane %v3347_v51, %v6510_v47  ;;  %v3376_v18 = vshrl.u32 %v3328_v56, 16  ;;  %v3392_v27 = vshrl.u32 %v3329_v12, 16 }
 0x97a   : > { %v3362_v15 = vcombine.high %v3354_v9, %v5988_v58  ;;  %v3363_v16 = vcombine.high %v3361_v10, %v5988_v58  ;;  %v3366_v13 = vpack.i.b16 %v3354_v9, %v3320_v4  ;;  %v3369_v17 = vshrl.u32 %v3354_v9, 16 }
 0x97b   : > { %v3382_v20 = vpack.i.b16 %v3361_v10, %v3327_v7  ;;  %v3385_v22 = vshrl.u32 %v3361_v10, 16 }
 0x97c   : > { %v3370_v23 = vpack.i.b16 %v3369_v17, %v3368_v14  ;;  %v3374_v24 = vpack.i.b16 %v3362_v15, %v3328_v56  ;;  %v3377_v25 = vshrl.u32 %v3362_v15, 16  ;;  %v3390_v26 = vpack.i.b16 %v3363_v16, %v3329_v12 }
 0x97d   : > { %v3386_v28 = vpack.i.b16 %v3385_v22, %v3384_v19  ;;  %v3393_v29 = vshrl.u32 %v3363_v16, 16  ;;  %v3396_v30 = vcombine.low %v3366_v13, %v3382_v20  ;;  %v4700_v22 = vld [vmem:[%s7009_s19] ss:$0 sm:$0xff] }
 0x97e   : > { %v3378_v32 = vpack.i.b16 %v3377_v25, %v3376_v18  ;;  %v3404_v35 = vcombine.low %v3374_v24, %v3390_v26 }
 0x97f   : > { %v3394_v11 = vpack.i.b16 %v3393_v29, %v3392_v27  ;;  %v3421_v36 = vcombine.low %v3370_v23, %v3386_v28  ;;  %v3403_v33 = vrot.slane %v3396_v30, %v6507_v43  ;;  %v1928_v27 = vadd.f32 %v4700_v22, %v6575_v55 }
 0x980   : > { %v3411_v21 = vrot.slane %v3404_v35, %v6507_v43 }
 0x981   : > { %v3429_v37 = vcombine.low %v3378_v32, %v3394_v11  ;;  %v3428_v31 = vrot.slane %v3421_v36, %v6507_v43  ;;  %v2110_v28 = vpack.c.bf16 %v1928_v27, %v1928_v27 }
 0x982   : > { %v3412_v38 = vcombine.low %v3403_v33, %v3411_v21 }
 0x983   : > { %v3436_v39 = vrot.slane %v3429_v37, %v6507_v43 }
 0x984   : > { %v3419_v41 = vrot.slane %v3412_v38, %v6510_v47 }
 0x985   : > { %v3437_v40 = vcombine.low %v3428_v31, %v3436_v39 }
 0x986   : > { %v3449_v46 = vshrl.u32 %v3419_v41, 16  ;;  %v3420_v57 = vcombine.high %v3419_v41, %v5988_v58 }
 0x987   : > { %v3444_v42 = vrot.slane %v3437_v40, %v6510_v47 }
 0x988   : > { %v3455_v61 = vshrl.u32 %v3420_v57, 16 }
 0x989   : > { %v3448_v45 = vpack.i.b16 %v3444_v42, %v3419_v41  ;;  %v3450_v48 = vshrl.u32 %v3444_v42, 16  ;;  %v3445_v53 = vcombine.high %v3444_v42, %v5988_v58 }
 0x98b   : > { %4931 = vmatmul.mubr.msk.bf16.vlgmr.msra.gmra.mxu1 %vm2544_vm3, %v3448_v45  ;;  %v3451_v52 = vpack.i.b16 %v3450_v48, %v3449_v46  ;;  %v3456_v59 = vshrl.u32 %v3445_v53, 16  ;;  %v3454_v60 = vpack.i.b16 %v3445_v53, %v3420_v57 }
 0x98c   : > { %4941 = vmatpush3.bf16.xpose.msra.mxu1 %v3554_v50  ;;  %4942 = vmatprep.mubr.msk.bf16.mxu1 %vm5982_vm0, %v5981_v0 }
 0x98d   : > { %4937 = vmatmul.mubr.msk.bf16.vlgmr.msra.gmra.mxu0 %vm2544_vm3, %v3451_v52  ;;  %4952 = vmatprep.subr.bf16.mxu1 %v5981_v0  ;;  %v3457_v62 = vpack.i.b16 %v3456_v59, %v3455_v61  ;;  %v2124_v52 = vrot.slane %v2110_v28, %v6507_v43 }
 0x98e   : > { %4947 = vmatpush3.bf16.xpose.msra.mxu0 %v3600_v54  ;;  %4948 = vmatprep.mubr.msk.bf16.mxu0 %vm5982_vm0, %v5981_v0 }
 0x98f   : > { %4958 = vmatprep.subr.bf16.mxu0 %v5981_v0 }
 0x993   : > { %4943 = vmatmul.mubr.msk.bf16.vlgmr.msra.gmra.mxu1 %vm2544_vm3, %v3454_v60 }
 0x994   : > { %4954 = vmatprep.mubr.msk.bf16.mxu1 %vm5982_vm0, %v5981_v0 }
 0x995   : > { %4949 = vmatmul.mubr.msk.bf16.vlgmr.msra.gmra.mxu0 %vm2544_vm3, %v3457_v62 }
 0x996   : > { %4960 = vmatprep.mubr.msk.bf16.mxu0 %vm5982_vm0, %v5981_v0 }
 0xa4b   : > { %v3498_v2 = vpop.f32.mrf.mxu1 }
 0xa4c   : > { %v3499_v3 = vadd.f32 %v3498_v2, %v2292_v1 }
 0xa4d   : > { %v4932_v4 = vpop.f32.mrf.mxu1  ;;  %v3544_v5 = vpop.f32.mrf.mxu0 }
 0xa4e   : > { %v3545_v6 = vadd.f32 %v3544_v5, %v2292_v1  ;;  %v3642_v7 = vsel %vm2544_vm3, %v3499_v3, -inf }
 0xa4f   : > { %3643 = vmax.xlane.f32.xlu0 %v3642_v7  ;;  %v3501_v8 = vpop.f32.mrf.mxu1  ;;  %v4938_v51 = vpop.f32.mrf.mxu0 }
 0xa50   : > { %v3645_v56 = vsel %vm2544_vm3, %v3545_v6, -inf }
 0xa51   : > { %v4933_v9 = vpop.f32.mrf.mxu1  ;;  %3646 = vmax.xlane.f32.xlu1 %v3645_v56  ;;  %v3547_v10 = vpop.f32.mrf.mxu0 }
 0xa53   : > { %v4939_v12 = vpop.f32.mrf.mxu0  ;;  %v3590_v14 = vpop.f32.mrf.mxu1 }
 0xa54   : > { %v3591_v15 = vadd.f32 %v3590_v14, %v2292_v1 }
 0xa55   : > { %v4944_v16 = vpop.f32.mrf.mxu1  ;;  %v3636_v13 = vpop.f32.mrf.mxu0 }
 0xa56   : > { %v3637_v17 = vadd.f32 %v3636_v13, %v2292_v1  ;;  %v3648_v18 = vsel %vm2544_vm3, %v3591_v15, -inf }
 0xa57   : > { %3649 = vmax.xlane.f32.xlu0 %v3648_v18  ;;  %v3593_v19 = vpop.f32.mrf.mxu1  ;;  %v4950_v20 = vpop.f32.mrf.mxu0 }
 0xa58   : > { %v3651_v25 = vsel %vm2544_vm3, %v3637_v17, -inf }
 0xa59   : > { %v4945_v23 = vpop.f32.mrf.mxu1  ;;  %v3639_v24 = vpop.f32.mrf.mxu0 }
 0xa5b   : > { %3652 = vmax.xlane.f32.xlu0 %v3651_v25  ;;  %v4951_v26 = vpop.f32.mrf.mxu0 }
 0xa62   : > { %2112 = vrot.lane.b32.xlu1 %v2110_v28, %s5984_s5  ;;  %s7017_s5 = sld [smem:[#allocation71_spill]] }
 0xa66   : > { %2116 = vrot.lane.b32.xlu1 %v2110_v28, %s5983_s9  ;;  %s7016_s9 = sld [smem:[#allocation70_spill]] }
 0xa71   : > { %2114 = vrot.lane.b32.xlu0 %v2110_v28, %s5985_s6  ;;  %s7018_s6 = sld [smem:[#allocation72_spill]] }
 0xad8   : > { %v3644_v29 = vpop.xlane.xlu0 %3643 }
 0xad9   : > { %v3654_v30 = vsub.f32 %v3499_v3, %v3644_v29 }
 0xada   : > { %v3647_v32 = vpop.xlane.xlu1 %3646 }
 0xadb   : > { %v3658_v35 = vmul.f32 1.442695, %v3654_v30  ;;  %v3655_v11 = vsub.f32 %v3545_v6, %v3647_v32 }
 0xadd   : > { %5316 = vpow2.f32 %v3658_v35  ;;  %v3660_v36 = vmul.f32 1.442695, %v3655_v11 }
 0xade   : > { %v2113_v33 = vpop.permute.xlu1 %2112 }
 0xadf   : > { %5318 = vpow2.f32 %v3660_v36  ;;  %v2158_v55 = vrot.slane %v2113_v33, %v6507_v43 }
 0xae0   : > { %v3650_v21 = vpop.xlane.xlu0 %3649 }
 0xae1   : > { %v3656_v37 = vsub.f32 %v3591_v15, %v3650_v21 }
 0xae2   : > { %v2117_v38 = vpop.permute.xlu1 %2116 }
 0xae3   : > { %v3662_v31 = vmul.f32 1.442695, %v3656_v37  ;;  %v2166_v39 = vrot.slane %v2117_v38, %v6507_v43 }
 0xae4   : > { %v3653_v40 = vpop.xlane.xlu0 %3652 }
 0xae5   : > { %5320 = vpow2.f32 %v3662_v31  ;;  %v2167_v41 = vcombine.low %v2158_v55, %v2166_v39  ;;  %v2168_v42 = vcombine.high %v2158_v55, %v2166_v39  ;;  %v3657_v44 = vsub.f32 %v3637_v17, %v3653_v40 }
 0xae7   : > { %v3664_v45 = vmul.f32 1.442695, %v3657_v44  ;;  %v2175_v48 = vrot.slane %v2167_v41, %v6510_v47  ;;  %v2182_v49 = vrot.slane %v2168_v42, %v6510_v47 }
 0xae8   : > { %v2115_v46 = vpop.permute.xlu0 %2114 }
 0xae9   : > { %5322 = vpow2.f32 %v3664_v45  ;;  %v2132_v53 = vrot.slane %v2115_v46, %v6507_v43  ;;  %v2183_v61 = vcombine.high %v2175_v48, %v5988_v58  ;;  %v2184_v62 = vcombine.high %v2182_v49, %v5988_v58 }
 0xaea   : > { %v6773_v50 = vpop.eup %5316  ;;  %v2190_v3 = vshrl.u32 %v2175_v48, 16  ;;  %v2206_v4 = vshrl.u32 %v2182_v49, 16 }
 0xaeb   : > { %v3666_v54 = vsel %vm2544_vm3, %v6773_v50, 0.0  ;;  %v2133_v59 = vcombine.low %v2124_v52, %v2132_v53  ;;  %v2134_v60 = vcombine.high %v2124_v52, %v2132_v53  ;;  %v2198_v51 = vshrl.u32 %v2183_v61, 16 }
 0xaec   : > { %v6779_v57 = vpop.eup %5318  ;;  %3667 = vadd.xlane.f32.xlu1 %v3666_v54  ;;  %v2214_v56 = vshrl.u32 %v2184_v62, 16 }
 0xaed   : > { %v3669_v63 = vsel %vm2544_vm3, %v6779_v57, 0.0  ;;  %v2141_v1 = vrot.slane %v2133_v59, %v6510_v47  ;;  %v2148_v2 = vrot.slane %v2134_v60, %v6510_v47 }
 0xaee   : > { %3670 = vadd.xlane.f32.xlu0 %v3669_v63 }
 0xaef   : > { %v2149_v5 = vcombine.high %v2141_v1, %v5988_v58  ;;  %v2150_v6 = vcombine.high %v2148_v2, %v5988_v58  ;;  %v2187_v7 = vpack.i.b16 %v2175_v48, %v2141_v1  ;;  %v2189_v8 = vshrl.u32 %v2141_v1, 16 }
 0xaf0   : > { %v2203_v9 = vpack.i.b16 %v2182_v49, %v2148_v2  ;;  %v2205_v10 = vshrl.u32 %v2148_v2, 16 }
 0xaf1   : > { %v2191_v14 = vpack.i.b16 %v2190_v3, %v2189_v8  ;;  %v2195_v15 = vpack.i.b16 %v2183_v61, %v2149_v5  ;;  %v2197_v16 = vshrl.u32 %v2149_v5, 16  ;;  %v2211_v13 = vpack.i.b16 %v2184_v62, %v2150_v6 }
 0xaf2   : > { %v6789_v12 = vpop.eup %5320  ;;  %v2207_v17 = vpack.i.b16 %v2206_v4, %v2205_v10  ;;  %v2213_v18 = vshrl.u32 %v2150_v6, 16  ;;  %v2217_v19 = vcombine.low %v2187_v7, %v2203_v9 }
 0xaf3   : > { %v3672_v20 = vsel %vm2544_vm3, %v6789_v12, 0.0  ;;  %v2199_v22 = vpack.i.b16 %v2198_v51, %v2197_v16  ;;  %v2225_v23 = vcombine.low %v2195_v15, %v2211_v13 }
 0xaf4   : > { %3673 = vadd.xlane.f32.xlu0 %v3672_v20  ;;  %v2215_v24 = vpack.i.b16 %v2214_v56, %v2213_v18  ;;  %v2242_v25 = vcombine.low %v2191_v14, %v2207_v17  ;;  %v2224_v26 = vrot.slane %v2217_v19, %v6507_v43 }
 0xaf5   : > { %v2232_v27 = vrot.slane %v2225_v23, %v6507_v43 }
 0xaf6   : > { %v6795_v28 = vpop.eup %5322  ;;  %v2250_v29 = vcombine.low %v2199_v22, %v2215_v24  ;;  %v2249_v35 = vrot.slane %v2242_v25, %v6507_v43 }
 0xaf7   : > { %v2233_v30 = vcombine.low %v2224_v26, %v2232_v27  ;;  %v3675_v32 = vsel %vm2544_vm3, %v6795_v28, 0.0 }
 0xaf8   : > { %v2257_v11 = vrot.slane %v2250_v29, %v6507_v43  ;;  %3676 = vadd.xlane.f32.xlu1 %v3675_v32 }
 0xaf9   : > { %v2240_v36 = vrot.slane %v2233_v30, %v6510_v47 }
 0xafa   : > { %v2258_v33 = vcombine.low %v2249_v35, %v2257_v11 }
 0xafb   : > { %v2241_v21 = vcombine.high %v2240_v36, %v5988_v58  ;;  %v2271_v31 = vshrl.u32 %v2240_v36, 16 }
 0xafc   : > { %v2265_v37 = vrot.slane %v2258_v33, %v6510_v47 }
 0xafd   : > { %v2279_v42 = vshrl.u32 %v2241_v21, 16 }
 0xafe   : > { %v2266_v38 = vcombine.high %v2265_v37, %v5988_v58  ;;  %v2269_v55 = vpack.i.b16 %v2265_v37, %v2240_v36  ;;  %v2272_v39 = vshrl.u32 %v2265_v37, 16 }
 0xb00   : > { %v2273_v40 = vpack.i.b16 %v2272_v39, %v2271_v31  ;;  %v2277_v41 = vpack.i.b16 %v2266_v38, %v2241_v21  ;;  %v2280_v44 = vshrl.u32 %v2266_v38, 16  ;;  %2284 = vst.msk [vmem:[#allocation3 + $0x10] sm:$0xf] %vm1619_vm2, %v2269_v55  ;;  %v5290_v38 = vld [vmem:[#allocation30 + $0x8] sm:$0xff]  }
 0xb02   : > { %v2281_v45 = vpack.i.b16 %v2280_v44, %v2279_v42  ;;  %2285 = vst.msk [vmem:[#allocation3 + $0x14] sm:$0xf] %vm1619_vm2, %v2273_v40  ;;  %2286 = vst.msk [vmem:[#allocation3 + $0x18] sm:$0xf] %vm1619_vm2, %v2277_v41 }
 0xb04   : > { %2287 = vst.msk [vmem:[#allocation3 + $0x1c] sm:$0xf] %vm1619_vm2, %v2281_v45 }
 0xb07   : > { %v3213_v46 = vld [vmem:[#allocation3 + $0x10] sm:$0xf] }
 0xb08   : > { %v3694_v48 = vsel %vm2780_vm4, %v3213_v46, 0 }
 0xb09   : > { %4953 = vmatpush3.bf16.msra.mxu1 %v3694_v48  ;;  %v3214_v58 = vld [vmem:[#allocation3 + $0x14] sm:$0xf]  ;;  %v3215_v63 = vld [vmem:[#allocation3 + $0x18] sm:$0xf]  ;;  %v5291_v48 = vld [vmem:[#allocation30] sm:$0xff]  }
 0xb0a   : > { %v3740_v49 = vsel %vm2780_vm4, %v3214_v58, 0  ;;  %4964 = vmatprep.subr.bf16.mxu1 %v5981_v0  ;;  %v3786_v4 = vsel %vm2780_vm4, %v3215_v63, 0 }
 0xb0b   : > { %4959 = vmatpush3.bf16.msra.mxu0 %v3740_v49  ;;  %v3216_v3 = vld [vmem:[#allocation3 + $0x1c] sm:$0xf] }
 0xb0c   : > { %4970 = vmatprep.subr.bf16.mxu0 %v5981_v0  ;;  %v3832_v6 = vsel %vm2780_vm4, %v3216_v3, 0 }
 0xb75   : > { %v3668_v52 = vpop.xlane.xlu1 %3667 }
 0xb76   : > { %5324 = vrcp.f32 %v3668_v52 }
 0xb77   : > { %v3671_v53 = vpop.xlane.xlu0 %3670 }
 0xb78   : > { %5326 = vrcp.f32 %v3671_v53 }
 0xb7d   : > { %v3674_v54 = vpop.xlane.xlu0 %3673 }
 0xb7e   : > { %5328 = vrcp.f32 %v3674_v54 }
 0xb81   : > { %v3677_v59 = vpop.xlane.xlu1 %3676 }
 0xb82   : > { %5330 = vrcp.f32 %v3677_v59 }
 0xb83   : > { %v5325_v60 = vpop.eup %5324 }
 0xb84   : > { %v3682_v61 = vmul.f32 %v5325_v60, %v6773_v50 }
 0xb85   : > { %v5327_v62 = vpop.eup %5326 }
 0xb86   : > { %v3686_v1 = vpack.c.bf16 %v3682_v61, %v3682_v61  ;;  %v3683_v2 = vmul.f32 %v5327_v62, %v6779_v57 }
 0xb88   : > { %4955 = vmatmul.mubr.msk.bf16.vlgmr.msra.gmra.mxu1 %vm2544_vm3, %v3686_v1  ;;  %v3687_v5 = vpack.c.bf16 %v3683_v2, %v3683_v2 }
 0xb89   : > { %4965 = vmatpush3.bf16.msra.mxu1 %v3786_v4  ;;  %4966 = vmatprep.mubr.msk.bf16.mxu1 %vm5982_vm0, %v5981_v0 }
 0xb8a   : > { %4961 = vmatmul.mubr.msk.bf16.vlgmr.msra.gmra.mxu0 %vm2544_vm3, %v3687_v5  ;;  %4976 = vmatprep.subr.bf16.mxu1 %v5981_v0 }
 0xb8b   : > { %v5329_v50 = vpop.eup %5328  ;;  %4971 = vmatpush3.bf16.msra.mxu0 %v3832_v6  ;;  %4972 = vmatprep.mubr.msk.bf16.mxu0 %vm5982_vm0, %v5981_v0 }
 0xb8c   : > { %v3684_v57 = vmul.f32 %v5329_v50, %v6789_v12  ;;  %4984 = vmatprep.subr.bf16.mxu0 %v5981_v0 }
 0xb8e   : > { %v3688_v7 = vpack.c.bf16 %v3684_v57, %v3684_v57 }
 0xb8f   : > { %v5331_v8 = vpop.eup %5330 }
 0xb90   : > { %4967 = vmatmul.mubr.msk.bf16.vlgmr.msra.gmra.mxu1 %vm2544_vm3, %v3688_v7  ;;  %v3685_v51 = vmul.f32 %v5331_v8, %v6795_v28 }
 0xb91   : > { %4980 = vmatprep.mubr.msk.bf16.mxu1 %vm5982_vm0, %v5981_v0  ;;  %4977 = vmatpush3.bf16.msra.mxu1 %v5290_v38  ;;  %v4744_v38 = vld [vmem:[%s7014_s4] ss:$0 sm:$0xff]  ;;  %s5992_s4 = smov [#allocation33]  }
 0xb92   : > { %v3689_v56 = vpack.c.bf16 %v3685_v51, %v3685_v51  ;;  %4978 = vmatprep.subr.bf16.mxu1 %v5981_v0 }
 0xb94   : > { %4973 = vmatmul.mubr.msk.bf16.vlgmr.msra.gmra.mxu0 %vm2544_vm3, %v3689_v56  ;;  %v4738_v56 = vld [vmem:[%s7010_s7] ss:$0 sm:$0xff] }
 0xb95   : > { %4988 = vmatprep.mubr.msk.bf16.mxu0 %vm5982_vm0, %v5981_v0  ;;  %4979 = vmatpush3.bf16.msra.mxu1 %v5291_v48 }
 0xb96   : > { %4992 = vmatprep.subr.bf16.mxu1 %v5981_v0 }
 0xc48   : > { %v3730_v9 = vpop.f32.mrf.mxu1 }
 0xc4a   : > { %v4956_v10 = vpop.f32.mrf.mxu1  ;;  %v3776_v12 = vpop.f32.mrf.mxu0 }
 0xc4c   : > { %v3733_v14 = vpop.f32.mrf.mxu1  ;;  %v4962_v15 = vpop.f32.mrf.mxu0 }
 0xc4e   : > { %v4957_v16 = vpop.f32.mrf.mxu1  ;;  %v3779_v13 = vpop.f32.mrf.mxu0 }
 0xc50   : > { %v4963_v17 = vpop.f32.mrf.mxu0  ;;  %v3822_v18 = vpop.f32.mrf.mxu1 }
 0xc51   : > { %v3874_v20 = vcombine.low %v3730_v9, %v3822_v18  ;;  %v3875_v22 = vcombine.high %v3730_v9, %v3822_v18 }
 0xc52   : > { %v4968_v19 = vpop.f32.mrf.mxu1 }
 0xc53   : > { %v3882_v29 = vrot.slane %v3874_v20, %v6507_v43  ;;  %v3889_v30 = vrot.slane %v3875_v22, %v6507_v43 }
 0xc54   : > { %v3825_v23 = vpop.f32.mrf.mxu1  ;;  %v3868_v24 = vpop.f32.mrf.mxu0 }
 0xc55   : > { %v3890_v25 = vcombine.low %v3776_v12, %v3868_v24  ;;  %v3891_v26 = vcombine.high %v3776_v12, %v3868_v24  ;;  %v5292_v23 = vld [vmem:[#allocation31 + $0x8] sm:$0xff]   ;;  %v5293_v24 = vld [vmem:[#allocation31] sm:$0xff]  }
 0xc56   : > { %v4969_v27 = vpop.f32.mrf.mxu1  ;;  %v4974_v28 = vpop.f32.mrf.mxu0  ;;  %4985 = vmatpush3.bf16.msra.mxu0 %v5292_v23 }
 0xc57   : > { %v3898_v32 = vrot.slane %v3890_v25, %v6507_v43  ;;  %v3905_v35 = vrot.slane %v3891_v26, %v6507_v43  ;;  %4986 = vmatprep.subr.bf16.mxu0 %v5981_v0  ;;  %v5295_v25 = vld [vmem:[%s7011_s2 + $0x10] sm:$0xff]  }
 0xc58   : > { %v3871_v11 = vpop.f32.mrf.mxu0 }
 0xc59   : > { %v3906_v36 = vcombine.low %v3882_v29, %v3898_v32  ;;  %v3907_v33 = vcombine.high %v3882_v29, %v3898_v32  ;;  %v3922_v21 = vcombine.low %v3889_v30, %v3905_v35  ;;  %v3923_v37 = vcombine.high %v3889_v30, %v3905_v35  ;;  %v4742_v30 = vld [vmem:[%s7012_s26] ss:$0 sm:$0xff]  ;;  %s4301_s26 = scalar_lea.sflag [#allocation6], %s6404_s15 }
 0xc5a   : > { %v4975_v55 = vpop.f32.mrf.mxu0  ;;  %4987 = vmatpush3.bf16.msra.mxu0 %v5293_v24  ;;  %v4743_v35 = vld [vmem:[%s7013_s12] ss:$0 sm:$0xff] }
 0xc5b   : > { %v3914_v31 = vrot.slane %v3906_v36, %v6510_v47  ;;  %v3921_v39 = vrot.slane %v3907_v33, %v6510_v47  ;;  %v3930_v40 = vrot.slane %v3922_v21, %v6510_v47  ;;  %v3937_v41 = vrot.slane %v3923_v37, %v6510_v47  ;;  %v5296_v21 = vld [vmem:[%s7011_s2 + $0x8] sm:$0xff]   ;;  %v5297_v37 = vld [vmem:[%s7011_s2] sm:$0xff]  }
 0xc5d   : > { %v3942_v42 = vcombine.low %v3914_v31, %v3921_v39  ;;  %v4736_v44 = vcombine.high %v3914_v31, %v3921_v39  ;;  %v3958_v45 = vcombine.low %v3930_v40, %v3937_v41  ;;  %v4737_v46 = vcombine.high %v3930_v40, %v3937_v41 }
 0xc5f   : > { %v3949_v58 = vrot.slane %v3942_v42, %v6507_v43  ;;  %v3957_v49 = vrot.slane %v4736_v44, %v6507_v43  ;;  %v3965_v52 = vrot.slane %v3958_v45, %v6507_v43  ;;  %v3973_v53 = vrot.slane %v4737_v46, %v6507_v43  ;;  %v4748_v45 = vld [vmem:[%s7015_s10] ss:$0 sm:$0xff]  ;;  %s5812_s10 = sshll.u32 %s5992_s4, 4  ;;  %s5813_s10 = int_to_ptr.vmem [resolvable:$false] %s5812_s10 }
 0xc61   : > { %v3975_v54 = vcombine.high %v3949_v58, %v3957_v49  ;;  %v3991_v59 = vcombine.high %v3965_v52, %v3973_v53  ;;  %v3974_v60 = vcombine.low %v3949_v58, %v3957_v49  ;;  %v3990_v61 = vcombine.low %v3965_v52, %v3973_v53 }
 0xc63   : > { %v3989_v62 = vrot.slane %v3975_v54, %v6510_v47  ;;  %v4005_v63 = vrot.slane %v3991_v59, %v6510_v47  ;;  %v3982_v1 = vrot.slane %v3974_v60, %v6510_v47  ;;  %v3998_v2 = vrot.slane %v3990_v61, %v6510_v47 }
 0xc65   : > { %v4008_v3 = vcombine.low %v3989_v62, %v4005_v63  ;;  %v4007_v4 = vcombine.high %v3982_v1, %v3998_v2  ;;  %v4006_v5 = vcombine.low %v3982_v1, %v3998_v2  ;;  %v4009_v43 = vcombine.high %v3989_v62, %v4005_v63 }
 0xc67   : > { %4015 = vrot.lane.b32.xlu1 %v4008_v3, %s5989_s18  ;;  %4011 = vrot.lane.b32.xlu0 %v4007_v4, %s5990_s13  ;;  %s4684_s18 = sshll.u32 %s6404_s15, 3  ;;  %v4754_v4 = vld [vmem:[%s7016_s9] ss:$0 sm:$0xff]  ;;  %s4757_s13 = sshll.u32 %s7004_s16, 7 }
 0xc68   : > { %s4313_s7 = scalar_lea.hbm %s7018_s6, %s4757_s13  ;;  %s5814_s9 = scalar_lea.vmem %s5813_s10, 256 }
 0xc6b   : > { %4019 = vrot.lane.b32.xlu1 %v4009_v43, %s5991_s8  ;;  %v4755_v43 = vld [vmem:[%s7017_s5] ss:$0 sm:$0xff]  ;;  %s1293_s8 = scalar_lea.vmem [#allocation33], %s4684_s18 }
 0xc6c   : > { %s4315_s19 = sshll.u32 %s1293_s8, 4  ;;  %s4316_s19 = int_to_ptr.vmem [resolvable:$true] %s4315_s19 }
 0xc6d   : > { %s5808_s12 = scalar_lea.vmem %s4316_s19, 128  ;;  %p5815_p5 = scmp.lt.s32.totalorder %s4316_s19, %s5813_s10 }
 0xc6e   : > { %p5809_p8 = scmp.ne.s32.totalorder %s4316_s19, %s5808_s12  ;;  %p5816_p11 = scmp.lt.s32.totalorder %s5814_s9, %s5808_s12 }
 0xc70   : > { %p5810_p13 = pnand %p5809_p8, %p7019_p10  ;;  %p5817_p9 = por %p5816_p11, %p5815_p5 }
 0xc72   : > { %p5811_p7 = pneg %p5810_p13 }
 0xc74   : > { %p5818_p12 = pnand %p5817_p9, %p5811_p7 }
 0xcd9   : > { %v4016_v6 = vpop.permute.xlu1 %4015  ;;  %v4012_v50 = vpop.permute.xlu0 %4011 }
 0xcda   : > { %v4022_v57 = vsel %vm2544_vm3, %v4006_v5, %v4012_v50 }
 0xcdb   : > { %v4023_v8 = vsel %vm3111_vm5, %v4022_v57, %v4016_v6 }
 0xcdd   : > { %v4020_v7 = vpop.permute.xlu1 %4019 }
 0xcde   : > { %v4024_v47 = vsel %vm3113_vm6, %v4023_v8, %v4020_v7 }
 0xcdf   : > { %v4025_v51 = vpack.c.bf16 %v4024_v47, %v4024_v47 }
 0xce1   : > { %4981 = vmatmul.mubr.msk.bf16.vlgmr.msra.gmra.mxu1 %vm1339_vm1, %v4025_v51 }
 0xce2   : > { %5000 = vmatprep.mubr.msk.bf16.mxu1 %vm5982_vm0, %v5981_v0 }
 0xda1   : > { %v4081_v9 = vpop.f32.mrf.mxu1 }
 0xda2   : > { %v4082_v10 = vadd.f32 %v4738_v56, %v4081_v9 }
 0xda3   : > { %v4982_v12 = vpop.f32.mrf.mxu1 }
 0xda4   : > { %v4087_v14 = vadd.f32 %v4082_v10, %v6702_v34  ;;  %v5294_v34 = vld [vmem:[%s7011_s2 + $0x18] sm:$0xff]  }
 0xda5   : > { %v4084_v15 = vpop.f32.mrf.mxu1  ;;  %4993 = vmatpush3.bf16.msra.mxu1 %v5294_v34 }
 0xda6   : > { %v4090_v16 = vsel %vm1339_vm1, %v4087_v14, 0.0  ;;  %4994 = vmatprep.subr.bf16.mxu1 %v5981_v0 }
 0xda7   : > { %4091 = vadd.xlane.f32.xlu0 %v4090_v16  ;;  %v4983_v13 = vpop.f32.mrf.mxu1 }
 0xda9   : > { %4995 = vmatpush3.bf16.msra.mxu1 %v5295_v25 }
 0xdaa   : > { %4996 = vmatprep.subr.bf16.mxu1 %v5981_v0 }
 0xdad   : > { %4997 = vmatpush3.bf16.msra.mxu1 %v5296_v21 }
 0xdae   : > { %4998 = vmatprep.subr.bf16.mxu1 %v5981_v0 }
 0xdb1   : > { %4999 = vmatpush3.bf16.msra.mxu1 %v5297_v37 }
 0xe30   : > { %v4092_v17 = vpop.xlane.xlu0 %4091 }
 0xe31   : > { %v4093_v18 = vmul.f32 0.03125, %v4092_v17 }
 0xe33   : > { %v4094_v19 = vsub.f32 %v4087_v14, %v4093_v18 }
 0xe35   : > { %v4095_v20 = vmul.f32 %v4094_v19, %v4094_v19 }
 0xe37   : > { %v4096_v22 = vsel %vm1339_vm1, %v4095_v20, 0.0 }
 0xe38   : > { %4097 = vadd.xlane.f32.xlu1 %v4096_v22 }
 0xec1   : > { %v4098_v26 = vpop.xlane.xlu1 %4097 }
 0xec2   : > { %v4099_v27 = vmul.f32 0.03125, %v4098_v26 }
 0xec4   : > { %v4100_v28 = vadd.f32 1e-10, %v4099_v27 }
 0xec6   : > { %5332 = vrsqrt.f32 %v4100_v28 }
 0xed3   : > { %v5333_v29 = vpop.eup %5332 }
 0xed4   : > { %v4102_v32 = vmul.f32 %v5333_v29, %v4094_v19 }
 0xed6   : > { %v4109_v11 = vmul.f32 %v4742_v30, %v4102_v32 }
 0xed8   : > { %v4116_v36 = vadd.f32 %v4743_v35, %v4109_v11 }
 0xeda   : > { %v4117_v33 = vpack.c.bf16 %v4116_v36, %v4116_v36 }
 0xedc   : > { %4989 = vmatmul.mubr.msk.bf16.vlgmr.msra.gmra.mxu0 %vm1339_vm1, %v4117_v33 }
 0xf9c   : > { %v4178_v55 = vpop.f32.mrf.mxu0 }
 0xf9d   : > { %v4179_v31 = vadd.f32 %v4744_v38, %v4178_v55 }
 0xf9e   : > { %v4990_v39 = vpop.f32.mrf.mxu0 }
 0xf9f   : > { %v4184_v40 = vmax.f32 %v4179_v31, 0.0 }
 0xfa0   : > { %v4181_v41 = vpop.f32.mrf.mxu0 }
 0xfa1   : > { %v4185_v42 = vpack.c.bf16 %v4184_v40, %v4184_v40 }
 0xfa2   : > { %v4991_v44 = vpop.f32.mrf.mxu0 }
 0xfa3   : > { %5001 = vmatmul.mubr.msk.bf16.vlgmr.msra.gmra.mxu1 %vm4225_vm7, %v4185_v42 }
0x1063   : > { %v4263_v46 = vpop.f32.mrf.mxu1 }
0x1064   : > { %v4264_v48 = vadd.f32 %v4748_v45, %v4263_v46 }
0x1065   : > { %v5002_v58 = vpop.f32.mrf.mxu1 }
0x1066   : > { %v4269_v49 = vadd.f32 %v4264_v48, %v4116_v36 }
0x1067   : > { %v4266_v52 = vpop.f32.mrf.mxu1 }
0x1068   : > { %v4272_v0 = vsel %vm1339_vm1, %v4269_v49, 0.0 }
0x1069   : > { %4273 = vadd.xlane.f32.xlu0 %v4272_v0  ;;  %v5003_v53 = vpop.f32.mrf.mxu1 }
0x10f2   : > { %v4274_v54 = vpop.xlane.xlu0 %4273 }
0x10f3   : > { %v4275_v59 = vmul.f32 0.03125, %v4274_v54 }
0x10f5   : > { %v4276_v60 = vsub.f32 %v4269_v49, %v4275_v59 }
0x10f7   : > { %v4277_v61 = vmul.f32 %v4276_v60, %v4276_v60 }
0x10f9   : > { %v4278_v62 = vsel %vm1339_vm1, %v4277_v61, 0.0 }
0x10fa   : > { %4279 = vadd.xlane.f32.xlu0 %v4278_v62 }
0x1183   : > { %v4280_v63 = vpop.xlane.xlu0 %4279 }
0x1184   : > { %v4281_v1 = vmul.f32 0.03125, %v4280_v63 }
0x1186   : > { %v4282_v2 = vadd.f32 1e-10, %v4281_v1 }
0x1188   : > { %5334 = vrsqrt.f32 %v4282_v2 }
0x1195   : > { %v5335_v3 = vpop.eup %5334 }
0x1196   : > { %v4284_v5 = vmul.f32 %v5335_v3, %v4276_v60 }
0x1198   : > { %v4291_v6 = vmul.f32 %v4754_v4, %v4284_v5 }
0x119a   : > { %v4298_v50 = vadd.f32 %v4755_v43, %v4291_v6 }
0x119c   : > { %4299 = vst.msk [vmem:[%s1293_s8] sm:$0xff] %vm1339_vm1, %v4298_v50 }
0x119d   : > { %5821 = shalt.err (!%p5818_p12)
}
0x119e   : > { %s5822_s16 = scalar_lea.hbm %s4313_s7, 128  ;;  %s5826_s15 = scalar_lea.hbm %s7018_s6, 256 }
0x119f   : > { %p5823_p3 = scmp.ne.s32.totalorder %s4313_s7, %s5822_s16  ;;  %p5827_p6 = scmp.lt.s32.totalorder %s4313_s7, %s7018_s6 }
0x11a0   : > { %p5828_p0 = scmp.lt.s32.totalorder %s5826_s15, %s5822_s16 }
0x11a1   : > { %p5824_p1 = pnand %p5823_p3, %p7019_p10 }
0x11a2   : > { %p5829_p4 = por %p5828_p0, %p5827_p6 }
0x11a3   : > { %p5825_p2 = pneg %p5824_p1 }
0x11a5   : > { %p5830_p8 = pnand %p5829_p4, %p5825_p2 }
0x11a7   : > { %5833 = shalt.err (!%p5830_p8)
}
0x11a8   : > { %5072 = dma.vmem_to_hbm [thread:$0]  (%p7019_p10), %s4316_s19, 128, %s4313_s7, %s4301_s26  }
0x11a9 PF: > { %s4327_s5 = sand.u32 1, %s5908_s22   ;;  %p7020_p13 = scmp.ne.s32.totalorder %s6983_s3, 0 }
0x11aa   : > { %p7021_p7 = scmp.ge.s32.totalorder %s5928_s1, 2  ;;  %s4328_s18 = scalar_lea.sflag [#allocation6], %s4327_s5 }
0x11ac   : > { %p5131_p5 = pnand %p7021_p7, %p7020_p13 }
0x11ae   : > { %p5132_p11 = pneg %p5131_p5 }
0x11b0   : > { %5903 = dma.done.wait (%p5132_p11), %s4328_s18, 128  }
0x11b1   : > { %5905 = vsyncadd (%p5132_p11), %s4328_s18, 4294967168  ;;  %s90_s1 = sadd.s32 1, %s5928_s1   ;;  %s7022_s22 = smov %s5912_s23 }
0x11b2   : > { %p87_p9 = scmp.ge.s32.totalorder %s90_s1, 4   ;;  %s7023_s23 = smov %s5916_s0 }
0x11b3   : > { %s7024_s0 = smov %s6345_s17  ;;  %s7025_s26 = smov %s5924_s28 }
0x11b4   : > { %s7026_s28 = smov %s7028_s24  ;;  %89 = sbr.rel (!%p87_p9) target bundleno = 79 (0x4f), region = 314 }
0x11b9   :  { %4333 = vsyncpa [#allocation5], 1 }
0x11ba   :  { %4335 = vsyncpa [#allocation5 + $0x1], 1 }
0x11bb   :  { %4336 = vsyncpa [#allocation8], 1 }
0x11bc   :  { %4338 = vsyncpa [#allocation8 + $0x1], 1 }
0x11bd   :  { %4339 = vsyncpa [#allocation11], 1 }
0x11be   :  { %4340 = vsyncpa [#allocation14], 1 }
0x11bf   :  { %4341 = vsyncpa [#allocation17], 1 }
0x11c0   :  { %4342 = vsyncpa [#allocation20], 1 }
0x11c1   :  { %4343 = vsyncpa [#allocation23], 1 }
0x11c2   :  { %4344 = vsyncpa [#allocation26], 1 }
0x11c3   :  { %4345 = vsyncpa [#allocation29], 1 }
0x11c4   :  { %4346 = vsyncpa [#allocation32], 1 }
0x11c5   :  { %4347 = vsyncpa [#allocation6], 1 }
0x11c6   :  { %4349 = vsyncpa [#allocation6 + $0x1], 1 }

// kernel: tpu_custom_call.1
= control target key start
LH: loop header
LB: loop body
LE: loop exit
PB: predicated region body
PF: predicated region fallthrough
CT: control target
= control target key end

     0   :  { %s5930_s6 = smov 1   ;;  %s5931_s10 = smov 2   ;;  %s6917_s0 = inlined_call_operand.smem [shape: u32[32], index: -1, kind: input, shape index: {}] }
   0x1   :  { %s6001_s5 = sld [smem:[%s6917_s0]]   ;;  %s5932_s14 = smov 3  }
   0x2   :  { %s6006_s9 = sld [smem:[%s6917_s0 + %s5930_s6]]   ;;  %s5933_s18 = smov 4  }
   0x3   :  { %s6011_s13 = sld [smem:[%s6917_s0 + %s5931_s10]]   ;;  %s5934_s22 = smov 5  }
   0x4   :  { %s6016_s17 = sld [smem:[%s6917_s0 + %s5932_s14]]   ;;  %s5935_s26 = smov 6  }
   0x5   :  { %s6021_s21 = sld [smem:[%s6917_s0 + %s5933_s18]]   ;;  %s5936_s30 = smov 7  }
   0x6   :  { %s6026_s25 = sld [smem:[%s6917_s0 + %s5934_s22]]   ;;  %s5937_s4 = smov 8  }
   0x7   :  { %6933 = sst [smem:[#allocation46_spill]] %s6001_s5  ;;  %s5938_s10 = smov 9  }
   0x8   :  { %6934 = sst [smem:[#allocation47_spill]] %s6006_s9  ;;  %s5939_s15 = smov 10  }
   0x9   :  { %6935 = sst [smem:[#allocation48_spill]] %s6011_s13  ;;  %s5940_s20 = smov 11  }
   0xa   :  { %6936 = sst [smem:[#allocation49_spill]] %s6016_s17  ;;  %s5942_s1 = smov 13  }
   0xb   :  { %6937 = sst [smem:[#allocation50_spill]] %s6021_s21  ;;  %s5943_s7 = smov 14  }
   0xc   :  { %s6031_s29 = sld [smem:[%s6917_s0 + %s5935_s26]]   ;;  %s5941_s26 = smov 12  }
   0xd   :  { %s6036_s3 = sld [smem:[%s6917_s0 + %s5936_s30]]   ;;  %s5945_s22 = smov 16  }
   0xe   :  { %s6041_s8 = sld [smem:[%s6917_s0 + %s5937_s4]]   ;;  %s5946_s28 = smov 17  }
   0xf   :  { %s6046_s14 = sld [smem:[%s6917_s0 + %s5938_s10]]  }
  0x10   :  { %s6051_s19 = sld [smem:[%s6917_s0 + %s5939_s15]]   ;;  %s5944_s15 = smov 15  }
  0x11   :  { %s6056_s24 = sld [smem:[%s6917_s0 + %s5940_s20]]  }
  0x12   :  { %s6061_s30 = sld [smem:[%s6917_s0 + %s5941_s26]]  }
  0x13   :  { %6938 = sst [smem:[#allocation51_spill]] %s6036_s3 }
  0x14   :  { %6939 = sst [smem:[#allocation52_spill]] %s6041_s8 }
  0x15   :  { %6940 = sst [smem:[#allocation53_spill]] %s6046_s14 }
  0x16   :  { %6941 = sst [smem:[#allocation54_spill]] %s6051_s19 }
  0x17   :  { %6942 = sst [smem:[#allocation55_spill]] %s6056_s24 }
  0x18   :  { %s6066_s6 = sld [smem:[%s6917_s0 + %s5942_s1]]  }
  0x19   :  { %s6071_s12 = sld [smem:[%s6917_s0 + %s5943_s7]]   ;;  %s5947_s7 = smov 18  }
  0x1a   :  { %s6076_s20 = sld [smem:[%s6917_s0 + %s5944_s15]]   ;;  %s5948_s15 = smov 19  }
  0x1b   :  { %s6081_s27 = sld [smem:[%s6917_s0 + %s5945_s22]]   ;;  %s5949_s22 = smov 20  }
  0x1c   :  { %s6086_s4 = sld [smem:[%s6917_s0 + %s5946_s28]]   ;;  %s5950_s28 = smov 21  }
  0x1d   :  { %s6091_s14 = sld [smem:[%s6917_s0 + %s5947_s7]]   ;;  %s5951_s7 = smov 22  }
  0x1e   :  { %6943 = sst [smem:[#allocation56_spill]] %s6066_s6 }
  0x1f   :  { %6944 = sst [smem:[#allocation57_spill]] %s6071_s12 }
  0x20   :  { %s6096_s5 = sld [smem:[%s6917_s0 + %s5948_s15]]   ;;  %s5952_s15 = smov 23  }
  0x21   :  { %s6101_s13 = sld [smem:[%s6917_s0 + %s5949_s22]]   ;;  %s5953_s22 = smov 24  }
  0x22   :  { %6945 = sst [smem:[#allocation58_spill]] %s6086_s4 }
  0x23   :  { %6946 = sst [smem:[#allocation59_spill]] %s6091_s14 }
  0x24   :  { %s6106_s9 = sld [smem:[%s6917_s0 + %s5950_s28]]   ;;  %s5954_s28 = smov 25  }
  0x25   :  { %s6111_s21 = sld [smem:[%s6917_s0 + %s5951_s7]]   ;;  %s5955_s7 = smov 26  }
  0x26   :  { %6947 = sst [smem:[#allocation60_spill]] %s6096_s5 }
  0x27   :  { %6948 = sst [smem:[#allocation61_spill]] %s6101_s13 }
  0x28   :  { %s6116_s17 = sld [smem:[%s6917_s0 + %s5952_s15]]   ;;  %s5956_s15 = smov 27  }
  0x29   :  { %s6121_s13 = sld [smem:[%s6917_s0 + %s5953_s22]]   ;;  %s5957_s22 = smov 28  }
  0x2a   :  { %6949 = sst [smem:[#allocation62_spill]] %s6106_s9 }
  0x2b   :  { %6950 = sst [smem:[#allocation63_spill]] %s6111_s21 }
  0x2c   :  { %s6126_s9 = sld [smem:[%s6917_s0 + %s5954_s28]]   ;;  %s5958_s28 = smov 29  }
  0x2d   :  { %s6131_s21 = sld [smem:[%s6917_s0 + %s5955_s7]]   ;;  %s5959_s7 = smov 30  }
  0x2e   :  { %6951 = sst [smem:[#allocation64_spill]] %s6116_s17 }
  0x2f   :  { %6952 = sst [smem:[#allocation65_spill]] %s6121_s13 }
  0x30   :  { %s6136_s17 = sld [smem:[%s6917_s0 + %s5956_s15]]   ;;  %s5960_s15 = smov 31  }
  0x31   :  { %s6141_s13 = sld [smem:[%s6917_s0 + %s5957_s22]]  }
  0x32   :  { %6953 = sst [smem:[#allocation66_spill]] %s6126_s9 }
  0x33   :  { %6954 = sst [smem:[#allocation67_spill]] %s6131_s21 }
  0x34   :  { %s6146_s9 = sld [smem:[%s6917_s0 + %s5958_s28]]  }
  0x35   :  { %s6151_s21 = sld [smem:[%s6917_s0 + %s5959_s7]]  }
  0x36   :  { %6955 = sst [smem:[#allocation68_spill]] %s6136_s17 }
  0x37   :  { %6956 = sst [smem:[#allocation69_spill]] %s6141_s13 }
  0x38   :  { %s6156_s17 = sld [smem:[%s6917_s0 + %s5960_s15]]  }
  0x3a   :  { %6957 = sst [smem:[#allocation70_spill]] %s6146_s9 }
  0x3b   :  { %6958 = sst [smem:[#allocation71_spill]] %s6151_s21 }
  0x3e   :  { %6959 = sst [smem:[#allocation72_spill]] %s6156_s17 }
  0x3f   :  { %68 = vsyncpa [#allocation5], 0 }
  0x40   :  { %70 = vsyncpa [#allocation5 + $0x1], 0 }
  0x41   :  { %71 = vsyncpa [#allocation8], 0 }
  0x42   :  { %73 = vsyncpa [#allocation8 + $0x1], 0 }
  0x43   :  { %74 = vsyncpa [#allocation11], 0 }
  0x44   :  { %75 = vsyncpa [#allocation14], 0 }
  0x45   :  { %76 = vsyncpa [#allocation17], 0 }
  0x46   :  { %77 = vsyncpa [#allocation20], 0 }
  0x47   :  { %78 = vsyncpa [#allocation23], 0 }
  0x48   :  { %79 = vsyncpa [#allocation26], 0 }
  0x49   :  { %80 = vsyncpa [#allocation29], 0 }
  0x4a   :  { %81 = vsyncpa [#allocation32], 0 }
  0x4b   :  { %82 = vsyncpa [#allocation6], 0 }
  0x4c   :  { %84 = vsyncpa [#allocation6 + $0x1], 0  ;;  %s6158_s22 = smov 0   ;;  %s6160_s23 = smov 0  }
  0x4d   :  { %s6162_s0 = smov 0   ;;  %s6164_s26 = smov 0  }
  0x4e   :  { %s6166_s28 = smov 0   ;;  %s6168_s1 = smov 0  }
  0x4f LB: > { %6960 = sst [smem:[#allocation73_spill]] %s5920_s26  ;;  %s6189_s2 = sadd.s32 4294967295, %s5928_s1   ;;  %s5928_s1 = sphi %s6168_s1, %s90_s1   ;;  %s5924_s28 = sphi %s6166_s28, %s7026_s28   ;;  %s5920_s26 = sphi %s6164_s26, %s7025_s26   ;;  %s5916_s0 = sphi %s6162_s0, %s7024_s0   ;;  %s5912_s23 = sphi %s6160_s23, %s7023_s23   ;;  %s5908_s22 = sphi %s6158_s22, %s7022_s22  }
  0x50   : > { %p4643_p0 = scmp.ge.s32.totalorder %s5928_s1, 1  ;;  %p6924_p1 = scmp.eq.s32.totalorder %s6189_s2, 0 }
  0x51   : > { %p817_p2 = scmp.lt.s32.totalorder %s5928_s1, 3  ;;  %s5961_s10 = smov [#allocation9]  }
  0x52   : > { %s829_s11 = sshll.u32 %s5961_s10, 4  ;;  %s5962_s16 = smov [#allocation10]   ;;  %s830_s11 = int_to_ptr.vmem [resolvable:$true] %s829_s11 }
  0x53   : > { %p6194_p3 = pnand %p4643_p0, %p817_p2  ;;  %s843_s18 = sshll.u32 %s5962_s16, 4  ;;  %s844_s18 = int_to_ptr.vmem [resolvable:$true] %s843_s18 }
  0x54   : > { %s5963_s17 = smov [#allocation13]   ;;  %s5347_s10 = scalar_lea.vmem %s830_s11, 256 }
  0x55   : > { %s6961_s7 = scalar_select %p6194_p3, 1, 0 }
  0x56   : > { %p5074_p4 = pneg %p6194_p3  ;;  %s867_s21 = sshll.u32 %s5963_s17, 4  ;;  %s868_s21 = int_to_ptr.vmem [resolvable:$true] %s867_s21 }
  0x57   : > { %p5348_p8 = scmp.ne.s32.totalorder %s830_s11, %s5347_s10  ;;  %p5355_p11 = scmp.lt.s32.totalorder %s830_s11, %s830_s11 }
  0x58   : > { %p6203_p6 = pnand %p5074_p4, %p6924_p1  ;;  %p5356_p12 = scmp.lt.s32.totalorder %s5347_s10, %s5347_s10 }
  0x5a   : > { %p6209_p7 = pneg %p6203_p6  ;;  %p5357_p13 = por %p5356_p12, %p5355_p11 }
  0x5c   : > { %p5350_p9 = pnand %p5348_p8, %p6209_p7 }
  0x5e   : > { %p5351_p10 = pneg %p5350_p9 }
  0x60   : > { %p5358_p0 = pnand %p5357_p13, %p5351_p10 }
  0x62   : > { %5361 = shalt.err (!%p5358_p0)
}
  0x63   : > { %s6926_s16 = smov 64   ;;  %s6928_s17 = smov 4  }
  0x64   : > { %5077 = dma.hbm_to_vmem [thread:$0]  (!%p6203_p6), %s6026_s25, 256, %s830_s11, [#allocation8], %s6926_s16, %s6926_s16, %s6928_s17  }
  0x65   : > { %s5373_s13 = scalar_lea.vmem %s844_s18, 16  ;;  %s5380_s26 = scalar_lea.vmem %s844_s18, 32 }
  0x66   : > { %p5374_p2 = scmp.ne.s32.totalorder %s844_s18, %s5373_s13  ;;  %p5381_p9 = scmp.lt.s32.totalorder %s844_s18, %s844_s18 }
  0x67   : > { %p5382_p11 = scmp.lt.s32.totalorder %s5380_s26, %s5373_s13 }
  0x68   : > { %p5376_p4 = pnand %p5374_p2, %p6209_p7 }
  0x69   : > { %p5383_p10 = por %p5382_p11, %p5381_p9 }
  0x6a   : > { %p5377_p8 = pneg %p5376_p4 }
  0x6c   : > { %p5384_p12 = pnand %p5383_p10, %p5377_p8 }
  0x6e   : > { %5387 = shalt.err (!%p5384_p12)
}
  0x6f   : > { %5080 = dma.hbm_to_vmem [thread:$0]  (!%p6203_p6), %s6031_s29, 16, %s844_s18, [#allocation11]  }
  0x70   : > { %s5399_s10 = scalar_lea.vmem %s868_s21, 16  ;;  %s5406_s11 = scalar_lea.vmem %s868_s21, 32 }
  0x71   : > { %p5400_p13 = scmp.ne.s32.totalorder %s868_s21, %s5399_s10  ;;  %p5407_p2 = scmp.lt.s32.totalorder %s868_s21, %s868_s21 }
  0x72   : > { %p5408_p4 = scmp.lt.s32.totalorder %s5406_s11, %s5399_s10 }
  0x73   : > { %p5402_p0 = pnand %p5400_p13, %p6209_p7 }
  0x74   : > { %p5409_p1 = por %p5408_p4, %p5407_p2 }
  0x75   : > { %p5403_p5 = pneg %p5402_p0 }
  0x77   : > { %p5410_p3 = pnand %p5409_p1, %p5403_p5 }
  0x79   : > { %5413 = shalt.err (!%p5410_p3)
}
  0x7a   : > { %s6964_s8 = sld [smem:[#allocation52_spill]]  ;;  %s5966_s13 = smov [#allocation16]  }
  0x7b   : > { %s891_s26 = sshll.u32 %s5966_s13, 4  ;;  %s5967_s18 = smov [#allocation19]   ;;  %s892_s26 = int_to_ptr.vmem [resolvable:$true] %s891_s26 }
  0x7c   : > { %s916_s16 = sshll.u32 %s5967_s18, 4  ;;  %s5425_s17 = scalar_lea.vmem %s892_s26, 256  ;;  %s917_s16 = int_to_ptr.vmem [resolvable:$true] %s916_s16 }
  0x7d   : > { %p5426_p8 = scmp.ne.s32.totalorder %s892_s26, %s5425_s17  ;;  %p5433_p10 = scmp.lt.s32.totalorder %s892_s26, %s892_s26 }
  0x7e   : > { %p5434_p12 = scmp.lt.s32.totalorder %s5425_s17, %s5425_s17 }
  0x7f   : > { %p5428_p9 = pnand %p5426_p8, %p6209_p7 }
  0x80   : > { %5086 = dma.hbm_to_vmem [thread:$0]  (!%p6203_p6), %s6964_s8, 16, %s868_s21, [#allocation14]  }
  0x81   : > { %p5429_p11 = pneg %p5428_p9  ;;  %p5435_p13 = por %p5434_p12, %p5433_p10 }
  0x83   : > { %p5436_p1 = pnand %p5435_p13, %p5429_p11 }
  0x85   : > { %5439 = shalt.err (!%p5436_p1)
}
  0x86   : > { %s6965_s10 = smov 4   ;;  %s6966_s11 = smov 64  }
  0x87   : > { %s6967_s24 = sld [smem:[#allocation55_spill]]  ;;  %s5451_s21 = scalar_lea.vmem %s917_s16, 16 }
  0x88   : > { %p5452_p3 = scmp.ne.s32.totalorder %s917_s16, %s5451_s21  ;;  %s5458_s13 = scalar_lea.vmem %s917_s16, 32 }
  0x89   : > { %p5459_p2 = scmp.lt.s32.totalorder %s917_s16, %s917_s16  ;;  %p5460_p4 = scmp.lt.s32.totalorder %s5458_s13, %s5451_s21 }
  0x8a   : > { %p5454_p5 = pnand %p5452_p3, %p6209_p7 }
  0x8b   : > { %p5461_p8 = por %p5460_p4, %p5459_p2 }
  0x8c   : > { %p5455_p0 = pneg %p5454_p5 }
  0x8d   : > { %5092 = dma.hbm_to_vmem [thread:$0]  (!%p6203_p6), %s6967_s24, 256, %s892_s26, [#allocation17], %s6966_s11, %s6966_s11, %s6965_s10  }
  0x8e   : > { %p5462_p9 = pnand %p5461_p8, %p5455_p0 }
  0x90   : > { %5465 = shalt.err (!%p5462_p9)
}
  0x91   : > { %s6968_s6 = sld [smem:[#allocation56_spill]]  ;;  %s5968_s17 = smov [#allocation22]  }
  0x92   : > { %s937_s18 = sshll.u32 %s5968_s17, 4  ;;  %s5969_s26 = smov [#allocation25]   ;;  %s938_s18 = int_to_ptr.vmem [resolvable:$true] %s937_s18 }
  0x93   : > { %s961_s8 = sshll.u32 %s5969_s26, 4  ;;  %s5477_s24 = scalar_lea.vmem %s938_s18, 256  ;;  %s962_s8 = int_to_ptr.vmem [resolvable:$true] %s961_s8 }
  0x94   : > { %p5478_p11 = scmp.ne.s32.totalorder %s938_s18, %s5477_s24  ;;  %p5485_p13 = scmp.lt.s32.totalorder %s938_s18, %s938_s18 }
  0x95   : > { %p5486_p1 = scmp.lt.s32.totalorder %s5477_s24, %s5477_s24 }
  0x96   : > { %p5480_p10 = pnand %p5478_p11, %p6209_p7 }
  0x97   : > { %5098 = dma.hbm_to_vmem [thread:$0]  (!%p6203_p6), %s6968_s6, 16, %s917_s16, [#allocation20]  }
  0x98   : > { %p5481_p12 = pneg %p5480_p10  ;;  %p5487_p3 = por %p5486_p1, %p5485_p13 }
  0x9a   : > { %p5488_p5 = pnand %p5487_p3, %p5481_p12 }
  0x9c   : > { %5491 = shalt.err (!%p5488_p5)
}
  0x9d   : > { %5104 = dma.hbm_to_vmem [thread:$0]  (!%p6203_p6), %s6076_s20, 256, %s938_s18, [#allocation23], %s6966_s11, %s6966_s11, %s6965_s10  }
  0x9e   : > { %s5503_s16 = scalar_lea.vmem %s962_s8, 256  ;;  %p5511_p8 = scmp.lt.s32.totalorder %s962_s8, %s962_s8 }
  0x9f   : > { %p5504_p0 = scmp.ne.s32.totalorder %s962_s8, %s5503_s16  ;;  %p5512_p9 = scmp.lt.s32.totalorder %s5503_s16, %s5503_s16 }
  0xa1   : > { %p5506_p2 = pnand %p5504_p0, %p6209_p7  ;;  %p5513_p11 = por %p5512_p9, %p5511_p8 }
  0xa3   : > { %p5507_p4 = pneg %p5506_p2 }
  0xa5   : > { %p5514_p10 = pnand %p5513_p11, %p5507_p4 }
  0xa7   : > { %5517 = shalt.err (!%p5514_p10)
}
  0xa8   : > { %s6969_s4 = sld [smem:[#allocation58_spill]]  ;;  %s5970_s24 = smov [#allocation28]  }
  0xa9   : > { %s985_s21 = sshll.u32 %s5970_s24, 4  ;;  %s5971_s13 = smov [#allocation12]   ;;  %s986_s21 = int_to_ptr.vmem [resolvable:$true] %s985_s21 }
  0xaa   : > { %s853_s17 = sshll.u32 %s5971_s13, 4  ;;  %s5529_s18 = scalar_lea.vmem %s986_s21, 256  ;;  %s854_s17 = int_to_ptr.vmem [resolvable:$true] %s853_s17 }
  0xab   : > { %p5530_p12 = scmp.ne.s32.totalorder %s986_s21, %s5529_s18  ;;  %p5537_p3 = scmp.lt.s32.totalorder %s986_s21, %s986_s21 }
  0xac   : > { %p5538_p5 = scmp.lt.s32.totalorder %s5529_s18, %s5529_s18 }
  0xad   : > { %p5532_p13 = pnand %p5530_p12, %p6209_p7 }
  0xae   : > { %5110 = dma.hbm_to_vmem [thread:$0]  (!%p6203_p6), %s6969_s4, 256, %s962_s8, [#allocation26], %s6966_s11, %s6966_s11, %s6965_s10  }
  0xaf   : > { %p5533_p1 = pneg %p5532_p13  ;;  %p5539_p0 = por %p5538_p5, %p5537_p3 }
  0xb1   : > { %p5540_p2 = pnand %p5539_p0, %p5533_p1 }
  0xb3   : > { %5543 = shalt.err (!%p5540_p2)
}
  0xb4   : > { %s6970_s5 = sld [smem:[#allocation60_spill]]  ;;  %s5555_s8 = scalar_lea.vmem %s854_s17, 256 }
  0xb5   : > { %p5556_p4 = scmp.ne.s32.totalorder %s854_s17, %s5555_s8  ;;  %p5563_p11 = scmp.lt.s32.totalorder %s854_s17, %s854_s17 }
  0xb6   : > { %p5564_p10 = scmp.lt.s32.totalorder %s5555_s8, %s5555_s8 }
  0xb7   : > { %p5558_p8 = pnand %p5556_p4, %p6209_p7 }
  0xb8   : > { %p5565_p12 = por %p5564_p10, %p5563_p11 }
  0xb9   : > { %p5559_p9 = pneg %p5558_p8 }
  0xba   : > { %5116 = dma.hbm_to_vmem [thread:$0]  (!%p6203_p6), %s6970_s5, 256, %s986_s21, [#allocation29], %s6966_s11, %s6966_s11, %s6965_s10  }
  0xbb   : > { %p5566_p13 = pnand %p5565_p12, %p5559_p9 }
  0xbd   : > { %5569 = shalt.err (!%p5566_p13)
}
  0xbe   : > { %s6971_s3 = sld [smem:[#allocation51_spill]]  ;;  %s5972_s26 = smov [#allocation15]  }
  0xbf   : > { %s881_s16 = sshll.u32 %s5972_s26, 4  ;;  %s5973_s24 = smov [#allocation18]   ;;  %s882_s16 = int_to_ptr.vmem [resolvable:$true] %s881_s16 }
  0xc0   : > { %s905_s21 = sshll.u32 %s5973_s24, 4  ;;  %s5581_s13 = scalar_lea.vmem %s882_s16, 16  ;;  %s906_s21 = int_to_ptr.vmem [resolvable:$true] %s905_s21 }
  0xc1   : > { %p5582_p1 = scmp.ne.s32.totalorder %s882_s16, %s5581_s13  ;;  %s5588_s18 = scalar_lea.vmem %s882_s16, 32 }
  0xc2   : > { %p5589_p0 = scmp.lt.s32.totalorder %s882_s16, %s882_s16  ;;  %p5590_p2 = scmp.lt.s32.totalorder %s5588_s18, %s5581_s13 }
  0xc3   : > { %p5584_p3 = pnand %p5582_p1, %p6209_p7 }
  0xc4   : > { %5083 = dma.hbm_to_vmem [thread:$0]  (!%p6203_p6), %s6971_s3, 256, %s854_s17, [#allocation11], %s6966_s11, %s6966_s11, %s6965_s10  }
  0xc5   : > { %p5585_p5 = pneg %p5584_p3  ;;  %p5591_p4 = por %p5590_p2, %p5589_p0 }
  0xc7   : > { %p5592_p8 = pnand %p5591_p4, %p5585_p5 }
  0xc9   : > { %5595 = shalt.err (!%p5592_p8)
}
  0xca   : > { %s6972_s19 = sld [smem:[#allocation54_spill]]  ;;  %s5607_s17 = scalar_lea.vmem %s906_s21, 16 }
  0xcb   : > { %p5608_p9 = scmp.ne.s32.totalorder %s906_s21, %s5607_s17  ;;  %s5614_s8 = scalar_lea.vmem %s906_s21, 32 }
  0xcc   : > { %p5615_p12 = scmp.lt.s32.totalorder %s906_s21, %s906_s21  ;;  %p5616_p13 = scmp.lt.s32.totalorder %s5614_s8, %s5607_s17 }
  0xcd   : > { %p5610_p11 = pnand %p5608_p9, %p6209_p7 }
  0xce   : > { %p5617_p1 = por %p5616_p13, %p5615_p12 }
  0xcf   : > { %p5611_p10 = pneg %p5610_p11 }
  0xd0   : > { %5089 = dma.hbm_to_vmem [thread:$0]  (!%p6203_p6), %s6972_s19, 16, %s882_s16, [#allocation14]  }
  0xd1   : > { %p5618_p3 = pnand %p5617_p1, %p5611_p10 }
  0xd3   : > { %5621 = shalt.err (!%p5618_p3)
}
  0xd4   : > { %5095 = dma.hbm_to_vmem [thread:$0]  (!%p6203_p6), %s6061_s30, 16, %s906_s21, [#allocation17]  }
  0xd5   : > { %s5974_s26 = smov [#allocation21]   ;;  %s5975_s16 = smov [#allocation24]  }
  0xd6   : > { %s927_s24 = sshll.u32 %s5974_s26, 4  ;;  %s951_s13 = sshll.u32 %s5975_s16, 4  ;;  %s928_s24 = int_to_ptr.vmem [resolvable:$true] %s927_s24  ;;  %s952_s13 = int_to_ptr.vmem [resolvable:$true] %s951_s13 }
  0xd7   : > { %s5633_s18 = scalar_lea.vmem %s928_s24, 16  ;;  %s5640_s3 = scalar_lea.vmem %s928_s24, 32 }
  0xd8   : > { %p5634_p5 = scmp.ne.s32.totalorder %s928_s24, %s5633_s18  ;;  %p5641_p4 = scmp.lt.s32.totalorder %s928_s24, %s928_s24 }
  0xd9   : > { %p5642_p8 = scmp.lt.s32.totalorder %s5640_s3, %s5633_s18 }
  0xda   : > { %p5636_p0 = pnand %p5634_p5, %p6209_p7 }
  0xdb   : > { %p5643_p9 = por %p5642_p8, %p5641_p4 }
  0xdc   : > { %p5637_p2 = pneg %p5636_p0 }
  0xde   : > { %p5644_p11 = pnand %p5643_p9, %p5637_p2 }
  0xe0   : > { %5647 = shalt.err (!%p5644_p11)
}
  0xe1   : > { %s6973_s12 = sld [smem:[#allocation57_spill]]  ;;  %s5659_s21 = scalar_lea.vmem %s952_s13, 16 }
  0xe2   : > { %p5660_p10 = scmp.ne.s32.totalorder %s952_s13, %s5659_s21  ;;  %s5666_s17 = scalar_lea.vmem %s952_s13, 32 }
  0xe3   : > { %p5667_p1 = scmp.lt.s32.totalorder %s952_s13, %s952_s13  ;;  %p5668_p3 = scmp.lt.s32.totalorder %s5666_s17, %s5659_s21 }
  0xe4   : > { %p5662_p12 = pnand %p5660_p10, %p6209_p7 }
  0xe5   : > { %p5669_p5 = por %p5668_p3, %p5667_p1 }
  0xe6   : > { %p5663_p13 = pneg %p5662_p12 }
  0xe7   : > { %5101 = dma.hbm_to_vmem [thread:$0]  (!%p6203_p6), %s6973_s12, 16, %s928_s24, [#allocation20]  }
  0xe8   : > { %p5670_p0 = pnand %p5669_p5, %p5663_p13 }
  0xea   : > { %5673 = shalt.err (!%p5670_p0)
}
  0xeb   : > { %5107 = dma.hbm_to_vmem [thread:$0]  (!%p6203_p6), %s6081_s27, 16, %s952_s13, [#allocation23]  }
  0xec   : > { %s5976_s3 = smov [#allocation27]   ;;  %s5977_s26 = smov [#allocation30]  }
  0xed   : > { %s975_s8 = sshll.u32 %s5976_s3, 4  ;;  %s1001_s24 = sshll.u32 %s5977_s26, 4  ;;  %s976_s8 = int_to_ptr.vmem [resolvable:$true] %s975_s8  ;;  %s1002_s24 = int_to_ptr.vmem [resolvable:$true] %s1001_s24 }
  0xee   : > { %s5685_s16 = scalar_lea.vmem %s976_s8, 16  ;;  %s5692_s18 = scalar_lea.vmem %s976_s8, 32 }
  0xef   : > { %p5686_p2 = scmp.ne.s32.totalorder %s976_s8, %s5685_s16  ;;  %p5693_p9 = scmp.lt.s32.totalorder %s976_s8, %s976_s8 }
  0xf0   : > { %p5694_p11 = scmp.lt.s32.totalorder %s5692_s18, %s5685_s16 }
  0xf1   : > { %p5688_p4 = pnand %p5686_p2, %p6209_p7 }
  0xf2   : > { %p5695_p10 = por %p5694_p11, %p5693_p9 }
  0xf3   : > { %p5689_p8 = pneg %p5688_p4 }
  0xf5   : > { %p5696_p12 = pnand %p5695_p10, %p5689_p8 }
  0xf7   : > { %5699 = shalt.err (!%p5696_p12)
}
  0xf8   : > { %s6974_s14 = sld [smem:[#allocation59_spill]]  ;;  %s5711_s13 = scalar_lea.vmem %s1002_s24, 256 }
  0xf9   : > { %p5712_p13 = scmp.ne.s32.totalorder %s1002_s24, %s5711_s13  ;;  %p5719_p5 = scmp.lt.s32.totalorder %s1002_s24, %s1002_s24 }
  0xfa   : > { %p5720_p0 = scmp.lt.s32.totalorder %s5711_s13, %s5711_s13 }
  0xfb   : > { %p5714_p1 = pnand %p5712_p13, %p6209_p7 }
  0xfc   : > { %p5721_p2 = por %p5720_p0, %p5719_p5 }
  0xfd   : > { %p5715_p3 = pneg %p5714_p1 }
  0xfe   : > { %5113 = dma.hbm_to_vmem [thread:$0]  (!%p6203_p6), %s6974_s14, 16, %s976_s8, [#allocation26]  }
  0xff   : > { %p5722_p4 = pnand %p5721_p2, %p5715_p3 }
 0x101   : > { %5725 = shalt.err (!%p5722_p4)
}
 0x102   : > { %s6975_s21 = sld [smem:[#allocation62_spill]]  ;;  %s5978_s17 = smov [#allocation31]  }
 0x103   : > { %s1023_s3 = sshll.u32 %s5978_s17, 4  ;;  %s1024_s3 = int_to_ptr.vmem [resolvable:$true] %s1023_s3 }
 0x104   : > { %s5737_s8 = scalar_lea.vmem %s1024_s3, 256  ;;  %p5745_p10 = scmp.lt.s32.totalorder %s1024_s3, %s1024_s3 }
 0x105   : > { %p5738_p8 = scmp.ne.s32.totalorder %s1024_s3, %s5737_s8  ;;  %p5746_p12 = scmp.lt.s32.totalorder %s5737_s8, %s5737_s8 }
 0x107   : > { %p5740_p9 = pnand %p5738_p8, %p6209_p7  ;;  %p5747_p13 = por %p5746_p12, %p5745_p10 }
 0x108   : > { %5119 = dma.hbm_to_vmem [thread:$0]  (!%p6203_p6), %s6975_s21, 256, %s1002_s24, [#allocation29], %s6966_s11, %s6966_s11, %s6965_s10  }
 0x109   : > { %p5741_p11 = pneg %p5740_p9 }
 0x10b   : > { %p5748_p1 = pnand %p5747_p13, %p5741_p11 }
 0x10d   : > { %5751 = shalt.err (!%p5748_p1)
}
 0x10e   : > { %s6976_s26 = sld [smem:[#allocation66_spill]]  ;;  %s4642_s9 = sadd.s32 4294967294, %s5928_s1  }
 0x10f   : > { %s102_s24 = sadd.s32 1, %s5924_s28  ;;  %s191_s15 = sadd.s32 1, %s5916_s0 }
 0x110   : > { %p104_p7 = scmp.ge.s32.totalorder %s102_s24, 2  ;;  %p198_p3 = scmp.ne.s32.totalorder %s5916_s0, %s5912_s23 }
 0x111   : > { %p199_p5 = scmp.eq.s32.totalorder %s5928_s1, 0  ;;  %s6977_s16 = sld [smem:[#allocation49_spill]] }
 0x112   : > { %s7028_s24 = smov (%p104_p7, %s102_s24), 0  ;;  %p204_p2 = scmp.ne.s32.totalorder %s5912_s23, %s5908_s22 }
 0x113   : > { %p6325_p0 = por %p199_p5, %p198_p3  ;;  %p6980_p8 = scmp.eq.s32.totalorder %s6189_s2, 0 }
 0x114   : > { %5122 = dma.hbm_to_vmem [thread:$0]  (!%p6203_p6), %s6976_s26, 256, %s1024_s3, [#allocation32], %s6966_s11, %s6966_s11, %s6965_s10  }
 0x115   : > { %s186_s10 = ssub.s32 %s5924_s28, %s7028_s24  ;;  %p804_p6 = scmp.eq.s32.totalorder %s6189_s2, 1 }
 0x116   : > { %s6979_s11 = sld [smem:[#allocation50_spill]]  ;;  %p189_p4 = scmp.eq.s32.totalorder %s186_s10, 0 }
 0x117   : > { %p6336_p9 = por %p6980_p8, %p204_p2  ;;  %p6340_p11 = por %p804_p6, %p198_p3 }
 0x118   : > { %p810_p10 = scmp.eq.s32.totalorder %s4642_s9, 1  ;;  %p5150_p13 = scmp.lt.s32.totalorder %s5928_s1, 2 }
 0x119   : > { %s6981_s13 = scalar_select %p6336_p9, 1, 0 }
 0x11a   : > { %s6982_s21 = scalar_select %p6340_p11, 1, 0 }
 0x11b   : > { %s6345_s17 = scalar_select %p189_p4, %s5916_s0, %s191_s15  }
 0x11c   : > { %p6347_p12 = por %p810_p10, %p204_p2  ;;  %s1076_s8 = sand.u32 1, %s5916_s0  }
 0x11d   : > { %s4662_s26 = sshll.u32 %s5924_s28, 6  ;;  %s6354_s10 = sshll.u32 %s1076_s8, 2 }
 0x11e   : > { %s6983_s3 = scalar_select %p6347_p12, 1, 0 }
 0x11f   : > { %s6357_s4 = scalar_lea.hbm %s6977_s16, %s4662_s26  ;;  %s1080_s9 = scalar_lea.vmem [#allocation4], %s6354_s10 }
 0x120   : > { %s1088_s15 = sshll.u32 %s1080_s9, 4  ;;  %p6362_p1 = pnand %p5150_p13, %p6325_p0  ;;  %s1089_s15 = int_to_ptr.vmem [resolvable:$true] %s1088_s15 }
 0x121   : > { %s6367_s6 = scalar_lea.hbm %s6979_s11, %s4662_s26  ;;  %s1077_s12 = scalar_lea.sflag [#allocation5], %s1076_s8 }
 0x122   : > { %s5752_s14 = scalar_lea.hbm %s6357_s4, 64  ;;  %p5754_p3 = pneg %p6362_p1 }
 0x123   : > { %p5753_p7 = scmp.ne.s32.totalorder %s6357_s4, %s5752_s14  ;;  %s5757_s9 = scalar_lea.hbm %s6977_s16, 128 }
 0x124   : > { %p5758_p6 = scmp.lt.s32.totalorder %s6357_s4, %s6977_s16  ;;  %p5759_p0 = scmp.lt.s32.totalorder %s5757_s9, %s5752_s14 }
 0x125   : > { %p5755_p5 = pnand %p5754_p3, %p5753_p7 }
 0x126   : > { %p5760_p4 = por %p5759_p0, %p5758_p6 }
 0x127   : > { %p5756_p2 = pneg %p5755_p5 }
 0x129   : > { %p5761_p8 = pnand %p5760_p4, %p5756_p2 }
 0x12b   : > { %5764 = shalt.err (!%p5761_p8)
}
 0x12c   : > { %s5765_s18 = scalar_lea.vmem %s1089_s15, 64  ;;  %s5979_s8 = smov [#allocation4]  }
 0x12d   : > { %p5766_p10 = scmp.ne.s32.totalorder %s1089_s15, %s5765_s18  ;;  %s5770_s26 = sshll.u32 %s5979_s8, 4  ;;  %s5771_s26 = int_to_ptr.vmem [resolvable:$false] %s5770_s26 }
 0x12e   : > { %s5772_s19 = scalar_lea.vmem %s5771_s26, 128  ;;  %p5773_p11 = scmp.lt.s32.totalorder %s1089_s15, %s5771_s26 }
 0x12f   : > { %p5768_p13 = pnand %p5766_p10, %p5754_p3  ;;  %p5774_p7 = scmp.lt.s32.totalorder %s5772_s19, %s5765_s18 }
 0x131   : > { %p5769_p12 = pneg %p5768_p13  ;;  %p5775_p5 = por %p5774_p7, %p5773_p11 }
 0x133   : > { %p5776_p9 = pnand %p5775_p5, %p5769_p12 }
 0x135   : > { %5779 = shalt.err (!%p5776_p9)
}
 0x136   : > { %5126 = dma.hbm_to_vmem [thread:$0]  (!%p6362_p1), %s6357_s4, 64, %s1089_s15, %s1077_s12  }
 0x137   : > { %s1095_s14 = sand.u32 1, %s5928_s1   ;;  %s1099_s9 = scalar_lea.vmem [#allocation7], %s6354_s10 }
 0x138   : > { %s1107_s8 = sshll.u32 %s1099_s9, 4  ;;  %s1096_s19 = scalar_lea.sflag [#allocation8], %s1095_s14  ;;  %s1108_s8 = int_to_ptr.vmem [resolvable:$true] %s1107_s8 }
 0x139   : > { %s5780_s18 = scalar_lea.hbm %s6367_s6, 64  ;;  %s5785_s26 = scalar_lea.hbm %s6979_s11, 128 }
 0x13a   : > { %p5781_p11 = scmp.ne.s32.totalorder %s6367_s6, %s5780_s18  ;;  %p5786_p2 = scmp.lt.s32.totalorder %s6367_s6, %s6979_s11 }
 0x13b   : > { %p5787_p6 = scmp.lt.s32.totalorder %s5785_s26, %s5780_s18 }
 0x13c   : > { %p5783_p9 = pnand %p5781_p11, %p5754_p3 }
 0x13d   : > { %p5788_p0 = por %p5787_p6, %p5786_p2 }
 0x13e   : > { %p5784_p12 = pneg %p5783_p9 }
 0x140   : > { %p5789_p4 = pnand %p5788_p0, %p5784_p12 }
 0x142   : > { %5792 = shalt.err (!%p5789_p4)
}
 0x143   : > { %s5793_s16 = scalar_lea.vmem %s1108_s8, 64  ;;  %s5980_s12 = smov [#allocation7]  }
 0x144   : > { %p5794_p8 = scmp.ne.s32.totalorder %s1108_s8, %s5793_s16  ;;  %s5798_s4 = sshll.u32 %s5980_s12, 4  ;;  %s5799_s4 = int_to_ptr.vmem [resolvable:$false] %s5798_s4 }
 0x145   : > { %s5800_s10 = scalar_lea.vmem %s5799_s4, 128  ;;  %p5801_p7 = scmp.lt.s32.totalorder %s1108_s8, %s5799_s4 }
 0x146   : > { %p5796_p10 = pnand %p5794_p8, %p5754_p3  ;;  %p5802_p5 = scmp.lt.s32.totalorder %s5800_s10, %s5793_s16 }
 0x148   : > { %p5797_p13 = pneg %p5796_p10  ;;  %p5803_p11 = por %p5802_p5, %p5801_p7 }
 0x14a   : > { %p5804_p9 = pnand %p5803_p11, %p5797_p13 }
 0x14c   : > { %5807 = shalt.err (!%p5804_p9)
}
 0x14d   : > { %5129 = dma.hbm_to_vmem [thread:$0]  (!%p6362_p1), %s6367_s6, 64, %s1108_s8, %s1096_s19  }
 0x14e   : > { %p6985_p12 = scmp.ne.s32.totalorder %s6961_s7, 0 }
 0x14f   : > { %s6404_s15 = sand.u32 (!%p6985_p12), 1, %s5912_s23   ;;  %p6986_p3 = scmp.ne.s32.totalorder (!%p6985_p12), %s6981_s13, 0 }
 0x150   : > { %1116 = sbr.rel (%p6985_p12) target bundleno = 4521 (0x11a9), region = 144  ;;  %s4666_s14 = sshll.u32 (!%p6985_p12), %s6404_s15, 2 }
 0x151   : > { %s1119_s9 = scalar_lea.sflag (!%p6985_p12), [#allocation5], %s6404_s15  ;;  %s6408_s18 = scalar_lea.vmem (!%p6985_p12), [#allocation4], %s4666_s14 }
 0x155   : > { %5859 = dma.done.wait (%p6986_p3), %s1119_s9, 64  }
 0x156   : > { %5861 = vsyncadd (%p6986_p3), %s1119_s9, 4294967232  ;;  %s1127_s5 = sand.u32 1, %s6189_s2   ;;  %s6415_s7 = scalar_lea.vmem [#allocation7], %s4666_s14 }
 0x157   : > { %s1128_s6 = scalar_lea.sflag [#allocation8], %s1127_s5 }
 0x158   : > { %5863 = dma.done.wait (%p6986_p3), %s1128_s6, 64  }
 0x159   : > { %5865 = vsyncadd (%p6986_p3), %s1128_s6, 4294967232  ;;  %p6987_p1 = scmp.eq.s32.totalorder %s6189_s2, 0 }
 0x15b   : > { %5867 = dma.done.wait (%p6987_p1), [#allocation8], 256   ;;  %p6988_p2 = pmov %p6987_p1 }
 0x15c   : > { %p6989_p6 = pmov %p6987_p1 }
 0x15d   : > { %5869 = vsyncadd (%p6988_p2), [#allocation8], 4294967040 }
 0x15e   : > { %5871 = dma.done.wait (%p6989_p6), [#allocation11], 272   ;;  %p6990_p0 = pmov %p6987_p1 }
 0x160   : > { %5873 = vsyncadd (%p6990_p0), [#allocation11], 4294967024  ;;  %p6991_p4 = pmov %p6990_p0 }
 0x161   : > { %p6992_p8 = pmov %p6990_p0 }
 0x162   : > { %5875 = dma.done.wait (%p6991_p4), [#allocation14], 32  }
 0x163   : > { %5877 = vsyncadd (%p6992_p8), [#allocation14], 4294967264  ;;  %p6993_p10 = pmov %p6990_p0 }
 0x164   : > { %p6994_p13 = pmov %p6990_p0 }
 0x165   : > { %5879 = dma.done.wait (%p6993_p10), [#allocation17], 272  }
 0x166   : > { %5881 = vsyncadd (%p6994_p13), [#allocation17], 4294967024  ;;  %p6995_p7 = pmov %p6990_p0 }
 0x167   : > { %p6996_p5 = pmov %p6990_p0 }
 0x168   : > { %5883 = dma.done.wait (%p6995_p7), [#allocation20], 32  }
 0x169   : > { %5885 = vsyncadd (%p6996_p5), [#allocation20], 4294967264  ;;  %p6997_p11 = pmov %p6990_p0 }
 0x16a   : > { %p6998_p9 = pmov %p6990_p0 }
 0x16b   : > { %5887 = dma.done.wait (%p6997_p11), [#allocation23], 272  }
 0x16c   : > { %5889 = vsyncadd (%p6998_p9), [#allocation23], 4294967024  ;;  %p6999_p12 = pmov %p6990_p0 }
 0x16d   : > { %p7000_p3 = pmov %p6990_p0 }
 0x16e   : > { %5891 = dma.done.wait (%p6999_p12), [#allocation26], 272  }
 0x16f   : > { %5893 = vsyncadd (%p7000_p3), [#allocation26], 4294967024  ;;  %p7001_p1 = pmov %p6990_p0 }
 0x170   : > { %p7002_p2 = pmov %p6990_p0 }
 0x171   : > { %5895 = dma.done.wait (%p7001_p1), [#allocation29], 512  }
 0x172   : > { %5897 = vsyncadd (%p7002_p2), [#allocation29], 4294966784  ;;  %p7003_p6 = pmov %p6990_p0 }
 0x174   : > { %5899 = dma.done.wait (%p7003_p6), [#allocation32], 256  }
 0x175   : > { %5901 = vsyncadd (%p6990_p0), [#allocation32], 4294967040  ;;  %s7004_s16 = sld [smem:[#allocation73_spill]]  ;;  %v5981_v0 = vmov 0.0   ;;  %vm5982_vm0 = vmmov 0   ;;  %v5276_v1 = vld [vmem:[#allocation12 + $0x8] sm:$0xff]   ;;  %v1457_v37 = vlaneseq }
 0x176   : > { %s7005_s13 = sld [smem:[#allocation47_spill]]  ;;  %4824 = vmatprep.subr.bf16.mxu0 %v5981_v0  ;;  %4828 = vmatprep.mubr.msk.bf16.mxu0 %vm5982_vm0, %v5981_v0  ;;  %v5277_v2 = vld [vmem:[#allocation12] sm:$0xff]   ;;  %vm1339_vm1 = vcmask 261120   ;;  %v5280_v8 = vld [vmem:[#allocation9 + $0x8] sm:$0xff]   ;;  %v5281_v10 = vld [vmem:[#allocation9] sm:$0xff]   ;;  %s5983_s9 = smov 104  }
 0x177   : > { %s7006_s8 = sld [smem:[#allocation48_spill]]  ;;  %4832 = vmatprep.subr.bf16.mxu1 %v5981_v0  ;;  %4836 = vmatprep.mubr.msk.bf16.mxu1 %vm5982_vm0, %v5981_v0  ;;  %v5278_v5 = vld [vmem:[#allocation25 + $0x8] sm:$0xff]   ;;  %v5279_v6 = vld [vmem:[#allocation25] sm:$0xff]   ;;  %v4688_v13 = vld [vmem:[#allocation13] ss:$0 sm:$0xff]  ;;  %s5984_s5 = smov 120  }
 0x178   : > { %4825 = vmatpush3.bf16.msra.mxu0 %v5276_v1  ;;  %s7007_s12 = sld [smem:[#allocation46_spill]]  ;;  %s5985_s6 = smov 112   ;;  %v4704_v26 = vld [vmem:[#allocation10] ss:$0 sm:$0xff]  ;;  %v5284_v27 = vld [vmem:[#allocation28 + $0x8] sm:$0xff]   ;;  %v5285_v32 = vld [vmem:[#allocation28] sm:$0xff]  }
 0x179   : > { %4826 = vmatprep.subr.bf16.mxu0 %v5981_v0  ;;  %s7008_s14 = sld [smem:[#allocation53_spill]]  ;;  %v5986_v35 = vmov 1983009808   ;;  %v5987_v38 = vmov 1934713408   ;;  %v1458_v41 = vshrl.u32 %v1457_v37, 7 }
 0x17a   : > { %v1455_v36 = vunpack.c.l.s4 %v5986_v35  ;;  %v1472_v39 = vunpack.c.l.s4 %v5987_v38  ;;  %v5988_v58 = vmov 0   ;;  %vm1619_vm2 = vcmask 60416   ;;  %p7019_p10 = scmp.ne.s32.totalorder %s6982_s21, 0 }
 0x17b   : > { %p1294_p4 = scmp.lt.s32.totalorder %s7004_s16, 1  ;;  %vm2544_vm3 = vcmask 64512   ;;  %vm2780_vm4 = vcmask 1043456   ;;  %vm3111_vm5 = vcmask 130048   ;;  %vm3113_vm6 = vcmask 195584  }
 0x17c   : > { %4827 = vmatpush3.bf16.msra.mxu0 %v5277_v2  ;;  %v1456_v40 = vunpack.c.0.s8 %v1455_v36  ;;  %v1473_v42 = vunpack.c.0.s8 %v1472_v39  ;;  %vm4225_vm7 = vcmask 523264  }
 0x17d   : > { %s1295_s19 = scalar_select %p1294_p4, %s7004_s16, 1  ;;  %4840 = vmatprep.subr.bf16.mxu0 %v5981_v0 }
 0x17e   : > { %v6507_v43 = vsub.s32 %v1456_v40, %v1458_v41  ;;  %v6510_v47 = vsub.s32 %v1473_v42, %v1458_v41 }
 0x17f   : > { %s4685_s2 = sshll.u32 %s1295_s19, 3  ;;  %v5282_v19 = vld [vmem:[%s7008_s14 + $0x8] sm:$0xff]   ;;  %v5283_v22 = vld [vmem:[%s7008_s14] sm:$0xff]   ;;  %s7009_s19 = sld [smem:[#allocation61_spill]] }
 0x180   : > { %s1304_s26 = scalar_lea.vmem %s7005_s13, %s4685_s2  ;;  %s1308_s4 = scalar_lea.vmem %s7006_s8, %s4685_s2  ;;  %4833 = vmatpush3.bf16.msra.mxu1 %v5282_v19 }
 0x181   : > { %v1314_v3 = vld [vmem:[%s1304_s26] sm:$0xff]  ;;  %s1300_s10 = scalar_lea.vmem %s7007_s12, %s4685_s2  ;;  %4834 = vmatprep.subr.bf16.mxu1 %v5981_v0  ;;  %s5990_s13 = smov 8  }
 0x182   : > { %v1315_v4 = vpack.c.bf16 %v1314_v3, %v1314_v3  ;;  %v1802_v7 = vld [vmem:[%s1308_s4] sm:$0xff]  ;;  %s5991_s8 = smov 24   ;;  %s7011_s2 = sld [smem:[#allocation68_spill]] }
 0x183   : > { %v1803_v9 = vpack.c.bf16 %v1802_v7, %v1802_v7  ;;  %v6478_v11 = vld [vmem:[%s1300_s10] sm:$0xff]  ;;  %s7012_s26 = sld [smem:[#allocation64_spill]] }
 0x184   : > { %4829 = vmatmul.mubr.msk.bf16.vlgmr.msra.gmra.mxu0 %vm1339_vm1, %v1315_v4  ;;  %v2312_v12 = vpack.c.bf16 %v6478_v11, %v6478_v11  ;;  %4835 = vmatpush3.bf16.msra.mxu1 %v5283_v22  ;;  %s7013_s12 = sld [smem:[#allocation65_spill]] }
 0x185   : > { %4841 = vmatpush3.bf16.msra.mxu0 %v5278_v5  ;;  %4844 = vmatprep.mubr.msk.bf16.mxu0 %vm5982_vm0, %v5981_v0  ;;  %s7014_s4 = sld [smem:[#allocation67_spill]] }
 0x186   : > { %4842 = vmatprep.subr.bf16.mxu0 %v5981_v0  ;;  %4848 = vmatprep.subr.bf16.mxu1 %v5981_v0  ;;  %s7015_s10 = sld [smem:[#allocation69_spill]] }
 0x187   : > { %4837 = vmatmul.mubr.msk.bf16.vlgmr.msra.gmra.mxu1 %vm1339_vm1, %v1315_v4 }
 0x188   : > { %4852 = vmatprep.mubr.msk.bf16.mxu1 %vm5982_vm0, %v5981_v0  ;;  %4849 = vmatpush3.bf16.msra.mxu1 %v5284_v27 }
 0x189   : > { %4843 = vmatpush3.bf16.msra.mxu0 %v5279_v6  ;;  %4850 = vmatprep.subr.bf16.mxu1 %v5981_v0 }
 0x18a   : > { %4856 = vmatprep.subr.bf16.mxu0 %v5981_v0 }
 0x18c   : > { %4845 = vmatmul.mubr.msk.bf16.vlgmr.msra.gmra.mxu0 %vm1339_vm1, %v1803_v9  ;;  %4851 = vmatpush3.bf16.msra.mxu1 %v5285_v32 }
 0x18d   : > { %4857 = vmatpush3.bf16.msra.mxu0 %v5280_v8  ;;  %4860 = vmatprep.mubr.msk.bf16.mxu0 %vm5982_vm0, %v5981_v0 }
 0x18e   : > { %4858 = vmatprep.subr.bf16.mxu0 %v5981_v0  ;;  %4864 = vmatprep.subr.bf16.mxu1 %v5981_v0 }
 0x18f   : > { %4853 = vmatmul.mubr.msk.bf16.vlgmr.msra.gmra.mxu1 %vm1339_vm1, %v1803_v9 }
 0x190   : > { %4866 = vmatprep.mubr.msk.bf16.mxu1 %vm5982_vm0, %v5981_v0 }
 0x191   : > { %4859 = vmatpush3.bf16.msra.mxu0 %v5281_v10 }
 0x192   : > { %4870 = vmatprep.subr.bf16.mxu0 %v5981_v0 }
 0x194   : > { %4861 = vmatmul.mubr.msk.bf16.vlgmr.msra.gmra.mxu0 %vm1339_vm1, %v2312_v12 }
 0x195   : > { %4872 = vmatprep.mubr.msk.bf16.mxu0 %vm5982_vm0, %v5981_v0 }
 0x244   : > { %v1377_v14 = vpop.f32.mrf.mxu0 }
 0x245   : > { %v1378_v15 = vadd.f32 %v4688_v13, %v1377_v14 }
 0x246   : > { %v4830_v16 = vpop.f32.mrf.mxu0 }
 0x247   : > { %v1446_v17 = vpack.c.bf16 %v1378_v15, %v1378_v15 }
 0x248   : > { %v1380_v18 = vpop.f32.mrf.mxu0 }
 0x249   : > { %1452 = vrot.lane.b32.xlu1 %v1446_v17, %s5983_s9  ;;  %1448 = vrot.lane.b32.xlu0 %v1446_v17, %s5984_s5  ;;  %v1460_v54 = vrot.slane %v1446_v17, %v6507_v43 }
 0x24a   : > { %v4831_v20 = vpop.f32.mrf.mxu0 }
 0x24c   : > { %v6490_v21 = vpop.f32.mrf.mxu0 }
 0x24d   : > { %1450 = vrot.lane.b32.xlu0 %v1446_v17, %s5985_s6 }
 0x24e   : > { %v4846_v23 = vpop.f32.mrf.mxu0 }
 0x250   : > { %v1867_v24 = vpop.f32.mrf.mxu0 }
 0x252   : > { %v4847_v25 = vpop.f32.mrf.mxu0 }
 0x254   : > { %v2369_v28 = vpop.f32.mrf.mxu0 }
 0x255   : > { %v2370_v29 = vadd.f32 %v4704_v26, %v2369_v28 }
 0x256   : > { %v4862_v30 = vpop.f32.mrf.mxu0 }
 0x257   : > { %v2375_v31 = vpack.c.bf16 %v2370_v29, %v2370_v29 }
 0x258   : > { %v2372_v33 = vpop.f32.mrf.mxu0 }
 0x259   : > { %2379 = vrot.lane.b32.xlu0 %v2375_v31, %s5985_s6  ;;  %2377 = vrot.lane.b32.xlu1 %v2375_v31, %s5984_s5  ;;  %v2389_v25 = vrot.slane %v2375_v31, %v6507_v43 }
 0x25a   : > { %v4863_v34 = vpop.f32.mrf.mxu0 }
 0x25d   : > { %2381 = vrot.lane.b32.xlu1 %v2375_v31, %s5983_s9 }
 0x2bb   : > { %v1453_v44 = vpop.permute.xlu1 %1452  ;;  %v1449_v45 = vpop.permute.xlu0 %1448 }
 0x2bc   : > { %v1502_v46 = vrot.slane %v1453_v44, %v6507_v43  ;;  %v1494_v48 = vrot.slane %v1449_v45, %v6507_v43 }
 0x2be   : > { %v1503_v49 = vcombine.low %v1494_v48, %v1502_v46  ;;  %v1504_v50 = vcombine.high %v1494_v48, %v1502_v46 }
 0x2bf   : > { %v1451_v51 = vpop.permute.xlu0 %1450 }
 0x2c0   : > { %v1511_v52 = vrot.slane %v1503_v49, %v6510_v47  ;;  %v1468_v53 = vrot.slane %v1451_v51, %v6507_v43  ;;  %v1518_v55 = vrot.slane %v1504_v50, %v6510_v47 }
 0x2c2   : > { %v1469_v56 = vcombine.low %v1460_v54, %v1468_v53  ;;  %v1470_v57 = vcombine.high %v1460_v54, %v1468_v53  ;;  %v1519_v59 = vcombine.high %v1511_v52, %v5988_v58  ;;  %v1520_v62 = vcombine.high %v1518_v55, %v5988_v58 }
 0x2c3   : > { %v1526_v63 = vshrl.u32 %v1511_v52, 16  ;;  %v1542_v6 = vshrl.u32 %v1518_v55, 16 }
 0x2c4   : > { %v1477_v60 = vrot.slane %v1469_v56, %v6510_v47  ;;  %v1484_v61 = vrot.slane %v1470_v57, %v6510_v47  ;;  %v1534_v5 = vshrl.u32 %v1519_v59, 16  ;;  %v1550_v14 = vshrl.u32 %v1520_v62, 16 }
 0x2c6   : > { %v1485_v1 = vcombine.high %v1477_v60, %v5988_v58  ;;  %v1486_v2 = vcombine.high %v1484_v61, %v5988_v58  ;;  %v1523_v3 = vpack.i.b16 %v1511_v52, %v1477_v60  ;;  %v1525_v4 = vshrl.u32 %v1477_v60, 16 }
 0x2c7   : > { %v1539_v7 = vpack.i.b16 %v1518_v55, %v1484_v61  ;;  %v1541_v8 = vshrl.u32 %v1484_v61, 16 }
 0x2c8   : > { %v1527_v9 = vpack.i.b16 %v1526_v63, %v1525_v4  ;;  %v1531_v10 = vpack.i.b16 %v1519_v59, %v1485_v1  ;;  %v1533_v12 = vshrl.u32 %v1485_v1, 16  ;;  %v1547_v13 = vpack.i.b16 %v1520_v62, %v1486_v2 }
 0x2c9   : > { %v1543_v15 = vpack.i.b16 %v1542_v6, %v1541_v8  ;;  %v1549_v16 = vshrl.u32 %v1486_v2, 16  ;;  %v1553_v17 = vcombine.low %v1523_v3, %v1539_v7 }
 0x2ca   : > { %v1535_v18 = vpack.i.b16 %v1534_v5, %v1533_v12  ;;  %v1561_v19 = vcombine.low %v1531_v10, %v1547_v13 }
 0x2cb   : > { %v2380_v20 = vpop.permute.xlu0 %2379  ;;  %v2378_v22 = vpop.permute.xlu1 %2377  ;;  %v1551_v23 = vpack.i.b16 %v1550_v14, %v1549_v16  ;;  %v1578_v24 = vcombine.low %v1527_v9, %v1543_v15  ;;  %v1560_v27 = vrot.slane %v1553_v17, %v6507_v43 }
 0x2cc   : > { %v2397_v26 = vrot.slane %v2380_v20, %v6507_v43  ;;  %v1568_v28 = vrot.slane %v1561_v19, %v6507_v43  ;;  %v2423_v40 = vrot.slane %v2378_v22, %v6507_v43 }
 0x2cd   : > { %v1586_v29 = vcombine.low %v1535_v18, %v1551_v23  ;;  %v1585_v34 = vrot.slane %v1578_v24, %v6507_v43 }
 0x2ce   : > { %v2398_v30 = vcombine.low %v2389_v25, %v2397_v26  ;;  %v2399_v32 = vcombine.high %v2389_v25, %v2397_v26  ;;  %v1569_v33 = vcombine.low %v1560_v27, %v1568_v28 }
 0x2cf   : > { %v2382_v35 = vpop.permute.xlu1 %2381  ;;  %v1593_v36 = vrot.slane %v1586_v29, %v6507_v43 }
 0x2d0   : > { %v2406_v37 = vrot.slane %v2398_v30, %v6510_v47  ;;  %v2413_v38 = vrot.slane %v2399_v32, %v6510_v47  ;;  %v2431_v31 = vrot.slane %v2382_v35, %v6507_v43  ;;  %v1576_v39 = vrot.slane %v1569_v33, %v6510_v47 }
 0x2d1   : > { %v1594_v41 = vcombine.low %v1585_v34, %v1593_v36 }
 0x2d2   : > { %v2414_v42 = vcombine.high %v2406_v37, %v5988_v58  ;;  %v2415_v44 = vcombine.high %v2413_v38, %v5988_v58  ;;  %v1577_v45 = vcombine.high %v1576_v39, %v5988_v58  ;;  %v2432_v46 = vcombine.low %v2423_v40, %v2431_v31 }
 0x2d3   : > { %v1601_v48 = vrot.slane %v1594_v41, %v6510_v47  ;;  %v1607_v49 = vshrl.u32 %v1576_v39, 16  ;;  %v2454_v50 = vshrl.u32 %v2406_v37, 16  ;;  %v2433_v51 = vcombine.high %v2423_v40, %v2431_v31 }
 0x2d4   : > { %v2462_v52 = vshrl.u32 %v2414_v42, 16  ;;  %v2470_v53 = vshrl.u32 %v2413_v38, 16  ;;  %v2478_v54 = vshrl.u32 %v2415_v44, 16  ;;  %v2440_v55 = vrot.slane %v2432_v46, %v6510_v47 }
 0x2d5   : > { %v1602_v56 = vcombine.high %v1601_v48, %v5988_v58  ;;  %v1605_v57 = vpack.i.b16 %v1601_v48, %v1576_v39  ;;  %v1608_v59 = vshrl.u32 %v1601_v48, 16  ;;  %v2447_v60 = vrot.slane %v2433_v51, %v6510_v47  ;;  %v1440_v51 = vpop.f32.mrf.mxu1 }
 0x2d6   : > { %v1615_v61 = vshrl.u32 %v1577_v45, 16  ;;  %v2448_v62 = vcombine.high %v2440_v55, %v5988_v58  ;;  %v2452_v63 = vpack.i.b16 %v2440_v55, %v2406_v37  ;;  %v2455_v1 = vshrl.u32 %v2440_v55, 16 }
 0x2d7   : > { %v1609_v2 = vpack.i.b16 %v1608_v59, %v1607_v49  ;;  %v1613_v3 = vpack.i.b16 %v1602_v56, %v1577_v45  ;;  %v1616_v4 = vshrl.u32 %v1602_v56, 16  ;;  %1620 = vst.msk [vmem:[#allocation2] sm:$0xf] %vm1619_vm2, %v1605_v57  ;;  %v2449_v5 = vcombine.high %v2447_v60, %v5988_v58 }
 0x2d8   : > { %v2456_v6 = vpack.i.b16 %v2455_v1, %v2454_v50  ;;  %v2460_v7 = vpack.i.b16 %v2448_v62, %v2414_v42  ;;  %v2463_v8 = vshrl.u32 %v2448_v62, 16  ;;  %v2468_v9 = vpack.i.b16 %v2447_v60, %v2413_v38 }
 0x2d9   : > { %v1617_v10 = vpack.i.b16 %v1616_v4, %v1615_v61  ;;  %1621 = vst.msk [vmem:[#allocation2 + $0x4] sm:$0xf] %vm1619_vm2, %v1609_v2  ;;  %1622 = vst.msk [vmem:[#allocation2 + $0x8] sm:$0xf] %vm1619_vm2, %v1613_v3  ;;  %v2471_v12 = vshrl.u32 %v2447_v60, 16  ;;  %v2476_v13 = vpack.i.b16 %v2449_v5, %v2415_v44  ;;  %v2479_v14 = vshrl.u32 %v2449_v5, 16 }
 0x2da   : > { %v2464_v15 = vpack.i.b16 %v2463_v8, %v2462_v52  ;;  %v2482_v16 = vcombine.low %v2452_v63, %v2468_v9  ;;  %v4838_v52 = vpop.f32.mrf.mxu1  ;;  %v2289_v60 = vld [vmem:[%s6408_s18] sm:$0xf]  ;;  %s5989_s18 = smov 16  }
 0x2db   : > { %1623 = vst.msk [vmem:[#allocation2 + $0xc] sm:$0xf] %vm1619_vm2, %v1617_v10  ;;  %v2472_v17 = vpack.i.b16 %v2471_v12, %v2470_v53  ;;  %v2480_v18 = vpack.i.b16 %v2479_v14, %v2478_v54  ;;  %v2490_v19 = vcombine.low %v2460_v7, %v2476_v13  ;;  %v2290_v61 = vunpack.c.l.bf16 %v2289_v60 }
 0x2dc   : > { %v2489_v20 = vrot.slane %v2482_v16, %v6507_v43  ;;  %v1443_v53 = vpop.f32.mrf.mxu1 }
 0x2dd   : > { %v2497_v22 = vrot.slane %v2490_v19, %v6507_v43  ;;  %v2507_v23 = vcombine.low %v2456_v6, %v2472_v17  ;;  %v2515_v24 = vcombine.low %v2464_v15, %v2480_v18 }
 0x2de   : > { %v2293_v25 = vld [vmem:[#allocation2] sm:$0xf]  ;;  %v4839_v54 = vpop.f32.mrf.mxu1 }
 0x2df   : > { %v2498_v26 = vcombine.low %v2489_v20, %v2497_v22  ;;  %v2514_v27 = vrot.slane %v2507_v23, %v6507_v43  ;;  %v2522_v28 = vrot.slane %v2515_v24, %v6507_v43  ;;  %v2549_v29 = vsel %vm2544_vm3, %v2293_v25, 0  ;;  %v4692_v20 = vld [vmem:[#allocation15] ss:$0 sm:$0xff] }
 0x2e0   : > { %4865 = vmatpush3.bf16.xpose.msra.mxu1 %v2549_v29  ;;  %v2294_v30 = vld [vmem:[#allocation2 + $0x4] sm:$0xf]  ;;  %v2295_v36 = vld [vmem:[#allocation2 + $0x8] sm:$0xf]  ;;  %v6575_v55 = vpop.f32.mrf.mxu1 }
 0x2e1   : > { %v2523_v32 = vcombine.low %v2514_v27, %v2522_v28  ;;  %v2595_v33 = vsel %vm2544_vm3, %v2294_v30, 0  ;;  %v2505_v34 = vrot.slane %v2498_v26, %v6510_v47  ;;  %4876 = vmatprep.subr.bf16.mxu1 %v5981_v0  ;;  %v2641_v40 = vsel %vm2544_vm3, %v2295_v36, 0 }
 0x2e2   : > { %4871 = vmatpush3.bf16.xpose.msra.mxu0 %v2595_v33  ;;  %v2296_v39 = vld [vmem:[#allocation2 + $0xc] sm:$0xf]  ;;  %v4854_v56 = vpop.f32.mrf.mxu1  ;;  %v1441_v26 = vadd.f32 %v4692_v20, %v1440_v51 }
 0x2e3   : > { %v2530_v35 = vrot.slane %v2523_v32, %v6510_v47  ;;  %4882 = vmatprep.subr.bf16.mxu0 %v5981_v0  ;;  %v2535_v38 = vshrl.u32 %v2505_v34, 16  ;;  %v2687_v44 = vsel %vm2544_vm3, %v2296_v39, 0  ;;  %v2506_v45 = vcombine.high %v2505_v34, %v5988_v58 }
 0x2e4   : > { %v1930_v57 = vpop.f32.mrf.mxu1  ;;  %v1624_v27 = vpack.c.bf16 %v1441_v26, %v1441_v26 }
 0x2e5   : > { %v2534_v37 = vpack.i.b16 %v2530_v35, %v2505_v34  ;;  %v2536_v31 = vshrl.u32 %v2530_v35, 16  ;;  %v2531_v42 = vcombine.high %v2530_v35, %v5988_v58  ;;  %v2541_v49 = vshrl.u32 %v2506_v45, 16 }
 0x2e6   : > { %v4855_v59 = vpop.f32.mrf.mxu1  ;;  %v1638_v52 = vrot.slane %v1624_v27, %v6507_v43 }
 0x2e7   : > { %4867 = vmatmul.mubr.msk.bf16.vlgmr.msra.gmra.mxu1 %vm2544_vm3, %v2534_v37  ;;  %v2537_v41 = vpack.i.b16 %v2536_v31, %v2535_v38  ;;  %v2542_v46 = vshrl.u32 %v2531_v42, 16  ;;  %v2540_v48 = vpack.i.b16 %v2531_v42, %v2506_v45 }
 0x2e8   : > { %4877 = vmatpush3.bf16.xpose.msra.mxu1 %v2641_v40  ;;  %4878 = vmatprep.mubr.msk.bf16.mxu1 %vm5982_vm0, %v5981_v0 }
 0x2e9   : > { %4873 = vmatmul.mubr.msk.bf16.vlgmr.msra.gmra.mxu0 %vm2544_vm3, %v2537_v41  ;;  %4888 = vmatprep.subr.bf16.mxu1 %v5981_v0  ;;  %v2543_v50 = vpack.i.b16 %v2542_v46, %v2541_v49 }
 0x2ea   : > { %4883 = vmatpush3.bf16.xpose.msra.mxu0 %v2687_v44  ;;  %4884 = vmatprep.mubr.msk.bf16.mxu0 %vm5982_vm0, %v5981_v0 }
 0x2eb   : > { %4894 = vmatprep.subr.bf16.mxu0 %v5981_v0 }
 0x2ef   : > { %4879 = vmatmul.mubr.msk.bf16.vlgmr.msra.gmra.mxu1 %vm2544_vm3, %v2540_v48 }
 0x2f0   : > { %4890 = vmatprep.mubr.msk.bf16.mxu1 %vm5982_vm0, %v5981_v0 }
 0x2f1   : > { %4885 = vmatmul.mubr.msk.bf16.vlgmr.msra.gmra.mxu0 %vm2544_vm3, %v2543_v50 }
 0x2f2   : > { %4896 = vmatprep.mubr.msk.bf16.mxu0 %vm5982_vm0, %v5981_v0 }
 0x3a7   : > { %v2585_v62 = vpop.f32.mrf.mxu1 }
 0x3a8   : > { %v2586_v63 = vadd.f32 %v2585_v62, %v2290_v61 }
 0x3a9   : > { %v4868_v1 = vpop.f32.mrf.mxu1  ;;  %v2631_v2 = vpop.f32.mrf.mxu0 }
 0x3aa   : > { %v2632_v3 = vadd.f32 %v2631_v2, %v2290_v61  ;;  %v2729_v4 = vsel %vm2544_vm3, %v2586_v63, -inf }
 0x3ab   : > { %2730 = vmax.xlane.f32.xlu0 %v2729_v4  ;;  %v2588_v5 = vpop.f32.mrf.mxu1  ;;  %v4874_v6 = vpop.f32.mrf.mxu0 }
 0x3ac   : > { %v2732_v7 = vsel %vm2544_vm3, %v2632_v3, -inf }
 0x3ad   : > { %v4869_v8 = vpop.f32.mrf.mxu1  ;;  %2733 = vmax.xlane.f32.xlu1 %v2732_v7  ;;  %v2634_v9 = vpop.f32.mrf.mxu0 }
 0x3af   : > { %v4875_v10 = vpop.f32.mrf.mxu0  ;;  %v2677_v12 = vpop.f32.mrf.mxu1 }
 0x3b0   : > { %v2678_v13 = vadd.f32 %v2677_v12, %v2290_v61 }
 0x3b1   : > { %v4880_v14 = vpop.f32.mrf.mxu1  ;;  %v2723_v15 = vpop.f32.mrf.mxu0 }
 0x3b2   : > { %v2724_v16 = vadd.f32 %v2723_v15, %v2290_v61  ;;  %v2735_v17 = vsel %vm2544_vm3, %v2678_v13, -inf }
 0x3b3   : > { %2736 = vmax.xlane.f32.xlu0 %v2735_v17  ;;  %v2680_v18 = vpop.f32.mrf.mxu1  ;;  %v4886_v19 = vpop.f32.mrf.mxu0 }
 0x3b4   : > { %v2738_v24 = vsel %vm2544_vm3, %v2724_v16, -inf }
 0x3b5   : > { %v4881_v22 = vpop.f32.mrf.mxu1  ;;  %v2726_v23 = vpop.f32.mrf.mxu0 }
 0x3b7   : > { %2739 = vmax.xlane.f32.xlu0 %v2738_v24  ;;  %v4887_v25 = vpop.f32.mrf.mxu0 }
 0x3be   : > { %1626 = vrot.lane.b32.xlu1 %v1624_v27, %s5984_s5 }
 0x3c2   : > { %1630 = vrot.lane.b32.xlu1 %v1624_v27, %s5983_s9 }
 0x3cd   : > { %1628 = vrot.lane.b32.xlu0 %v1624_v27, %s5985_s6 }
 0x434   : > { %v2731_v28 = vpop.xlane.xlu0 %2730 }
 0x435   : > { %v2741_v29 = vsub.f32 %v2586_v63, %v2731_v28 }
 0x436   : > { %v2734_v30 = vpop.xlane.xlu1 %2733 }
 0x437   : > { %v2745_v32 = vmul.f32 1.442695, %v2741_v29  ;;  %v2742_v33 = vsub.f32 %v2632_v3, %v2734_v30 }
 0x439   : > { %5298 = vpow2.f32 %v2745_v32  ;;  %v2747_v34 = vmul.f32 1.442695, %v2742_v33 }
 0x43a   : > { %v1627_v35 = vpop.permute.xlu1 %1626 }
 0x43b   : > { %5300 = vpow2.f32 %v2747_v34  ;;  %v1672_v31 = vrot.slane %v1627_v35, %v6507_v43 }
 0x43c   : > { %v2737_v36 = vpop.xlane.xlu0 %2736 }
 0x43d   : > { %v2743_v37 = vsub.f32 %v2678_v13, %v2737_v36 }
 0x43e   : > { %v1631_v38 = vpop.permute.xlu1 %1630 }
 0x43f   : > { %v2749_v39 = vmul.f32 1.442695, %v2743_v37  ;;  %v1680_v40 = vrot.slane %v1631_v38, %v6507_v43 }
 0x440   : > { %v2740_v41 = vpop.xlane.xlu0 %2739 }
 0x441   : > { %5302 = vpow2.f32 %v2749_v39  ;;  %v1681_v42 = vcombine.low %v1672_v31, %v1680_v40  ;;  %v1682_v44 = vcombine.high %v1672_v31, %v1680_v40  ;;  %v2744_v45 = vsub.f32 %v2724_v16, %v2740_v41 }
 0x443   : > { %v2751_v46 = vmul.f32 1.442695, %v2744_v45  ;;  %v1689_v49 = vrot.slane %v1681_v42, %v6510_v47  ;;  %v1696_v50 = vrot.slane %v1682_v44, %v6510_v47 }
 0x444   : > { %v1629_v48 = vpop.permute.xlu0 %1628 }
 0x445   : > { %5304 = vpow2.f32 %v2751_v46  ;;  %v1646_v53 = vrot.slane %v1629_v48, %v6507_v43  ;;  %v1697_v60 = vcombine.high %v1689_v49, %v5988_v58  ;;  %v1698_v61 = vcombine.high %v1696_v50, %v5988_v58 }
 0x446   : > { %v6589_v51 = vpop.eup %5298  ;;  %v1704_v2 = vshrl.u32 %v1689_v49, 16  ;;  %v1720_v3 = vshrl.u32 %v1696_v50, 16 }
 0x447   : > { %v2753_v54 = vsel %vm2544_vm3, %v6589_v51, 0.0  ;;  %v1647_v57 = vcombine.low %v1638_v52, %v1646_v53  ;;  %v1648_v59 = vcombine.high %v1638_v52, %v1646_v53  ;;  %v1712_v8 = vshrl.u32 %v1697_v60, 16 }
 0x448   : > { %v6595_v56 = vpop.eup %5300  ;;  %2754 = vadd.xlane.f32.xlu1 %v2753_v54  ;;  %v1728_v9 = vshrl.u32 %v1698_v61, 16 }
 0x449   : > { %v2756_v62 = vsel %vm2544_vm3, %v6595_v56, 0.0  ;;  %v1655_v63 = vrot.slane %v1647_v57, %v6510_v47  ;;  %v1662_v1 = vrot.slane %v1648_v59, %v6510_v47 }
 0x44a   : > { %2757 = vadd.xlane.f32.xlu0 %v2756_v62 }
 0x44b   : > { %v1663_v4 = vcombine.high %v1655_v63, %v5988_v58  ;;  %v1664_v5 = vcombine.high %v1662_v1, %v5988_v58  ;;  %v1701_v6 = vpack.i.b16 %v1689_v49, %v1655_v63  ;;  %v1703_v7 = vshrl.u32 %v1655_v63, 16 }
 0x44c   : > { %v1717_v10 = vpack.i.b16 %v1696_v50, %v1662_v1  ;;  %v1719_v12 = vshrl.u32 %v1662_v1, 16 }
 0x44d   : > { %v1705_v14 = vpack.i.b16 %v1704_v2, %v1703_v7  ;;  %v1709_v15 = vpack.i.b16 %v1697_v60, %v1663_v4  ;;  %v1711_v16 = vshrl.u32 %v1663_v4, 16  ;;  %v1725_v17 = vpack.i.b16 %v1698_v61, %v1664_v5 }
 0x44e   : > { %v6605_v13 = vpop.eup %5302  ;;  %v1721_v18 = vpack.i.b16 %v1720_v3, %v1719_v12  ;;  %v1727_v19 = vshrl.u32 %v1664_v5, 16  ;;  %v1731_v20 = vcombine.low %v1701_v6, %v1717_v10 }
 0x44f   : > { %v2759_v22 = vsel %vm2544_vm3, %v6605_v13, 0.0  ;;  %v1713_v23 = vpack.i.b16 %v1712_v8, %v1711_v16  ;;  %v1739_v24 = vcombine.low %v1709_v15, %v1725_v17 }
 0x450   : > { %2760 = vadd.xlane.f32.xlu0 %v2759_v22  ;;  %v1729_v25 = vpack.i.b16 %v1728_v9, %v1727_v19  ;;  %v1756_v26 = vcombine.low %v1705_v14, %v1721_v18  ;;  %v1738_v27 = vrot.slane %v1731_v20, %v6507_v43 }
 0x451   : > { %v1746_v28 = vrot.slane %v1739_v24, %v6507_v43 }
 0x452   : > { %v6611_v29 = vpop.eup %5304  ;;  %v1764_v30 = vcombine.low %v1713_v23, %v1729_v25  ;;  %v1763_v34 = vrot.slane %v1756_v26, %v6507_v43 }
 0x453   : > { %v1747_v32 = vcombine.low %v1738_v27, %v1746_v28  ;;  %v2762_v33 = vsel %vm2544_vm3, %v6611_v29, 0.0 }
 0x454   : > { %v1771_v35 = vrot.slane %v1764_v30, %v6507_v43  ;;  %2763 = vadd.xlane.f32.xlu1 %v2762_v33 }
 0x455   : > { %v1754_v36 = vrot.slane %v1747_v32, %v6510_v47 }
 0x456   : > { %v1772_v37 = vcombine.low %v1763_v34, %v1771_v35 }
 0x457   : > { %v1755_v38 = vcombine.high %v1754_v36, %v5988_v58  ;;  %v1785_v41 = vshrl.u32 %v1754_v36, 16 }
 0x458   : > { %v1779_v31 = vrot.slane %v1772_v37, %v6510_v47 }
 0x459   : > { %v1793_v46 = vshrl.u32 %v1755_v38, 16 }
 0x45a   : > { %v1780_v39 = vcombine.high %v1779_v31, %v5988_v58  ;;  %v1783_v40 = vpack.i.b16 %v1779_v31, %v1754_v36  ;;  %v1786_v42 = vshrl.u32 %v1779_v31, 16 }
 0x45c   : > { %v1787_v44 = vpack.i.b16 %v1786_v42, %v1785_v41  ;;  %v1791_v45 = vpack.i.b16 %v1780_v39, %v1755_v38  ;;  %v1794_v48 = vshrl.u32 %v1780_v39, 16  ;;  %1798 = vst.msk [vmem:[#allocation2 + $0x10] sm:$0xf] %vm1619_vm2, %v1783_v40  ;;  %v5286_v42 = vld [vmem:[#allocation16 + $0x8] sm:$0xff]  }
 0x45e   : > { %v1795_v49 = vpack.i.b16 %v1794_v48, %v1793_v46  ;;  %1799 = vst.msk [vmem:[#allocation2 + $0x14] sm:$0xf] %vm1619_vm2, %v1787_v44  ;;  %1800 = vst.msk [vmem:[#allocation2 + $0x18] sm:$0xf] %vm1619_vm2, %v1791_v45 }
 0x460   : > { %1801 = vst.msk [vmem:[#allocation2 + $0x1c] sm:$0xf] %vm1619_vm2, %v1795_v49 }
 0x463   : > { %v2298_v50 = vld [vmem:[#allocation2 + $0x10] sm:$0xf] }
 0x464   : > { %v2782_v52 = vsel %vm2780_vm4, %v2298_v50, 0 }
 0x465   : > { %4889 = vmatpush3.bf16.msra.mxu1 %v2782_v52  ;;  %v2299_v53 = vld [vmem:[#allocation2 + $0x14] sm:$0xf]  ;;  %v2300_v2 = vld [vmem:[#allocation2 + $0x18] sm:$0xf] }
 0x466   : > { %v2828_v54 = vsel %vm2780_vm4, %v2299_v53, 0  ;;  %4900 = vmatprep.subr.bf16.mxu1 %v5981_v0  ;;  %v2874_v6 = vsel %vm2780_vm4, %v2300_v2, 0 }
 0x467   : > { %4895 = vmatpush3.bf16.msra.mxu0 %v2828_v54  ;;  %v2301_v5 = vld [vmem:[#allocation2 + $0x1c] sm:$0xf] }
 0x468   : > { %4906 = vmatprep.subr.bf16.mxu0 %v5981_v0  ;;  %v2920_v8 = vsel %vm2780_vm4, %v2301_v5, 0 }
 0x4d1   : > { %v2755_v57 = vpop.xlane.xlu1 %2754 }
 0x4d2   : > { %5306 = vrcp.f32 %v2755_v57  ;;  %v5287_v57 = vld [vmem:[#allocation16] sm:$0xff]  }
 0x4d3   : > { %v2758_v59 = vpop.xlane.xlu0 %2757 }
 0x4d4   : > { %5308 = vrcp.f32 %v2758_v59 }
 0x4d9   : > { %v2761_v60 = vpop.xlane.xlu0 %2760 }
 0x4da   : > { %5310 = vrcp.f32 %v2761_v60 }
 0x4dd   : > { %v2764_v61 = vpop.xlane.xlu1 %2763 }
 0x4de   : > { %5312 = vrcp.f32 %v2764_v61 }
 0x4df   : > { %v5307_v62 = vpop.eup %5306 }
 0x4e0   : > { %v2769_v63 = vmul.f32 %v5307_v62, %v6589_v51 }
 0x4e1   : > { %v5309_v1 = vpop.eup %5308 }
 0x4e2   : > { %v2773_v3 = vpack.c.bf16 %v2769_v63, %v2769_v63  ;;  %v2770_v4 = vmul.f32 %v5309_v1, %v6595_v56 }
 0x4e4   : > { %4891 = vmatmul.mubr.msk.bf16.vlgmr.msra.gmra.mxu1 %vm2544_vm3, %v2773_v3  ;;  %v2774_v7 = vpack.c.bf16 %v2770_v4, %v2770_v4 }
 0x4e5   : > { %4901 = vmatpush3.bf16.msra.mxu1 %v2874_v6  ;;  %4902 = vmatprep.mubr.msk.bf16.mxu1 %vm5982_vm0, %v5981_v0 }
 0x4e6   : > { %4897 = vmatmul.mubr.msk.bf16.vlgmr.msra.gmra.mxu0 %vm2544_vm3, %v2774_v7  ;;  %4912 = vmatprep.subr.bf16.mxu1 %v5981_v0 }
 0x4e7   : > { %v5311_v51 = vpop.eup %5310  ;;  %4907 = vmatpush3.bf16.msra.mxu0 %v2920_v8  ;;  %4908 = vmatprep.mubr.msk.bf16.mxu0 %vm5982_vm0, %v5981_v0 }
 0x4e8   : > { %v2771_v56 = vmul.f32 %v5311_v51, %v6605_v13  ;;  %4920 = vmatprep.subr.bf16.mxu0 %v5981_v0 }
 0x4ea   : > { %v2775_v9 = vpack.c.bf16 %v2771_v56, %v2771_v56 }
 0x4eb   : > { %v5313_v10 = vpop.eup %5312 }
 0x4ec   : > { %4903 = vmatmul.mubr.msk.bf16.vlgmr.msra.gmra.mxu1 %vm2544_vm3, %v2775_v9  ;;  %v2772_v12 = vmul.f32 %v5313_v10, %v6611_v29 }
 0x4ed   : > { %4916 = vmatprep.mubr.msk.bf16.mxu1 %vm5982_vm0, %v5981_v0  ;;  %4913 = vmatpush3.bf16.msra.mxu1 %v5286_v42 }
 0x4ee   : > { %v2776_v14 = vpack.c.bf16 %v2772_v12, %v2772_v12  ;;  %4914 = vmatprep.subr.bf16.mxu1 %v5981_v0 }
 0x4f0   : > { %4909 = vmatmul.mubr.msk.bf16.vlgmr.msra.gmra.mxu0 %vm2544_vm3, %v2776_v14 }
 0x4f1   : > { %4924 = vmatprep.mubr.msk.bf16.mxu0 %vm5982_vm0, %v5981_v0  ;;  %4915 = vmatpush3.bf16.msra.mxu1 %v5287_v57 }
 0x4f2   : > { %4928 = vmatprep.subr.bf16.mxu1 %v5981_v0 }
 0x5a4   : > { %v2818_v15 = vpop.f32.mrf.mxu1 }
 0x5a6   : > { %v4892_v16 = vpop.f32.mrf.mxu1  ;;  %v2864_v13 = vpop.f32.mrf.mxu0 }
 0x5a8   : > { %v2821_v17 = vpop.f32.mrf.mxu1  ;;  %v4898_v18 = vpop.f32.mrf.mxu0 }
 0x5a9   : > { %v4718_v18 = vld [vmem:[#allocation18] ss:$0 sm:$0xff] }
 0x5aa   : > { %v4893_v19 = vpop.f32.mrf.mxu1  ;;  %v2867_v20 = vpop.f32.mrf.mxu0 }
 0x5ac   : > { %v4899_v22 = vpop.f32.mrf.mxu0  ;;  %v2910_v23 = vpop.f32.mrf.mxu1 }
 0x5ad   : > { %v2962_v25 = vcombine.low %v2818_v15, %v2910_v23  ;;  %v2963_v26 = vcombine.high %v2818_v15, %v2910_v23 }
 0x5ae   : > { %v4904_v24 = vpop.f32.mrf.mxu1 }
 0x5af   : > { %v2970_v34 = vrot.slane %v2962_v25, %v6507_v43  ;;  %v2977_v35 = vrot.slane %v2963_v26, %v6507_v43 }
 0x5b0   : > { %v2913_v27 = vpop.f32.mrf.mxu1  ;;  %v2956_v28 = vpop.f32.mrf.mxu0 }
 0x5b1   : > { %v2978_v29 = vcombine.low %v2864_v13, %v2956_v28  ;;  %v2979_v30 = vcombine.high %v2864_v13, %v2956_v28  ;;  %v4696_v27 = vld [vmem:[#allocation27] ss:$0 sm:$0xff] }
 0x5b2   : > { %v4905_v32 = vpop.f32.mrf.mxu1  ;;  %v4910_v33 = vpop.f32.mrf.mxu0  ;;  %v1865_v28 = vadd.f32 %v4696_v27, %v6490_v21 }
 0x5b3   : > { %v2986_v36 = vrot.slane %v2978_v29, %v6507_v43  ;;  %v2993_v37 = vrot.slane %v2979_v30, %v6507_v43 }
 0x5b4   : > { %v2959_v38 = vpop.f32.mrf.mxu0  ;;  %v1933_v29 = vpack.c.bf16 %v1865_v28, %v1865_v28  ;;  %v4723_v28 = vld [vmem:[#allocation21] ss:$0 sm:$0xff] }
 0x5b5   : > { %v2994_v31 = vcombine.low %v2970_v34, %v2986_v36  ;;  %v2995_v39 = vcombine.high %v2970_v34, %v2986_v36  ;;  %v3010_v40 = vcombine.low %v2977_v35, %v2993_v37  ;;  %v3011_v41 = vcombine.high %v2977_v35, %v2993_v37  ;;  %v5289_v36 = vld [vmem:[#allocation22] sm:$0xff]  }
 0x5b6   : > { %v4911_v44 = vpop.f32.mrf.mxu0 }
 0x5b7   : > { %v3002_v45 = vrot.slane %v2994_v31, %v6510_v47  ;;  %v3009_v46 = vrot.slane %v2995_v39, %v6510_v47  ;;  %v3018_v48 = vrot.slane %v3010_v40, %v6510_v47  ;;  %v3025_v49 = vrot.slane %v3011_v41, %v6510_v47 }
 0x5b9   : > { %v3030_v50 = vcombine.low %v3002_v45, %v3009_v46  ;;  %v4716_v52 = vcombine.high %v3002_v45, %v3009_v46  ;;  %v3046_v53 = vcombine.low %v3018_v48, %v3025_v49  ;;  %v4717_v54 = vcombine.high %v3018_v48, %v3025_v49 }
 0x5ba   : > { %v1947_v48 = vrot.slane %v1933_v29, %v6507_v43 }
 0x5bb   : > { %v3037_v59 = vrot.slane %v3030_v50, %v6507_v43  ;;  %v3045_v60 = vrot.slane %v4716_v52, %v6507_v43  ;;  %v3053_v61 = vrot.slane %v3046_v53, %v6507_v43  ;;  %v3061_v62 = vrot.slane %v4717_v54, %v6507_v43 }
 0x5bd   : > { %v3063_v63 = vcombine.high %v3037_v59, %v3045_v60  ;;  %v3079_v1 = vcombine.high %v3053_v61, %v3061_v62  ;;  %v3062_v2 = vcombine.low %v3037_v59, %v3045_v60  ;;  %v3078_v3 = vcombine.low %v3053_v61, %v3061_v62 }
 0x5bf   : > { %v3077_v4 = vrot.slane %v3063_v63, %v6510_v47  ;;  %v3093_v5 = vrot.slane %v3079_v1, %v6510_v47  ;;  %v3070_v6 = vrot.slane %v3062_v2, %v6510_v47  ;;  %v3086_v7 = vrot.slane %v3078_v3, %v6510_v47 }
 0x5c1   : > { %v3096_v8 = vcombine.low %v3077_v4, %v3093_v5  ;;  %v3095_v51 = vcombine.high %v3070_v6, %v3086_v7  ;;  %v3094_v56 = vcombine.low %v3070_v6, %v3086_v7  ;;  %v3097_v9 = vcombine.high %v3077_v4, %v3093_v5 }
 0x5c3   : > { %3103 = vrot.lane.b32.xlu1 %v3096_v8, %s5989_s18  ;;  %3099 = vrot.lane.b32.xlu0 %v3095_v51, %s5990_s13 }
 0x5c7   : > { %3107 = vrot.lane.b32.xlu1 %v3097_v9, %s5991_s8 }
 0x635   : > { %v3104_v10 = vpop.permute.xlu1 %3103  ;;  %v3100_v12 = vpop.permute.xlu0 %3099 }
 0x636   : > { %v3110_v14 = vsel %vm2544_vm3, %v3094_v56, %v3100_v12 }
 0x637   : > { %v3112_v16 = vsel %vm3111_vm5, %v3110_v14, %v3104_v10 }
 0x639   : > { %v3108_v15 = vpop.permute.xlu1 %3107 }
 0x63a   : > { %v3114_v13 = vsel %vm3113_vm6, %v3112_v16, %v3108_v15 }
 0x63b   : > { %v3115_v17 = vpack.c.bf16 %v3114_v13, %v3114_v13 }
 0x63d   : > { %4917 = vmatmul.mubr.msk.bf16.vlgmr.msra.gmra.mxu1 %vm1339_vm1, %v3115_v17 }
 0x63e   : > { %4930 = vmatprep.mubr.msk.bf16.mxu1 %vm5982_vm0, %v5981_v0 }
 0x6fd   : > { %v3171_v19 = vpop.f32.mrf.mxu1 }
 0x6fe   : > { %v3172_v20 = vadd.f32 %v4718_v18, %v3171_v19 }
 0x6ff   : > { %v4918_v22 = vpop.f32.mrf.mxu1 }
 0x700   : > { %v3177_v23 = vadd.f32 %v3172_v20, %v6478_v11  ;;  %v5288_v11 = vld [vmem:[#allocation22 + $0x8] sm:$0xff]  }
 0x701   : > { %v3174_v24 = vpop.f32.mrf.mxu1  ;;  %4921 = vmatpush3.bf16.msra.mxu0 %v5288_v11 }
 0x702   : > { %v3180_v25 = vsel %vm1339_vm1, %v3177_v23, 0.0  ;;  %4922 = vmatprep.subr.bf16.mxu0 %v5981_v0 }
 0x703   : > { %3181 = vadd.xlane.f32.xlu0 %v3180_v25  ;;  %v4919_v26 = vpop.f32.mrf.mxu1 }
 0x705   : > { %4923 = vmatpush3.bf16.msra.mxu0 %v5289_v36 }
 0x706   : > { %4934 = vmatprep.subr.bf16.mxu0 %v5981_v0 }
 0x719   : > { %1935 = vrot.lane.b32.xlu0 %v1933_v29, %s5984_s5 }
 0x71d   : > { %1939 = vrot.lane.b32.xlu0 %v1933_v29, %s5983_s9 }
 0x78c   : > { %v3182_v30 = vpop.xlane.xlu0 %3181 }
 0x78d   : > { %v3184_v32 = vmul.f32 0.03125, %v3182_v30 }
 0x78f   : > { %v3185_v33 = vsub.f32 %v3177_v23, %v3184_v32  ;;  %v4722_v23 = vld [vmem:[#allocation19] ss:$0 sm:$0xff] }
 0x790   : > { %v1936_v21 = vpop.permute.xlu0 %1935 }
 0x791   : > { %v3186_v34 = vmul.f32 %v3185_v33, %v3185_v33  ;;  %v1981_v31 = vrot.slane %v1936_v21, %v6507_v43 }
 0x793   : > { %v3187_v35 = vsel %vm1339_vm1, %v3186_v34, 0.0 }
 0x794   : > { %3188 = vadd.xlane.f32.xlu1 %v3187_v35  ;;  %v1940_v37 = vpop.permute.xlu0 %1939 }
 0x795   : > { %v1989_v38 = vrot.slane %v1940_v37, %v6507_v43 }
 0x797   : > { %v1990_v39 = vcombine.low %v1981_v31, %v1989_v38  ;;  %v1991_v42 = vcombine.high %v1981_v31, %v1989_v38 }
 0x799   : > { %v1998_v45 = vrot.slane %v1990_v39, %v6510_v47  ;;  %v2005_v50 = vrot.slane %v1991_v42, %v6510_v47 }
 0x79b   : > { %v2006_v54 = vcombine.high %v1998_v45, %v5988_v58  ;;  %v2007_v60 = vcombine.high %v2005_v50, %v5988_v58  ;;  %v2013_v61 = vshrl.u32 %v1998_v45, 16  ;;  %v2029_v4 = vshrl.u32 %v2005_v50, 16 }
 0x79d   : > { %v2021_v3 = vshrl.u32 %v2006_v54, 16  ;;  %v2037_v9 = vshrl.u32 %v2007_v60, 16 }
 0x7a5   : > { %1937 = vrot.lane.b32.xlu1 %v1933_v29, %s5985_s6 }
 0x81d   : > { %v3189_v40 = vpop.xlane.xlu1 %3188 }
 0x81e   : > { %v3190_v41 = vmul.f32 0.03125, %v3189_v40 }
 0x820   : > { %v3191_v44 = vadd.f32 1e-10, %v3190_v41 }
 0x821   : > { %v1938_v46 = vpop.permute.xlu1 %1937 }
 0x822   : > { %5314 = vrsqrt.f32 %v3191_v44  ;;  %v1955_v49 = vrot.slane %v1938_v46, %v6507_v43 }
 0x824   : > { %v1956_v52 = vcombine.low %v1947_v48, %v1955_v49  ;;  %v1957_v53 = vcombine.high %v1947_v48, %v1955_v49  ;;  %v4724_v49 = vld [vmem:[#allocation24] ss:$0 sm:$0xff] }
 0x826   : > { %v1964_v57 = vrot.slane %v1956_v52, %v6510_v47  ;;  %v1971_v59 = vrot.slane %v1957_v53, %v6510_v47 }
 0x828   : > { %v1972_v62 = vcombine.high %v1964_v57, %v5988_v58  ;;  %v1973_v63 = vcombine.high %v1971_v59, %v5988_v58  ;;  %v2010_v1 = vpack.i.b16 %v1998_v45, %v1964_v57  ;;  %v2012_v2 = vshrl.u32 %v1964_v57, 16 }
 0x829   : > { %v2026_v5 = vpack.i.b16 %v2005_v50, %v1971_v59  ;;  %v2028_v6 = vshrl.u32 %v1971_v59, 16 }
 0x82a   : > { %v2014_v7 = vpack.i.b16 %v2013_v61, %v2012_v2  ;;  %v2018_v8 = vpack.i.b16 %v2006_v54, %v1972_v62  ;;  %v2020_v51 = vshrl.u32 %v1972_v62, 16  ;;  %v2034_v56 = vpack.i.b16 %v2007_v60, %v1973_v63 }
 0x82b   : > { %v2030_v10 = vpack.i.b16 %v2029_v4, %v2028_v6  ;;  %v2036_v12 = vshrl.u32 %v1973_v63, 16  ;;  %v2040_v14 = vcombine.low %v2010_v1, %v2026_v5 }
 0x82c   : > { %v2022_v15 = vpack.i.b16 %v2021_v3, %v2020_v51  ;;  %v2048_v16 = vcombine.low %v2018_v8, %v2034_v56 }
 0x82d   : > { %v2038_v13 = vpack.i.b16 %v2037_v9, %v2036_v12  ;;  %v2065_v17 = vcombine.low %v2014_v7, %v2030_v10  ;;  %v2047_v18 = vrot.slane %v2040_v14, %v6507_v43 }
 0x82e   : > { %v2055_v19 = vrot.slane %v2048_v16, %v6507_v43 }
 0x82f   : > { %v5315_v20 = vpop.eup %5314  ;;  %v2073_v22 = vcombine.low %v2022_v15, %v2038_v13  ;;  %v2072_v26 = vrot.slane %v2065_v17, %v6507_v43 }
 0x830   : > { %v3193_v24 = vmul.f32 %v5315_v20, %v3185_v33  ;;  %v2056_v25 = vcombine.low %v2047_v18, %v2055_v19 }
 0x831   : > { %v2080_v27 = vrot.slane %v2073_v22, %v6507_v43 }
 0x832   : > { %v2063_v29 = vrot.slane %v2056_v25, %v6510_v47  ;;  %v3200_v30 = vmul.f32 %v4722_v23, %v3193_v24 }
 0x833   : > { %v2081_v32 = vcombine.low %v2072_v26, %v2080_v27 }
 0x834   : > { %v6702_v34 = vadd.f32 %v4723_v28, %v3200_v30  ;;  %v2064_v35 = vcombine.high %v2063_v29, %v5988_v58  ;;  %v2094_v37 = vshrl.u32 %v2063_v29, 16 }
 0x835   : > { %v2088_v11 = vrot.slane %v2081_v32, %v6510_v47 }
 0x836   : > { %v3227_v36 = vpack.c.bf16 %v6702_v34, %v6702_v34  ;;  %v2102_v40 = vshrl.u32 %v2064_v35, 16 }
 0x837   : > { %v2089_v33 = vcombine.high %v2088_v11, %v5988_v58  ;;  %v2092_v21 = vpack.i.b16 %v2088_v11, %v2063_v29  ;;  %v2095_v38 = vshrl.u32 %v2088_v11, 16 }
 0x838   : > { %4925 = vmatmul.mubr.msk.bf16.vlgmr.msra.gmra.mxu0 %vm1339_vm1, %v3227_v36 }
 0x839   : > { %v2096_v31 = vpack.i.b16 %v2095_v38, %v2094_v37  ;;  %v2100_v39 = vpack.i.b16 %v2089_v33, %v2064_v35  ;;  %v2103_v41 = vshrl.u32 %v2089_v33, 16  ;;  %2106 = vst.msk [vmem:[#allocation3] sm:$0xf] %vm1619_vm2, %v2092_v21  ;;  %4936 = vmatprep.mubr.msk.bf16.mxu0 %vm5982_vm0, %v5981_v0 }
 0x83b   : > { %v2104_v42 = vpack.i.b16 %v2103_v41, %v2102_v40  ;;  %2107 = vst.msk [vmem:[#allocation3 + $0x4] sm:$0xf] %vm1619_vm2, %v2096_v31  ;;  %2108 = vst.msk [vmem:[#allocation3 + $0x8] sm:$0xf] %vm1619_vm2, %v2100_v39 }
 0x83d   : > { %2109 = vst.msk [vmem:[#allocation3 + $0xc] sm:$0xf] %vm1619_vm2, %v2104_v42 }
 0x840   : > { %v3208_v44 = vld [vmem:[#allocation3] sm:$0xf] }
 0x841   : > { %v3462_v45 = vsel %vm2544_vm3, %v3208_v44, 0 }
 0x842   : > { %4929 = vmatpush3.bf16.xpose.msra.mxu1 %v3462_v45  ;;  %v3209_v46 = vld [vmem:[#allocation3 + $0x4] sm:$0xf]  ;;  %v3210_v44 = vld [vmem:[#allocation3 + $0x8] sm:$0xf] }
 0x843   : > { %v3508_v48 = vsel %vm2544_vm3, %v3209_v46, 0  ;;  %4940 = vmatprep.subr.bf16.mxu1 %v5981_v0 }
 0x844   : > { %4935 = vmatpush3.bf16.xpose.msra.mxu0 %v3508_v48 }
 0x845   : > { %4946 = vmatprep.subr.bf16.mxu0 %v5981_v0 }
 0x8f8   : > { %v3283_v50 = vpop.f32.mrf.mxu0 }
 0x8f9   : > { %v3284_v52 = vadd.f32 %v4724_v49, %v3283_v50  ;;  %v3211_v49 = vld [vmem:[#allocation3 + $0xc] sm:$0xf]  ;;  %v3554_v50 = vsel %vm2544_vm3, %v3210_v44, 0 }
 0x8fa   : > { %v4926_v53 = vpop.f32.mrf.mxu0 }
 0x8fb   : > { %v3289_v54 = vpack.c.bf16 %v3284_v52, %v3284_v52 }
 0x8fc   : > { %v3286_v57 = vpop.f32.mrf.mxu0 }
 0x8fd   : > { %3293 = vrot.lane.b32.xlu0 %v3289_v54, %s5985_s6  ;;  %3291 = vrot.lane.b32.xlu1 %v3289_v54, %s5984_s5  ;;  %v3303_v62 = vrot.slane %v3289_v54, %v6507_v43 }
 0x8fe   : > { %v4927_v59 = vpop.f32.mrf.mxu0 }
 0x901   : > { %3295 = vrot.lane.b32.xlu1 %v3289_v54, %s5983_s9  ;;  %v3600_v54 = vsel %vm2544_vm3, %v3211_v49, 0 }
 0x96f   : > { %v3294_v60 = vpop.permute.xlu0 %3293  ;;  %v3292_v61 = vpop.permute.xlu1 %3291 }
 0x970   : > { %v3311_v63 = vrot.slane %v3294_v60, %v6507_v43  ;;  %v3337_v6 = vrot.slane %v3292_v61, %v6507_v43 }
 0x972   : > { %v3312_v1 = vcombine.low %v3303_v62, %v3311_v63  ;;  %v3313_v2 = vcombine.high %v3303_v62, %v3311_v63  ;;  %v2291_v63 = vld [vmem:[%s6415_s7] sm:$0xf]  ;;  %s7010_s7 = sld [smem:[#allocation63_spill]] }
 0x973   : > { %v3296_v3 = vpop.permute.xlu1 %3295 }
 0x974   : > { %v3320_v4 = vrot.slane %v3312_v1, %v6510_v47  ;;  %v3345_v5 = vrot.slane %v3296_v3, %v6507_v43  ;;  %v3327_v7 = vrot.slane %v3313_v2, %v6510_v47  ;;  %v2292_v1 = vunpack.c.l.bf16 %v2291_v63 }
 0x976   : > { %v3346_v8 = vcombine.low %v3337_v6, %v3345_v5  ;;  %v3347_v51 = vcombine.high %v3337_v6, %v3345_v5  ;;  %v3328_v56 = vcombine.high %v3320_v4, %v5988_v58  ;;  %v3329_v12 = vcombine.high %v3327_v7, %v5988_v58 }
 0x977   : > { %v3368_v14 = vshrl.u32 %v3320_v4, 16  ;;  %v3384_v19 = vshrl.u32 %v3327_v7, 16 }
 0x978   : > { %v3354_v9 = vrot.slane %v3346_v8, %v6510_v47  ;;  %v3361_v10 = vrot.slane %v3347_v51, %v6510_v47  ;;  %v3376_v18 = vshrl.u32 %v3328_v56, 16  ;;  %v3392_v27 = vshrl.u32 %v3329_v12, 16 }
 0x97a   : > { %v3362_v15 = vcombine.high %v3354_v9, %v5988_v58  ;;  %v3363_v16 = vcombine.high %v3361_v10, %v5988_v58  ;;  %v3366_v13 = vpack.i.b16 %v3354_v9, %v3320_v4  ;;  %v3369_v17 = vshrl.u32 %v3354_v9, 16 }
 0x97b   : > { %v3382_v20 = vpack.i.b16 %v3361_v10, %v3327_v7  ;;  %v3385_v22 = vshrl.u32 %v3361_v10, 16 }
 0x97c   : > { %v3370_v23 = vpack.i.b16 %v3369_v17, %v3368_v14  ;;  %v3374_v24 = vpack.i.b16 %v3362_v15, %v3328_v56  ;;  %v3377_v25 = vshrl.u32 %v3362_v15, 16  ;;  %v3390_v26 = vpack.i.b16 %v3363_v16, %v3329_v12 }
 0x97d   : > { %v3386_v28 = vpack.i.b16 %v3385_v22, %v3384_v19  ;;  %v3393_v29 = vshrl.u32 %v3363_v16, 16  ;;  %v3396_v30 = vcombine.low %v3366_v13, %v3382_v20  ;;  %v4700_v22 = vld [vmem:[%s7009_s19] ss:$0 sm:$0xff] }
 0x97e   : > { %v3378_v32 = vpack.i.b16 %v3377_v25, %v3376_v18  ;;  %v3404_v35 = vcombine.low %v3374_v24, %v3390_v26 }
 0x97f   : > { %v3394_v11 = vpack.i.b16 %v3393_v29, %v3392_v27  ;;  %v3421_v36 = vcombine.low %v3370_v23, %v3386_v28  ;;  %v3403_v33 = vrot.slane %v3396_v30, %v6507_v43  ;;  %v1928_v27 = vadd.f32 %v4700_v22, %v6575_v55 }
 0x980   : > { %v3411_v21 = vrot.slane %v3404_v35, %v6507_v43 }
 0x981   : > { %v3429_v37 = vcombine.low %v3378_v32, %v3394_v11  ;;  %v3428_v31 = vrot.slane %v3421_v36, %v6507_v43  ;;  %v2110_v28 = vpack.c.bf16 %v1928_v27, %v1928_v27 }
 0x982   : > { %v3412_v38 = vcombine.low %v3403_v33, %v3411_v21 }
 0x983   : > { %v3436_v39 = vrot.slane %v3429_v37, %v6507_v43 }
 0x984   : > { %v3419_v41 = vrot.slane %v3412_v38, %v6510_v47 }
 0x985   : > { %v3437_v40 = vcombine.low %v3428_v31, %v3436_v39 }
 0x986   : > { %v3449_v46 = vshrl.u32 %v3419_v41, 16  ;;  %v3420_v57 = vcombine.high %v3419_v41, %v5988_v58 }
 0x987   : > { %v3444_v42 = vrot.slane %v3437_v40, %v6510_v47 }
 0x988   : > { %v3455_v61 = vshrl.u32 %v3420_v57, 16 }
 0x989   : > { %v3448_v45 = vpack.i.b16 %v3444_v42, %v3419_v41  ;;  %v3450_v48 = vshrl.u32 %v3444_v42, 16  ;;  %v3445_v53 = vcombine.high %v3444_v42, %v5988_v58 }
 0x98b   : > { %4931 = vmatmul.mubr.msk.bf16.vlgmr.msra.gmra.mxu1 %vm2544_vm3, %v3448_v45  ;;  %v3451_v52 = vpack.i.b16 %v3450_v48, %v3449_v46  ;;  %v3456_v59 = vshrl.u32 %v3445_v53, 16  ;;  %v3454_v60 = vpack.i.b16 %v3445_v53, %v3420_v57 }
 0x98c   : > { %4941 = vmatpush3.bf16.xpose.msra.mxu1 %v3554_v50  ;;  %4942 = vmatprep.mubr.msk.bf16.mxu1 %vm5982_vm0, %v5981_v0 }
 0x98d   : > { %4937 = vmatmul.mubr.msk.bf16.vlgmr.msra.gmra.mxu0 %vm2544_vm3, %v3451_v52  ;;  %4952 = vmatprep.subr.bf16.mxu1 %v5981_v0  ;;  %v3457_v62 = vpack.i.b16 %v3456_v59, %v3455_v61  ;;  %v2124_v52 = vrot.slane %v2110_v28, %v6507_v43 }
 0x98e   : > { %4947 = vmatpush3.bf16.xpose.msra.mxu0 %v3600_v54  ;;  %4948 = vmatprep.mubr.msk.bf16.mxu0 %vm5982_vm0, %v5981_v0 }
 0x98f   : > { %4958 = vmatprep.subr.bf16.mxu0 %v5981_v0 }
 0x993   : > { %4943 = vmatmul.mubr.msk.bf16.vlgmr.msra.gmra.mxu1 %vm2544_vm3, %v3454_v60 }
 0x994   : > { %4954 = vmatprep.mubr.msk.bf16.mxu1 %vm5982_vm0, %v5981_v0 }
 0x995   : > { %4949 = vmatmul.mubr.msk.bf16.vlgmr.msra.gmra.mxu0 %vm2544_vm3, %v3457_v62 }
 0x996   : > { %4960 = vmatprep.mubr.msk.bf16.mxu0 %vm5982_vm0, %v5981_v0 }
 0xa4b   : > { %v3498_v2 = vpop.f32.mrf.mxu1 }
 0xa4c   : > { %v3499_v3 = vadd.f32 %v3498_v2, %v2292_v1 }
 0xa4d   : > { %v4932_v4 = vpop.f32.mrf.mxu1  ;;  %v3544_v5 = vpop.f32.mrf.mxu0 }
 0xa4e   : > { %v3545_v6 = vadd.f32 %v3544_v5, %v2292_v1  ;;  %v3642_v7 = vsel %vm2544_vm3, %v3499_v3, -inf }
 0xa4f   : > { %3643 = vmax.xlane.f32.xlu0 %v3642_v7  ;;  %v3501_v8 = vpop.f32.mrf.mxu1  ;;  %v4938_v51 = vpop.f32.mrf.mxu0 }
 0xa50   : > { %v3645_v56 = vsel %vm2544_vm3, %v3545_v6, -inf }
 0xa51   : > { %v4933_v9 = vpop.f32.mrf.mxu1  ;;  %3646 = vmax.xlane.f32.xlu1 %v3645_v56  ;;  %v3547_v10 = vpop.f32.mrf.mxu0 }
 0xa53   : > { %v4939_v12 = vpop.f32.mrf.mxu0  ;;  %v3590_v14 = vpop.f32.mrf.mxu1 }
 0xa54   : > { %v3591_v15 = vadd.f32 %v3590_v14, %v2292_v1 }
 0xa55   : > { %v4944_v16 = vpop.f32.mrf.mxu1  ;;  %v3636_v13 = vpop.f32.mrf.mxu0 }
 0xa56   : > { %v3637_v17 = vadd.f32 %v3636_v13, %v2292_v1  ;;  %v3648_v18 = vsel %vm2544_vm3, %v3591_v15, -inf }
 0xa57   : > { %3649 = vmax.xlane.f32.xlu0 %v3648_v18  ;;  %v3593_v19 = vpop.f32.mrf.mxu1  ;;  %v4950_v20 = vpop.f32.mrf.mxu0 }
 0xa58   : > { %v3651_v25 = vsel %vm2544_vm3, %v3637_v17, -inf }
 0xa59   : > { %v4945_v23 = vpop.f32.mrf.mxu1  ;;  %v3639_v24 = vpop.f32.mrf.mxu0 }
 0xa5b   : > { %3652 = vmax.xlane.f32.xlu0 %v3651_v25  ;;  %v4951_v26 = vpop.f32.mrf.mxu0 }
 0xa62   : > { %2112 = vrot.lane.b32.xlu1 %v2110_v28, %s5984_s5  ;;  %s7017_s5 = sld [smem:[#allocation71_spill]] }
 0xa66   : > { %2116 = vrot.lane.b32.xlu1 %v2110_v28, %s5983_s9  ;;  %s7016_s9 = sld [smem:[#allocation70_spill]] }
 0xa71   : > { %2114 = vrot.lane.b32.xlu0 %v2110_v28, %s5985_s6  ;;  %s7018_s6 = sld [smem:[#allocation72_spill]] }
 0xad8   : > { %v3644_v29 = vpop.xlane.xlu0 %3643 }
 0xad9   : > { %v3654_v30 = vsub.f32 %v3499_v3, %v3644_v29 }
 0xada   : > { %v3647_v32 = vpop.xlane.xlu1 %3646 }
 0xadb   : > { %v3658_v35 = vmul.f32 1.442695, %v3654_v30  ;;  %v3655_v11 = vsub.f32 %v3545_v6, %v3647_v32 }
 0xadd   : > { %5316 = vpow2.f32 %v3658_v35  ;;  %v3660_v36 = vmul.f32 1.442695, %v3655_v11 }
 0xade   : > { %v2113_v33 = vpop.permute.xlu1 %2112 }
 0xadf   : > { %5318 = vpow2.f32 %v3660_v36  ;;  %v2158_v55 = vrot.slane %v2113_v33, %v6507_v43 }
 0xae0   : > { %v3650_v21 = vpop.xlane.xlu0 %3649 }
 0xae1   : > { %v3656_v37 = vsub.f32 %v3591_v15, %v3650_v21 }
 0xae2   : > { %v2117_v38 = vpop.permute.xlu1 %2116 }
 0xae3   : > { %v3662_v31 = vmul.f32 1.442695, %v3656_v37  ;;  %v2166_v39 = vrot.slane %v2117_v38, %v6507_v43 }
 0xae4   : > { %v3653_v40 = vpop.xlane.xlu0 %3652 }
 0xae5   : > { %5320 = vpow2.f32 %v3662_v31  ;;  %v2167_v41 = vcombine.low %v2158_v55, %v2166_v39  ;;  %v2168_v42 = vcombine.high %v2158_v55, %v2166_v39  ;;  %v3657_v44 = vsub.f32 %v3637_v17, %v3653_v40 }
 0xae7   : > { %v3664_v45 = vmul.f32 1.442695, %v3657_v44  ;;  %v2175_v48 = vrot.slane %v2167_v41, %v6510_v47  ;;  %v2182_v49 = vrot.slane %v2168_v42, %v6510_v47 }
 0xae8   : > { %v2115_v46 = vpop.permute.xlu0 %2114 }
 0xae9   : > { %5322 = vpow2.f32 %v3664_v45  ;;  %v2132_v53 = vrot.slane %v2115_v46, %v6507_v43  ;;  %v2183_v61 = vcombine.high %v2175_v48, %v5988_v58  ;;  %v2184_v62 = vcombine.high %v2182_v49, %v5988_v58 }
 0xaea   : > { %v6773_v50 = vpop.eup %5316  ;;  %v2190_v3 = vshrl.u32 %v2175_v48, 16  ;;  %v2206_v4 = vshrl.u32 %v2182_v49, 16 }
 0xaeb   : > { %v3666_v54 = vsel %vm2544_vm3, %v6773_v50, 0.0  ;;  %v2133_v59 = vcombine.low %v2124_v52, %v2132_v53  ;;  %v2134_v60 = vcombine.high %v2124_v52, %v2132_v53  ;;  %v2198_v51 = vshrl.u32 %v2183_v61, 16 }
 0xaec   : > { %v6779_v57 = vpop.eup %5318  ;;  %3667 = vadd.xlane.f32.xlu1 %v3666_v54  ;;  %v2214_v56 = vshrl.u32 %v2184_v62, 16 }
 0xaed   : > { %v3669_v63 = vsel %vm2544_vm3, %v6779_v57, 0.0  ;;  %v2141_v1 = vrot.slane %v2133_v59, %v6510_v47  ;;  %v2148_v2 = vrot.slane %v2134_v60, %v6510_v47 }
 0xaee   : > { %3670 = vadd.xlane.f32.xlu0 %v3669_v63 }
 0xaef   : > { %v2149_v5 = vcombine.high %v2141_v1, %v5988_v58  ;;  %v2150_v6 = vcombine.high %v2148_v2, %v5988_v58  ;;  %v2187_v7 = vpack.i.b16 %v2175_v48, %v2141_v1  ;;  %v2189_v8 = vshrl.u32 %v2141_v1, 16 }
 0xaf0   : > { %v2203_v9 = vpack.i.b16 %v2182_v49, %v2148_v2  ;;  %v2205_v10 = vshrl.u32 %v2148_v2, 16 }
 0xaf1   : > { %v2191_v14 = vpack.i.b16 %v2190_v3, %v2189_v8  ;;  %v2195_v15 = vpack.i.b16 %v2183_v61, %v2149_v5  ;;  %v2197_v16 = vshrl.u32 %v2149_v5, 16  ;;  %v2211_v13 = vpack.i.b16 %v2184_v62, %v2150_v6 }
 0xaf2   : > { %v6789_v12 = vpop.eup %5320  ;;  %v2207_v17 = vpack.i.b16 %v2206_v4, %v2205_v10  ;;  %v2213_v18 = vshrl.u32 %v2150_v6, 16  ;;  %v2217_v19 = vcombine.low %v2187_v7, %v2203_v9 }
 0xaf3   : > { %v3672_v20 = vsel %vm2544_vm3, %v6789_v12, 0.0  ;;  %v2199_v22 = vpack.i.b16 %v2198_v51, %v2197_v16  ;;  %v2225_v23 = vcombine.low %v2195_v15, %v2211_v13 }
 0xaf4   : > { %3673 = vadd.xlane.f32.xlu0 %v3672_v20  ;;  %v2215_v24 = vpack.i.b16 %v2214_v56, %v2213_v18  ;;  %v2242_v25 = vcombine.low %v2191_v14, %v2207_v17  ;;  %v2224_v26 = vrot.slane %v2217_v19, %v6507_v43 }
 0xaf5   : > { %v2232_v27 = vrot.slane %v2225_v23, %v6507_v43 }
 0xaf6   : > { %v6795_v28 = vpop.eup %5322  ;;  %v2250_v29 = vcombine.low %v2199_v22, %v2215_v24  ;;  %v2249_v35 = vrot.slane %v2242_v25, %v6507_v43 }
 0xaf7   : > { %v2233_v30 = vcombine.low %v2224_v26, %v2232_v27  ;;  %v3675_v32 = vsel %vm2544_vm3, %v6795_v28, 0.0 }
 0xaf8   : > { %v2257_v11 = vrot.slane %v2250_v29, %v6507_v43  ;;  %3676 = vadd.xlane.f32.xlu1 %v3675_v32 }
 0xaf9   : > { %v2240_v36 = vrot.slane %v2233_v30, %v6510_v47 }
 0xafa   : > { %v2258_v33 = vcombine.low %v2249_v35, %v2257_v11 }
 0xafb   : > { %v2241_v21 = vcombine.high %v2240_v36, %v5988_v58  ;;  %v2271_v31 = vshrl.u32 %v2240_v36, 16 }
 0xafc   : > { %v2265_v37 = vrot.slane %v2258_v33, %v6510_v47 }
 0xafd   : > { %v2279_v42 = vshrl.u32 %v2241_v21, 16 }
 0xafe   : > { %v2266_v38 = vcombine.high %v2265_v37, %v5988_v58  ;;  %v2269_v55 = vpack.i.b16 %v2265_v37, %v2240_v36  ;;  %v2272_v39 = vshrl.u32 %v2265_v37, 16 }
 0xb00   : > { %v2273_v40 = vpack.i.b16 %v2272_v39, %v2271_v31  ;;  %v2277_v41 = vpack.i.b16 %v2266_v38, %v2241_v21  ;;  %v2280_v44 = vshrl.u32 %v2266_v38, 16  ;;  %2284 = vst.msk [vmem:[#allocation3 + $0x10] sm:$0xf] %vm1619_vm2, %v2269_v55  ;;  %v5290_v38 = vld [vmem:[#allocation30 + $0x8] sm:$0xff]  }
 0xb02   : > { %v2281_v45 = vpack.i.b16 %v2280_v44, %v2279_v42  ;;  %2285 = vst.msk [vmem:[#allocation3 + $0x14] sm:$0xf] %vm1619_vm2, %v2273_v40  ;;  %2286 = vst.msk [vmem:[#allocation3 + $0x18] sm:$0xf] %vm1619_vm2, %v2277_v41 }
 0xb04   : > { %2287 = vst.msk [vmem:[#allocation3 + $0x1c] sm:$0xf] %vm1619_vm2, %v2281_v45 }
 0xb07   : > { %v3213_v46 = vld [vmem:[#allocation3 + $0x10] sm:$0xf] }
 0xb08   : > { %v3694_v48 = vsel %vm2780_vm4, %v3213_v46, 0 }
 0xb09   : > { %4953 = vmatpush3.bf16.msra.mxu1 %v3694_v48  ;;  %v3214_v58 = vld [vmem:[#allocation3 + $0x14] sm:$0xf]  ;;  %v3215_v63 = vld [vmem:[#allocation3 + $0x18] sm:$0xf]  ;;  %v5291_v48 = vld [vmem:[#allocation30] sm:$0xff]  }
 0xb0a   : > { %v3740_v49 = vsel %vm2780_vm4, %v3214_v58, 0  ;;  %4964 = vmatprep.subr.bf16.mxu1 %v5981_v0  ;;  %v3786_v4 = vsel %vm2780_vm4, %v3215_v63, 0 }
 0xb0b   : > { %4959 = vmatpush3.bf16.msra.mxu0 %v3740_v49  ;;  %v3216_v3 = vld [vmem:[#allocation3 + $0x1c] sm:$0xf] }
 0xb0c   : > { %4970 = vmatprep.subr.bf16.mxu0 %v5981_v0  ;;  %v3832_v6 = vsel %vm2780_vm4, %v3216_v3, 0 }
 0xb75   : > { %v3668_v52 = vpop.xlane.xlu1 %3667 }
 0xb76   : > { %5324 = vrcp.f32 %v3668_v52 }
 0xb77   : > { %v3671_v53 = vpop.xlane.xlu0 %3670 }
 0xb78   : > { %5326 = vrcp.f32 %v3671_v53 }
 0xb7d   : > { %v3674_v54 = vpop.xlane.xlu0 %3673 }
 0xb7e   : > { %5328 = vrcp.f32 %v3674_v54 }
 0xb81   : > { %v3677_v59 = vpop.xlane.xlu1 %3676 }
 0xb82   : > { %5330 = vrcp.f32 %v3677_v59 }
 0xb83   : > { %v5325_v60 = vpop.eup %5324 }
 0xb84   : > { %v3682_v61 = vmul.f32 %v5325_v60, %v6773_v50 }
 0xb85   : > { %v5327_v62 = vpop.eup %5326 }
 0xb86   : > { %v3686_v1 = vpack.c.bf16 %v3682_v61, %v3682_v61  ;;  %v3683_v2 = vmul.f32 %v5327_v62, %v6779_v57 }
 0xb88   : > { %4955 = vmatmul.mubr.msk.bf16.vlgmr.msra.gmra.mxu1 %vm2544_vm3, %v3686_v1  ;;  %v3687_v5 = vpack.c.bf16 %v3683_v2, %v3683_v2 }
 0xb89   : > { %4965 = vmatpush3.bf16.msra.mxu1 %v3786_v4  ;;  %4966 = vmatprep.mubr.msk.bf16.mxu1 %vm5982_vm0, %v5981_v0 }
 0xb8a   : > { %4961 = vmatmul.mubr.msk.bf16.vlgmr.msra.gmra.mxu0 %vm2544_vm3, %v3687_v5  ;;  %4976 = vmatprep.subr.bf16.mxu1 %v5981_v0 }
 0xb8b   : > { %v5329_v50 = vpop.eup %5328  ;;  %4971 = vmatpush3.bf16.msra.mxu0 %v3832_v6  ;;  %4972 = vmatprep.mubr.msk.bf16.mxu0 %vm5982_vm0, %v5981_v0 }
 0xb8c   : > { %v3684_v57 = vmul.f32 %v5329_v50, %v6789_v12  ;;  %4984 = vmatprep.subr.bf16.mxu0 %v5981_v0 }
 0xb8e   : > { %v3688_v7 = vpack.c.bf16 %v3684_v57, %v3684_v57 }
 0xb8f   : > { %v5331_v8 = vpop.eup %5330 }
 0xb90   : > { %4967 = vmatmul.mubr.msk.bf16.vlgmr.msra.gmra.mxu1 %vm2544_vm3, %v3688_v7  ;;  %v3685_v51 = vmul.f32 %v5331_v8, %v6795_v28 }
 0xb91   : > { %4980 = vmatprep.mubr.msk.bf16.mxu1 %vm5982_vm0, %v5981_v0  ;;  %4977 = vmatpush3.bf16.msra.mxu1 %v5290_v38  ;;  %v4744_v38 = vld [vmem:[%s7014_s4] ss:$0 sm:$0xff]  ;;  %s5992_s4 = smov [#allocation33]  }
 0xb92   : > { %v3689_v56 = vpack.c.bf16 %v3685_v51, %v3685_v51  ;;  %4978 = vmatprep.subr.bf16.mxu1 %v5981_v0 }
 0xb94   : > { %4973 = vmatmul.mubr.msk.bf16.vlgmr.msra.gmra.mxu0 %vm2544_vm3, %v3689_v56  ;;  %v4738_v56 = vld [vmem:[%s7010_s7] ss:$0 sm:$0xff] }
 0xb95   : > { %4988 = vmatprep.mubr.msk.bf16.mxu0 %vm5982_vm0, %v5981_v0  ;;  %4979 = vmatpush3.bf16.msra.mxu1 %v5291_v48 }
 0xb96   : > { %4992 = vmatprep.subr.bf16.mxu1 %v5981_v0 }
 0xc48   : > { %v3730_v9 = vpop.f32.mrf.mxu1 }
 0xc4a   : > { %v4956_v10 = vpop.f32.mrf.mxu1  ;;  %v3776_v12 = vpop.f32.mrf.mxu0 }
 0xc4c   : > { %v3733_v14 = vpop.f32.mrf.mxu1  ;;  %v4962_v15 = vpop.f32.mrf.mxu0 }
 0xc4e   : > { %v4957_v16 = vpop.f32.mrf.mxu1  ;;  %v3779_v13 = vpop.f32.mrf.mxu0 }
 0xc50   : > { %v4963_v17 = vpop.f32.mrf.mxu0  ;;  %v3822_v18 = vpop.f32.mrf.mxu1 }
 0xc51   : > { %v3874_v20 = vcombine.low %v3730_v9, %v3822_v18  ;;  %v3875_v22 = vcombine.high %v3730_v9, %v3822_v18 }
 0xc52   : > { %v4968_v19 = vpop.f32.mrf.mxu1 }
 0xc53   : > { %v3882_v29 = vrot.slane %v3874_v20, %v6507_v43  ;;  %v3889_v30 = vrot.slane %v3875_v22, %v6507_v43 }
 0xc54   : > { %v3825_v23 = vpop.f32.mrf.mxu1  ;;  %v3868_v24 = vpop.f32.mrf.mxu0 }
 0xc55   : > { %v3890_v25 = vcombine.low %v3776_v12, %v3868_v24  ;;  %v3891_v26 = vcombine.high %v3776_v12, %v3868_v24  ;;  %v5292_v23 = vld [vmem:[#allocation31 + $0x8] sm:$0xff]   ;;  %v5293_v24 = vld [vmem:[#allocation31] sm:$0xff]  }
 0xc56   : > { %v4969_v27 = vpop.f32.mrf.mxu1  ;;  %v4974_v28 = vpop.f32.mrf.mxu0  ;;  %4985 = vmatpush3.bf16.msra.mxu0 %v5292_v23 }
 0xc57   : > { %v3898_v32 = vrot.slane %v3890_v25, %v6507_v43  ;;  %v3905_v35 = vrot.slane %v3891_v26, %v6507_v43  ;;  %4986 = vmatprep.subr.bf16.mxu0 %v5981_v0  ;;  %v5295_v25 = vld [vmem:[%s7011_s2 + $0x10] sm:$0xff]  }
 0xc58   : > { %v3871_v11 = vpop.f32.mrf.mxu0 }
 0xc59   : > { %v3906_v36 = vcombine.low %v3882_v29, %v3898_v32  ;;  %v3907_v33 = vcombine.high %v3882_v29, %v3898_v32  ;;  %v3922_v21 = vcombine.low %v3889_v30, %v3905_v35  ;;  %v3923_v37 = vcombine.high %v3889_v30, %v3905_v35  ;;  %v4742_v30 = vld [vmem:[%s7012_s26] ss:$0 sm:$0xff]  ;;  %s4301_s26 = scalar_lea.sflag [#allocation6], %s6404_s15 }
 0xc5a   : > { %v4975_v55 = vpop.f32.mrf.mxu0  ;;  %4987 = vmatpush3.bf16.msra.mxu0 %v5293_v24  ;;  %v4743_v35 = vld [vmem:[%s7013_s12] ss:$0 sm:$0xff] }
 0xc5b   : > { %v3914_v31 = vrot.slane %v3906_v36, %v6510_v47  ;;  %v3921_v39 = vrot.slane %v3907_v33, %v6510_v47  ;;  %v3930_v40 = vrot.slane %v3922_v21, %v6510_v47  ;;  %v3937_v41 = vrot.slane %v3923_v37, %v6510_v47  ;;  %v5296_v21 = vld [vmem:[%s7011_s2 + $0x8] sm:$0xff]   ;;  %v5297_v37 = vld [vmem:[%s7011_s2] sm:$0xff]  }
 0xc5d   : > { %v3942_v42 = vcombine.low %v3914_v31, %v3921_v39  ;;  %v4736_v44 = vcombine.high %v3914_v31, %v3921_v39  ;;  %v3958_v45 = vcombine.low %v3930_v40, %v3937_v41  ;;  %v4737_v46 = vcombine.high %v3930_v40, %v3937_v41 }
 0xc5f   : > { %v3949_v58 = vrot.slane %v3942_v42, %v6507_v43  ;;  %v3957_v49 = vrot.slane %v4736_v44, %v6507_v43  ;;  %v3965_v52 = vrot.slane %v3958_v45, %v6507_v43  ;;  %v3973_v53 = vrot.slane %v4737_v46, %v6507_v43  ;;  %v4748_v45 = vld [vmem:[%s7015_s10] ss:$0 sm:$0xff]  ;;  %s5812_s10 = sshll.u32 %s5992_s4, 4  ;;  %s5813_s10 = int_to_ptr.vmem [resolvable:$false] %s5812_s10 }
 0xc61   : > { %v3975_v54 = vcombine.high %v3949_v58, %v3957_v49  ;;  %v3991_v59 = vcombine.high %v3965_v52, %v3973_v53  ;;  %v3974_v60 = vcombine.low %v3949_v58, %v3957_v49  ;;  %v3990_v61 = vcombine.low %v3965_v52, %v3973_v53 }
 0xc63   : > { %v3989_v62 = vrot.slane %v3975_v54, %v6510_v47  ;;  %v4005_v63 = vrot.slane %v3991_v59, %v6510_v47  ;;  %v3982_v1 = vrot.slane %v3974_v60, %v6510_v47  ;;  %v3998_v2 = vrot.slane %v3990_v61, %v6510_v47 }
 0xc65   : > { %v4008_v3 = vcombine.low %v3989_v62, %v4005_v63  ;;  %v4007_v4 = vcombine.high %v3982_v1, %v3998_v2  ;;  %v4006_v5 = vcombine.low %v3982_v1, %v3998_v2  ;;  %v4009_v43 = vcombine.high %v3989_v62, %v4005_v63 }
 0xc67   : > { %4015 = vrot.lane.b32.xlu1 %v4008_v3, %s5989_s18  ;;  %4011 = vrot.lane.b32.xlu0 %v4007_v4, %s5990_s13  ;;  %s4684_s18 = sshll.u32 %s6404_s15, 3  ;;  %v4754_v4 = vld [vmem:[%s7016_s9] ss:$0 sm:$0xff]  ;;  %s4757_s13 = sshll.u32 %s7004_s16, 7 }
 0xc68   : > { %s4313_s7 = scalar_lea.hbm %s7018_s6, %s4757_s13  ;;  %s5814_s9 = scalar_lea.vmem %s5813_s10, 256 }
 0xc6b   : > { %4019 = vrot.lane.b32.xlu1 %v4009_v43, %s5991_s8  ;;  %v4755_v43 = vld [vmem:[%s7017_s5] ss:$0 sm:$0xff]  ;;  %s1293_s8 = scalar_lea.vmem [#allocation33], %s4684_s18 }
 0xc6c   : > { %s4315_s19 = sshll.u32 %s1293_s8, 4  ;;  %s4316_s19 = int_to_ptr.vmem [resolvable:$true] %s4315_s19 }
 0xc6d   : > { %s5808_s12 = scalar_lea.vmem %s4316_s19, 128  ;;  %p5815_p5 = scmp.lt.s32.totalorder %s4316_s19, %s5813_s10 }
 0xc6e   : > { %p5809_p8 = scmp.ne.s32.totalorder %s4316_s19, %s5808_s12  ;;  %p5816_p11 = scmp.lt.s32.totalorder %s5814_s9, %s5808_s12 }
 0xc70   : > { %p5810_p13 = pnand %p5809_p8, %p7019_p10  ;;  %p5817_p9 = por %p5816_p11, %p5815_p5 }
 0xc72   : > { %p5811_p7 = pneg %p5810_p13 }
 0xc74   : > { %p5818_p12 = pnand %p5817_p9, %p5811_p7 }
 0xcd9   : > { %v4016_v6 = vpop.permute.xlu1 %4015  ;;  %v4012_v50 = vpop.permute.xlu0 %4011 }
 0xcda   : > { %v4022_v57 = vsel %vm2544_vm3, %v4006_v5, %v4012_v50 }
 0xcdb   : > { %v4023_v8 = vsel %vm3111_vm5, %v4022_v57, %v4016_v6 }
 0xcdd   : > { %v4020_v7 = vpop.permute.xlu1 %4019 }
 0xcde   : > { %v4024_v47 = vsel %vm3113_vm6, %v4023_v8, %v4020_v7 }
 0xcdf   : > { %v4025_v51 = vpack.c.bf16 %v4024_v47, %v4024_v47 }
 0xce1   : > { %4981 = vmatmul.mubr.msk.bf16.vlgmr.msra.gmra.mxu1 %vm1339_vm1, %v4025_v51 }
 0xce2   : > { %5000 = vmatprep.mubr.msk.bf16.mxu1 %vm5982_vm0, %v5981_v0 }
 0xda1   : > { %v4081_v9 = vpop.f32.mrf.mxu1 }
 0xda2   : > { %v4082_v10 = vadd.f32 %v4738_v56, %v4081_v9 }
 0xda3   : > { %v4982_v12 = vpop.f32.mrf.mxu1 }
 0xda4   : > { %v4087_v14 = vadd.f32 %v4082_v10, %v6702_v34  ;;  %v5294_v34 = vld [vmem:[%s7011_s2 + $0x18] sm:$0xff]  }
 0xda5   : > { %v4084_v15 = vpop.f32.mrf.mxu1  ;;  %4993 = vmatpush3.bf16.msra.mxu1 %v5294_v34 }
 0xda6   : > { %v4090_v16 = vsel %vm1339_vm1, %v4087_v14, 0.0  ;;  %4994 = vmatprep.subr.bf16.mxu1 %v5981_v0 }
 0xda7   : > { %4091 = vadd.xlane.f32.xlu0 %v4090_v16  ;;  %v4983_v13 = vpop.f32.mrf.mxu1 }
 0xda9   : > { %4995 = vmatpush3.bf16.msra.mxu1 %v5295_v25 }
 0xdaa   : > { %4996 = vmatprep.subr.bf16.mxu1 %v5981_v0 }
 0xdad   : > { %4997 = vmatpush3.bf16.msra.mxu1 %v5296_v21 }
 0xdae   : > { %4998 = vmatprep.subr.bf16.mxu1 %v5981_v0 }
 0xdb1   : > { %4999 = vmatpush3.bf16.msra.mxu1 %v5297_v37 }
 0xe30   : > { %v4092_v17 = vpop.xlane.xlu0 %4091 }
 0xe31   : > { %v4093_v18 = vmul.f32 0.03125, %v4092_v17 }
 0xe33   : > { %v4094_v19 = vsub.f32 %v4087_v14, %v4093_v18 }
 0xe35   : > { %v4095_v20 = vmul.f32 %v4094_v19, %v4094_v19 }
 0xe37   : > { %v4096_v22 = vsel %vm1339_vm1, %v4095_v20, 0.0 }
 0xe38   : > { %4097 = vadd.xlane.f32.xlu1 %v4096_v22 }
 0xec1   : > { %v4098_v26 = vpop.xlane.xlu1 %4097 }
 0xec2   : > { %v4099_v27 = vmul.f32 0.03125, %v4098_v26 }
 0xec4   : > { %v4100_v28 = vadd.f32 1e-10, %v4099_v27 }
 0xec6   : > { %5332 = vrsqrt.f32 %v4100_v28 }
 0xed3   : > { %v5333_v29 = vpop.eup %5332 }
 0xed4   : > { %v4102_v32 = vmul.f32 %v5333_v29, %v4094_v19 }
 0xed6   : > { %v4109_v11 = vmul.f32 %v4742_v30, %v4102_v32 }
 0xed8   : > { %v4116_v36 = vadd.f32 %v4743_v35, %v4109_v11 }
 0xeda   : > { %v4117_v33 = vpack.c.bf16 %v4116_v36, %v4116_v36 }
 0xedc   : > { %4989 = vmatmul.mubr.msk.bf16.vlgmr.msra.gmra.mxu0 %vm1339_vm1, %v4117_v33 }
 0xf9c   : > { %v4178_v55 = vpop.f32.mrf.mxu0 }
 0xf9d   : > { %v4179_v31 = vadd.f32 %v4744_v38, %v4178_v55 }
 0xf9e   : > { %v4990_v39 = vpop.f32.mrf.mxu0 }
 0xf9f   : > { %v4184_v40 = vmax.f32 %v4179_v31, 0.0 }
 0xfa0   : > { %v4181_v41 = vpop.f32.mrf.mxu0 }
 0xfa1   : > { %v4185_v42 = vpack.c.bf16 %v4184_v40, %v4184_v40 }
 0xfa2   : > { %v4991_v44 = vpop.f32.mrf.mxu0 }
 0xfa3   : > { %5001 = vmatmul.mubr.msk.bf16.vlgmr.msra.gmra.mxu1 %vm4225_vm7, %v4185_v42 }
0x1063   : > { %v4263_v46 = vpop.f32.mrf.mxu1 }
0x1064   : > { %v4264_v48 = vadd.f32 %v4748_v45, %v4263_v46 }
0x1065   : > { %v5002_v58 = vpop.f32.mrf.mxu1 }
0x1066   : > { %v4269_v49 = vadd.f32 %v4264_v48, %v4116_v36 }
0x1067   : > { %v4266_v52 = vpop.f32.mrf.mxu1 }
0x1068   : > { %v4272_v0 = vsel %vm1339_vm1, %v4269_v49, 0.0 }
0x1069   : > { %4273 = vadd.xlane.f32.xlu0 %v4272_v0  ;;  %v5003_v53 = vpop.f32.mrf.mxu1 }
0x10f2   : > { %v4274_v54 = vpop.xlane.xlu0 %4273 }
0x10f3   : > { %v4275_v59 = vmul.f32 0.03125, %v4274_v54 }
0x10f5   : > { %v4276_v60 = vsub.f32 %v4269_v49, %v4275_v59 }
0x10f7   : > { %v4277_v61 = vmul.f32 %v4276_v60, %v4276_v60 }
0x10f9   : > { %v4278_v62 = vsel %vm1339_vm1, %v4277_v61, 0.0 }
0x10fa   : > { %4279 = vadd.xlane.f32.xlu0 %v4278_v62 }
0x1183   : > { %v4280_v63 = vpop.xlane.xlu0 %4279 }
0x1184   : > { %v4281_v1 = vmul.f32 0.03125, %v4280_v63 }
0x1186   : > { %v4282_v2 = vadd.f32 1e-10, %v4281_v1 }
0x1188   : > { %5334 = vrsqrt.f32 %v4282_v2 }
0x1195   : > { %v5335_v3 = vpop.eup %5334 }
0x1196   : > { %v4284_v5 = vmul.f32 %v5335_v3, %v4276_v60 }
0x1198   : > { %v4291_v6 = vmul.f32 %v4754_v4, %v4284_v5 }
0x119a   : > { %v4298_v50 = vadd.f32 %v4755_v43, %v4291_v6 }
0x119c   : > { %4299 = vst.msk [vmem:[%s1293_s8] sm:$0xff] %vm1339_vm1, %v4298_v50 }
0x119d   : > { %5821 = shalt.err (!%p5818_p12)
}
0x119e   : > { %s5822_s16 = scalar_lea.hbm %s4313_s7, 128  ;;  %s5826_s15 = scalar_lea.hbm %s7018_s6, 256 }
0x119f   : > { %p5823_p3 = scmp.ne.s32.totalorder %s4313_s7, %s5822_s16  ;;  %p5827_p6 = scmp.lt.s32.totalorder %s4313_s7, %s7018_s6 }
0x11a0   : > { %p5828_p0 = scmp.lt.s32.totalorder %s5826_s15, %s5822_s16 }
0x11a1   : > { %p5824_p1 = pnand %p5823_p3, %p7019_p10 }
0x11a2   : > { %p5829_p4 = por %p5828_p0, %p5827_p6 }
0x11a3   : > { %p5825_p2 = pneg %p5824_p1 }
0x11a5   : > { %p5830_p8 = pnand %p5829_p4, %p5825_p2 }
0x11a7   : > { %5833 = shalt.err (!%p5830_p8)
}
0x11a8   : > { %5072 = dma.vmem_to_hbm [thread:$0]  (%p7019_p10), %s4316_s19, 128, %s4313_s7, %s4301_s26  }
0x11a9 PF: > { %s4327_s5 = sand.u32 1, %s5908_s22   ;;  %p7020_p13 = scmp.ne.s32.totalorder %s6983_s3, 0 }
0x11aa   : > { %p7021_p7 = scmp.ge.s32.totalorder %s5928_s1, 2  ;;  %s4328_s18 = scalar_lea.sflag [#allocation6], %s4327_s5 }
0x11ac   : > { %p5131_p5 = pnand %p7021_p7, %p7020_p13 }
0x11ae   : > { %p5132_p11 = pneg %p5131_p5 }
0x11b0   : > { %5903 = dma.done.wait (%p5132_p11), %s4328_s18, 128  }
0x11b1   : > { %5905 = vsyncadd (%p5132_p11), %s4328_s18, 4294967168  ;;  %s90_s1 = sadd.s32 1, %s5928_s1   ;;  %s7022_s22 = smov %s5912_s23 }
0x11b2   : > { %p87_p9 = scmp.ge.s32.totalorder %s90_s1, 4   ;;  %s7023_s23 = smov %s5916_s0 }
0x11b3   : > { %s7024_s0 = smov %s6345_s17  ;;  %s7025_s26 = smov %s5924_s28 }
0x11b4   : > { %s7026_s28 = smov %s7028_s24  ;;  %89 = sbr.rel (!%p87_p9) target bundleno = 79 (0x4f), region = 314 }
0x11b9   :  { %4333 = vsyncpa [#allocation5], 1 }
0x11ba   :  { %4335 = vsyncpa [#allocation5 + $0x1], 1 }
0x11bb   :  { %4336 = vsyncpa [#allocation8], 1 }
0x11bc   :  { %4338 = vsyncpa [#allocation8 + $0x1], 1 }
0x11bd   :  { %4339 = vsyncpa [#allocation11], 1 }
0x11be   :  { %4340 = vsyncpa [#allocation14], 1 }
0x11bf   :  { %4341 = vsyncpa [#allocation17], 1 }
0x11c0   :  { %4342 = vsyncpa [#allocation20], 1 }
0x11c1   :  { %4343 = vsyncpa [#allocation23], 1 }
0x11c2   :  { %4344 = vsyncpa [#allocation26], 1 }
0x11c3   :  { %4345 = vsyncpa [#allocation29], 1 }
0x11c4   :  { %4346 = vsyncpa [#allocation32], 1 }
0x11c5   :  { %4347 = vsyncpa [#allocation6], 1 }
0x11c6   :  { %4349 = vsyncpa [#allocation6 + $0x1], 1 }

</bundles_post_ra>
